<compile_context>
chip_gen: v5e
topology: v5e:2x2
jax: 0.10.0
libtpu: 0.0.40
codegen_flags: <defaults>
</compile_context>

<pallas_src>
import functools

import jax
import jax.numpy as jnp
from jax import lax
from jax.experimental import pallas as pl
from jax.experimental.pallas import tpu as pltpu


def _round_up(x, m):
    return (x + m - 1) // m * m


# ----------------------------------------------------------------------------
# Fused (matmul + bias + optional ReLU) kernel, batched over a leading
# "branch" axis.  Operands bf16 (native MXU path), accumulation/epilogue f32.
#   x_ref: (1, bm, Kp)  bf16 im2col slab tile
#   w_ref: (1, Kp, Cp)  bf16 weights with BN scale folded in
#   b_ref: (1, 1, Cp)   f32 folded bias (conv bias + BN shift)
#   o_ref: (1, bm, Cp)
# ----------------------------------------------------------------------------
def _fused_matmul_kernel(x_ref, w_ref, b_ref, o_ref, *, apply_relu):
    y = jnp.dot(x_ref[0], w_ref[0], preferred_element_type=jnp.float32)
    y = y + b_ref[0]
    if apply_relu:
        y = jnp.maximum(y, 0.0)
    o_ref[0] = y.astype(o_ref.dtype)


def _fused_matmul_batched(x3d, w3d, b3d, *, apply_relu, out_dtype,
                          block_m=256):
    """out[b] = act(x3d[b] @ w3d[b] + b3d[b]) for every branch b."""
    B, M, Kp = x3d.shape
    Cp = w3d.shape[-1]

    bm = min(block_m, _round_up(M, 8))
    Mp = _round_up(M, bm)
    if Mp != M:
        x3d = jnp.pad(x3d, ((0, 0), (0, Mp - M), (0, 0)))
    grid = (B, Mp // bm)

    cost = pl.CostEstimate(
        flops=2 * B * Mp * Kp * Cp,
        transcendentals=0,
        bytes_accessed=int(B * (Mp * Kp * x3d.dtype.itemsize
                                + Kp * Cp * w3d.dtype.itemsize
                                + Mp * Cp * jnp.dtype(out_dtype).itemsize
                                + Cp * 4)),
    )

    kernel = functools.partial(_fused_matmul_kernel, apply_relu=apply_relu)
    out = pl.pallas_call(
        kernel,
        out_shape=jax.ShapeDtypeStruct((B, Mp, Cp), out_dtype),
        grid_spec=pltpu.PrefetchScalarGridSpec(
            num_scalar_prefetch=0,
            grid=grid,
            in_specs=[
                pl.BlockSpec((1, bm, Kp), lambda b, i: (b, i, 0)),
                pl.BlockSpec((1, Kp, Cp), lambda b, i: (b, 0, 0)),
                pl.BlockSpec((1, 1, Cp), lambda b, i: (b, 0, 0)),
            ],
            out_specs=pl.BlockSpec((1, bm, Cp), lambda b, i: (b, i, 0)),
        ),
        compiler_params=pltpu.CompilerParams(
            dimension_semantics=("parallel", "parallel")),
        cost_estimate=cost,
    )(x3d, w3d, b3d)
    return out[:, :M, :]


# ----------------------------------------------------------------------------
# conv1 (1x1, 1280 -> 64) + bn1 + ReLU with the concat fused away:
#   x1_ref:   (bm, 256)     bf16   aspp1 output tile
#   aspp_ref: (3, bm, 256)  bf16   aspp2/3/4 output tiles
#   w_ref:    (4, 256, Cp)  bf16   conv1 weights (BN1 scale folded), per branch
#   b_ref:    (1, Cp)       f32    BN1 shift
#   gap_ref:  (bm, Cp)      f32    per-row GAP-branch contribution
# ----------------------------------------------------------------------------
def _conv1_kernel(x1_ref, aspp_ref, w_ref, b_ref, gap_ref, o_ref):
    acc = jnp.dot(x1_ref[...], w_ref[0], preferred_element_type=jnp.float32)
    acc += jnp.dot(aspp_ref[0], w_ref[1], preferred_element_type=jnp.float32)
    acc += jnp.dot(aspp_ref[1], w_ref[2], preferred_element_type=jnp.float32)
    acc += jnp.dot(aspp_ref[2], w_ref[3], preferred_element_type=jnp.float32)
    acc = acc + b_ref[...] + gap_ref[...]
    o_ref[...] = jnp.maximum(acc, 0.0).astype(o_ref.dtype)


def _conv1_fused(x1, aspp_out, w4, shift, gap_rows, *, out_dtype,
                 block_m=256):
    M, C1 = x1.shape
    Cp = w4.shape[-1]
    bm = min(block_m, _round_up(M, 8))
    Mp = _round_up(M, bm)
    if Mp != M:
        x1 = jnp.pad(x1, ((0, Mp - M), (0, 0)))
        aspp_out = jnp.pad(aspp_out, ((0, 0), (0, Mp - M), (0, 0)))
        gap_rows = jnp.pad(gap_rows, ((0, Mp - M), (0, 0)))
    grid = (Mp // bm,)

    out = pl.pallas_call(
        _conv1_kernel,
        out_shape=jax.ShapeDtypeStruct((Mp, Cp), out_dtype),
        grid_spec=pltpu.PrefetchScalarGridSpec(
            num_scalar_prefetch=0,
            grid=grid,
            in_specs=[
                pl.BlockSpec((bm, C1), lambda i: (i, 0)),
                pl.BlockSpec((3, bm, C1), lambda i: (0, i, 0)),
                pl.BlockSpec((4, C1, Cp), lambda i: (0, 0, 0)),
                pl.BlockSpec((1, Cp), lambda i: (0, 0)),
                pl.BlockSpec((bm, Cp), lambda i: (i, 0)),
            ],
            out_specs=pl.BlockSpec((bm, Cp), lambda i: (i, 0)),
        ),
        compiler_params=pltpu.CompilerParams(
            dimension_semantics=("parallel",)),
    )(x1, aspp_out, w4, shift.reshape(1, Cp), gap_rows)
    return out[:M]


# ----------------------------------------------------------------------------
# Helpers: BN folding and im2col (built in the jitted wrapper, lane-dense).
# ----------------------------------------------------------------------------
def _fold_bn(w_oihw, conv_bias, bn_params, eps=1e-5):
    Cout, Cin, KH, KW = w_oihw.shape
    if bn_params is not None:
        gamma, beta, mean, var = bn_params
        scale = gamma / jnp.sqrt(var + eps)
        shift = beta - mean * scale
    else:
        scale = jnp.ones((Cout,), jnp.float32)
        shift = jnp.zeros((Cout,), jnp.float32)
    if conv_bias is not None:
        shift = shift + conv_bias * scale
    w2d = jnp.transpose(w_oihw, (2, 3, 1, 0)).reshape(KH * KW * Cin, Cout)
    return w2d * scale[None, :], shift


def _im2col(x_nhwc, KH, KW, padding, dilation):
    N, H, W, Cin = x_nhwc.shape
    Ho = H + 2 * padding - dilation * (KH - 1)
    Wo = W + 2 * padding - dilation * (KW - 1)
    if KH == 1 and KW == 1 and padding == 0:
        cols = x_nhwc
    else:
        xp = jnp.pad(x_nhwc,
                     ((0, 0), (padding, padding), (padding, padding), (0, 0)))
        taps = [xp[:, kh * dilation: kh * dilation + Ho,
                      kw * dilation: kw * dilation + Wo, :]
                for kh in range(KH) for kw in range(KW)]
        cols = jnp.concatenate(taps, axis=-1)
    return cols.reshape(N * Ho * Wo, KH * KW * Cin), (N, Ho, Wo)


def _conv_bn_act(x_nhwc, w_oihw, conv_bias, bn_params, *, padding, dilation,
                 apply_relu, out_dtype=jnp.bfloat16):
    """Conv2d(stride 1, dilated) + BN(eval) + optional ReLU via fused matmul."""
    Cout, Cin, KH, KW = w_oihw.shape
    w2d, shift = _fold_bn(w_oihw, conv_bias, bn_params)
    x2d, (N, Ho, Wo) = _im2col(x_nhwc, KH, KW, padding, dilation)

    K = KH * KW * Cin
    Kp = _round_up(K, 128)
    Cp = _round_up(Cout, 128)
    if Kp != K:
        x2d = jnp.pad(x2d, ((0, 0), (0, Kp - K)))
        w2d = jnp.pad(w2d, ((0, Kp - K), (0, 0)))
    if Cp != Cout:
        w2d = jnp.pad(w2d, ((0, 0), (0, Cp - Cout)))
        shift = jnp.pad(shift, (0, Cp - Cout))

    y = _fused_matmul_batched(
        x2d[None].astype(jnp.bfloat16),
        w2d[None].astype(jnp.bfloat16),
        shift.reshape(1, 1, Cp).astype(jnp.float32),
        apply_relu=apply_relu, out_dtype=out_dtype)
    return y[0, :, :Cout].reshape(N, Ho, Wo, Cout)


# ----------------------------------------------------------------------------
# ResBlk forward (conv_in+BN+ReLU -> ASPP -> conv_out+BN), one jit.
# ----------------------------------------------------------------------------
def _resblk_forward(x_nchw, p):
    f32 = jnp.float32
    x = jnp.transpose(x_nchw, (0, 2, 3, 1)).astype(f32)     # NCHW -> NHWC
    N, H, W, _ = x.shape

    # conv_in + bn_in + relu_in
    x = _conv_bn_act(x, p["conv_in_w"], p["conv_in_b"], p["bn_in"],
                     padding=1, dilation=1, apply_relu=True)   # (N,H,W,64) bf16

    # ---- ASPP (dec_att) -----------------------------------------------------
    # aspp1: 1x1 conv.
    x1 = _conv_bn_act(x, p["aspp1_w"], None, p["aspp1_bn"],
                      padding=0, dilation=1, apply_relu=True)  # (N,H,W,256) bf16

    # aspp2/3/4: identical M/K/Cout -> one batched pallas_call over branches.
    slabs, w_list, b_list = [], [], []
    for name, d in (("aspp2", 6), ("aspp3", 12), ("aspp4", 18)):
        w2d, shift = _fold_bn(p[name + "_w"], None, p[name + "_bn"])
        slab, _ = _im2col(x, 3, 3, d, d)
        slabs.append(slab)
        w_list.append(w2d)
        b_list.append(shift)
    K = 9 * 64
    Kp = _round_up(K, 128)
    xb = jnp.stack(slabs, axis=0)
    xb = jnp.pad(xb, ((0, 0), (0, 0), (0, Kp - K))).astype(jnp.bfloat16)
    wb = jnp.stack(w_list, axis=0)
    wb = jnp.pad(wb, ((0, 0), (0, Kp - K), (0, 0))).astype(jnp.bfloat16)
    bb = jnp.stack(b_list, axis=0).reshape(3, 1, 256).astype(f32)
    aspp_out = _fused_matmul_batched(xb, wb, bb, apply_relu=True,
                                     out_dtype=jnp.bfloat16)   # (3, M, 256)

    M = N * H * W

    # GAP branch: pool -> 1x1 conv + BN + ReLU (tiny; plain jnp.dot) -> the
    # bilinear upsample of a 1x1 map with align_corners=True is a constant
    # broadcast, so its conv1 contribution is a per-image additive bias.
    gap = jnp.mean(x.astype(f32), axis=(1, 2))                 # (N, 64)
    w_gap2d, shift_gap = _fold_bn(p["gap_w"], None, p["gap_bn"])
    x5 = jnp.maximum(gap @ w_gap2d + shift_gap, 0.0)           # (N, 256)

    # conv1 (1x1, 1280 -> 64) + bn1 + relu, concat fused away.
    w_c1, shift_c1 = _fold_bn(p["conv1_w"], None, p["bn1"])    # (1280, 64)
    gap_contrib = x5 @ w_c1[1024:1280, :]                      # (N, 64)
    Cp1 = 128
    gap_rows = jnp.broadcast_to(gap_contrib[:, None, :], (N, H * W, 64))
    gap_rows = gap_rows.reshape(M, 64)
    gap_rows = jnp.pad(gap_rows, ((0, 0), (0, Cp1 - 64))).astype(f32)
    w4 = w_c1[:1024].reshape(4, 256, 64)
    w4 = jnp.pad(w4, ((0, 0), (0, 0), (0, Cp1 - 64))).astype(jnp.bfloat16)
    shift_c1 = jnp.pad(shift_c1, (0, Cp1 - 64)).astype(f32)
    y = _conv1_fused(x1.reshape(M, 256).astype(jnp.bfloat16), aspp_out,
                     w4, shift_c1, gap_rows, out_dtype=jnp.bfloat16)
    x = y[:, :64].reshape(N, H, W, 64)
    # TODO(synk): Dropout(0.5) omitted (identity in eval mode).

    # conv_out + bn_out (no trailing ReLU); final output in f32.
    x = _conv_bn_act(x, p["conv_out_w"], p["conv_out_b"], p["bn_out"],
                     padding=1, dilation=1, apply_relu=False,
                     out_dtype=jnp.float32)

    return jnp.transpose(x, (0, 3, 1, 2))                      # back to NCHW


resblk_forward = jax.jit(_resblk_forward)


# ----------------------------------------------------------------------------
# Pure-JAX reference (lax.conv, f32, highest precision) for correctness.
# ----------------------------------------------------------------------------
def _ref_conv_bn_act(x, w, b, bn, padding, dilation, relu, eps=1e-5):
    y = lax.conv_general_dilated(
        x, w, window_strides=(1, 1),
        padding=((padding, padding), (padding, padding)),
        rhs_dilation=(dilation, dilation),
        dimension_numbers=("NCHW", "OIHW", "NCHW"),
        precision=lax.Precision.HIGHEST)
    if b is not None:
        y = y + b[None, :, None, None]
    if bn is not None:
        gamma, beta, mean, var = bn
        scale = gamma / jnp.sqrt(var + eps)
        y = (y * scale[None, :, None, None]
             + (beta - mean * scale)[None, :, None, None])
    if relu:
        y = jnp.maximum(y, 0.0)
    return y


def resblk_reference(x, p):
    x = _ref_conv_bn_act(x, p["conv_in_w"], p["conv_in_b"], p["bn_in"], 1, 1, True)
    x1 = _ref_conv_bn_act(x, p["aspp1_w"], None, p["aspp1_bn"], 0, 1, True)
    x2 = _ref_conv_bn_act(x, p["aspp2_w"], None, p["aspp2_bn"], 6, 6, True)
    x3 = _ref_conv_bn_act(x, p["aspp3_w"], None, p["aspp3_bn"], 12, 12, True)
    x4 = _ref_conv_bn_act(x, p["aspp4_w"], None, p["aspp4_bn"], 18, 18, True)
    gap = jnp.mean(x, axis=(2, 3), keepdims=True)
    x5 = _ref_conv_bn_act(gap, p["gap_w"], None, p["gap_bn"], 0, 1, True)
    x5 = jnp.broadcast_to(x5, (x4.shape[0], x5.shape[1]) + x4.shape[2:])
    xc = jnp.concatenate([x1, x2, x3, x4, x5], axis=1)
    x = _ref_conv_bn_act(xc, p["conv1_w"], None, p["bn1"], 0, 1, True)
    x = _ref_conv_bn_act(x, p["conv_out_w"], p["conv_out_b"], p["bn_out"], 1, 1, False)
    return x


# ----------------------------------------------------------------------------
# Deterministic parameter construction (matches PyTorch module shapes).
# ----------------------------------------------------------------------------
def init_params(key, channel_in, channel_out):
    keys = iter(jax.random.split(key, 48))

    def conv_w(shape):
        fan_in = shape[1] * shape[2] * shape[3]
        return (jax.random.normal(next(keys), shape, jnp.float32)
                / jnp.sqrt(jnp.float32(fan_in)))

    def bn(c):
        return (1.0 + 0.1 * jax.random.normal(next(keys), (c,), jnp.float32),
                0.1 * jax.random.normal(next(keys), (c,), jnp.float32),
                0.1 * jax.random.normal(next(keys), (c,), jnp.float32),
                jnp.abs(jax.random.normal(next(keys), (c,), jnp.float32)) + 0.5)

    p = {}
    p["conv_in_w"] = conv_w((64, channel_in, 3, 3))
    p["conv_in_b"] = 0.1 * jax.random.normal(next(keys), (64,), jnp.float32)
    p["bn_in"] = bn(64)
    p["aspp1_w"] = conv_w((256, 64, 1, 1)); p["aspp1_bn"] = bn(256)
    p["aspp2_w"] = conv_w((256, 64, 3, 3)); p["aspp2_bn"] = bn(256)
    p["aspp3_w"] = conv_w((256, 64, 3, 3)); p["aspp3_bn"] = bn(256)
    p["aspp4_w"] = conv_w((256, 64, 3, 3)); p["aspp4_bn"] = bn(256)
    p["gap_w"] = conv_w((256, 64, 1, 1)); p["gap_bn"] = bn(256)
    p["conv1_w"] = conv_w((64, 256 * 5, 1, 1)); p["bn1"] = bn(64)
    p["conv_out_w"] = conv_w((channel_out, 64, 3, 3))
    p["conv_out_b"] = 0.1 * jax.random.normal(next(keys), (channel_out,), jnp.float32)
    p["bn_out"] = bn(channel_out)
    return p


if __name__ == "__main__":
    # ResBlk(channel_in=4, channel_out=4) on a small input.
    N, Cin, H, W = 2, 4, 16, 16
    Cout = 4

    key = jax.random.PRNGKey(0)
    kx, kp = jax.random.split(key)
    x = jax.random.normal(kx, (N, Cin, H, W), jnp.float32)
    params = init_params(kp, Cin, Cout)

    out = resblk_forward(x, params)
    out = jax.block_until_ready(out)

    ref = resblk_reference(x, params)
    assert out.shape == (N, Cout, H, W), out.shape
    # bf16 MXU operands (f32 accumulation) => loosened tolerance vs the
    # f32/HIGHEST reference.
    max_diff = float(jnp.max(jnp.abs(out - ref)))
    assert jnp.allclose(out, ref, atol=0.15, rtol=0.1), (
        "mismatch vs reference, max abs diff = %s" % max_diff)

    print("KERNEL_OK")
</pallas_src>

<mosaic_0001>
module attributes {stable_mosaic.version = 11 : i64} {
  func.func @_fused_matmul_kernel(%arg0: i32, %arg1: i32, %arg2: memref<1x256x128xbf16, #tpu.memory_space<vmem>>, %arg3: memref<1x128x128xbf16, #tpu.memory_space<vmem>>, %arg4: memref<1x1x128xf32, #tpu.memory_space<vmem>>, %arg5: memref<1x256x128xbf16, #tpu.memory_space<vmem>>) attributes {dimension_semantics = [#tpu.dimension_semantics<parallel>, #tpu.dimension_semantics<parallel>], iteration_bounds = array<i64: 1, 2>, scalar_prefetch = 0 : i64, scratch_operands = 0 : i64, tpu.core_type = #tpu.core_type<tc>, window_params = [{transform_indices = @transform_0, window_bounds = array<i64: 1, 256, 128>}, {transform_indices = @transform_1, window_bounds = array<i64: 1, 128, 128>}, {transform_indices = @transform_2, window_bounds = array<i64: 1, 1, 128>}, {transform_indices = @transform_3, window_bounds = array<i64: 1, 256, 128>}]} {
    %c0 = arith.constant 0 : index
    %c0_0 = arith.constant 0 : index
    %c0_1 = arith.constant 0 : index
    %0 = vector.load %arg2[%c0, %c0_0, %c0_1] : memref<1x256x128xbf16, #tpu.memory_space<vmem>>, vector<1x256x128xbf16>
    %1 = vector.shape_cast %0 : vector<1x256x128xbf16> to vector<256x128xbf16>
    %c0_2 = arith.constant 0 : index
    %c0_3 = arith.constant 0 : index
    %c0_4 = arith.constant 0 : index
    %2 = vector.load %arg3[%c0_2, %c0_3, %c0_4] : memref<1x128x128xbf16, #tpu.memory_space<vmem>>, vector<1x128x128xbf16>
    %3 = vector.shape_cast %2 : vector<1x128x128xbf16> to vector<128x128xbf16>
    %cst = arith.constant dense<0.000000e+00> : vector<256x128xf32>
    %4 = tpu.matmul %1, %3, %cst {dimension_numbers = #tpu.dot_dimension_numbers<[1], [0], [0], [1], [0, 0, 1, 1], [], []>} : vector<256x128xbf16>, vector<128x128xbf16>, vector<256x128xf32> -> vector<256x128xf32>
    %c0_5 = arith.constant 0 : index
    %c0_6 = arith.constant 0 : index
    %c0_7 = arith.constant 0 : index
    %5 = vector.load %arg4[%c0_5, %c0_6, %c0_7] : memref<1x1x128xf32, #tpu.memory_space<vmem>>, vector<1x1x128xf32>
    %6 = vector.shape_cast %5 : vector<1x1x128xf32> to vector<1x128xf32>
    %7 = vector.broadcast %6 : vector<1x128xf32> to vector<256x128xf32>
    %8 = arith.addf %4, %7 : vector<256x128xf32>
    %cst_8 = arith.constant 0.000000e+00 : f32
    %9 = vector.broadcast %cst_8 : f32 to vector<256x128xf32>
    %10 = arith.maximumf %8, %9 : vector<256x128xf32>
    %11 = arith.truncf %10 : vector<256x128xf32> to vector<256x128xbf16>
    %c0_9 = arith.constant 0 : index
    %c0_10 = arith.constant 0 : index
    %c0_11 = arith.constant 0 : index
    %12 = vector.load %arg5[%c0_9, %c0_10, %c0_11] : memref<1x256x128xbf16, #tpu.memory_space<vmem>>, vector<1x256x128xbf16>
    %13 = vector.shape_cast %12 : vector<1x256x128xbf16> to vector<256x128xbf16>
    %14 = vector.shape_cast %11 : vector<256x128xbf16> to vector<1x256x128xbf16>
    tpu.vector_store %arg5[%c0_9, %c0_10, %c0_11], %14 {strides = array<i32>} : memref<1x256x128xbf16, #tpu.memory_space<vmem>>, vector<1x256x128xbf16>,
    return
  }
  func.func @transform_0(%arg0: i32, %arg1: i32) -> (i32, i32, i32) {
    %c0_i32 = arith.constant 0 : i32
    %c0_i32_0 = arith.constant 0 : i32
    return %arg0, %arg1, %c0_i32 : i32, i32, i32
  }
  func.func @transform_1(%arg0: i32, %arg1: i32) -> (i32, i32, i32) {
    %c0_i32 = arith.constant 0 : i32
    %c0_i32_0 = arith.constant 0 : i32
    %c0_i32_1 = arith.constant 0 : i32
    return %arg0, %c0_i32, %c0_i32_0 : i32, i32, i32
  }
  func.func @transform_2(%arg0: i32, %arg1: i32) -> (i32, i32, i32) {
    %c0_i32 = arith.constant 0 : i32
    %c0_i32_0 = arith.constant 0 : i32
    %c0_i32_1 = arith.constant 0 : i32
    return %arg0, %c0_i32, %c0_i32_0 : i32, i32, i32
  }
  func.func @transform_3(%arg0: i32, %arg1: i32) -> (i32, i32, i32) {
    %c0_i32 = arith.constant 0 : i32
    %c0_i32_0 = arith.constant 0 : i32
    return %arg0, %arg1, %c0_i32 : i32, i32, i32
  }
}

module attributes {stable_mosaic.version = 11 : i64} {
  func.func @_fused_matmul_kernel(%arg0: i32, %arg1: i32, %arg2: memref<1x256x640xbf16, #tpu.memory_space<vmem>>, %arg3: memref<1x640x256xbf16, #tpu.memory_space<vmem>>, %arg4: memref<1x1x256xf32, #tpu.memory_space<vmem>>, %arg5: memref<1x256x256xbf16, #tpu.memory_space<vmem>>) attributes {dimension_semantics = [#tpu.dimension_semantics<parallel>, #tpu.dimension_semantics<parallel>], iteration_bounds = array<i64: 3, 2>, scalar_prefetch = 0 : i64, scratch_operands = 0 : i64, tpu.core_type = #tpu.core_type<tc>, window_params = [{transform_indices = @transform_0, window_bounds = array<i64: 1, 256, 640>}, {transform_indices = @transform_1, window_bounds = array<i64: 1, 640, 256>}, {transform_indices = @transform_2, window_bounds = array<i64: 1, 1, 256>}, {transform_indices = @transform_3, window_bounds = array<i64: 1, 256, 256>}]} {
    %c0 = arith.constant 0 : index
    %c0_0 = arith.constant 0 : index
    %c0_1 = arith.constant 0 : index
    %0 = vector.load %arg2[%c0, %c0_0, %c0_1] : memref<1x256x640xbf16, #tpu.memory_space<vmem>>, vector<1x256x640xbf16>
    %1 = vector.shape_cast %0 : vector<1x256x640xbf16> to vector<256x640xbf16>
    %c0_2 = arith.constant 0 : index
    %c0_3 = arith.constant 0 : index
    %c0_4 = arith.constant 0 : index
    %2 = vector.load %arg3[%c0_2, %c0_3, %c0_4] : memref<1x640x256xbf16, #tpu.memory_space<vmem>>, vector<1x640x256xbf16>
    %3 = vector.shape_cast %2 : vector<1x640x256xbf16> to vector<640x256xbf16>
    %cst = arith.constant dense<0.000000e+00> : vector<256x256xf32>
    %4 = tpu.matmul %1, %3, %cst {dimension_numbers = #tpu.dot_dimension_numbers<[1], [0], [0], [1], [0, 0, 1, 1], [], []>} : vector<256x640xbf16>, vector<640x256xbf16>, vector<256x256xf32> -> vector<256x256xf32>
    %c0_5 = arith.constant 0 : index
    %c0_6 = arith.constant 0 : index
    %c0_7 = arith.constant 0 : index
    %5 = vector.load %arg4[%c0_5, %c0_6, %c0_7] : memref<1x1x256xf32, #tpu.memory_space<vmem>>, vector<1x1x256xf32>
    %6 = vector.shape_cast %5 : vector<1x1x256xf32> to vector<1x256xf32>
    %7 = vector.broadcast %6 : vector<1x256xf32> to vector<256x256xf32>
    %8 = arith.addf %4, %7 : vector<256x256xf32>
    %cst_8 = arith.constant 0.000000e+00 : f32
    %9 = vector.broadcast %cst_8 : f32 to vector<256x256xf32>
    %10 = arith.maximumf %8, %9 : vector<256x256xf32>
    %11 = arith.truncf %10 : vector<256x256xf32> to vector<256x256xbf16>
    %c0_9 = arith.constant 0 : index
    %c0_10 = arith.constant 0 : index
    %c0_11 = arith.constant 0 : index
    %12 = vector.load %arg5[%c0_9, %c0_10, %c0_11] : memref<1x256x256xbf16, #tpu.memory_space<vmem>>, vector<1x256x256xbf16>
    %13 = vector.shape_cast %12 : vector<1x256x256xbf16> to vector<256x256xbf16>
    %14 = vector.shape_cast %11 : vector<256x256xbf16> to vector<1x256x256xbf16>
    tpu.vector_store %arg5[%c0_9, %c0_10, %c0_11], %14 {strides = array<i32>} : memref<1x256x256xbf16, #tpu.memory_space<vmem>>, vector<1x256x256xbf16>,
    return
  }
  func.func @transform_0(%arg0: i32, %arg1: i32) -> (i32, i32, i32) {
    %c0_i32 = arith.constant 0 : i32
    %c0_i32_0 = arith.constant 0 : i32
    return %arg0, %arg1, %c0_i32 : i32, i32, i32
  }
  func.func @transform_1(%arg0: i32, %arg1: i32) -> (i32, i32, i32) {
    %c0_i32 = arith.constant 0 : i32
    %c0_i32_0 = arith.constant 0 : i32
    %c0_i32_1 = arith.constant 0 : i32
    return %arg0, %c0_i32, %c0_i32_0 : i32, i32, i32
  }
  func.func @transform_2(%arg0: i32, %arg1: i32) -> (i32, i32, i32) {
    %c0_i32 = arith.constant 0 : i32
    %c0_i32_0 = arith.constant 0 : i32
    %c0_i32_1 = arith.constant 0 : i32
    return %arg0, %c0_i32, %c0_i32_0 : i32, i32, i32
  }
  func.func @transform_3(%arg0: i32, %arg1: i32) -> (i32, i32, i32) {
    %c0_i32 = arith.constant 0 : i32
    %c0_i32_0 = arith.constant 0 : i32
    return %arg0, %arg1, %c0_i32 : i32, i32, i32
  }
}

module attributes {stable_mosaic.version = 11 : i64} {
  func.func @_fused_matmul_kernel(%arg0: i32, %arg1: i32, %arg2: memref<1x256x128xbf16, #tpu.memory_space<vmem>>, %arg3: memref<1x128x256xbf16, #tpu.memory_space<vmem>>, %arg4: memref<1x1x256xf32, #tpu.memory_space<vmem>>, %arg5: memref<1x256x256xbf16, #tpu.memory_space<vmem>>) attributes {dimension_semantics = [#tpu.dimension_semantics<parallel>, #tpu.dimension_semantics<parallel>], iteration_bounds = array<i64: 1, 2>, scalar_prefetch = 0 : i64, scratch_operands = 0 : i64, tpu.core_type = #tpu.core_type<tc>, window_params = [{transform_indices = @transform_0, window_bounds = array<i64: 1, 256, 128>}, {transform_indices = @transform_1, window_bounds = array<i64: 1, 128, 256>}, {transform_indices = @transform_2, window_bounds = array<i64: 1, 1, 256>}, {transform_indices = @transform_3, window_bounds = array<i64: 1, 256, 256>}]} {
    %c0 = arith.constant 0 : index
    %c0_0 = arith.constant 0 : index
    %c0_1 = arith.constant 0 : index
    %0 = vector.load %arg2[%c0, %c0_0, %c0_1] : memref<1x256x128xbf16, #tpu.memory_space<vmem>>, vector<1x256x128xbf16>
    %1 = vector.shape_cast %0 : vector<1x256x128xbf16> to vector<256x128xbf16>
    %c0_2 = arith.constant 0 : index
    %c0_3 = arith.constant 0 : index
    %c0_4 = arith.constant 0 : index
    %2 = vector.load %arg3[%c0_2, %c0_3, %c0_4] : memref<1x128x256xbf16, #tpu.memory_space<vmem>>, vector<1x128x256xbf16>
    %3 = vector.shape_cast %2 : vector<1x128x256xbf16> to vector<128x256xbf16>
    %cst = arith.constant dense<0.000000e+00> : vector<256x256xf32>
    %4 = tpu.matmul %1, %3, %cst {dimension_numbers = #tpu.dot_dimension_numbers<[1], [0], [0], [1], [0, 0, 1, 1], [], []>} : vector<256x128xbf16>, vector<128x256xbf16>, vector<256x256xf32> -> vector<256x256xf32>
    %c0_5 = arith.constant 0 : index
    %c0_6 = arith.constant 0 : index
    %c0_7 = arith.constant 0 : index
    %5 = vector.load %arg4[%c0_5, %c0_6, %c0_7] : memref<1x1x256xf32, #tpu.memory_space<vmem>>, vector<1x1x256xf32>
    %6 = vector.shape_cast %5 : vector<1x1x256xf32> to vector<1x256xf32>
    %7 = vector.broadcast %6 : vector<1x256xf32> to vector<256x256xf32>
    %8 = arith.addf %4, %7 : vector<256x256xf32>
    %cst_8 = arith.constant 0.000000e+00 : f32
    %9 = vector.broadcast %cst_8 : f32 to vector<256x256xf32>
    %10 = arith.maximumf %8, %9 : vector<256x256xf32>
    %11 = arith.truncf %10 : vector<256x256xf32> to vector<256x256xbf16>
    %c0_9 = arith.constant 0 : index
    %c0_10 = arith.constant 0 : index
    %c0_11 = arith.constant 0 : index
    %12 = vector.load %arg5[%c0_9, %c0_10, %c0_11] : memref<1x256x256xbf16, #tpu.memory_space<vmem>>, vector<1x256x256xbf16>
    %13 = vector.shape_cast %12 : vector<1x256x256xbf16> to vector<256x256xbf16>
    %14 = vector.shape_cast %11 : vector<256x256xbf16> to vector<1x256x256xbf16>
    tpu.vector_store %arg5[%c0_9, %c0_10, %c0_11], %14 {strides = array<i32>} : memref<1x256x256xbf16, #tpu.memory_space<vmem>>, vector<1x256x256xbf16>,
    return
  }
  func.func @transform_0(%arg0: i32, %arg1: i32) -> (i32, i32, i32) {
    %c0_i32 = arith.constant 0 : i32
    %c0_i32_0 = arith.constant 0 : i32
    return %arg0, %arg1, %c0_i32 : i32, i32, i32
  }
  func.func @transform_1(%arg0: i32, %arg1: i32) -> (i32, i32, i32) {
    %c0_i32 = arith.constant 0 : i32
    %c0_i32_0 = arith.constant 0 : i32
    %c0_i32_1 = arith.constant 0 : i32
    return %arg0, %c0_i32, %c0_i32_0 : i32, i32, i32
  }
  func.func @transform_2(%arg0: i32, %arg1: i32) -> (i32, i32, i32) {
    %c0_i32 = arith.constant 0 : i32
    %c0_i32_0 = arith.constant 0 : i32
    %c0_i32_1 = arith.constant 0 : i32
    return %arg0, %c0_i32, %c0_i32_0 : i32, i32, i32
  }
  func.func @transform_3(%arg0: i32, %arg1: i32) -> (i32, i32, i32) {
    %c0_i32 = arith.constant 0 : i32
    %c0_i32_0 = arith.constant 0 : i32
    return %arg0, %arg1, %c0_i32 : i32, i32, i32
  }
}

module attributes {stable_mosaic.version = 11 : i64} {
  func.func @_conv1_kernel(%arg0: i32, %arg1: memref<256x256xbf16, #tpu.memory_space<vmem>>, %arg2: memref<3x256x256xbf16, #tpu.memory_space<vmem>>, %arg3: memref<4x256x128xbf16, #tpu.memory_space<vmem>>, %arg4: memref<1x128xf32, #tpu.memory_space<vmem>>, %arg5: memref<256x128xf32, #tpu.memory_space<vmem>>, %arg6: memref<256x128xbf16, #tpu.memory_space<vmem>>) attributes {dimension_semantics = [#tpu.dimension_semantics<parallel>], iteration_bounds = array<i64: 2>, scalar_prefetch = 0 : i64, scratch_operands = 0 : i64, tpu.core_type = #tpu.core_type<tc>, window_params = [{transform_indices = @transform_0, window_bounds = array<i64: 256, 256>}, {transform_indices = @transform_1, window_bounds = array<i64: 3, 256, 256>}, {pipeline_mode = #tpu.pipeline_mode<synchronous>, transform_indices = @transform_2, window_bounds = array<i64: 4, 256, 128>}, {pipeline_mode = #tpu.pipeline_mode<synchronous>, transform_indices = @transform_3, window_bounds = array<i64: 1, 128>}, {transform_indices = @transform_4, window_bounds = array<i64: 256, 128>}, {transform_indices = @transform_5, window_bounds = array<i64: 256, 128>}]} {
    %c0 = arith.constant 0 : index
    %c0_0 = arith.constant 0 : index
    %0 = vector.load %arg1[%c0, %c0_0] : memref<256x256xbf16, #tpu.memory_space<vmem>>, vector<256x256xbf16>
    %c0_1 = arith.constant 0 : index
    %c0_2 = arith.constant 0 : index
    %c0_3 = arith.constant 0 : index
    %1 = vector.load %arg3[%c0_1, %c0_2, %c0_3] : memref<4x256x128xbf16, #tpu.memory_space<vmem>>, vector<1x256x128xbf16>
    %2 = vector.shape_cast %1 : vector<1x256x128xbf16> to vector<256x128xbf16>
    %cst = arith.constant dense<0.000000e+00> : vector<256x128xf32>
    %3 = tpu.matmul %0, %2, %cst {dimension_numbers = #tpu.dot_dimension_numbers<[1], [0], [0], [1], [0, 0, 1, 1], [], []>} : vector<256x256xbf16>, vector<256x128xbf16>, vector<256x128xf32> -> vector<256x128xf32>
    %c0_4 = arith.constant 0 : index
    %c0_5 = arith.constant 0 : index
    %c0_6 = arith.constant 0 : index
    %4 = vector.load %arg2[%c0_4, %c0_5, %c0_6] : memref<3x256x256xbf16, #tpu.memory_space<vmem>>, vector<1x256x256xbf16>
    %5 = vector.shape_cast %4 : vector<1x256x256xbf16> to vector<256x256xbf16>
    %c1 = arith.constant 1 : index
    %c0_7 = arith.constant 0 : index
    %c0_8 = arith.constant 0 : index
    %6 = vector.load %arg3[%c1, %c0_7, %c0_8] : memref<4x256x128xbf16, #tpu.memory_space<vmem>>, vector<1x256x128xbf16>
    %7 = vector.shape_cast %6 : vector<1x256x128xbf16> to vector<256x128xbf16>
    %cst_9 = arith.constant dense<0.000000e+00> : vector<256x128xf32>
    %8 = tpu.matmul %5, %7, %cst_9 {dimension_numbers = #tpu.dot_dimension_numbers<[1], [0], [0], [1], [0, 0, 1, 1], [], []>} : vector<256x256xbf16>, vector<256x128xbf16>, vector<256x128xf32> -> vector<256x128xf32>
    %9 = arith.addf %3, %8 : vector<256x128xf32>
    %c1_10 = arith.constant 1 : index
    %c0_11 = arith.constant 0 : index
    %c0_12 = arith.constant 0 : index
    %10 = vector.load %arg2[%c1_10, %c0_11, %c0_12] : memref<3x256x256xbf16, #tpu.memory_space<vmem>>, vector<1x256x256xbf16>
    %11 = vector.shape_cast %10 : vector<1x256x256xbf16> to vector<256x256xbf16>
    %c2 = arith.constant 2 : index
    %c0_13 = arith.constant 0 : index
    %c0_14 = arith.constant 0 : index
    %12 = vector.load %arg3[%c2, %c0_13, %c0_14] : memref<4x256x128xbf16, #tpu.memory_space<vmem>>, vector<1x256x128xbf16>
    %13 = vector.shape_cast %12 : vector<1x256x128xbf16> to vector<256x128xbf16>
    %cst_15 = arith.constant dense<0.000000e+00> : vector<256x128xf32>
    %14 = tpu.matmul %11, %13, %cst_15 {dimension_numbers = #tpu.dot_dimension_numbers<[1], [0], [0], [1], [0, 0, 1, 1], [], []>} : vector<256x256xbf16>, vector<256x128xbf16>, vector<256x128xf32> -> vector<256x128xf32>
    %15 = arith.addf %9, %14 : vector<256x128xf32>
    %c2_16 = arith.constant 2 : index
    %c0_17 = arith.constant 0 : index
    %c0_18 = arith.constant 0 : index
    %16 = vector.load %arg2[%c2_16, %c0_17, %c0_18] : memref<3x256x256xbf16, #tpu.memory_space<vmem>>, vector<1x256x256xbf16>
    %17 = vector.shape_cast %16 : vector<1x256x256xbf16> to vector<256x256xbf16>
    %c3 = arith.constant 3 : index
    %c0_19 = arith.constant 0 : index
    %c0_20 = arith.constant 0 : index
    %18 = vector.load %arg3[%c3, %c0_19, %c0_20] : memref<4x256x128xbf16, #tpu.memory_space<vmem>>, vector<1x256x128xbf16>
    %19 = vector.shape_cast %18 : vector<1x256x128xbf16> to vector<256x128xbf16>
    %cst_21 = arith.constant dense<0.000000e+00> : vector<256x128xf32>
    %20 = tpu.matmul %17, %19, %cst_21 {dimension_numbers = #tpu.dot_dimension_numbers<[1], [0], [0], [1], [0, 0, 1, 1], [], []>} : vector<256x256xbf16>, vector<256x128xbf16>, vector<256x128xf32> -> vector<256x128xf32>
    %21 = arith.addf %15, %20 : vector<256x128xf32>
    %c0_22 = arith.constant 0 : index
    %c0_23 = arith.constant 0 : index
    %22 = vector.load %arg4[%c0_22, %c0_23] : memref<1x128xf32, #tpu.memory_space<vmem>>, vector<1x128xf32>
    %23 = vector.broadcast %22 : vector<1x128xf32> to vector<256x128xf32>
    %24 = arith.addf %21, %23 : vector<256x128xf32>
    %c0_24 = arith.constant 0 : index
    %c0_25 = arith.constant 0 : index
    %25 = vector.load %arg5[%c0_24, %c0_25] : memref<256x128xf32, #tpu.memory_space<vmem>>, vector<256x128xf32>
    %26 = arith.addf %24, %25 : vector<256x128xf32>
    %cst_26 = arith.constant 0.000000e+00 : f32
    %27 = vector.broadcast %cst_26 : f32 to vector<256x128xf32>
    %28 = arith.maximumf %26, %27 : vector<256x128xf32>
    %29 = arith.truncf %28 : vector<256x128xf32> to vector<256x128xbf16>
    %c0_27 = arith.constant 0 : index
    %c0_28 = arith.constant 0 : index
    %30 = vector.load %arg6[%c0_27, %c0_28] : memref<256x128xbf16, #tpu.memory_space<vmem>>, vector<256x128xbf16>
    tpu.vector_store %arg6[%c0_27, %c0_28], %29 {strides = array<i32>} : memref<256x128xbf16, #tpu.memory_space<vmem>>, vector<256x128xbf16>,
    return
  }
  func.func @transform_0(%arg0: i32) -> (i32, i32) {
    %c0_i32 = arith.constant 0 : i32
    %c0_i32_0 = arith.constant 0 : i32
    return %arg0, %c0_i32 : i32, i32
  }
  func.func @transform_1(%arg0: i32) -> (i32, i32, i32) {
    %c0_i32 = arith.constant 0 : i32
    %c0_i32_0 = arith.constant 0 : i32
    %c0_i32_1 = arith.constant 0 : i32
    return %c0_i32, %arg0, %c0_i32_0 : i32, i32, i32
  }
  func.func @transform_2(%arg0: i32) -> (i32, i32, i32) {
    %c0_i32 = arith.constant 0 : i32
    %c0_i32_0 = arith.constant 0 : i32
    %c0_i32_1 = arith.constant 0 : i32
    %c0_i32_2 = arith.constant 0 : i32
    return %c0_i32, %c0_i32_0, %c0_i32_1 : i32, i32, i32
  }
  func.func @transform_3(%arg0: i32) -> (i32, i32) {
    %c0_i32 = arith.constant 0 : i32
    %c0_i32_0 = arith.constant 0 : i32
    %c0_i32_1 = arith.constant 0 : i32
    return %c0_i32, %c0_i32_0 : i32, i32
  }
  func.func @transform_4(%arg0: i32) -> (i32, i32) {
    %c0_i32 = arith.constant 0 : i32
    %c0_i32_0 = arith.constant 0 : i32
    return %arg0, %c0_i32 : i32, i32
  }
  func.func @transform_5(%arg0: i32) -> (i32, i32) {
    %c0_i32 = arith.constant 0 : i32
    %c0_i32_0 = arith.constant 0 : i32
    return %arg0, %c0_i32 : i32, i32
  }
}

module attributes {stable_mosaic.version = 11 : i64} {
  func.func @_fused_matmul_kernel(%arg0: i32, %arg1: i32, %arg2: memref<1x256x640xbf16, #tpu.memory_space<vmem>>, %arg3: memref<1x640x128xbf16, #tpu.memory_space<vmem>>, %arg4: memref<1x1x128xf32, #tpu.memory_space<vmem>>, %arg5: memref<1x256x128xf32, #tpu.memory_space<vmem>>) attributes {dimension_semantics = [#tpu.dimension_semantics<parallel>, #tpu.dimension_semantics<parallel>], iteration_bounds = array<i64: 1, 2>, scalar_prefetch = 0 : i64, scratch_operands = 0 : i64, tpu.core_type = #tpu.core_type<tc>, window_params = [{transform_indices = @transform_0, window_bounds = array<i64: 1, 256, 640>}, {transform_indices = @transform_1, window_bounds = array<i64: 1, 640, 128>}, {transform_indices = @transform_2, window_bounds = array<i64: 1, 1, 128>}, {transform_indices = @transform_3, window_bounds = array<i64: 1, 256, 128>}]} {
    %c0 = arith.constant 0 : index
    %c0_0 = arith.constant 0 : index
    %c0_1 = arith.constant 0 : index
    %0 = vector.load %arg2[%c0, %c0_0, %c0_1] : memref<1x256x640xbf16, #tpu.memory_space<vmem>>, vector<1x256x640xbf16>
    %1 = vector.shape_cast %0 : vector<1x256x640xbf16> to vector<256x640xbf16>
    %c0_2 = arith.constant 0 : index
    %c0_3 = arith.constant 0 : index
    %c0_4 = arith.constant 0 : index
    %2 = vector.load %arg3[%c0_2, %c0_3, %c0_4] : memref<1x640x128xbf16, #tpu.memory_space<vmem>>, vector<1x640x128xbf16>
    %3 = vector.shape_cast %2 : vector<1x640x128xbf16> to vector<640x128xbf16>
    %cst = arith.constant dense<0.000000e+00> : vector<256x128xf32>
    %4 = tpu.matmul %1, %3, %cst {dimension_numbers = #tpu.dot_dimension_numbers<[1], [0], [0], [1], [0, 0, 1, 1], [], []>} : vector<256x640xbf16>, vector<640x128xbf16>, vector<256x128xf32> -> vector<256x128xf32>
    %c0_5 = arith.constant 0 : index
    %c0_6 = arith.constant 0 : index
    %c0_7 = arith.constant 0 : index
    %5 = vector.load %arg4[%c0_5, %c0_6, %c0_7] : memref<1x1x128xf32, #tpu.memory_space<vmem>>, vector<1x1x128xf32>
    %6 = vector.shape_cast %5 : vector<1x1x128xf32> to vector<1x128xf32>
    %7 = vector.broadcast %6 : vector<1x128xf32> to vector<256x128xf32>
    %8 = arith.addf %4, %7 : vector<256x128xf32>
    %c0_8 = arith.constant 0 : index
    %c0_9 = arith.constant 0 : index
    %c0_10 = arith.constant 0 : index
    %9 = vector.load %arg5[%c0_8, %c0_9, %c0_10] : memref<1x256x128xf32, #tpu.memory_space<vmem>>, vector<1x256x128xf32>
    %10 = vector.shape_cast %9 : vector<1x256x128xf32> to vector<256x128xf32>
    %11 = vector.shape_cast %8 : vector<256x128xf32> to vector<1x256x128xf32>
    tpu.vector_store %arg5[%c0_8, %c0_9, %c0_10], %11 {strides = array<i32>} : memref<1x256x128xf32, #tpu.memory_space<vmem>>, vector<1x256x128xf32>,
    return
  }
  func.func @transform_0(%arg0: i32, %arg1: i32) -> (i32, i32, i32) {
    %c0_i32 = arith.constant 0 : i32
    %c0_i32_0 = arith.constant 0 : i32
    return %arg0, %arg1, %c0_i32 : i32, i32, i32
  }
  func.func @transform_1(%arg0: i32, %arg1: i32) -> (i32, i32, i32) {
    %c0_i32 = arith.constant 0 : i32
    %c0_i32_0 = arith.constant 0 : i32
    %c0_i32_1 = arith.constant 0 : i32
    return %arg0, %c0_i32, %c0_i32_0 : i32, i32, i32
  }
  func.func @transform_2(%arg0: i32, %arg1: i32) -> (i32, i32, i32) {
    %c0_i32 = arith.constant 0 : i32
    %c0_i32_0 = arith.constant 0 : i32
    %c0_i32_1 = arith.constant 0 : i32
    return %arg0, %c0_i32, %c0_i32_0 : i32, i32, i32
  }
  func.func @transform_3(%arg0: i32, %arg1: i32) -> (i32, i32, i32) {
    %c0_i32 = arith.constant 0 : i32
    %c0_i32_0 = arith.constant 0 : i32
    return %arg0, %arg1, %c0_i32 : i32, i32, i32
  }
}

</mosaic_0001>

<bundles_post_ra>
// kernel: _resblk_forward.5
= control target key start
LH: loop header
LB: loop body
LE: loop exit
PB: predicated region body
PF: predicated region fallthrough
CT: control target
= control target key end

     0   :  { %s1060_s12 = smov 0   ;;  %s1062_s13 = smov 0   ;;  %s1200_s0 = inlined_call_operand.vmem [shape: bf16[1,512,128], index: 0, kind: input, shape index: {}]   ;;  %s1201_s1 = inlined_call_operand.vmem [shape: bf16[1,128,128], index: 1, kind: input, shape index: {}]   ;;  %s1202_s2 = inlined_call_operand.vmem [shape: f32[1,1,128], index: 2, kind: input, shape index: {}]   ;;  %s1203_s3 = inlined_call_operand.vmem [shape: bf16[1,512,128], index: 3, kind: output, shape index: {}]  }
   0x1   :  { %s1064_s14 = smov 0  }
   0x2 LB: > { %s22_s15 = sadd.s32 1, %s1034_s13  ;;  %p745_p0 = scmp.ge.s32.totalorder %s1038_s14, 1  ;;  %s1038_s14 = sphi %s1064_s14, %s13_s14   ;;  %s1034_s13 = sphi %s1062_s13, %s1205_s13   ;;  %s1030_s12 = sphi %s1060_s12, %s1204_s12  }
   0x3   : > { %p23_p1 = scmp.ge.s32.totalorder %s22_s15, 2  ;;  %p176_p2 = scmp.lt.s32.totalorder %s1038_s14, 3 }
   0x5   : > { %s1207_s15 = smov (%p23_p1, %s22_s15), 0  ;;  %p177_p3 = pnand %p745_p0, %p176_p2 }
   0x6   : > { %s746_s24 = sshll.u32 (!%p177_p3), %s1030_s12, 5 }
   0x7   : > { %180 = sbr.rel (%p177_p3) target bundleno = 241 (0xf1), region = 32  ;;  %p219_p4 = scmp.lt.s32.totalorder (!%p177_p3), %s746_s24, 63 }
   0xc   : > { %v871_v0 = vld [vmem:[%s1201_s1 + $0x38] sm:$0xff]  ;;  %v870_v1 = vld [vmem:[%s1201_s1 + $0x30] sm:$0xff]  ;;  %v869_v2 = vld [vmem:[%s1201_s1 + $0x28] sm:$0xff]  ;;  %s1209_s24 = smov (!%p219_p4, %s746_s24), 63 }
   0xd   : > { %440 = vmatpush.bf16.msra.mxu0 %v871_v0  ;;  %967 = vmatpush.bf16.msra.mxu1 %v871_v0  ;;  %v868_v3 = vld [vmem:[%s1201_s1 + $0x20] sm:$0xff]  ;;  %v867_v4 = vld [vmem:[%s1201_s1 + $0x18] sm:$0xff]  ;;  %v866_v5 = vld [vmem:[%s1201_s1 + $0x10] sm:$0xff]  ;;  %s747_s4 = sshll.u32 %s1209_s24, 2 }
   0xe   : > { %968 = vmatpush.bf16.msra.mxu2 %v871_v0  ;;  %969 = vmatpush.bf16.msra.mxu3 %v871_v0  ;;  %v865_v6 = vld [vmem:[%s1201_s1 + $0x8] sm:$0xff]  ;;  %v864_v7 = vld [vmem:[%s1201_s1] sm:$0xff]  ;;  %s1113_s9 = scalar_lea.vmem %s1200_s0, %s747_s4  ;;  %s1145_s17 = scalar_lea.vmem %s1203_s3, %s747_s4 }
   0xf   : > { %v848_v8 = vld [vmem:[%s1113_s9] sm:$0xff]  ;;  %v849_v12 = vld [vmem:[%s1113_s9 + $0x8] sm:$0xff]  ;;  %v850_v16 = vld [vmem:[%s1113_s9 + $0x10] sm:$0xff] }
  0x10   : > { %v852_v9 = vld [vmem:[%s1113_s9 + $0x20] sm:$0xff]  ;;  %v853_v13 = vld [vmem:[%s1113_s9 + $0x28] sm:$0xff]  ;;  %v854_v17 = vld [vmem:[%s1113_s9 + $0x30] sm:$0xff] }
  0x11   : > { %441 = vmatpush.bf16.msra.mxu0 %v870_v1  ;;  %970 = vmatpush.bf16.msra.mxu1 %v870_v1  ;;  %v856_v10 = vld [vmem:[%s1113_s9 + $0x40] sm:$0xff]  ;;  %v857_v14 = vld [vmem:[%s1113_s9 + $0x48] sm:$0xff]  ;;  %v858_v18 = vld [vmem:[%s1113_s9 + $0x50] sm:$0xff] }
  0x12   : > { %971 = vmatpush.bf16.msra.mxu2 %v870_v1  ;;  %972 = vmatpush.bf16.msra.mxu3 %v870_v1  ;;  %v860_v11 = vld [vmem:[%s1113_s9 + $0x60] sm:$0xff]  ;;  %v861_v15 = vld [vmem:[%s1113_s9 + $0x68] sm:$0xff]  ;;  %v862_v19 = vld [vmem:[%s1113_s9 + $0x70] sm:$0xff] }
  0x13   : > { %v851_v20 = vld [vmem:[%s1113_s9 + $0x18] sm:$0xff]  ;;  %v1134_v26 = vld [vmem:[%s1202_s2] ss:$0 sm:$0xff] }
  0x14   : > { %v855_v21 = vld [vmem:[%s1113_s9 + $0x38] sm:$0xff] }
  0x15   : > { %442 = vmatpush.bf16.msra.mxu0 %v869_v2  ;;  %973 = vmatpush.bf16.msra.mxu1 %v869_v2  ;;  %v859_v22 = vld [vmem:[%s1113_s9 + $0x58] sm:$0xff] }
  0x16   : > { %974 = vmatpush.bf16.msra.mxu2 %v869_v2  ;;  %975 = vmatpush.bf16.msra.mxu3 %v869_v2  ;;  %v863_v23 = vld [vmem:[%s1113_s9 + $0x78] sm:$0xff] }
  0x19   : > { %443 = vmatpush.bf16.msra.mxu0 %v868_v3  ;;  %976 = vmatpush.bf16.msra.mxu1 %v868_v3 }
  0x1a   : > { %977 = vmatpush.bf16.msra.mxu2 %v868_v3  ;;  %978 = vmatpush.bf16.msra.mxu3 %v868_v3 }
  0x1d   : > { %444 = vmatpush.bf16.msra.mxu0 %v867_v4  ;;  %979 = vmatpush.bf16.msra.mxu1 %v867_v4 }
  0x1e   : > { %980 = vmatpush.bf16.msra.mxu2 %v867_v4  ;;  %981 = vmatpush.bf16.msra.mxu3 %v867_v4 }
  0x21   : > { %445 = vmatpush.bf16.msra.mxu0 %v866_v5  ;;  %982 = vmatpush.bf16.msra.mxu1 %v866_v5 }
  0x22   : > { %983 = vmatpush.bf16.msra.mxu2 %v866_v5  ;;  %984 = vmatpush.bf16.msra.mxu3 %v866_v5 }
  0x25   : > { %446 = vmatpush.bf16.msra.mxu0 %v865_v6  ;;  %985 = vmatpush.bf16.msra.mxu1 %v865_v6 }
  0x26   : > { %986 = vmatpush.bf16.msra.mxu2 %v865_v6  ;;  %987 = vmatpush.bf16.msra.mxu3 %v865_v6 }
  0x29   : > { %447 = vmatpush.bf16.msra.mxu0 %v864_v7  ;;  %988 = vmatpush.bf16.msra.mxu1 %v864_v7 }
  0x2a   : > { %989 = vmatpush.bf16.msra.mxu2 %v864_v7  ;;  %990 = vmatpush.bf16.msra.mxu3 %v864_v7 }
  0x2c   : > { %448 = vmatmul.bf16.vlgmr.msra.gmra.mxu0 %v848_v8  ;;  %468 = vmatmul.bf16.vlgmr.msra.gmra.mxu1 %v852_v9 }
  0x2d   : > { %488 = vmatmul.bf16.vlgmr.msra.gmra.mxu2 %v856_v10  ;;  %508 = vmatmul.bf16.vlgmr.msra.gmra.mxu3 %v860_v11 }
  0x3c   : > { %453 = vmatmul.bf16.gmra.mxu0 %v849_v12  ;;  %473 = vmatmul.bf16.gmra.mxu1 %v853_v13 }
  0x3d   : > { %493 = vmatmul.bf16.gmra.mxu2 %v857_v14  ;;  %513 = vmatmul.bf16.gmra.mxu3 %v861_v15 }
  0x4c   : > { %458 = vmatmul.bf16.gmra.mxu0 %v850_v16  ;;  %478 = vmatmul.bf16.gmra.mxu1 %v854_v17 }
  0x4d   : > { %498 = vmatmul.bf16.gmra.mxu2 %v858_v18  ;;  %518 = vmatmul.bf16.gmra.mxu3 %v862_v19 }
  0x5c   : > { %463 = vmatmul.bf16.gmra.mxu0 %v851_v20  ;;  %483 = vmatmul.bf16.gmra.mxu1 %v855_v21 }
  0x5d   : > { %503 = vmatmul.bf16.gmra.mxu2 %v859_v22  ;;  %523 = vmatmul.bf16.gmra.mxu3 %v863_v23 }
  0xa9   : > { %v449_v24 = vpop.f32.mrf.mxu0  ;;  %v469_v25 = vpop.f32.mrf.mxu1 }
  0xaa   : > { %v450_v27 = vadd.f32 %v1134_v26, %v449_v24  ;;  %v470_v28 = vadd.f32 %v1134_v26, %v469_v25 }
  0xac   : > { %v529_v35 = vmax.f32 %v450_v27, 0.0  ;;  %v537_v36 = vmax.f32 %v470_v28, 0.0 }
  0xb0   : > { %v489_v29 = vpop.f32.mrf.mxu2  ;;  %v509_v30 = vpop.f32.mrf.mxu3 }
  0xb1   : > { %v451_v31 = vpop.f32.mrf.mxu0  ;;  %v471_v32 = vpop.f32.mrf.mxu1  ;;  %v490_v41 = vadd.f32 %v1134_v26, %v489_v29  ;;  %v510_v42 = vadd.f32 %v1134_v26, %v509_v30 }
  0xb2   : > { %v452_v33 = vadd.f32 %v1134_v26, %v451_v31  ;;  %v472_v34 = vadd.f32 %v1134_v26, %v471_v32 }
  0xb3   : > { %v545_v49 = vmax.f32 %v490_v41, 0.0  ;;  %v553_v50 = vmax.f32 %v510_v42, 0.0 }
  0xb4   : > { %v530_v37 = vmax.f32 %v452_v33, 0.0  ;;  %v538_v38 = vmax.f32 %v472_v34, 0.0 }
  0xb6   : > { %v875_v39 = vpack.c.bf16 %v530_v37, %v529_v35  ;;  %v895_v40 = vpack.c.bf16 %v538_v38, %v537_v36 }
  0xb8   : > { %876 = vst [vmem:[%s1145_s17] sm:$0xff] %v875_v39   ;;  %v491_v43 = vpop.f32.mrf.mxu2  ;;  %v511_v44 = vpop.f32.mrf.mxu3 }
  0xb9   : > { %955 = vst [vmem:[%s1145_s17 + $0x20] sm:$0xff] %v895_v40   ;;  %v492_v45 = vadd.f32 %v1134_v26, %v491_v43  ;;  %v512_v46 = vadd.f32 %v1134_v26, %v511_v44  ;;  %v454_v47 = vpop.f32.mrf.mxu0  ;;  %v474_v48 = vpop.f32.mrf.mxu1 }
  0xba   : > { %v455_v55 = vadd.f32 %v1134_v26, %v454_v47  ;;  %v475_v56 = vadd.f32 %v1134_v26, %v474_v48 }
  0xbb   : > { %v546_v51 = vmax.f32 %v492_v45, 0.0  ;;  %v554_v52 = vmax.f32 %v512_v46, 0.0 }
  0xbc   : > { %v531_v63 = vmax.f32 %v455_v55, 0.0  ;;  %v539_v0 = vmax.f32 %v475_v56, 0.0 }
  0xbd   : > { %v915_v53 = vpack.c.bf16 %v546_v51, %v545_v49  ;;  %v935_v54 = vpack.c.bf16 %v554_v52, %v553_v50 }
  0xbf   : > { %959 = vst [vmem:[%s1145_s17 + $0x40] sm:$0xff] %v915_v53  }
  0xc0   : > { %963 = vst [vmem:[%s1145_s17 + $0x60] sm:$0xff] %v935_v54   ;;  %v494_v57 = vpop.f32.mrf.mxu2  ;;  %v514_v58 = vpop.f32.mrf.mxu3 }
  0xc1   : > { %v456_v59 = vpop.f32.mrf.mxu0  ;;  %v476_v60 = vpop.f32.mrf.mxu1  ;;  %v495_v5 = vadd.f32 %v1134_v26, %v494_v57  ;;  %v515_v6 = vadd.f32 %v1134_v26, %v514_v58 }
  0xc2   : > { %v457_v61 = vadd.f32 %v1134_v26, %v456_v59  ;;  %v477_v62 = vadd.f32 %v1134_v26, %v476_v60 }
  0xc3   : > { %v547_v13 = vmax.f32 %v495_v5, 0.0  ;;  %v555_v14 = vmax.f32 %v515_v6, 0.0 }
  0xc4   : > { %v532_v1 = vmax.f32 %v457_v61, 0.0  ;;  %v540_v2 = vmax.f32 %v477_v62, 0.0 }
  0xc6   : > { %v880_v3 = vpack.c.bf16 %v532_v1, %v531_v63  ;;  %v900_v4 = vpack.c.bf16 %v540_v2, %v539_v0 }
  0xc8   : > { %952 = vst [vmem:[%s1145_s17 + $0x8] sm:$0xff] %v880_v3   ;;  %v496_v7 = vpop.f32.mrf.mxu2  ;;  %v516_v8 = vpop.f32.mrf.mxu3 }
  0xc9   : > { %956 = vst [vmem:[%s1145_s17 + $0x28] sm:$0xff] %v900_v4   ;;  %v497_v9 = vadd.f32 %v1134_v26, %v496_v7  ;;  %v517_v10 = vadd.f32 %v1134_v26, %v516_v8  ;;  %v459_v11 = vpop.f32.mrf.mxu0  ;;  %v479_v12 = vpop.f32.mrf.mxu1 }
  0xca   : > { %v460_v19 = vadd.f32 %v1134_v26, %v459_v11  ;;  %v480_v20 = vadd.f32 %v1134_v26, %v479_v12 }
  0xcb   : > { %v548_v15 = vmax.f32 %v497_v9, 0.0  ;;  %v556_v16 = vmax.f32 %v517_v10, 0.0 }
  0xcc   : > { %v533_v28 = vmax.f32 %v460_v19, 0.0  ;;  %v541_v29 = vmax.f32 %v480_v20, 0.0 }
  0xcd   : > { %v920_v17 = vpack.c.bf16 %v548_v15, %v547_v13  ;;  %v940_v18 = vpack.c.bf16 %v556_v16, %v555_v14 }
  0xcf   : > { %960 = vst [vmem:[%s1145_s17 + $0x48] sm:$0xff] %v920_v17  }
  0xd0   : > { %964 = vst [vmem:[%s1145_s17 + $0x68] sm:$0xff] %v940_v18   ;;  %v499_v21 = vpop.f32.mrf.mxu2  ;;  %v519_v22 = vpop.f32.mrf.mxu3 }
  0xd1   : > { %v461_v23 = vpop.f32.mrf.mxu0  ;;  %v481_v24 = vpop.f32.mrf.mxu1  ;;  %v500_v34 = vadd.f32 %v1134_v26, %v499_v21  ;;  %v520_v35 = vadd.f32 %v1134_v26, %v519_v22 }
  0xd2   : > { %v462_v25 = vadd.f32 %v1134_v26, %v461_v23  ;;  %v482_v27 = vadd.f32 %v1134_v26, %v481_v24 }
  0xd3   : > { %v549_v42 = vmax.f32 %v500_v34, 0.0  ;;  %v557_v43 = vmax.f32 %v520_v35, 0.0 }
  0xd4   : > { %v534_v30 = vmax.f32 %v462_v25, 0.0  ;;  %v542_v31 = vmax.f32 %v482_v27, 0.0 }
  0xd6   : > { %v885_v32 = vpack.c.bf16 %v534_v30, %v533_v28  ;;  %v905_v33 = vpack.c.bf16 %v542_v31, %v541_v29 }
  0xd8   : > { %953 = vst [vmem:[%s1145_s17 + $0x10] sm:$0xff] %v885_v32   ;;  %v501_v36 = vpop.f32.mrf.mxu2  ;;  %v521_v37 = vpop.f32.mrf.mxu3 }
  0xd9   : > { %957 = vst [vmem:[%s1145_s17 + $0x30] sm:$0xff] %v905_v33   ;;  %v502_v38 = vadd.f32 %v1134_v26, %v501_v36  ;;  %v522_v39 = vadd.f32 %v1134_v26, %v521_v37  ;;  %v464_v40 = vpop.f32.mrf.mxu0  ;;  %v484_v41 = vpop.f32.mrf.mxu1 }
  0xda   : > { %v465_v48 = vadd.f32 %v1134_v26, %v464_v40  ;;  %v485_v49 = vadd.f32 %v1134_v26, %v484_v41 }
  0xdb   : > { %v550_v44 = vmax.f32 %v502_v38, 0.0  ;;  %v558_v45 = vmax.f32 %v522_v39, 0.0 }
  0xdc   : > { %v535_v56 = vmax.f32 %v465_v48, 0.0  ;;  %v543_v57 = vmax.f32 %v485_v49, 0.0 }
  0xdd   : > { %v925_v46 = vpack.c.bf16 %v550_v44, %v549_v42  ;;  %v945_v47 = vpack.c.bf16 %v558_v45, %v557_v43 }
  0xdf   : > { %961 = vst [vmem:[%s1145_s17 + $0x50] sm:$0xff] %v925_v46  }
  0xe0   : > { %965 = vst [vmem:[%s1145_s17 + $0x70] sm:$0xff] %v945_v47   ;;  %v504_v50 = vpop.f32.mrf.mxu2  ;;  %v524_v51 = vpop.f32.mrf.mxu3 }
  0xe1   : > { %v466_v52 = vpop.f32.mrf.mxu0  ;;  %v486_v53 = vpop.f32.mrf.mxu1  ;;  %v505_v62 = vadd.f32 %v1134_v26, %v504_v50  ;;  %v525_v63 = vadd.f32 %v1134_v26, %v524_v51 }
  0xe2   : > { %v467_v54 = vadd.f32 %v1134_v26, %v466_v52  ;;  %v487_v55 = vadd.f32 %v1134_v26, %v486_v53 }
  0xe3   : > { %v551_v4 = vmax.f32 %v505_v62, 0.0  ;;  %v559_v5 = vmax.f32 %v525_v63, 0.0 }
  0xe4   : > { %v536_v58 = vmax.f32 %v467_v54, 0.0  ;;  %v544_v59 = vmax.f32 %v487_v55, 0.0 }
  0xe6   : > { %v890_v60 = vpack.c.bf16 %v536_v58, %v535_v56  ;;  %v910_v61 = vpack.c.bf16 %v544_v59, %v543_v57 }
  0xe8   : > { %954 = vst [vmem:[%s1145_s17 + $0x18] sm:$0xff] %v890_v60   ;;  %v506_v0 = vpop.f32.mrf.mxu2  ;;  %v526_v1 = vpop.f32.mrf.mxu3 }
  0xe9   : > { %958 = vst [vmem:[%s1145_s17 + $0x38] sm:$0xff] %v910_v61   ;;  %v507_v2 = vadd.f32 %v1134_v26, %v506_v0  ;;  %v527_v3 = vadd.f32 %v1134_v26, %v526_v1 }
  0xeb   : > { %v552_v6 = vmax.f32 %v507_v2, 0.0  ;;  %v560_v7 = vmax.f32 %v527_v3, 0.0 }
  0xed   : > { %v930_v8 = vpack.c.bf16 %v552_v6, %v551_v4  ;;  %v950_v9 = vpack.c.bf16 %v560_v7, %v559_v5 }
  0xef   : > { %962 = vst [vmem:[%s1145_s17 + $0x58] sm:$0xff] %v930_v8  }
  0xf0   : > { %966 = vst [vmem:[%s1145_s17 + $0x78] sm:$0xff] %v950_v9  }
  0xf1 PF: > { %s13_s14 = sadd.s32 1, %s1038_s14   ;;  %s1204_s12 = smov %s1034_s13 }
  0xf2   : > { %p10_p5 = scmp.ge.s32.totalorder %s13_s14, 4   ;;  %s1205_s13 = smov %s1207_s15 }
  0xf4   :  { %12 = sbr.rel (!%p10_p5) target bundleno = 2 (0x2), region = 68 }

// kernel: _resblk_forward.7
= control target key start
LH: loop header
LB: loop body
LE: loop exit
PB: predicated region body
PF: predicated region fallthrough
CT: control target
= control target key end

     0   :  { %s3326_s12 = smov 0   ;;  %s3328_s13 = smov 0   ;;  %s4434_s0 = inlined_call_operand.vmem [shape: bf16[3,512,640], index: 0, kind: input, shape index: {}]   ;;  %s4435_s1 = inlined_call_operand.vmem [shape: bf16[3,640,256], index: 1, kind: input, shape index: {}]   ;;  %s4436_s2 = inlined_call_operand.vmem [shape: f32[3,1,256], index: 2, kind: input, shape index: {}]   ;;  %s4437_s3 = inlined_call_operand.vmem [shape: bf16[3,512,256], index: 3, kind: output, shape index: {}]  }
   0x1   :  { %s3330_s14 = smov 0   ;;  %s3332_s15 = smov 0  }
   0x2   :  { %s3334_s16 = smov 0  }
   0x3 LB: > { %s22_s17 = sadd.s32 1, %s3296_s14  ;;  %s25_s18 = sadd.s32 1, %s3300_s15  ;;  %s3304_s16 = sphi %s3334_s16, %s13_s16   ;;  %s3300_s15 = sphi %s3332_s15, %s4634_s15   ;;  %s3296_s14 = sphi %s3330_s14, %s4633_s14   ;;  %s3292_s13 = sphi %s3328_s13, %s4632_s13   ;;  %s3288_s12 = sphi %s3326_s12, %s4631_s12  }
   0x4   : > { %p23_p0 = scmp.ge.s32.totalorder %s22_s17, 2  ;;  %p2395_p1 = scmp.ge.s32.totalorder %s3304_s16, 1 }
   0x5   : > { %p178_p2 = scmp.lt.s32.totalorder %s3304_s16, 7 }
   0x6   : > { %s4636_s17 = smov (%p23_p0, %s22_s17), 0  ;;  %s4638_s18 = smov (!%p23_p0, %s25_s18), %s3300_s15 }
   0x7   : > { %p179_p3 = pnand %p2395_p1, %p178_p2  ;;  %p27_p4 = scmp.ge.s32.totalorder %s4638_s18, 3 }
   0x9   : > { %s4640_s18 = smov (%p27_p4, %s4638_s18), 0  ;;  %182 = sbr.rel (%p179_p3) target bundleno = 831 (0x33f), region = 32 }
   0xe   : > { %p222_p5 = scmp.lt.s32.totalorder %s3292_s13, 2  ;;  %s2396_s23 = sshll.u32 %s3288_s12, 5 }
   0xf   : > { %p224_p6 = scmp.lt.s32.totalorder %s2396_s23, 63 }
  0x10   : > { %s4642_s13 = smov (!%p222_p5, %s3292_s13), 2 }
  0x11   : > { %s3224_s19 = smul.u32 640, %s4642_s13  ;;  %s4644_s23 = smov (!%p224_p6, %s2396_s23), 63 }
  0x12   : > { %s3222_s24 = smul.u32 5, %s4644_s23  ;;  %s2399_s4 = sshll.u32 %s4642_s13, 1 }
  0x13   : > { %s3364_s22 = scalar_lea.vmem %s4435_s1, %s3224_s19  ;;  %s3223_s25 = smul.u32 320, %s4642_s13 }
  0x14   : > { %v2782_v0 = vld [vmem:[%s3364_s22 + $0x70] sm:$0xf]  ;;  %v3141_v1 = vld [vmem:[%s3364_s22 + $0x74] sm:$0xf0]  ;;  %v2774_v5 = vld [vmem:[%s3364_s22 + $0x60] sm:$0xf]  ;;  %s3644_s7 = scalar_lea.vmem %s4436_s2, %s2399_s4 }
  0x15   : > { %v2846_v2 = vld [vmem:[%s3364_s22 + $0xf0] sm:$0xf]  ;;  %v2783_v3 = vor.u32 %v3141_v1, %v2782_v0  ;;  %v3157_v4 = vld [vmem:[%s3364_s22 + $0xf4] sm:$0xf0]  ;;  %v3139_v6 = vld [vmem:[%s3364_s22 + $0x64] sm:$0xf0]  ;;  %s228_s26 = sadd.s32 %s3223_s25, %s3222_s24 }
  0x16   : > { %v2847_v7 = vor.u32 %v3157_v4, %v2846_v2  ;;  %v2838_v8 = vld [vmem:[%s3364_s22 + $0xe0] sm:$0xf]  ;;  %v3155_v9 = vld [vmem:[%s3364_s22 + $0xe4] sm:$0xf0]  ;;  %v2775_v10 = vor.u32 %v3139_v6, %v2774_v5  ;;  %v2766_v12 = vld [vmem:[%s3364_s22 + $0x50] sm:$0xf] }
  0x17   : > { %3206 = vmatpush.bf16.msra.mxu2 %v2783_v3  ;;  %1250 = vmatpush.bf16.msra.mxu0 %v2783_v3  ;;  %v2839_v11 = vor.u32 %v3155_v9, %v2838_v8  ;;  %v3137_v13 = vld [vmem:[%s3364_s22 + $0x54] sm:$0xf0]  ;;  %v2830_v14 = vld [vmem:[%s3364_s22 + $0xd0] sm:$0xf]  ;;  %v2758_v18 = vld [vmem:[%s3364_s22 + $0x40] sm:$0xf] }
  0x18   : > { %3214 = vmatpush.bf16.msra.mxu3 %v2847_v7  ;;  %1339 = vmatpush.bf16.msra.mxu1 %v2847_v7  ;;  %v3153_v15 = vld [vmem:[%s3364_s22 + $0xd4] sm:$0xf0]  ;;  %v2767_v16 = vor.u32 %v3137_v13, %v2766_v12  ;;  %v3135_v19 = vld [vmem:[%s3364_s22 + $0x44] sm:$0xf0]  ;;  %v2822_v20 = vld [vmem:[%s3364_s22 + $0xc0] sm:$0xf] }
  0x19   : > { %v2831_v17 = vor.u32 %v3153_v15, %v2830_v14  ;;  %v3151_v21 = vld [vmem:[%s3364_s22 + $0xc4] sm:$0xf0]  ;;  %v2759_v22 = vor.u32 %v3135_v19, %v2758_v18  ;;  %v2750_v24 = vld [vmem:[%s3364_s22 + $0x30] sm:$0xf]  ;;  %v3133_v25 = vld [vmem:[%s3364_s22 + $0x34] sm:$0xf0] }
  0x1a   : > { %v2823_v23 = vor.u32 %v3151_v21, %v2822_v20  ;;  %v2814_v26 = vld [vmem:[%s3364_s22 + $0xb0] sm:$0xf]  ;;  %v3149_v27 = vld [vmem:[%s3364_s22 + $0xb4] sm:$0xf0]  ;;  %v2751_v28 = vor.u32 %v3133_v25, %v2750_v24  ;;  %v2742_v30 = vld [vmem:[%s3364_s22 + $0x20] sm:$0xf] }
  0x1b   : > { %3207 = vmatpush.bf16.msra.mxu2 %v2775_v10  ;;  %1251 = vmatpush.bf16.msra.mxu0 %v2775_v10  ;;  %v2815_v29 = vor.u32 %v3149_v27, %v2814_v26  ;;  %v3131_v31 = vld [vmem:[%s3364_s22 + $0x24] sm:$0xf0]  ;;  %v2806_v32 = vld [vmem:[%s3364_s22 + $0xa0] sm:$0xf]  ;;  %s2397_s27 = sshll.u32 %s228_s26, 2  ;;  %s2401_s8 = sshll.u32 %s4644_s23, 1 }
  0x1c   : > { %3215 = vmatpush.bf16.msra.mxu3 %v2839_v11  ;;  %1340 = vmatpush.bf16.msra.mxu1 %v2839_v11  ;;  %v3147_v33 = vld [vmem:[%s3364_s22 + $0xa4] sm:$0xf0]  ;;  %v2743_v34 = vor.u32 %v3131_v31, %v2742_v30  ;;  %v2734_v36 = vld [vmem:[%s3364_s22 + $0x10] sm:$0xf]  ;;  %v3129_v37 = vld [vmem:[%s3364_s22 + $0x14] sm:$0xf0]  ;;  %s3402_s30 = scalar_lea.vmem %s4434_s0, %s2397_s27 }
  0x1d   : > { %v2807_v35 = vor.u32 %v3147_v33, %v2806_v32  ;;  %v2798_v38 = vld [vmem:[%s3364_s22 + $0x90] sm:$0xf]  ;;  %v3145_v39 = vld [vmem:[%s3364_s22 + $0x94] sm:$0xf0]  ;;  %v2735_v40 = vor.u32 %v3129_v37, %v2734_v36  ;;  %v2726_v41 = vld [vmem:[%s3364_s22] sm:$0xf] }
  0x1e   : > { %v3127_v42 = vld [vmem:[%s3364_s22 + $0x4] sm:$0xf0]  ;;  %v2790_v43 = vld [vmem:[%s3364_s22 + $0x80] sm:$0xf]  ;;  %v2799_v44 = vor.u32 %v3145_v39, %v2798_v38  ;;  %v2910_v46 = vld [vmem:[%s3364_s22 + $0x170] sm:$0xf] }
  0x1f   : > { %3208 = vmatpush.bf16.msra.mxu2 %v2767_v16  ;;  %1252 = vmatpush.bf16.msra.mxu0 %v2767_v16  ;;  %v3143_v45 = vld [vmem:[%s3364_s22 + $0x84] sm:$0xf0]  ;;  %v3173_v47 = vld [vmem:[%s3364_s22 + $0x174] sm:$0xf0]  ;;  %v2566_v48 = vld [vmem:[%s3402_s30 + $0x140] sm:$0xf]  ;;  %v2727_v54 = vor.u32 %v3127_v42, %v2726_v41 }
  0x20   : > { %3216 = vmatpush.bf16.msra.mxu3 %v2831_v17  ;;  %1341 = vmatpush.bf16.msra.mxu1 %v2831_v17  ;;  %v3088_v49 = vld [vmem:[%s3402_s30 + $0x150] sm:$0xf0]  ;;  %v2974_v50 = vld [vmem:[%s3364_s22 + $0x1f0] sm:$0xf]  ;;  %v3086_v51 = vld [vmem:[%s3402_s30 + $0x144] sm:$0xf]  ;;  %v2791_v58 = vor.u32 %v3143_v45, %v2790_v43  ;;  %v2911_v59 = vor.u32 %v3173_v47, %v2910_v46 }
  0x21   : > { %v2568_v52 = vld [vmem:[%s3402_s30 + $0x154] sm:$0xf0]  ;;  %v2406_v55 = vld [vmem:[%s3402_s30] sm:$0xf]  ;;  %v3048_v56 = vld [vmem:[%s3402_s30 + $0x10] sm:$0xf0]  ;;  %v3425_v3 = vor.u32 %v3088_v49, %v2566_v48 }
  0x22   : > { %v3189_v53 = vld [vmem:[%s3364_s22 + $0x1f4] sm:$0xf0]  ;;  %v3046_v57 = vld [vmem:[%s3402_s30 + $0x4] sm:$0xf]  ;;  %v3038_v61 = vld [vmem:[%s3364_s22 + $0x270] sm:$0xf]  ;;  %v3427_v4 = vor.u32 %v3048_v56, %v2406_v55  ;;  %v3432_v8 = vor.u32 %v3086_v51, %v2568_v52 }
  0x23   : > { %3209 = vmatpush.bf16.msra.mxu2 %v2759_v22  ;;  %1253 = vmatpush.bf16.msra.mxu0 %v2759_v22  ;;  %v2408_v60 = vld [vmem:[%s3402_s30 + $0x14] sm:$0xf0]  ;;  %v2975_v63 = vor.u32 %v3189_v53, %v2974_v50  ;;  %v3140_v0 = vld [vmem:[%s3364_s22 + $0x74] sm:$0xf]  ;;  %v2902_v1 = vld [vmem:[%s3364_s22 + $0x160] sm:$0xf] }
  0x24   : > { %3217 = vmatpush.bf16.msra.mxu3 %v2823_v23  ;;  %1342 = vmatpush.bf16.msra.mxu1 %v2823_v23  ;;  %v3205_v62 = vld [vmem:[%s3364_s22 + $0x274] sm:$0xf0]  ;;  %v3171_v2 = vld [vmem:[%s3364_s22 + $0x164] sm:$0xf0]  ;;  %v2784_v5 = vld [vmem:[%s3364_s22 + $0x78] sm:$0xf0]  ;;  %v3434_v10 = vor.u32 %v3046_v57, %v2408_v60 }
  0x25   : > { %v2966_v6 = vld [vmem:[%s3364_s22 + $0x1e0] sm:$0xf]  ;;  %v3187_v7 = vld [vmem:[%s3364_s22 + $0x1e4] sm:$0xf0]  ;;  %4475 = vst [vmem:[#allocation2_spill] sm:$0xff] %v3432_v8  ;;  %v3039_v9 = vor.u32 %v3205_v62, %v3038_v61  ;;  %v2903_v11 = vor.u32 %v3171_v2, %v2902_v1  ;;  %v2787_v14 = vor.u32 %v3140_v0, %v2784_v5  ;;  %s2402_s9 = sshll.u32 %s4642_s13, 7 }
  0x26   : > { %v3030_v12 = vld [vmem:[%s3364_s22 + $0x260] sm:$0xf]  ;;  %v3203_v13 = vld [vmem:[%s3364_s22 + $0x264] sm:$0xf0]  ;;  %v2967_v15 = vor.u32 %v3187_v7, %v2966_v6  ;;  %v3138_v16 = vld [vmem:[%s3364_s22 + $0x64] sm:$0xf]  ;;  %s248_s10 = sadd.s32 %s2402_s9, %s2401_s8 }
  0x27   : > { %3210 = vmatpush.bf16.msra.mxu2 %v2751_v28  ;;  %1254 = vmatpush.bf16.msra.mxu0 %v2751_v28  ;;  %v2776_v17 = vld [vmem:[%s3364_s22 + $0x68] sm:$0xf0]  ;;  %v3031_v18 = vor.u32 %v3203_v13, %v3030_v12  ;;  %v2894_v19 = vld [vmem:[%s3364_s22 + $0x150] sm:$0xf]  ;;  %v3169_v20 = vld [vmem:[%s3364_s22 + $0x154] sm:$0xf0] }
  0x28   : > { %3218 = vmatpush.bf16.msra.mxu3 %v2815_v29  ;;  %1343 = vmatpush.bf16.msra.mxu1 %v2815_v29  ;;  %v2958_v21 = vld [vmem:[%s3364_s22 + $0x1d0] sm:$0xf]  ;;  %v2895_v22 = vor.u32 %v3169_v20, %v2894_v19  ;;  %v3185_v23 = vld [vmem:[%s3364_s22 + $0x1d4] sm:$0xf0]  ;;  %v2779_v24 = vor.u32 %v3138_v16, %v2776_v17  ;;  %v3136_v28 = vld [vmem:[%s3364_s22 + $0x54] sm:$0xf] }
  0x29   : > { %v2959_v25 = vor.u32 %v3185_v23, %v2958_v21  ;;  %v3022_v26 = vld [vmem:[%s3364_s22 + $0x250] sm:$0xf]  ;;  %v3201_v27 = vld [vmem:[%s3364_s22 + $0x254] sm:$0xf0]  ;;  %v2768_v29 = vld [vmem:[%s3364_s22 + $0x58] sm:$0xf0] }
  0x2a   : > { %v3023_v30 = vor.u32 %v3201_v27, %v3022_v26  ;;  %v2771_v31 = vor.u32 %v3136_v28, %v2768_v29  ;;  %v2586_v32 = vld [vmem:[%s3402_s30 + $0x168] sm:$0xf]  ;;  %v3093_v33 = vld [vmem:[%s3402_s30 + $0x178] sm:$0xf0]  ;;  %v3091_v36 = vld [vmem:[%s3402_s30 + $0x16c] sm:$0xf] }
  0x2b   : > { %3211 = vmatpush.bf16.msra.mxu2 %v2743_v34  ;;  %1255 = vmatpush.bf16.msra.mxu0 %v2743_v34  ;;  %v2426_v34 = vld [vmem:[%s3402_s30 + $0x28] sm:$0xf]  ;;  %v2588_v37 = vld [vmem:[%s3402_s30 + $0x17c] sm:$0xf0]  ;;  %v3051_v38 = vld [vmem:[%s3402_s30 + $0x2c] sm:$0xf] }
  0x2c   : > { %3219 = vmatpush.bf16.msra.mxu3 %v2807_v35  ;;  %1344 = vmatpush.bf16.msra.mxu1 %v2807_v35  ;;  %v3053_v35 = vld [vmem:[%s3402_s30 + $0x38] sm:$0xf0]  ;;  %v2428_v39 = vld [vmem:[%s3402_s30 + $0x3c] sm:$0xf0]  ;;  %v3464_v42 = vor.u32 %v3091_v36, %v2588_v37  ;;  %v3167_v45 = vld [vmem:[%s3364_s22 + $0x144] sm:$0xf0] }
  0x2d   : > { %v3462_v41 = vor.u32 %v3053_v35, %v2426_v34  ;;  %v3466_v43 = vor.u32 %v3051_v38, %v2428_v39  ;;  %v2950_v46 = vld [vmem:[%s3364_s22 + $0x1c0] sm:$0xf]  ;;  %v3183_v48 = vld [vmem:[%s3364_s22 + $0x1c4] sm:$0xf0]  ;;  %v3134_v52 = vld [vmem:[%s3364_s22 + $0x44] sm:$0xf] }
  0x2e   : > { %4476 = vst [vmem:[#allocation3_spill] sm:$0xff] %v3464_v42  ;;  %v2951_v49 = vor.u32 %v3183_v48, %v2950_v46  ;;  %v3014_v50 = vld [vmem:[%s3364_s22 + $0x240] sm:$0xf]  ;;  %v3199_v51 = vld [vmem:[%s3364_s22 + $0x244] sm:$0xf0]  ;;  %s2403_s11 = sshll.u32 %s248_s10, 2 }
  0x2f   : > { %3212 = vmatpush.bf16.msra.mxu2 %v2735_v40  ;;  %1256 = vmatpush.bf16.msra.mxu0 %v2735_v40  ;;  %v3460_v40 = vor.u32 %v3093_v33, %v2586_v32  ;;  %v3015_v53 = vor.u32 %v3199_v51, %v3014_v50  ;;  %v2606_v56 = vld [vmem:[%s3402_s30 + $0x190] sm:$0xf]  ;;  %v3098_v57 = vld [vmem:[%s3402_s30 + $0x1a0] sm:$0xf0]  ;;  %v3096_v60 = vld [vmem:[%s3402_s30 + $0x194] sm:$0xf]  ;;  %s4266_s13 = scalar_lea.vmem %s4437_s3, %s2403_s11 }
  0x30   : > { %3220 = vmatpush.bf16.msra.mxu3 %v2799_v44  ;;  %1345 = vmatpush.bf16.msra.mxu1 %v2799_v44  ;;  %v2886_v44 = vld [vmem:[%s3364_s22 + $0x140] sm:$0xf]  ;;  %v2608_v61 = vld [vmem:[%s3402_s30 + $0x1a4] sm:$0xf0]  ;;  %v3056_v62 = vld [vmem:[%s3402_s30 + $0x54] sm:$0xf]  ;;  %v3488_v0 = vor.u32 %v3098_v57, %v2606_v56 }
  0x31   : > { %v2887_v47 = vor.u32 %v3167_v45, %v2886_v44  ;;  %v3492_v2 = vor.u32 %v3096_v60, %v2608_v61  ;;  %v2878_v6 = vld [vmem:[%s3364_s22 + $0x130] sm:$0xf]  ;;  %v3165_v7 = vld [vmem:[%s3364_s22 + $0x134] sm:$0xf0]  ;;  %v3132_v16 = vld [vmem:[%s3364_s22 + $0x34] sm:$0xf] }
  0x32   : > { %v3181_v12 = vld [vmem:[%s3364_s22 + $0x1b4] sm:$0xf0]  ;;  %v3103_v21 = vld [vmem:[%s3402_s30 + $0x1c8] sm:$0xf0]  ;;  %v3061_v26 = vld [vmem:[%s3402_s30 + $0x7c] sm:$0xf] }
  0x33   : > { %3213 = vmatpush.bf16.msra.mxu2 %v2727_v54  ;;  %1257 = vmatpush.bf16.msra.mxu0 %v2727_v54  ;;  %v2760_v54 = vld [vmem:[%s3364_s22 + $0x48] sm:$0xf0]  ;;  %4477 = vst [vmem:[#allocation4_spill] sm:$0xff] %v3492_v2  ;;  %v2626_v20 = vld [vmem:[%s3402_s30 + $0x1b8] sm:$0xf] }
  0x34   : > { %3221 = vmatpush.bf16.msra.mxu3 %v2791_v58  ;;  %1346 = vmatpush.bf16.msra.mxu1 %v2791_v58  ;;  %v2763_v55 = vor.u32 %v3134_v52, %v2760_v54  ;;  %v2446_v58 = vld [vmem:[%s3402_s30 + $0x50] sm:$0xf]  ;;  %v3063_v23 = vld [vmem:[%s3402_s30 + $0x88] sm:$0xf0]  ;;  %v3516_v28 = vor.u32 %v3103_v21, %v2626_v20  ;;  %v2870_v32 = vld [vmem:[%s3364_s22 + $0x120] sm:$0xf] }
  0x35   : > { %v2468_v27 = vld [vmem:[%s3402_s30 + $0x8c] sm:$0xf0]  ;;  %v3163_v33 = vld [vmem:[%s3364_s22 + $0x124] sm:$0xf0]  ;;  %v2934_v34 = vld [vmem:[%s3364_s22 + $0x1a0] sm:$0xf] }
  0x36   : > { %1298 = vmatmul.bf16.vlgmr.msra.gmra.mxu2 %v3425_v3  ;;  %1258 = vmatmul.bf16.vlgmr.msra.gmra.mxu0 %v3427_v4  ;;  %v2871_v35 = vor.u32 %v3163_v33, %v2870_v32  ;;  %v3179_v36 = vld [vmem:[%s3364_s22 + $0x1a4] sm:$0xf0]  ;;  %v2998_v38 = vld [vmem:[%s3364_s22 + $0x220] sm:$0xf]  ;;  %v3130_v44 = vld [vmem:[%s3364_s22 + $0x24] sm:$0xf] }
  0x37   : > { %1428 = vmatpush.bf16.msrb.mxu2 %v2911_v59  ;;  %1387 = vmatmul.bf16.vlgmr.msra.gmra.mxu3 %v3432_v8  ;;  %v3058_v59 = vld [vmem:[%s3402_s30 + $0x60] sm:$0xf0]  ;;  %v2935_v37 = vor.u32 %v3179_v36, %v2934_v34  ;;  %v3195_v39 = vld [vmem:[%s3364_s22 + $0x224] sm:$0xf0]  ;;  %v2744_v46 = vld [vmem:[%s3364_s22 + $0x28] sm:$0xf0] }
  0x38   : > { %1517 = vmatpush.bf16.msrb.mxu3 %v2975_v63  ;;  %1606 = vmatpush.bf16.msrb.mxu0 %v3039_v9  ;;  %v2448_v63 = vld [vmem:[%s3402_s30 + $0x64] sm:$0xf0]  ;;  %v3490_v1 = vor.u32 %v3058_v59, %v2446_v58  ;;  %v2942_v9 = vld [vmem:[%s3364_s22 + $0x1b0] sm:$0xf]  ;;  %v2999_v45 = vor.u32 %v3195_v39, %v2998_v38  ;;  %v2646_v48 = vld [vmem:[%s3402_s30 + $0x1e0] sm:$0xf] }
  0x39   : > { %1347 = vmatmul.bf16.vlgmr.msra.gmra.mxu1 %v3434_v10  ;;  %v3494_v5 = vor.u32 %v3056_v62, %v2448_v63  ;;  %v2943_v13 = vor.u32 %v3181_v12, %v2942_v9  ;;  %v2486_v50 = vld [vmem:[%s3402_s30 + $0xa0] sm:$0xf]  ;;  %v3068_v51 = vld [vmem:[%s3402_s30 + $0xb0] sm:$0xf0]  ;;  %v3106_v52 = vld [vmem:[%s3402_s30 + $0x1e4] sm:$0xf] }
  0x3a   : > { %1695 = vmatpush.bf16.msrb.mxu1 %v2787_v14  ;;  %v3006_v14 = vld [vmem:[%s3364_s22 + $0x230] sm:$0xf]  ;;  %v3066_v54 = vld [vmem:[%s3402_s30 + $0xa4] sm:$0xf]  ;;  %v3546_v57 = vor.u32 %v3068_v51, %v2486_v50  ;;  %v3161_v61 = vld [vmem:[%s3364_s22 + $0x114] sm:$0xf0] }
  0x3b   : > { %1429 = vmatpush.bf16.msrb.mxu2 %v2903_v11  ;;  %v2879_v11 = vor.u32 %v3165_v7, %v2878_v6  ;;  %v2862_v60 = vld [vmem:[%s3364_s22 + $0x110] sm:$0xf]  ;;  %v3177_v6 = vld [vmem:[%s3364_s22 + $0x194] sm:$0xf0]  ;;  %v3128_v12 = vld [vmem:[%s3364_s22 + $0x14] sm:$0xf] }
  0x3c   : > { %1518 = vmatpush.bf16.msrb.mxu3 %v2967_v15  ;;  %1607 = vmatpush.bf16.msrb.mxu0 %v3031_v18  ;;  %v3197_v15 = vld [vmem:[%s3364_s22 + $0x234] sm:$0xf0]  ;;  %v2752_v18 = vld [vmem:[%s3364_s22 + $0x38] sm:$0xf0]  ;;  %v2926_v62 = vld [vmem:[%s3364_s22 + $0x190] sm:$0xf]  ;;  %v2863_v63 = vor.u32 %v3161_v61, %v2862_v60 }
  0x3d   : > { %v3007_v17 = vor.u32 %v3197_v15, %v3006_v14  ;;  %v2755_v19 = vor.u32 %v3132_v16, %v2752_v18  ;;  %v2927_v7 = vor.u32 %v3177_v6, %v2926_v62  ;;  %v2990_v9 = vld [vmem:[%s3364_s22 + $0x210] sm:$0xf]  ;;  %v2736_v14 = vld [vmem:[%s3364_s22 + $0x18] sm:$0xf0]  ;;  %v2666_v16 = vld [vmem:[%s3402_s30 + $0x208] sm:$0xf] }
  0x3e   : > { %1696 = vmatpush.bf16.msrb.mxu1 %v2779_v24  ;;  %v3101_v24 = vld [vmem:[%s3402_s30 + $0x1bc] sm:$0xf]  ;;  %v2739_v15 = vor.u32 %v3128_v12, %v2736_v14  ;;  %v2506_v18 = vld [vmem:[%s3402_s30 + $0xc8] sm:$0xf]  ;;  %v3111_v20 = vld [vmem:[%s3402_s30 + $0x20c] sm:$0xf] }
  0x3f   : > { %1430 = vmatpush.bf16.msrb.mxu2 %v2895_v22  ;;  %v2466_v22 = vld [vmem:[%s3402_s30 + $0x78] sm:$0xf]  ;;  %v2668_v21 = vld [vmem:[%s3402_s30 + $0x21c] sm:$0xf0]  ;;  %v3159_v33 = vld [vmem:[%s3364_s22 + $0x104] sm:$0xf0] }
  0x40   : > { %1519 = vmatpush.bf16.msrb.mxu3 %v2959_v25  ;;  %1608 = vmatpush.bf16.msrb.mxu0 %v3023_v30  ;;  %v2628_v25 = vld [vmem:[%s3402_s30 + $0x1cc] sm:$0xf0]  ;;  %v3518_v29 = vor.u32 %v3063_v23, %v2466_v22  ;;  %v3071_v22 = vld [vmem:[%s3402_s30 + $0xcc] sm:$0xf]  ;;  %v2508_v23 = vld [vmem:[%s3402_s30 + $0xdc] sm:$0xf0] }
  0x41   : > { %v3520_v30 = vor.u32 %v3101_v24, %v2628_v25  ;;  %v2854_v32 = vld [vmem:[%s3364_s22 + $0x100] sm:$0xf]  ;;  %v3175_v36 = vld [vmem:[%s3364_s22 + $0x184] sm:$0xf0]  ;;  %v2526_v50 = vld [vmem:[%s3402_s30 + $0xf0] sm:$0xf] }
  0x42   : > { %1697 = vmatpush.bf16.msrb.mxu1 %v2771_v31  ;;  %v3522_v31 = vor.u32 %v3061_v26, %v2468_v27  ;;  %v3576_v26 = vor.u32 %v3111_v20, %v2668_v21  ;;  %v3578_v27 = vor.u32 %v3071_v22, %v2508_v23  ;;  %v2918_v34 = vld [vmem:[%s3364_s22 + $0x180] sm:$0xf]  ;;  %v3191_v39 = vld [vmem:[%s3364_s22 + $0x204] sm:$0xf0]  ;;  %v3078_v51 = vld [vmem:[%s3402_s30 + $0x100] sm:$0xf0] }
  0x43   : > { %1431 = vmatpush.bf16.msrb.mxu2 %v2887_v47  ;;  %4478 = vst [vmem:[#allocation5_spill] sm:$0xff] %v3520_v30  ;;  %v2747_v47 = vor.u32 %v3130_v44, %v2744_v46  ;;  %v2982_v38 = vld [vmem:[%s3364_s22 + $0x200] sm:$0xf]  ;;  %v3126_v44 = vld [vmem:[%s3364_s22 + $0x4] sm:$0xf]  ;;  %v3602_v61 = vor.u32 %v3078_v51, %v2526_v50 }
  0x44   : > { %1520 = vmatpush.bf16.msrb.mxu3 %v2951_v49  ;;  %1609 = vmatpush.bf16.msrb.mxu0 %v3015_v53  ;;  %v3108_v49 = vld [vmem:[%s3402_s30 + $0x1f0] sm:$0xf0]  ;;  %v2648_v53 = vld [vmem:[%s3402_s30 + $0x1f4] sm:$0xf0]  ;;  %4481 = vst [vmem:[#allocation8_spill] sm:$0xff] %v3576_v26 }
  0x45   : > { %v3544_v56 = vor.u32 %v3108_v49, %v2646_v48  ;;  %v3548_v58 = vor.u32 %v3106_v52, %v2648_v53  ;;  %4482 = vst [vmem:[#allocation9_spill] sm:$0xff] %v3578_v27  ;;  %v2728_v46 = vld [vmem:[%s3364_s22 + $0x8] sm:$0xf0]  ;;  %v2686_v48 = vld [vmem:[%s3402_s30 + $0x230] sm:$0xf] }
  0x46   : > { %1303 = vmatmul.bf16.gmra.mxu2 %v3460_v40  ;;  %1263 = vmatmul.bf16.gmra.mxu0 %v3462_v41  ;;  %v3118_v49 = vld [vmem:[%s3402_s30 + $0x240] sm:$0xf0]  ;;  %v3116_v52 = vld [vmem:[%s3402_s30 + $0x234] sm:$0xf]  ;;  %v2688_v53 = vld [vmem:[%s3402_s30 + $0x244] sm:$0xf0] }
  0x47   : > { %1392 = vmatmul.bf16.gmra.mxu3 %v3464_v42  ;;  %1698 = vmatpush.bf16.msrb.mxu1 %v2763_v55  ;;  %v2488_v55 = vld [vmem:[%s3402_s30 + $0xb4] sm:$0xf0]  ;;  %4479 = vst [vmem:[#allocation6_spill] sm:$0xff] %v3548_v58  ;;  %v3600_v60 = vor.u32 %v3118_v49, %v2686_v48  ;;  %v3604_v62 = vor.u32 %v3116_v52, %v2688_v53  ;;  %v3156_v6 = vld [vmem:[%s3364_s22 + $0xf4] sm:$0xf] }
  0x48   : > { %1432 = vmatpush.bf16.msrb.mxu2 %v2879_v11  ;;  %1521 = vmatpush.bf16.msrb.mxu3 %v2943_v13  ;;  %v3550_v59 = vor.u32 %v3066_v54, %v2488_v55  ;;  %v3193_v11 = vld [vmem:[%s3364_s22 + $0x214] sm:$0xf0]  ;;  %v3076_v54 = vld [vmem:[%s3402_s30 + $0xf4] sm:$0xf]  ;;  %v2528_v55 = vld [vmem:[%s3402_s30 + $0x104] sm:$0xf0] }
  0x49   : > { %1352 = vmatmul.bf16.gmra.mxu1 %v3466_v43  ;;  %1610 = vmatpush.bf16.msrb.mxu0 %v3007_v17  ;;  %v2991_v13 = vor.u32 %v3193_v11, %v2990_v9  ;;  %v3113_v17 = vld [vmem:[%s3402_s30 + $0x218] sm:$0xf0]  ;;  %4483 = vst [vmem:[#allocation10_spill] sm:$0xff] %v3604_v62  ;;  %v3172_v9 = vld [vmem:[%s3364_s22 + $0x174] sm:$0xf] }
  0x4a   : > { %4480 = vst [vmem:[#allocation7_spill] sm:$0xff] %v3550_v59  ;;  %v3572_v24 = vor.u32 %v3113_v17, %v2666_v16  ;;  %v2912_v12 = vld [vmem:[%s3364_s22 + $0x178] sm:$0xf0]  ;;  %v2706_v14 = vld [vmem:[%s3402_s30 + $0x258] sm:$0xf] }
  0x4b   : > { %1699 = vmatpush.bf16.msrb.mxu1 %v2755_v19  ;;  %v3073_v19 = vld [vmem:[%s3402_s30 + $0xd8] sm:$0xf0]  ;;  %v3123_v17 = vld [vmem:[%s3402_s30 + $0x268] sm:$0xf0]  ;;  %v2708_v22 = vld [vmem:[%s3402_s30 + $0x26c] sm:$0xf0] }
  0x4c   : > { %1433 = vmatpush.bf16.msrb.mxu2 %v2871_v35  ;;  %1522 = vmatpush.bf16.msrb.mxu3 %v2935_v37  ;;  %v3574_v25 = vor.u32 %v3073_v19, %v2506_v18  ;;  %v2855_v35 = vor.u32 %v3159_v33, %v2854_v32  ;;  %v2919_v37 = vor.u32 %v3175_v36, %v2918_v34  ;;  %v2976_v16 = vld [vmem:[%s3364_s22 + $0x1f8] sm:$0xf0]  ;;  %v2546_v18 = vld [vmem:[%s3402_s30 + $0x118] sm:$0xf]  ;;  %v3083_v19 = vld [vmem:[%s3402_s30 + $0x128] sm:$0xf0] }
  0x4d   : > { %1611 = vmatpush.bf16.msrb.mxu0 %v2999_v45  ;;  %v2983_v45 = vor.u32 %v3191_v39, %v2982_v38  ;;  %v3121_v21 = vld [vmem:[%s3402_s30 + $0x25c] sm:$0xf]  ;;  %v2548_v32 = vld [vmem:[%s3402_s30 + $0x12c] sm:$0xf0]  ;;  %v3626_v33 = vor.u32 %v3123_v17, %v2706_v14  ;;  %v3628_v34 = vor.u32 %v3083_v19, %v2546_v18  ;;  %v3050_v48 = vld [vmem:[%s3402_s30 + $0x20] sm:$0xf0] }
  0x4e   : > { %v3081_v23 = vld [vmem:[%s3402_s30 + $0x11c] sm:$0xf]  ;;  %v3047_v49 = vld [vmem:[%s3402_s30 + $0xc] sm:$0xf]  ;;  %v2416_v50 = vld [vmem:[%s3402_s30 + $0x1c] sm:$0xf0] }
  0x4f   : > { %1700 = vmatpush.bf16.msrb.mxu1 %v2747_v47  ;;  %v2731_v47 = vor.u32 %v3126_v44, %v2728_v46  ;;  %v3632_v36 = vor.u32 %v3081_v23, %v2548_v32  ;;  %v3040_v38 = vld [vmem:[%s3364_s22 + $0x278] sm:$0xf0]  ;;  %v428_v44 = vld [vmem:[%s3644_s7] sm:$0x3]  ;;  %v2434_v32 = vld [vmem:[%s3402_s30 + $0x30] sm:$0xf] }
  0x50   : > { %1434 = vmatpush.bf16.msrb.mxu2 %v2863_v63  ;;  %1523 = vmatpush.bf16.msrb.mxu3 %v2927_v7  ;;  %v3606_v63 = vor.u32 %v3076_v54, %v2528_v55  ;;  %v2848_v7 = vld [vmem:[%s3364_s22 + $0xf8] sm:$0xf0]  ;;  %v3653_v51 = vperm.slane %v428_v44, 0  ;;  %v3659_v55 = vor.u32 %v3047_v49, %v2416_v50  ;;  %v2442_v44 = vld [vmem:[%s3402_s30 + $0x38] sm:$0xf] }
  0x51   : > { %1612 = vmatpush.bf16.msrb.mxu0 %v2991_v13  ;;  %v2851_v11 = vor.u32 %v3156_v6, %v2848_v7  ;;  %v2915_v13 = vor.u32 %v3172_v9, %v2912_v12  ;;  %4486 = vst [vmem:[#allocation13_spill] sm:$0xff] %v3632_v36  ;;  %v3049_v46 = vld [vmem:[%s3402_s30 + $0x18] sm:$0xf0]  ;;  %v2840_v12 = vld [vmem:[%s3364_s22 + $0xe8] sm:$0xf0] }
  0x52   : > { %4484 = vst [vmem:[#allocation11_spill] sm:$0xff] %v3606_v63 }
  0x53   : > { %1701 = vmatpush.bf16.msrb.mxu1 %v2739_v15  ;;  %v3188_v15 = vld [vmem:[%s3364_s22 + $0x1f4] sm:$0xf] }
  0x54   : > { %1435 = vmatpush.bf16.msrb.mxu2 %v2855_v35  ;;  %1524 = vmatpush.bf16.msrb.mxu3 %v2919_v37  ;;  %v2979_v20 = vor.u32 %v3188_v15, %v2976_v16  ;;  %v3630_v35 = vor.u32 %v3121_v21, %v2708_v22  ;;  %v3204_v37 = vld [vmem:[%s3364_s22 + $0x274] sm:$0xf]  ;;  %v2904_v15 = vld [vmem:[%s3364_s22 + $0x168] sm:$0xf0] }
  0x55   : > { %1613 = vmatpush.bf16.msrb.mxu0 %v2983_v45  ;;  %v3043_v39 = vor.u32 %v3204_v37, %v3040_v38  ;;  %v2414_v45 = vld [vmem:[%s3402_s30 + $0x8] sm:$0xf]  ;;  %v3186_v37 = vld [vmem:[%s3364_s22 + $0x1e4] sm:$0xf]  ;;  %v2968_v38 = vld [vmem:[%s3364_s22 + $0x1e8] sm:$0xf0] }
  0x56   : > { %1308 = vmatmul.bf16.gmra.mxu2 %v3488_v0  ;;  %1268 = vmatmul.bf16.gmra.mxu0 %v3490_v1  ;;  %4485 = vst [vmem:[#allocation12_spill] sm:$0xff] %v3630_v35  ;;  %v3655_v52 = vor.u32 %v3049_v46, %v2414_v45  ;;  %v3055_v45 = vld [vmem:[%s3402_s30 + $0x48] sm:$0xf0]  ;;  %v2971_v46 = vor.u32 %v3186_v37, %v2968_v38 }
  0x57   : > { %1397 = vmatmul.bf16.gmra.mxu3 %v3492_v2  ;;  %1702 = vmatpush.bf16.msrb.mxu1 %v2731_v47  ;;  %v2422_v47 = vld [vmem:[%s3402_s30 + $0x10] sm:$0xf] }
  0x58   : > { %1784 = vmatpush.bf16.msra.mxu2 %v2851_v11  ;;  %1873 = vmatpush.bf16.msra.mxu3 %v2915_v13  ;;  %v3657_v53 = vor.u32 %v3050_v48, %v2422_v47  ;;  %v3154_v11 = vld [vmem:[%s3364_s22 + $0xe4] sm:$0xf]  ;;  %v3052_v47 = vld [vmem:[%s3402_s30 + $0x34] sm:$0xf]  ;;  %v2436_v48 = vld [vmem:[%s3402_s30 + $0x44] sm:$0xf0] }
  0x59   : > { %1357 = vmatmul.bf16.gmra.mxu1 %v3494_v5  ;;  %1962 = vmatpush.bf16.msra.mxu0 %v2979_v20  ;;  %v3170_v13 = vld [vmem:[%s3364_s22 + $0x164] sm:$0xf]  ;;  %v2843_v14 = vor.u32 %v3154_v11, %v2840_v12  ;;  %v3691_v12 = vor.u32 %v3052_v47, %v2436_v48  ;;  %v2462_v47 = vld [vmem:[%s3402_s30 + $0x60] sm:$0xf]  ;;  %v3060_v48 = vld [vmem:[%s3402_s30 + $0x70] sm:$0xf0] }
  0x5a   : > { %v2907_v17 = vor.u32 %v3170_v13, %v2904_v15  ;;  %v3202_v15 = vld [vmem:[%s3364_s22 + $0x264] sm:$0xf] }
  0x5b   : > { %2051 = vmatpush.bf16.msra.mxu1 %v3043_v39  ;;  %v3054_v39 = vld [vmem:[%s3402_s30 + $0x40] sm:$0xf0] }
  0x5c   : > { %1785 = vmatpush.bf16.msra.mxu2 %v2843_v14  ;;  %1874 = vmatpush.bf16.msra.mxu3 %v2907_v17 }
  0x5d   : > { %1963 = vmatpush.bf16.msra.mxu0 %v2971_v46  ;;  %v3059_v46 = vld [vmem:[%s3402_s30 + $0x68] sm:$0xf0] }
  0x66   : > { %1313 = vmatmul.bf16.gmra.mxu2 %v3516_v28  ;;  %1273 = vmatmul.bf16.gmra.mxu0 %v3518_v29 }
  0x67   : > { %1402 = vmatmul.bf16.gmra.mxu3 %v3520_v30  ;;  %v3200_v30 = vld [vmem:[%s3364_s22 + $0x254] sm:$0xf] }
  0x69   : > { %1362 = vmatmul.bf16.gmra.mxu1 %v3522_v31 }
  0x76   : > { %1318 = vmatmul.bf16.gmra.mxu2 %v3544_v56  ;;  %1278 = vmatmul.bf16.gmra.mxu0 %v3546_v57 }
  0x77   : > { %1407 = vmatmul.bf16.gmra.mxu3 %v3548_v58 }
  0x79   : > { %1367 = vmatmul.bf16.gmra.mxu1 %v3550_v59 }
  0x86   : > { %1323 = vmatmul.bf16.gmra.mxu2 %v3572_v24  ;;  %1283 = vmatmul.bf16.gmra.mxu0 %v3574_v25 }
  0x87   : > { %1412 = vmatmul.bf16.gmra.mxu3 %v3576_v26 }
  0x89   : > { %1372 = vmatmul.bf16.gmra.mxu1 %v3578_v27  ;;  %v2952_v27 = vld [vmem:[%s3364_s22 + $0x1c8] sm:$0xf0] }
  0x96   : > { %1328 = vmatmul.bf16.gmra.mxu2 %v3600_v60  ;;  %1288 = vmatmul.bf16.gmra.mxu0 %v3602_v61 }
  0x97   : > { %1417 = vmatmul.bf16.gmra.mxu3 %v3604_v62 }
  0x99   : > { %1377 = vmatmul.bf16.gmra.mxu1 %v3606_v63  ;;  %v3182_v63 = vld [vmem:[%s3364_s22 + $0x1c4] sm:$0xf] }
  0xa6   : > { %1333 = vmatmul.bf16.gmra.mxu2 %v3626_v33  ;;  %1293 = vmatmul.bf16.gmra.mxu0 %v3628_v34 }
  0xa7   : > { %1422 = vmatmul.bf16.gmra.mxu3 %v3630_v35  ;;  %v3062_v35 = vld [vmem:[%s3402_s30 + $0x84] sm:$0xf] }
  0xa9   : > { %1382 = vmatmul.bf16.gmra.mxu1 %v3632_v36 }
  0xb3   : > { %v1259_v54 = vpop.f32.mrf.mxu0 }
  0xb4   : > { %v1260_v6 = vadd.f32 %v1259_v54, %v3653_v51 }
  0xb6   : > { %v1348_v7 = vpop.f32.mrf.mxu1  ;;  %1436 = vmatmul.bf16.vlgmr.msrb.gmra.mxu2 %v3655_v52  ;;  %1614 = vmatmul.bf16.vlgmr.msrb.gmra.mxu0 %v3657_v53 }
  0xb7   : > { %v3663_v9 = vadd.f32 %v1348_v7, %v1260_v6  ;;  %1525 = vmatmul.bf16.vlgmr.msrb.gmra.mxu3 %v3659_v55  ;;  %v3687_v6 = vor.u32 %v3054_v39, %v2434_v32  ;;  %v3689_v7 = vor.u32 %v3055_v45, %v2442_v44  ;;  %v2454_v45 = vld [vmem:[%s3402_s30 + $0x58] sm:$0xf] }
  0xb9   : > { %1703 = vmatmul.bf16.vlgmr.msrb.gmra.mxu1 %v3427_v4  ;;  %v1299_v16 = vpop.f32.mrf.mxu2 }
  0xba   : > { %v1300_v18 = vadd.f32 %v1299_v16, %v3653_v51  ;;  %v1388_v19 = vpop.f32.mrf.mxu3  ;;  %v3032_v16 = vld [vmem:[%s3364_s22 + $0x268] sm:$0xf0] }
  0xbb   : > { %v1261_v20 = vpop.f32.mrf.mxu0 }
  0xbc   : > { %v3673_v21 = vadd.f32 %v1388_v19, %v1300_v18  ;;  %v1262_v4 = vadd.f32 %v1261_v20, %v3653_v51  ;;  %v3035_v18 = vor.u32 %v3202_v15, %v3032_v16  ;;  %v3719_v15 = vor.u32 %v3060_v48, %v2462_v47 }
  0xbe   : > { %v1350_v22 = vpop.f32.mrf.mxu1  ;;  %2052 = vmatpush.bf16.msra.mxu1 %v3035_v18 }
  0xbf   : > { %v3676_v23 = vadd.f32 %v1350_v22, %v1262_v4 }
  0xc1   : > { %v1301_v49 = vpop.f32.mrf.mxu2 }
  0xc2   : > { %v1302_v50 = vadd.f32 %v1301_v49, %v3653_v51  ;;  %v1390_v54 = vpop.f32.mrf.mxu3  ;;  %v3057_v49 = vld [vmem:[%s3402_s30 + $0x5c] sm:$0xf] }
  0xc3   : > { %v1264_v11 = vpop.f32.mrf.mxu0 }
  0xc4   : > { %v3693_v13 = vadd.f32 %v1390_v54, %v1302_v50  ;;  %v1265_v14 = vadd.f32 %v1264_v11, %v3653_v51  ;;  %v2456_v50 = vld [vmem:[%s3402_s30 + $0x6c] sm:$0xf0] }
  0xc6   : > { %v1353_v17 = vpop.f32.mrf.mxu1  ;;  %1441 = vmatmul.bf16.gmra.mxu2 %v3687_v6  ;;  %1619 = vmatmul.bf16.gmra.mxu0 %v3689_v7 }
  0xc7   : > { %v3699_v19 = vadd.f32 %v1353_v17, %v1265_v14  ;;  %1530 = vmatmul.bf16.gmra.mxu3 %v3691_v12  ;;  %v3717_v14 = vor.u32 %v3059_v46, %v2454_v45  ;;  %v3721_v17 = vor.u32 %v3057_v49, %v2456_v50  ;;  %v2896_v46 = vld [vmem:[%s3364_s22 + $0x158] sm:$0xf0] }
  0xc9   : > { %1708 = vmatmul.bf16.gmra.mxu1 %v3462_v41  ;;  %v1304_v20 = vpop.f32.mrf.mxu2 }
  0xca   : > { %v1305_v4 = vadd.f32 %v1304_v20, %v3653_v51  ;;  %v1393_v22 = vpop.f32.mrf.mxu3 }
  0xcb   : > { %v1266_v32 = vpop.f32.mrf.mxu0 }
  0xcc   : > { %v3705_v37 = vadd.f32 %v1393_v22, %v1305_v4  ;;  %v1267_v38 = vadd.f32 %v1266_v32, %v3653_v51  ;;  %v3152_v32 = vld [vmem:[%s3364_s22 + $0xd4] sm:$0xf] }
  0xce   : > { %v1355_v39 = vpop.f32.mrf.mxu1 }
  0xcf   : > { %v3708_v44 = vadd.f32 %v1355_v39, %v1267_v38  ;;  %v2832_v38 = vld [vmem:[%s3364_s22 + $0xd8] sm:$0xf0]  ;;  %v3168_v39 = vld [vmem:[%s3364_s22 + $0x154] sm:$0xf] }
  0xd0   : > { %v2835_v45 = vor.u32 %v3152_v32, %v2832_v38  ;;  %v2899_v48 = vor.u32 %v3168_v39, %v2896_v46  ;;  %v2960_v32 = vld [vmem:[%s3364_s22 + $0x1d8] sm:$0xf0]  ;;  %v3064_v38 = vld [vmem:[%s3402_s30 + $0x90] sm:$0xf0]  ;;  %v2482_v39 = vld [vmem:[%s3402_s30 + $0x88] sm:$0xf] }
  0xd1   : > { %v1306_v41 = vpop.f32.mrf.mxu2  ;;  %v3065_v46 = vld [vmem:[%s3402_s30 + $0x98] sm:$0xf0] }
  0xd2   : > { %v1307_v54 = vadd.f32 %v1306_v41, %v3653_v51  ;;  %v1395_v11 = vpop.f32.mrf.mxu3  ;;  %1786 = vmatpush.bf16.msra.mxu2 %v2835_v45  ;;  %1875 = vmatpush.bf16.msra.mxu3 %v2899_v48  ;;  %v2476_v45 = vld [vmem:[%s3402_s30 + $0x94] sm:$0xf0] }
  0xd3   : > { %v1269_v16 = vpop.f32.mrf.mxu0 }
  0xd4   : > { %v3723_v18 = vadd.f32 %v1395_v11, %v1307_v54  ;;  %v1270_v20 = vadd.f32 %v1269_v16, %v3653_v51 }
  0xd6   : > { %v1358_v4 = vpop.f32.mrf.mxu1  ;;  %1446 = vmatmul.bf16.gmra.mxu2 %v3717_v14  ;;  %1624 = vmatmul.bf16.gmra.mxu0 %v3719_v15 }
  0xd7   : > { %v3727_v22 = vadd.f32 %v1358_v4, %v1270_v20  ;;  %1535 = vmatmul.bf16.gmra.mxu3 %v3721_v17  ;;  %v2474_v20 = vld [vmem:[%s3402_s30 + $0x80] sm:$0xf]  ;;  %v3184_v4 = vld [vmem:[%s3364_s22 + $0x1d4] sm:$0xf] }
  0xd9   : > { %1713 = vmatmul.bf16.gmra.mxu1 %v3490_v1  ;;  %v1309_v47 = vpop.f32.mrf.mxu2 }
  0xda   : > { %v1310_v49 = vadd.f32 %v1309_v47, %v3653_v51  ;;  %v1398_v50 = vpop.f32.mrf.mxu3  ;;  %v2963_v47 = vor.u32 %v3184_v4, %v2960_v32  ;;  %v3024_v4 = vld [vmem:[%s3364_s22 + $0x258] sm:$0xf0] }
  0xdb   : > { %v1271_v41 = vpop.f32.mrf.mxu0  ;;  %v3027_v2 = vor.u32 %v3200_v30, %v3024_v4  ;;  %v3067_v4 = vld [vmem:[%s3402_s30 + $0xac] sm:$0xf] }
  0xdc   : > { %v3737_v54 = vadd.f32 %v1398_v50, %v1310_v49  ;;  %v1272_v1 = vadd.f32 %v1271_v41, %v3653_v51  ;;  %1964 = vmatpush.bf16.msra.mxu0 %v2963_v47  ;;  %v3751_v50 = vor.u32 %v3064_v38, %v2474_v20  ;;  %v3753_v41 = vor.u32 %v3065_v46, %v2482_v39 }
  0xdd   : > { %2053 = vmatpush.bf16.msra.mxu1 %v3027_v2  ;;  %v2496_v2 = vld [vmem:[%s3402_s30 + $0xbc] sm:$0xf0] }
  0xde   : > { %v1360_v11 = vpop.f32.mrf.mxu1  ;;  %4487 = vst [vmem:[#allocation14_spill] sm:$0xff] %v3753_v41 }
  0xdf   : > { %v3740_v16 = vadd.f32 %v1360_v11, %v1272_v1  ;;  %v3755_v11 = vor.u32 %v3062_v35, %v2476_v45  ;;  %v2494_v45 = vld [vmem:[%s3402_s30 + $0xa8] sm:$0xf] }
  0xe1   : > { %v1311_v62 = vpop.f32.mrf.mxu2 }
  0xe2   : > { %v1312_v48 = vadd.f32 %v1311_v62, %v3653_v51  ;;  %v1400_v49 = vpop.f32.mrf.mxu3 }
  0xe3   : > { %v1274_v1 = vpop.f32.mrf.mxu0 }
  0xe4   : > { %v3757_v26 = vadd.f32 %v1400_v49, %v1312_v48  ;;  %v1275_v58 = vadd.f32 %v1274_v1, %v3653_v51  ;;  %v3069_v48 = vld [vmem:[%s3402_s30 + $0xb8] sm:$0xf0]  ;;  %v2502_v49 = vld [vmem:[%s3402_s30 + $0xb0] sm:$0xf]  ;;  %v3070_v1 = vld [vmem:[%s3402_s30 + $0xc0] sm:$0xf0] }
  0xe6   : > { %v1363_v32 = vpop.f32.mrf.mxu1  ;;  %1451 = vmatmul.bf16.gmra.mxu2 %v3751_v50  ;;  %1629 = vmatmul.bf16.gmra.mxu0 %v3753_v41 }
  0xe7   : > { %v3763_v62 = vadd.f32 %v1363_v32, %v1275_v58  ;;  %1540 = vmatmul.bf16.gmra.mxu3 %v3755_v11 }
  0xe9   : > { %1718 = vmatmul.bf16.gmra.mxu1 %v3518_v29  ;;  %v1314_v35 = vpop.f32.mrf.mxu2 }
  0xea   : > { %v1315_v20 = vadd.f32 %v1314_v35, %v3653_v51  ;;  %v1403_v30 = vpop.f32.mrf.mxu3 }
  0xeb   : > { %v1276_v38 = vpop.f32.mrf.mxu0 }
  0xec   : > { %v3769_v39 = vadd.f32 %v1403_v30, %v1315_v20  ;;  %v1277_v58 = vadd.f32 %v1276_v38, %v3653_v51  ;;  %v3781_v20 = vor.u32 %v3069_v48, %v2494_v45  ;;  %v3783_v30 = vor.u32 %v3070_v1, %v2502_v49  ;;  %v3150_v45 = vld [vmem:[%s3364_s22 + $0xc4] sm:$0xf]  ;;  %v2824_v48 = vld [vmem:[%s3364_s22 + $0xc8] sm:$0xf0] }
  0xed   : > { %v3166_v49 = vld [vmem:[%s3364_s22 + $0x144] sm:$0xf]  ;;  %v2827_v1 = vor.u32 %v3150_v45, %v2824_v48  ;;  %v2514_v48 = vld [vmem:[%s3402_s30 + $0xd0] sm:$0xf] }
  0xee   : > { %4488 = vst [vmem:[#allocation15_spill] sm:$0xff] %v3769_v39  ;;  %v1365_v46 = vpop.f32.mrf.mxu1 }
  0xef   : > { %v3772_v47 = vadd.f32 %v1365_v46, %v1277_v58  ;;  %4489 = vst [vmem:[#allocation16_spill] sm:$0xff] %v3781_v20  ;;  %v3785_v58 = vor.u32 %v3067_v4, %v2496_v2  ;;  %v2888_v4 = vld [vmem:[%s3364_s22 + $0x148] sm:$0xf0]  ;;  %1787 = vmatpush.bf16.msra.mxu2 %v2827_v1  ;;  %v2516_v1 = vld [vmem:[%s3402_s30 + $0xe4] sm:$0xf0] }
  0xf0   : > { %4490 = vst [vmem:[#allocation17_spill] sm:$0xff] %v3783_v30 }
  0xf1   : > { %v1316_v29 = vpop.f32.mrf.mxu2  ;;  %4491 = vst [vmem:[#allocation18_spill] sm:$0xff] %v3785_v58 }
  0xf2   : > { %v1317_v32 = vadd.f32 %v1316_v29, %v3653_v51  ;;  %v1405_v35 = vpop.f32.mrf.mxu3 }
  0xf3   : > { %v1279_v38 = vpop.f32.mrf.mxu0 }
  0xf4   : > { %v3787_v46 = vadd.f32 %v1405_v35, %v1317_v32  ;;  %v1280_v42 = vadd.f32 %v1279_v38, %v3653_v51 }
  0xf6   : > { %4492 = vst [vmem:[#allocation19_spill] sm:$0xff] %v3787_v46  ;;  %v1368_v8 = vpop.f32.mrf.mxu1  ;;  %1456 = vmatmul.bf16.gmra.mxu2 %v3781_v20  ;;  %1634 = vmatmul.bf16.gmra.mxu0 %v3783_v30  ;;  %v3074_v30 = vld [vmem:[%s3402_s30 + $0xe0] sm:$0xf0]  ;;  %v3072_v20 = vld [vmem:[%s3402_s30 + $0xd4] sm:$0xf] }
  0xf7   : > { %v3791_v36 = vadd.f32 %v1368_v8, %v1280_v42  ;;  %1545 = vmatmul.bf16.gmra.mxu3 %v3785_v58  ;;  %v2891_v8 = vor.u32 %v3166_v49, %v2888_v4  ;;  %v2522_v49 = vld [vmem:[%s3402_s30 + $0xd8] sm:$0xf]  ;;  %v3075_v4 = vld [vmem:[%s3402_s30 + $0xe8] sm:$0xf0]  ;;  %v3198_v46 = vld [vmem:[%s3364_s22 + $0x244] sm:$0xf] }
  0xf9   : > { %1723 = vmatmul.bf16.gmra.mxu1 %v3546_v57  ;;  %v1319_v2 = vpop.f32.mrf.mxu2  ;;  %1876 = vmatpush.bf16.msra.mxu3 %v2891_v8 }
  0xfa   : > { %v1320_v42 = vadd.f32 %v1319_v2, %v3653_v51  ;;  %v1408_v29 = vpop.f32.mrf.mxu3  ;;  %v2955_v2 = vor.u32 %v3182_v63, %v2952_v27  ;;  %v3016_v27 = vld [vmem:[%s3364_s22 + $0x248] sm:$0xf0] }
  0xfb   : > { %v1281_v32 = vpop.f32.mrf.mxu0  ;;  %v3019_v39 = vor.u32 %v3198_v46, %v3016_v27  ;;  %v3077_v27 = vld [vmem:[%s3402_s30 + $0xfc] sm:$0xf] }
  0xfc   : > { %v3801_v35 = vadd.f32 %v1408_v29, %v1320_v42  ;;  %v1282_v57 = vadd.f32 %v1281_v32, %v3653_v51  ;;  %1965 = vmatpush.bf16.msra.mxu0 %v2955_v2  ;;  %v3815_v29 = vor.u32 %v3074_v30, %v2514_v48  ;;  %v3817_v32 = vor.u32 %v3075_v4, %v2522_v49 }
  0xfd   : > { %2054 = vmatpush.bf16.msra.mxu1 %v3019_v39  ;;  %v2536_v39 = vld [vmem:[%s3402_s30 + $0x10c] sm:$0xf0] }
  0xfe   : > { %4493 = vst [vmem:[#allocation20_spill] sm:$0xff] %v3801_v35  ;;  %v1370_v38 = vpop.f32.mrf.mxu1 }
  0xff   : > { %v3804_v45 = vadd.f32 %v1370_v38, %v1282_v57  ;;  %4494 = vst [vmem:[#allocation21_spill] sm:$0xff] %v3815_v29  ;;  %v3819_v38 = vor.u32 %v3072_v20, %v2516_v1  ;;  %v2534_v1 = vld [vmem:[%s3402_s30 + $0xf8] sm:$0xf] }
 0x100   : > { %4495 = vst [vmem:[#allocation22_spill] sm:$0xff] %v3817_v32 }
 0x101   : > { %v1321_v58 = vpop.f32.mrf.mxu2  ;;  %4496 = vst [vmem:[#allocation23_spill] sm:$0xff] %v3819_v38 }
 0x102   : > { %v1322_v8 = vadd.f32 %v1321_v58, %v3653_v51  ;;  %v1410_v42 = vpop.f32.mrf.mxu3 }
 0x103   : > { %v1284_v57 = vpop.f32.mrf.mxu0 }
 0x104   : > { %v3821_v35 = vadd.f32 %v1410_v42, %v1322_v8  ;;  %v1285_v59 = vadd.f32 %v1284_v57, %v3653_v51  ;;  %v3079_v8 = vld [vmem:[%s3402_s30 + $0x108] sm:$0xf0]  ;;  %v2542_v42 = vld [vmem:[%s3402_s30 + $0x100] sm:$0xf]  ;;  %v3080_v57 = vld [vmem:[%s3402_s30 + $0x110] sm:$0xf0] }
 0x106   : > { %4497 = vst [vmem:[#allocation24_spill] sm:$0xff] %v3821_v35  ;;  %v1373_v63 = vpop.f32.mrf.mxu1  ;;  %1461 = vmatmul.bf16.gmra.mxu2 %v3815_v29  ;;  %1639 = vmatmul.bf16.gmra.mxu0 %v3817_v32 }
 0x107   : > { %v3827_v30 = vadd.f32 %v1373_v63, %v1285_v59  ;;  %1550 = vmatmul.bf16.gmra.mxu3 %v3819_v38 }
 0x109   : > { %1728 = vmatmul.bf16.gmra.mxu1 %v3574_v25  ;;  %v1324_v20 = vpop.f32.mrf.mxu2 }
 0x10a   : > { %v1325_v58 = vadd.f32 %v1324_v20, %v3653_v51  ;;  %v1413_v46 = vpop.f32.mrf.mxu3 }
 0x10b   : > { %v1286_v48 = vpop.f32.mrf.mxu0 }
 0x10c   : > { %v3833_v49 = vadd.f32 %v1413_v46, %v1325_v58  ;;  %v1287_v59 = vadd.f32 %v1286_v48, %v3653_v51  ;;  %v3845_v58 = vor.u32 %v3079_v8, %v2534_v1  ;;  %v3847_v46 = vor.u32 %v3080_v57, %v2542_v42  ;;  %v3148_v1 = vld [vmem:[%s3364_s22 + $0xb4] sm:$0xf]  ;;  %v2816_v8 = vld [vmem:[%s3364_s22 + $0xb8] sm:$0xf0] }
 0x10d   : > { %v2819_v42 = vor.u32 %v3148_v1, %v2816_v8  ;;  %v3164_v57 = vld [vmem:[%s3364_s22 + $0x134] sm:$0xf]  ;;  %v2554_v8 = vld [vmem:[%s3402_s30 + $0x120] sm:$0xf] }
 0x10e   : > { %4498 = vst [vmem:[#allocation25_spill] sm:$0xff] %v3833_v49  ;;  %v1375_v4 = vpop.f32.mrf.mxu1 }
 0x10f   : > { %v3836_v2 = vadd.f32 %v1375_v4, %v1287_v59  ;;  %4499 = vst [vmem:[#allocation26_spill] sm:$0xff] %v3845_v58  ;;  %v3849_v59 = vor.u32 %v3077_v27, %v2536_v39  ;;  %v2880_v27 = vld [vmem:[%s3364_s22 + $0x138] sm:$0xf0]  ;;  %1788 = vmatpush.bf16.msra.mxu2 %v2819_v42 }
 0x110   : > { %4500 = vst [vmem:[#allocation27_spill] sm:$0xff] %v3847_v46 }
 0x111   : > { %v1326_v25 = vpop.f32.mrf.mxu2  ;;  %4501 = vst [vmem:[#allocation28_spill] sm:$0xff] %v3849_v59 }
 0x112   : > { %v1327_v63 = vadd.f32 %v1326_v25, %v3653_v51  ;;  %v1415_v20 = vpop.f32.mrf.mxu3 }
 0x113   : > { %v1289_v48 = vpop.f32.mrf.mxu0 }
 0x114   : > { %v3851_v4 = vadd.f32 %v1415_v20, %v1327_v63  ;;  %v1290_v49 = vadd.f32 %v1289_v48, %v3653_v51 }
 0x116   : > { %4502 = vst [vmem:[#allocation29_spill] sm:$0xff] %v3851_v4  ;;  %v1378_v32 = vpop.f32.mrf.mxu1  ;;  %1466 = vmatmul.bf16.gmra.mxu2 %v3845_v58  ;;  %1644 = vmatmul.bf16.gmra.mxu0 %v3847_v46  ;;  %v3084_v46 = vld [vmem:[%s3402_s30 + $0x130] sm:$0xf0]  ;;  %v3082_v58 = vld [vmem:[%s3402_s30 + $0x124] sm:$0xf] }
 0x117   : > { %v3855_v29 = vadd.f32 %v1378_v32, %v1290_v49  ;;  %1555 = vmatmul.bf16.gmra.mxu3 %v3849_v59  ;;  %v2883_v32 = vor.u32 %v3164_v57, %v2880_v27  ;;  %v2562_v59 = vld [vmem:[%s3402_s30 + $0x128] sm:$0xf]  ;;  %v3085_v57 = vld [vmem:[%s3402_s30 + $0x138] sm:$0xf0]  ;;  %v2556_v27 = vld [vmem:[%s3402_s30 + $0x134] sm:$0xf0] }
 0x118   : > { %v3180_v4 = vld [vmem:[%s3364_s22 + $0x1b4] sm:$0xf] }
 0x119   : > { %1733 = vmatmul.bf16.gmra.mxu1 %v3602_v61  ;;  %v1329_v39 = vpop.f32.mrf.mxu2  ;;  %1877 = vmatpush.bf16.msra.mxu3 %v2883_v32 }
 0x11a   : > { %v1330_v49 = vadd.f32 %v1329_v39, %v3653_v51  ;;  %v1418_v25 = vpop.f32.mrf.mxu3  ;;  %v2944_v39 = vld [vmem:[%s3364_s22 + $0x1b8] sm:$0xf0] }
 0x11b   : > { %v1291_v63 = vpop.f32.mrf.mxu0  ;;  %v2947_v35 = vor.u32 %v3180_v4, %v2944_v39 }
 0x11c   : > { %v3865_v20 = vadd.f32 %v1418_v25, %v1330_v49  ;;  %v1292_v61 = vadd.f32 %v1291_v63, %v3653_v51  ;;  %v3879_v49 = vor.u32 %v3084_v46, %v2554_v8  ;;  %v3881_v25 = vor.u32 %v3085_v57, %v2562_v59 }
 0x11d   : > { %1966 = vmatpush.bf16.msra.mxu0 %v2947_v35  ;;  %v3196_v35 = vld [vmem:[%s3364_s22 + $0x234] sm:$0xf] }
 0x11e   : > { %4503 = vst [vmem:[#allocation30_spill] sm:$0xff] %v3865_v20  ;;  %v1380_v48 = vpop.f32.mrf.mxu1 }
 0x11f   : > { %v3868_v1 = vadd.f32 %v1380_v48, %v1292_v61  ;;  %4504 = vst [vmem:[#allocation31_spill] sm:$0xff] %v3879_v49  ;;  %v3883_v61 = vor.u32 %v3082_v58, %v2556_v27 }
 0x120   : > { %4505 = vst [vmem:[#allocation32_spill] sm:$0xff] %v3881_v25 }
 0x121   : > { %v1331_v38 = vpop.f32.mrf.mxu2  ;;  %4506 = vst [vmem:[#allocation33_spill] sm:$0xff] %v3883_v61 }
 0x122   : > { %v1332_v42 = vadd.f32 %v1331_v38, %v3653_v51  ;;  %v1420_v32 = vpop.f32.mrf.mxu3  ;;  %v3008_v38 = vld [vmem:[%s3364_s22 + $0x238] sm:$0xf0] }
 0x123   : > { %v1294_v63 = vpop.f32.mrf.mxu0  ;;  %v3011_v46 = vor.u32 %v3196_v35, %v3008_v38  ;;  %v2576_v35 = vld [vmem:[%s3402_s30 + $0x15c] sm:$0xf0] }
 0x124   : > { %v3885_v48 = vadd.f32 %v1420_v32, %v1332_v42  ;;  %v1295_v20 = vadd.f32 %v1294_v63, %v3653_v51  ;;  %v3089_v42 = vld [vmem:[%s3402_s30 + $0x158] sm:$0xf0]  ;;  %v2582_v32 = vld [vmem:[%s3402_s30 + $0x150] sm:$0xf]  ;;  %v3090_v63 = vld [vmem:[%s3402_s30 + $0x160] sm:$0xf0] }
 0x125   : > { %2055 = vmatpush.bf16.msra.mxu1 %v3011_v46 }
 0x126   : > { %4507 = vst [vmem:[#allocation34_spill] sm:$0xff] %v3885_v48  ;;  %v1383_v41 = vpop.f32.mrf.mxu1  ;;  %1471 = vmatmul.bf16.gmra.mxu2 %v3879_v49  ;;  %1649 = vmatmul.bf16.gmra.mxu0 %v3881_v25  ;;  %v3087_v25 = vld [vmem:[%s3402_s30 + $0x14c] sm:$0xf]  ;;  %v2596_v49 = vld [vmem:[%s3402_s30 + $0x184] sm:$0xf0] }
 0x127   : > { %v3889_v4 = vadd.f32 %v1383_v41, %v1295_v20  ;;  %1560 = vmatmul.bf16.gmra.mxu3 %v3883_v61  ;;  %v3178_v61 = vld [vmem:[%s3364_s22 + $0x1a4] sm:$0xf]  ;;  %v2936_v48 = vld [vmem:[%s3364_s22 + $0x1a8] sm:$0xf0] }
 0x129   : > { %1738 = vmatmul.bf16.gmra.mxu1 %v3628_v34  ;;  %v1334_v58 = vpop.f32.mrf.mxu2  ;;  %v2574_v34 = vld [vmem:[%s3402_s30 + $0x148] sm:$0xf] }
 0x12a   : > { %v1335_v59 = vadd.f32 %v1334_v58, %v3653_v51  ;;  %v1423_v41 = vpop.f32.mrf.mxu3 }
 0x12b   : > { %v1296_v20 = vpop.f32.mrf.mxu0 }
 0x12c   : > { %v3897_v8 = vadd.f32 %v1423_v41, %v1335_v59  ;;  %v1297_v57 = vadd.f32 %v1296_v20, %v3653_v51  ;;  %v3909_v59 = vor.u32 %v3089_v42, %v2574_v34  ;;  %v3911_v41 = vor.u32 %v3090_v63, %v2582_v32  ;;  %v2808_v34 = vld [vmem:[%s3364_s22 + $0xa8] sm:$0xf0]  ;;  %v3162_v42 = vld [vmem:[%s3364_s22 + $0x124] sm:$0xf] }
 0x12d   : > { %v2872_v63 = vld [vmem:[%s3364_s22 + $0x128] sm:$0xf0] }
 0x12e   : > { %4508 = vst [vmem:[#allocation35_spill] sm:$0xff] %v3897_v8  ;;  %v1385_v27 = vpop.f32.mrf.mxu1 }
 0x12f   : > { %v3900_v39 = vadd.f32 %v1385_v27, %v1297_v57  ;;  %4509 = vst [vmem:[#allocation36_spill] sm:$0xff] %v3909_v59  ;;  %v3913_v57 = vor.u32 %v3087_v25, %v2576_v35 }
 0x130   : > { %4510 = vst [vmem:[#allocation37_spill] sm:$0xff] %v3911_v41 }
 0x131   : > { %v1336_v38 = vpop.f32.mrf.mxu2  ;;  %4511 = vst [vmem:[#allocation38_spill] sm:$0xff] %v3913_v57 }
 0x132   : > { %v1337_v58 = vadd.f32 %v1336_v38, %v3653_v51  ;;  %v1425_v46 = vpop.f32.mrf.mxu3  ;;  %v3146_v51 = vld [vmem:[%s3364_s22 + $0xa4] sm:$0xf] }
 0x133   : > { %v1615_v20 = vpop.f32.mrf.mxu0  ;;  %v2811_v32 = vor.u32 %v3146_v51, %v2808_v34  ;;  %v2602_v51 = vld [vmem:[%s3402_s30 + $0x178] sm:$0xf]  ;;  %v3095_v34 = vld [vmem:[%s3402_s30 + $0x188] sm:$0xf0] }
 0x134   : > { %v3915_v27 = vadd.f32 %v1425_v46, %v1337_v58  ;;  %v2875_v58 = vor.u32 %v3162_v42, %v2872_v63 }
 0x135   : > { %1789 = vmatpush.bf16.msra.mxu2 %v2811_v32 }
 0x136   : > { %4512 = vst [vmem:[#allocation39_spill] sm:$0xff] %v3915_v27  ;;  %v3917_v8 = vpop.f32.mrf.mxu1  ;;  %1476 = vmatmul.bf16.gmra.mxu2 %v3909_v59  ;;  %1654 = vmatmul.bf16.gmra.mxu0 %v3911_v41  ;;  %v2594_v59 = vld [vmem:[%s3402_s30 + $0x170] sm:$0xf]  ;;  %v3092_v27 = vld [vmem:[%s3402_s30 + $0x174] sm:$0xf] }
 0x137   : > { %4513 = vst [vmem:[#allocation40_spill] sm:$0xff] %v3917_v8  ;;  %1565 = vmatmul.bf16.gmra.mxu3 %v3913_v57  ;;  %v3094_v57 = vld [vmem:[%s3402_s30 + $0x180] sm:$0xf0] }
 0x138   : > { %1878 = vmatpush.bf16.msra.mxu3 %v2875_v58  ;;  %v3941_v63 = vor.u32 %v3094_v57, %v2594_v59 }
 0x139   : > { %1743 = vmatmul.bf16.gmra.mxu1 %v3425_v3  ;;  %v1437_v25 = vpop.f32.mrf.mxu2 }
 0x13a   : > { %v1438_v35 = vadd.f32 %v1437_v25, %v3663_v9  ;;  %v1526_v38 = vpop.f32.mrf.mxu3  ;;  %v2939_v25 = vor.u32 %v3178_v61, %v2936_v48 }
 0x13b   : > { %v1617_v46 = vpop.f32.mrf.mxu0 }
 0x13c   : > { %v1527_v3 = vadd.f32 %v1526_v38, %v1438_v35  ;;  %v3943_v35 = vor.u32 %v3095_v34, %v2602_v51  ;;  %v3945_v38 = vor.u32 %v3092_v27, %v2596_v49  ;;  %1967 = vmatpush.bf16.msra.mxu0 %v2939_v25  ;;  %v3000_v49 = vld [vmem:[%s3364_s22 + $0x228] sm:$0xf0] }
 0x13d   : > { %v3099_v25 = vld [vmem:[%s3402_s30 + $0x1a8] sm:$0xf0] }
 0x13e   : > { %v3928_v41 = vpop.f32.mrf.mxu1  ;;  %v3930_v8 = vadd.f32 %v1615_v20, %v1527_v3 }
 0x140   : > { %4514 = vst [vmem:[#allocation41_spill] sm:$0xff] %v3930_v8 }
 0x141   : > { %v1439_v9 = vpop.f32.mrf.mxu2 }
 0x142   : > { %v1440_v42 = vadd.f32 %v1439_v9, %v3676_v23  ;;  %v1528_v32 = vpop.f32.mrf.mxu3  ;;  %v3194_v23 = vld [vmem:[%s3364_s22 + $0x224] sm:$0xf]  ;;  %v2614_v9 = vld [vmem:[%s3402_s30 + $0x198] sm:$0xf] }
 0x143   : > { %v1620_v20 = vpop.f32.mrf.mxu0  ;;  %v3003_v48 = vor.u32 %v3194_v23, %v3000_v49  ;;  %v3969_v49 = vor.u32 %v3099_v25, %v2614_v9 }
 0x144   : > { %v1529_v58 = vadd.f32 %v1528_v32, %v1440_v42  ;;  %v2622_v42 = vld [vmem:[%s3402_s30 + $0x1a0] sm:$0xf]  ;;  %v3097_v32 = vld [vmem:[%s3402_s30 + $0x19c] sm:$0xf] }
 0x145   : > { %2056 = vmatpush.bf16.msra.mxu1 %v3003_v48  ;;  %4517 = vst [vmem:[#allocation44_spill] sm:$0xff] %v3969_v49 }
 0x146   : > { %v3947_v3 = vpop.f32.mrf.mxu1  ;;  %v3949_v8 = vadd.f32 %v1617_v46, %v1529_v58  ;;  %1481 = vmatmul.bf16.gmra.mxu2 %v3941_v63  ;;  %1659 = vmatmul.bf16.gmra.mxu0 %v3943_v35  ;;  %v2616_v58 = vld [vmem:[%s3402_s30 + $0x1ac] sm:$0xf0] }
 0x147   : > { %1570 = vmatmul.bf16.gmra.mxu3 %v3945_v38  ;;  %v3973_v48 = vor.u32 %v3097_v32, %v2616_v58 }
 0x148   : > { %4515 = vst [vmem:[#allocation42_spill] sm:$0xff] %v3949_v8 }
 0x149   : > { %1748 = vmatmul.bf16.gmra.mxu1 %v3460_v40  ;;  %v1442_v61 = vpop.f32.mrf.mxu2  ;;  %v3100_v40 = vld [vmem:[%s3402_s30 + $0x1b0] sm:$0xf0]  ;;  %4519 = vst [vmem:[#allocation46_spill] sm:$0xff] %v3973_v48 }
 0x14a   : > { %v1443_v59 = vadd.f32 %v1442_v61, %v3699_v19  ;;  %v1531_v57 = vpop.f32.mrf.mxu3  ;;  %v3971_v61 = vor.u32 %v3100_v40, %v2622_v42  ;;  %v3160_v42 = vld [vmem:[%s3364_s22 + $0x114] sm:$0xf] }
 0x14b   : > { %v1622_v27 = vpop.f32.mrf.mxu0 }
 0x14c   : > { %v1532_v46 = vadd.f32 %v1531_v57, %v1443_v59  ;;  %4518 = vst [vmem:[#allocation45_spill] sm:$0xff] %v3971_v61 }
 0x14e   : > { %v3958_v51 = vpop.f32.mrf.mxu1  ;;  %v3960_v34 = vadd.f32 %v1620_v20, %v1532_v46 }
 0x150   : > { %4516 = vst [vmem:[#allocation43_spill] sm:$0xff] %v3960_v34  ;;  %v2928_v34 = vld [vmem:[%s3364_s22 + $0x198] sm:$0xf0] }
 0x151   : > { %v1444_v8 = vpop.f32.mrf.mxu2 }
 0x152   : > { %v1445_v23 = vadd.f32 %v1444_v8, %v3708_v44  ;;  %v1533_v19 = vpop.f32.mrf.mxu3  ;;  %v3144_v44 = vld [vmem:[%s3364_s22 + $0x94] sm:$0xf]  ;;  %v2800_v8 = vld [vmem:[%s3364_s22 + $0x98] sm:$0xf0] }
 0x153   : > { %v1625_v20 = vpop.f32.mrf.mxu0  ;;  %v2803_v25 = vor.u32 %v3144_v44, %v2800_v8  ;;  %v3104_v44 = vld [vmem:[%s3402_s30 + $0x1d0] sm:$0xf0]  ;;  %v3102_v8 = vld [vmem:[%s3402_s30 + $0x1c4] sm:$0xf] }
 0x154   : > { %v1534_v59 = vadd.f32 %v1533_v19, %v1445_v23 }
 0x155   : > { %1790 = vmatpush.bf16.msra.mxu2 %v2803_v25 }
 0x156   : > { %v3975_v57 = vpop.f32.mrf.mxu1  ;;  %v3977_v46 = vadd.f32 %v1622_v27, %v1534_v59  ;;  %1486 = vmatmul.bf16.gmra.mxu2 %v3969_v49  ;;  %1664 = vmatmul.bf16.gmra.mxu0 %v3971_v61  ;;  %v2864_v27 = vld [vmem:[%s3364_s22 + $0x118] sm:$0xf0]  ;;  %v2642_v61 = vld [vmem:[%s3402_s30 + $0x1c8] sm:$0xf]  ;;  %v2636_v49 = vld [vmem:[%s3402_s30 + $0x1d4] sm:$0xf0] }
 0x157   : > { %4520 = vst [vmem:[#allocation47_spill] sm:$0xff] %v3975_v57  ;;  %1575 = vmatmul.bf16.gmra.mxu3 %v3973_v48  ;;  %v2867_v58 = vor.u32 %v3160_v42, %v2864_v27  ;;  %v3105_v57 = vld [vmem:[%s3402_s30 + $0x1d8] sm:$0xf0]  ;;  %v3176_v48 = vld [vmem:[%s3364_s22 + $0x194] sm:$0xf] }
 0x158   : > { %4521 = vst [vmem:[#allocation48_spill] sm:$0xff] %v3977_v46  ;;  %v2634_v46 = vld [vmem:[%s3402_s30 + $0x1c0] sm:$0xf] }
 0x159   : > { %1753 = vmatmul.bf16.gmra.mxu1 %v3488_v0  ;;  %v1447_v9 = vpop.f32.mrf.mxu2  ;;  %1879 = vmatpush.bf16.msra.mxu3 %v2867_v58  ;;  %v4001_v27 = vor.u32 %v3104_v44, %v2634_v46 }
 0x15a   : > { %v1448_v40 = vadd.f32 %v1447_v9, %v3727_v22  ;;  %v1536_v32 = vpop.f32.mrf.mxu3  ;;  %v2931_v9 = vor.u32 %v3176_v48, %v2928_v34  ;;  %v2992_v34 = vld [vmem:[%s3364_s22 + $0x218] sm:$0xf0] }
 0x15b   : > { %v1627_v23 = vpop.f32.mrf.mxu0 }
 0x15c   : > { %v1537_v0 = vadd.f32 %v1536_v32, %v1448_v40  ;;  %v4003_v40 = vor.u32 %v3105_v57, %v2642_v61  ;;  %v4005_v32 = vor.u32 %v3102_v8, %v2636_v49  ;;  %1968 = vmatpush.bf16.msra.mxu0 %v2931_v9  ;;  %v3109_v9 = vld [vmem:[%s3402_s30 + $0x1f8] sm:$0xf0] }
 0x15e   : > { %v3988_v19 = vpop.f32.mrf.mxu1  ;;  %v3990_v59 = vadd.f32 %v1625_v20, %v1537_v0 }
 0x160   : > { %4522 = vst [vmem:[#allocation49_spill] sm:$0xff] %v3990_v59 }
 0x161   : > { %v1449_v22 = vpop.f32.mrf.mxu2 }
 0x162   : > { %v1450_v25 = vadd.f32 %v1449_v22, %v3740_v16  ;;  %v1538_v42 = vpop.f32.mrf.mxu3  ;;  %v3192_v16 = vld [vmem:[%s3364_s22 + $0x214] sm:$0xf]  ;;  %v2654_v22 = vld [vmem:[%s3402_s30 + $0x1e8] sm:$0xf] }
 0x163   : > { %v1630_v20 = vpop.f32.mrf.mxu0  ;;  %v2995_v61 = vor.u32 %v3192_v16, %v2992_v34  ;;  %v4029_v34 = vor.u32 %v3109_v9, %v2654_v22 }
 0x164   : > { %v1539_v58 = vadd.f32 %v1538_v42, %v1450_v25  ;;  %v2662_v25 = vld [vmem:[%s3402_s30 + $0x1f0] sm:$0xf]  ;;  %v3107_v42 = vld [vmem:[%s3402_s30 + $0x1ec] sm:$0xf] }
 0x165   : > { %2057 = vmatpush.bf16.msra.mxu1 %v2995_v61  ;;  %4525 = vst [vmem:[#allocation52_spill] sm:$0xff] %v4029_v34 }
 0x166   : > { %v4007_v0 = vpop.f32.mrf.mxu1  ;;  %v4009_v59 = vadd.f32 %v1627_v23, %v1539_v58  ;;  %1491 = vmatmul.bf16.gmra.mxu2 %v4001_v27  ;;  %1669 = vmatmul.bf16.gmra.mxu0 %v4003_v40  ;;  %v2656_v58 = vld [vmem:[%s3402_s30 + $0x1fc] sm:$0xf0] }
 0x167   : > { %1580 = vmatmul.bf16.gmra.mxu3 %v4005_v32  ;;  %v4033_v61 = vor.u32 %v3107_v42, %v2656_v58 }
 0x168   : > { %4523 = vst [vmem:[#allocation50_spill] sm:$0xff] %v4009_v59 }
 0x169   : > { %1758 = vmatmul.bf16.gmra.mxu1 %v3516_v28  ;;  %v1452_v49 = vpop.f32.mrf.mxu2  ;;  %v3110_v28 = vld [vmem:[%s3402_s30 + $0x200] sm:$0xf0]  ;;  %4527 = vst [vmem:[#allocation54_spill] sm:$0xff] %v4033_v61 }
 0x16a   : > { %v1453_v48 = vadd.f32 %v1452_v49, %v3763_v62  ;;  %v1541_v57 = vpop.f32.mrf.mxu3  ;;  %v4031_v49 = vor.u32 %v3110_v28, %v2662_v25  ;;  %v3158_v25 = vld [vmem:[%s3364_s22 + $0x104] sm:$0xf] }
 0x16b   : > { %v1632_v46 = vpop.f32.mrf.mxu0 }
 0x16c   : > { %v1542_v23 = vadd.f32 %v1541_v57, %v1453_v48  ;;  %4526 = vst [vmem:[#allocation53_spill] sm:$0xff] %v4031_v49 }
 0x16e   : > { %v4018_v44 = vpop.f32.mrf.mxu1  ;;  %v4020_v8 = vadd.f32 %v1630_v20, %v1542_v23 }
 0x170   : > { %4524 = vst [vmem:[#allocation51_spill] sm:$0xff] %v4020_v8  ;;  %v2920_v8 = vld [vmem:[%s3364_s22 + $0x188] sm:$0xf0] }
 0x171   : > { %v1454_v59 = vpop.f32.mrf.mxu2 }
 0x172   : > { %v1455_v16 = vadd.f32 %v1454_v59, %v3772_v47  ;;  %v1543_v62 = vpop.f32.mrf.mxu3  ;;  %v3142_v47 = vld [vmem:[%s3364_s22 + $0x84] sm:$0xf]  ;;  %v2792_v59 = vld [vmem:[%s3364_s22 + $0x88] sm:$0xf0] }
 0x173   : > { %v1635_v20 = vpop.f32.mrf.mxu0  ;;  %v2795_v9 = vor.u32 %v3142_v47, %v2792_v59  ;;  %v3114_v47 = vld [vmem:[%s3402_s30 + $0x220] sm:$0xf0]  ;;  %v3112_v59 = vld [vmem:[%s3402_s30 + $0x214] sm:$0xf] }
 0x174   : > { %v1544_v48 = vadd.f32 %v1543_v62, %v1455_v16 }
 0x175   : > { %1791 = vmatpush.bf16.msra.mxu2 %v2795_v9 }
 0x176   : > { %v4035_v57 = vpop.f32.mrf.mxu1  ;;  %v4037_v23 = vadd.f32 %v1632_v46, %v1544_v48  ;;  %1496 = vmatmul.bf16.gmra.mxu2 %v4029_v34  ;;  %1674 = vmatmul.bf16.gmra.mxu0 %v4031_v49  ;;  %v2856_v46 = vld [vmem:[%s3364_s22 + $0x108] sm:$0xf0]  ;;  %v2682_v49 = vld [vmem:[%s3402_s30 + $0x218] sm:$0xf]  ;;  %v2676_v34 = vld [vmem:[%s3402_s30 + $0x224] sm:$0xf0] }
 0x177   : > { %4528 = vst [vmem:[#allocation55_spill] sm:$0xff] %v4035_v57  ;;  %1585 = vmatmul.bf16.gmra.mxu3 %v4033_v61  ;;  %v2859_v58 = vor.u32 %v3158_v25, %v2856_v46  ;;  %v3115_v57 = vld [vmem:[%s3402_s30 + $0x228] sm:$0xf0]  ;;  %v3174_v61 = vld [vmem:[%s3364_s22 + $0x184] sm:$0xf] }
 0x178   : > { %4529 = vst [vmem:[#allocation56_spill] sm:$0xff] %v4037_v23  ;;  %v2674_v23 = vld [vmem:[%s3402_s30 + $0x210] sm:$0xf] }
 0x179   : > { %1763 = vmatmul.bf16.gmra.mxu1 %v3544_v56  ;;  %v1457_v22 = vpop.f32.mrf.mxu2  ;;  %1880 = vmatpush.bf16.msra.mxu3 %v2859_v58  ;;  %v4061_v46 = vor.u32 %v3114_v47, %v2674_v23 }
 0x17a   : > { %v1458_v28 = vadd.f32 %v1457_v22, %v3791_v36  ;;  %v1546_v42 = vpop.f32.mrf.mxu3  ;;  %v2923_v22 = vor.u32 %v3174_v61, %v2920_v8  ;;  %v2984_v8 = vld [vmem:[%s3364_s22 + $0x208] sm:$0xf0] }
 0x17b   : > { %v1637_v16 = vpop.f32.mrf.mxu0 }
 0x17c   : > { %v1547_v56 = vadd.f32 %v1546_v42, %v1458_v28  ;;  %v4063_v28 = vor.u32 %v3115_v57, %v2682_v49  ;;  %v4065_v42 = vor.u32 %v3112_v59, %v2676_v34  ;;  %1969 = vmatpush.bf16.msra.mxu0 %v2923_v22  ;;  %v3119_v22 = vld [vmem:[%s3402_s30 + $0x248] sm:$0xf0] }
 0x17e   : > { %v4048_v62 = vpop.f32.mrf.mxu1  ;;  %v4050_v48 = vadd.f32 %v1635_v20, %v1547_v56  ;;  %4531 = vst [vmem:[#allocation58_spill] sm:$0xff] %v4063_v28 }
 0x180   : > { %4530 = vst [vmem:[#allocation57_spill] sm:$0xff] %v4050_v48 }
 0x181   : > { %v1459_v36 = vpop.f32.mrf.mxu2 }
 0x182   : > { %v1460_v9 = vadd.f32 %v1459_v36, %v3804_v45  ;;  %v1548_v25 = vpop.f32.mrf.mxu3  ;;  %v3190_v45 = vld [vmem:[%s3364_s22 + $0x204] sm:$0xf]  ;;  %v2694_v36 = vld [vmem:[%s3402_s30 + $0x238] sm:$0xf] }
 0x183   : > { %v1640_v20 = vpop.f32.mrf.mxu0  ;;  %v2987_v49 = vor.u32 %v3190_v45, %v2984_v8  ;;  %v4089_v8 = vor.u32 %v3119_v22, %v2694_v36 }
 0x184   : > { %v1549_v58 = vadd.f32 %v1548_v25, %v1460_v9  ;;  %v2702_v9 = vld [vmem:[%s3402_s30 + $0x240] sm:$0xf]  ;;  %v3117_v25 = vld [vmem:[%s3402_s30 + $0x23c] sm:$0xf] }
 0x185   : > { %2058 = vmatpush.bf16.msra.mxu1 %v2987_v49 }
 0x186   : > { %v4067_v56 = vpop.f32.mrf.mxu1  ;;  %v4069_v48 = vadd.f32 %v1637_v16, %v1549_v58  ;;  %1501 = vmatmul.bf16.gmra.mxu2 %v4061_v46  ;;  %1679 = vmatmul.bf16.gmra.mxu0 %v4063_v28  ;;  %v2696_v58 = vld [vmem:[%s3402_s30 + $0x24c] sm:$0xf0] }
 0x187   : > { %1590 = vmatmul.bf16.gmra.mxu3 %v4065_v42  ;;  %v4093_v49 = vor.u32 %v3117_v25, %v2696_v58  ;;  %v2722_v25 = vld [vmem:[%s3402_s30 + $0x268] sm:$0xf]  ;;  %v3125_v58 = vld [vmem:[%s3402_s30 + $0x278] sm:$0xf0] }
 0x188   : > { %4532 = vst [vmem:[#allocation59_spill] sm:$0xff] %v4069_v48 }
 0x189   : > { %1768 = vmatmul.bf16.gmra.mxu1 %v3572_v24  ;;  %v1462_v34 = vpop.f32.mrf.mxu2  ;;  %v3120_v24 = vld [vmem:[%s3402_s30 + $0x250] sm:$0xf0] }
 0x18a   : > { %v1463_v61 = vadd.f32 %v1462_v34, %v3827_v30  ;;  %v1551_v57 = vpop.f32.mrf.mxu3  ;;  %v4091_v30 = vor.u32 %v3120_v24, %v2702_v9  ;;  %v2714_v9 = vld [vmem:[%s3402_s30 + $0x260] sm:$0xf]  ;;  %v3124_v24 = vld [vmem:[%s3402_s30 + $0x270] sm:$0xf0] }
 0x18b   : > { %v1642_v23 = vpop.f32.mrf.mxu0 }
 0x18c   : > { %v1552_v16 = vadd.f32 %v1551_v57, %v1463_v61  ;;  %4533 = vst [vmem:[#allocation60_spill] sm:$0xff] %v4091_v30 }
 0x18e   : > { %v4078_v47 = vpop.f32.mrf.mxu1  ;;  %v4080_v59 = vadd.f32 %v1640_v20, %v1552_v16 }
 0x191   : > { %v1464_v48 = vpop.f32.mrf.mxu2 }
 0x192   : > { %v1465_v28 = vadd.f32 %v1464_v48, %v3836_v2  ;;  %v1553_v45 = vpop.f32.mrf.mxu3 }
 0x193   : > { %v1645_v34 = vpop.f32.mrf.mxu0 }
 0x194   : > { %v1554_v20 = vadd.f32 %v1553_v45, %v1465_v28  ;;  %v3122_v45 = vld [vmem:[%s3402_s30 + $0x264] sm:$0xf] }
 0x196   : > { %v4095_v61 = vpop.f32.mrf.mxu1  ;;  %v4097_v57 = vadd.f32 %v1642_v23, %v1554_v20  ;;  %1506 = vmatmul.bf16.gmra.mxu2 %v4089_v8  ;;  %1684 = vmatmul.bf16.gmra.mxu0 %v4091_v30  ;;  %v2716_v20 = vld [vmem:[%s3402_s30 + $0x274] sm:$0xf0] }
 0x197   : > { %4534 = vst [vmem:[#allocation61_spill] sm:$0xff] %v4095_v61  ;;  %1595 = vmatmul.bf16.gmra.mxu3 %v4093_v49  ;;  %v4115_v61 = vor.u32 %v3124_v24, %v2714_v9 }
 0x198   : > { %4535 = vst [vmem:[#allocation62_spill] sm:$0xff] %v4097_v57 }
 0x199   : > { %1773 = vmatmul.bf16.gmra.mxu1 %v3600_v60  ;;  %v1467_v2 = vpop.f32.mrf.mxu2 }
 0x19a   : > { %v1468_v48 = vadd.f32 %v1467_v2, %v3855_v29  ;;  %v1556_v28 = vpop.f32.mrf.mxu3  ;;  %v4117_v29 = vor.u32 %v3125_v58, %v2722_v25 }
 0x19b   : > { %v1647_v16 = vpop.f32.mrf.mxu0 }
 0x19c   : > { %v1557_v36 = vadd.f32 %v1556_v28, %v1468_v48  ;;  %4536 = vst [vmem:[#allocation63_spill] sm:$0xff] %v4117_v29  ;;  %v4119_v48 = vor.u32 %v3122_v45, %v2716_v20 }
 0x19e   : > { %v4104_v22 = vpop.f32.mrf.mxu1  ;;  %v4106_v23 = vadd.f32 %v1645_v34, %v1557_v36 }
 0x1a1   : > { %v1469_v57 = vpop.f32.mrf.mxu2 }
 0x1a2   : > { %v1470_v30 = vadd.f32 %v1469_v57, %v3868_v1  ;;  %v1558_v60 = vpop.f32.mrf.mxu3 }
 0x1a3   : > { %v1650_v2 = vpop.f32.mrf.mxu0 }
 0x1a4   : > { %v1559_v28 = vadd.f32 %v1558_v60, %v1470_v30 }
 0x1a6   : > { %v4121_v34 = vpop.f32.mrf.mxu1  ;;  %v4123_v36 = vadd.f32 %v1647_v16, %v1559_v28  ;;  %1511 = vmatmul.bf16.gmra.mxu2 %v4115_v61  ;;  %1689 = vmatmul.bf16.gmra.mxu0 %v4117_v29 }
 0x1a7   : > { %1600 = vmatmul.bf16.gmra.mxu3 %v4119_v48 }
 0x1a8   : > { %4537 = vst [vmem:[#allocation64_spill] sm:$0xff] %v4123_v36 }
 0x1a9   : > { %1778 = vmatmul.bf16.gmra.mxu1 %v3626_v33  ;;  %v1472_v1 = vpop.f32.mrf.mxu2 }
 0x1aa   : > { %v1473_v57 = vadd.f32 %v1472_v1, %v3889_v4  ;;  %v1561_v9 = vpop.f32.mrf.mxu3 }
 0x1ab   : > { %v1652_v24 = vpop.f32.mrf.mxu0 }
 0x1ac   : > { %v1562_v25 = vadd.f32 %v1561_v9, %v1473_v57 }
 0x1ae   : > { %v4130_v58 = vpop.f32.mrf.mxu1  ;;  %v4132_v30 = vadd.f32 %v1650_v2, %v1562_v25 }
 0x1b1   : > { %v1474_v16 = vpop.f32.mrf.mxu2 }
 0x1b2   : > { %v1475_v45 = vadd.f32 %v1474_v16, %v3900_v39  ;;  %v1563_v20 = vpop.f32.mrf.mxu3 }
 0x1b3   : > { %v1655_v60 = vpop.f32.mrf.mxu0 }
 0x1b4   : > { %v1564_v28 = vadd.f32 %v1563_v20, %v1475_v45 }
 0x1b6   : > { %v4135_v36 = vpop.f32.mrf.mxu1  ;;  %v4137_v29 = vadd.f32 %v1652_v24, %v1564_v28  ;;  %1792 = vmatmul.bf16.vlgmr.msra.gmra.mxu2 %v3434_v10  ;;  %1970 = vmatmul.bf16.vlgmr.msra.gmra.mxu0 %v3659_v55 }
 0x1b7   : > { %1881 = vmatmul.bf16.vlgmr.msra.gmra.mxu3 %v3655_v52 }
 0x1b9   : > { %2059 = vmatmul.bf16.vlgmr.msra.gmra.mxu1 %v3657_v53  ;;  %v1477_v33 = vpop.f32.mrf.mxu2 }
 0x1ba   : > { %v1478_v4 = vadd.f32 %v1477_v33, %v3673_v21  ;;  %v1566_v2 = vpop.f32.mrf.mxu3 }
 0x1bb   : > { %v1657_v39 = vpop.f32.mrf.mxu0 }
 0x1bc   : > { %v1567_v1 = vadd.f32 %v1566_v2, %v1478_v4 }
 0x1be   : > { %v4144_v57 = vpop.f32.mrf.mxu1  ;;  %v4146_v9 = vadd.f32 %v1655_v60, %v1567_v1 }
 0x1c1   : > { %v1479_v24 = vpop.f32.mrf.mxu2 }
 0x1c2   : > { %v1480_v25 = vadd.f32 %v1479_v24, %v3693_v13  ;;  %v1568_v10 = vpop.f32.mrf.mxu3 }
 0x1c3   : > { %v1660_v16 = vpop.f32.mrf.mxu0 }
 0x1c4   : > { %v1569_v55 = vadd.f32 %v1568_v10, %v1480_v25 }
 0x1c6   : > { %v4149_v45 = vpop.f32.mrf.mxu1  ;;  %v4151_v52 = vadd.f32 %v1657_v39, %v1569_v55  ;;  %1797 = vmatmul.bf16.gmra.mxu2 %v3466_v43  ;;  %1975 = vmatmul.bf16.gmra.mxu0 %v3691_v12 }
 0x1c7   : > { %1886 = vmatmul.bf16.gmra.mxu3 %v3687_v6 }
 0x1c9   : > { %2064 = vmatmul.bf16.gmra.mxu1 %v3689_v7  ;;  %v1482_v53 = vpop.f32.mrf.mxu2 }
 0x1ca   : > { %v1483_v21 = vadd.f32 %v1482_v53, %v3705_v37  ;;  %v1571_v20 = vpop.f32.mrf.mxu3 }
 0x1cb   : > { %v1662_v13 = vpop.f32.mrf.mxu0 }
 0x1cc   : > { %v1572_v60 = vadd.f32 %v1571_v20, %v1483_v21 }
 0x1ce   : > { %v4158_v28 = vpop.f32.mrf.mxu1  ;;  %v4160_v33 = vadd.f32 %v1660_v16, %v1572_v60 }
 0x1d1   : > { %v1484_v4 = vpop.f32.mrf.mxu2 }
 0x1d2   : > { %v1485_v2 = vadd.f32 %v1484_v4, %v3723_v18  ;;  %v1573_v43 = vpop.f32.mrf.mxu3 }
 0x1d3   : > { %v1665_v39 = vpop.f32.mrf.mxu0 }
 0x1d4   : > { %v1574_v12 = vadd.f32 %v1573_v43, %v1485_v2 }
 0x1d6   : > { %v4163_v1 = vpop.f32.mrf.mxu1  ;;  %v4165_v6 = vadd.f32 %v1662_v13, %v1574_v12  ;;  %1802 = vmatmul.bf16.gmra.mxu2 %v3494_v5  ;;  %1980 = vmatmul.bf16.gmra.mxu0 %v3721_v17  ;;  %v4539_v13 = vld [vmem:[#allocation15_spill] sm:$0xff] }
 0x1d7   : > { %1891 = vmatmul.bf16.gmra.mxu3 %v3717_v14 }
 0x1d9   : > { %2069 = vmatmul.bf16.gmra.mxu1 %v3719_v15  ;;  %v1487_v7 = vpop.f32.mrf.mxu2  ;;  %v4538_v15 = vld [vmem:[#allocation14_spill] sm:$0xff] }
 0x1da   : > { %v1488_v37 = vadd.f32 %v1487_v7, %v3737_v54  ;;  %v1576_v24 = vpop.f32.mrf.mxu3  ;;  %v4540_v7 = vld [vmem:[#allocation19_spill] sm:$0xff] }
 0x1db   : > { %v1667_v18 = vpop.f32.mrf.mxu0 }
 0x1dc   : > { %v1577_v25 = vadd.f32 %v1576_v24, %v1488_v37 }
 0x1de   : > { %v4172_v10 = vpop.f32.mrf.mxu1  ;;  %v4174_v16 = vadd.f32 %v1665_v39, %v1577_v25  ;;  %v4541_v25 = vld [vmem:[#allocation7_spill] sm:$0xff] }
 0x1e1   : > { %v1489_v55 = vpop.f32.mrf.mxu2 }
 0x1e2   : > { %v1490_v53 = vadd.f32 %v1489_v55, %v3757_v26  ;;  %v1578_v5 = vpop.f32.mrf.mxu3  ;;  %v4542_v55 = vld [vmem:[#allocation18_spill] sm:$0xff] }
 0x1e3   : > { %v1670_v21 = vpop.f32.mrf.mxu0 }
 0x1e4   : > { %v1579_v17 = vadd.f32 %v1578_v5, %v1490_v53  ;;  %v4543_v53 = vld [vmem:[#allocation16_spill] sm:$0xff]  ;;  %v4544_v5 = vld [vmem:[#allocation17_spill] sm:$0xff] }
 0x1e6   : > { %v4177_v20 = vpop.f32.mrf.mxu1  ;;  %v4179_v14 = vadd.f32 %v1667_v18, %v1579_v17  ;;  %1807 = vmatmul.bf16.gmra.mxu2 %v3522_v31  ;;  %1985 = vmatmul.bf16.gmra.mxu0 %v3755_v11  ;;  %v4545_v17 = vld [vmem:[#allocation20_spill] sm:$0xff] }
 0x1e7   : > { %1896 = vmatmul.bf16.gmra.mxu3 %v3751_v50 }
 0x1e9   : > { %2074 = vmatmul.bf16.gmra.mxu1 %v4538_v15  ;;  %v1492_v54 = vpop.f32.mrf.mxu2 }
 0x1ea   : > { %v1493_v60 = vadd.f32 %v1492_v54, %v4539_v13  ;;  %v1581_v4 = vpop.f32.mrf.mxu3 }
 0x1eb   : > { %v1672_v26 = vpop.f32.mrf.mxu0 }
 0x1ec   : > { %v1582_v2 = vadd.f32 %v1581_v4, %v1493_v60 }
 0x1ee   : > { %v4186_v43 = vpop.f32.mrf.mxu1  ;;  %v4188_v39 = vadd.f32 %v1670_v21, %v1582_v2 }
 0x1f1   : > { %v1494_v12 = vpop.f32.mrf.mxu2 }
 0x1f2   : > { %v1495_v37 = vadd.f32 %v1494_v12, %v4540_v7  ;;  %v1583_v31 = vpop.f32.mrf.mxu3  ;;  %v4548_v12 = vld [vmem:[#allocation24_spill] sm:$0xff] }
 0x1f3   : > { %v1675_v24 = vpop.f32.mrf.mxu0 }
 0x1f4   : > { %v1584_v11 = vadd.f32 %v1583_v31, %v1495_v37 }
 0x1f6   : > { %v4191_v18 = vpop.f32.mrf.mxu1  ;;  %v4193_v50 = vadd.f32 %v1672_v26, %v1584_v11  ;;  %1812 = vmatmul.bf16.gmra.mxu2 %v4541_v25  ;;  %1990 = vmatmul.bf16.gmra.mxu0 %v4542_v55 }
 0x1f7   : > { %1901 = vmatmul.bf16.gmra.mxu3 %v4543_v53  ;;  %v4551_v53 = vld [vmem:[#allocation9_spill] sm:$0xff] }
 0x1f9   : > { %2079 = vmatmul.bf16.gmra.mxu1 %v4544_v5  ;;  %v1497_v21 = vpop.f32.mrf.mxu2  ;;  %v4552_v5 = vld [vmem:[#allocation23_spill] sm:$0xff] }
 0x1fa   : > { %v1498_v15 = vadd.f32 %v1497_v21, %v4545_v17  ;;  %v1586_v54 = vpop.f32.mrf.mxu3  ;;  %v4553_v21 = vld [vmem:[#allocation21_spill] sm:$0xff]  ;;  %v4554_v17 = vld [vmem:[#allocation22_spill] sm:$0xff] }
 0x1fb   : > { %v1677_v13 = vpop.f32.mrf.mxu0 }
 0x1fc   : > { %v1587_v60 = vadd.f32 %v1586_v54, %v1498_v15  ;;  %v4555_v15 = vld [vmem:[#allocation25_spill] sm:$0xff] }
 0x1fe   : > { %v4200_v4 = vpop.f32.mrf.mxu1  ;;  %v4202_v2 = vadd.f32 %v1675_v24, %v1587_v60 }
 0x1ff   : > { %4546 = vst [vmem:[#allocation14_spill] sm:$0xff] %v4200_v4 }
 0x200   : > { %4547 = vst [vmem:[#allocation15_spill] sm:$0xff] %v4202_v2 }
 0x201   : > { %v1499_v26 = vpop.f32.mrf.mxu2 }
 0x202   : > { %v1500_v7 = vadd.f32 %v1499_v26, %v4548_v12  ;;  %v1588_v37 = vpop.f32.mrf.mxu3 }
 0x203   : > { %v1680_v31 = vpop.f32.mrf.mxu0 }
 0x204   : > { %v1589_v11 = vadd.f32 %v1588_v37, %v1500_v7  ;;  %v4558_v37 = vld [vmem:[#allocation29_spill] sm:$0xff] }
 0x206   : > { %v4205_v25 = vpop.f32.mrf.mxu1  ;;  %v4207_v55 = vadd.f32 %v1677_v13, %v1589_v11  ;;  %1817 = vmatmul.bf16.gmra.mxu2 %v4551_v53  ;;  %1995 = vmatmul.bf16.gmra.mxu0 %v4552_v5 }
 0x207   : > { %4549 = vst [vmem:[#allocation19_spill] sm:$0xff] %v4205_v25  ;;  %1906 = vmatmul.bf16.gmra.mxu3 %v4553_v21 }
 0x208   : > { %4550 = vst [vmem:[#allocation7_spill] sm:$0xff] %v4207_v55 }
 0x209   : > { %2084 = vmatmul.bf16.gmra.mxu1 %v4554_v17  ;;  %v1502_v24 = vpop.f32.mrf.mxu2  ;;  %v4561_v17 = vld [vmem:[#allocation11_spill] sm:$0xff] }
 0x20a   : > { %v1503_v54 = vadd.f32 %v1502_v24, %v4555_v15  ;;  %v1591_v60 = vpop.f32.mrf.mxu3  ;;  %v4562_v24 = vld [vmem:[#allocation28_spill] sm:$0xff]  ;;  %v4563_v15 = vld [vmem:[#allocation26_spill] sm:$0xff] }
 0x20b   : > { %v1682_v26 = vpop.f32.mrf.mxu0 }
 0x20c   : > { %v1592_v12 = vadd.f32 %v1591_v60, %v1503_v54  ;;  %v4564_v54 = vld [vmem:[#allocation27_spill] sm:$0xff]  ;;  %v4565_v60 = vld [vmem:[#allocation30_spill] sm:$0xff] }
 0x20e   : > { %v4214_v2 = vpop.f32.mrf.mxu1  ;;  %v4216_v7 = vadd.f32 %v1680_v31, %v1592_v12 }
 0x20f   : > { %4556 = vst [vmem:[#allocation18_spill] sm:$0xff] %v4214_v2 }
 0x210   : > { %4557 = vst [vmem:[#allocation16_spill] sm:$0xff] %v4216_v7 }
 0x211   : > { %v1504_v13 = vpop.f32.mrf.mxu2 }
 0x212   : > { %v1505_v11 = vadd.f32 %v1504_v13, %v4558_v37  ;;  %v1593_v53 = vpop.f32.mrf.mxu3 }
 0x213   : > { %v1685_v55 = vpop.f32.mrf.mxu0 }
 0x214   : > { %v1594_v5 = vadd.f32 %v1593_v53, %v1505_v11  ;;  %v4568_v53 = vld [vmem:[#allocation34_spill] sm:$0xff] }
 0x216   : > { %v4219_v25 = vpop.f32.mrf.mxu1  ;;  %v4221_v21 = vadd.f32 %v1682_v26, %v1594_v5  ;;  %1822 = vmatmul.bf16.gmra.mxu2 %v4561_v17  ;;  %2000 = vmatmul.bf16.gmra.mxu0 %v4562_v24 }
 0x217   : > { %4559 = vst [vmem:[#allocation17_spill] sm:$0xff] %v4219_v25  ;;  %1911 = vmatmul.bf16.gmra.mxu3 %v4563_v15 }
 0x218   : > { %4560 = vst [vmem:[#allocation20_spill] sm:$0xff] %v4221_v21 }
 0x219   : > { %2089 = vmatmul.bf16.gmra.mxu1 %v4564_v54  ;;  %v1507_v31 = vpop.f32.mrf.mxu2  ;;  %v4571_v54 = vld [vmem:[#allocation13_spill] sm:$0xff] }
 0x21a   : > { %v1508_v12 = vadd.f32 %v1507_v31, %v4565_v60  ;;  %v1596_v7 = vpop.f32.mrf.mxu3  ;;  %v4572_v31 = vld [vmem:[#allocation33_spill] sm:$0xff]  ;;  %v4574_v60 = vld [vmem:[#allocation32_spill] sm:$0xff] }
 0x21b   : > { %v1687_v13 = vpop.f32.mrf.mxu0 }
 0x21c   : > { %v1597_v37 = vadd.f32 %v1596_v7, %v1508_v12  ;;  %v4573_v7 = vld [vmem:[#allocation31_spill] sm:$0xff] }
 0x21d   : > { %v4575_v12 = vld [vmem:[#allocation35_spill] sm:$0xff] }
 0x21e   : > { %v4228_v2 = vpop.f32.mrf.mxu1  ;;  %v4230_v11 = vadd.f32 %v1685_v55, %v1597_v37 }
 0x21f   : > { %4566 = vst [vmem:[#allocation24_spill] sm:$0xff] %v4228_v2 }
 0x220   : > { %4567 = vst [vmem:[#allocation9_spill] sm:$0xff] %v4230_v11 }
 0x221   : > { %v1509_v26 = vpop.f32.mrf.mxu2 }
 0x222   : > { %v1510_v5 = vadd.f32 %v1509_v26, %v4568_v53  ;;  %v1598_v17 = vpop.f32.mrf.mxu3 }
 0x223   : > { %v1690_v21 = vpop.f32.mrf.mxu0 }
 0x224   : > { %v1599_v24 = vadd.f32 %v1598_v17, %v1510_v5 }
 0x226   : > { %v4233_v25 = vpop.f32.mrf.mxu1  ;;  %v4235_v15 = vadd.f32 %v1687_v13, %v1599_v24  ;;  %1827 = vmatmul.bf16.gmra.mxu2 %v4571_v54  ;;  %2005 = vmatmul.bf16.gmra.mxu0 %v4572_v31  ;;  %v4578_v24 = vld [vmem:[#allocation39_spill] sm:$0xff] }
 0x227   : > { %4569 = vst [vmem:[#allocation23_spill] sm:$0xff] %v4233_v25  ;;  %1916 = vmatmul.bf16.gmra.mxu3 %v4573_v7  ;;  %v3265_v7 = vld [vmem:[%s3644_s7] sm:$0x3] }
 0x228   : > { %4570 = vst [vmem:[#allocation21_spill] sm:$0xff] %v4235_v15  ;;  %v4248_v25 = vperm.slane %v3265_v7, 1 }
 0x229   : > { %2094 = vmatmul.bf16.gmra.mxu1 %v4574_v60  ;;  %v1512_v55 = vpop.f32.mrf.mxu2 }
 0x22a   : > { %v1513_v37 = vadd.f32 %v1512_v55, %v4575_v12  ;;  %v1601_v26 = vpop.f32.mrf.mxu3  ;;  %v4580_v12 = vld [vmem:[#allocation2_spill] sm:$0xff] }
 0x22b   : > { %v1692_v53 = vpop.f32.mrf.mxu0 }
 0x22c   : > { %v1602_v11 = vadd.f32 %v1601_v26, %v1513_v37  ;;  %v4581_v37 = vld [vmem:[#allocation38_spill] sm:$0xff] }
 0x22e   : > { %v4242_v5 = vpop.f32.mrf.mxu1  ;;  %v4244_v17 = vadd.f32 %v1690_v21, %v1602_v11  ;;  %v4582_v21 = vld [vmem:[#allocation36_spill] sm:$0xff] }
 0x22f   : > { %4576 = vst [vmem:[#allocation22_spill] sm:$0xff] %v4242_v5  ;;  %v4583_v11 = vld [vmem:[#allocation40_spill] sm:$0xff] }
 0x230   : > { %4577 = vst [vmem:[#allocation25_spill] sm:$0xff] %v4244_v17  ;;  %v1705_v26 = vadd.f32 %v4583_v11, %v4248_v25 }
 0x231   : > { %v1514_v13 = vpop.f32.mrf.mxu2 }
 0x232   : > { %v1515_v54 = vadd.f32 %v1514_v13, %v4578_v24  ;;  %v1603_v31 = vpop.f32.mrf.mxu3  ;;  %v4584_v13 = vld [vmem:[#allocation37_spill] sm:$0xff] }
 0x233   : > { %v1971_v15 = vpop.f32.mrf.mxu0 }
 0x234   : > { %v1604_v60 = vadd.f32 %v1603_v31, %v1515_v54 }
 0x236   : > { %v2060_v2 = vpop.f32.mrf.mxu1  ;;  %v4250_v55 = vadd.f32 %v1692_v53, %v1604_v60  ;;  %1832 = vmatmul.bf16.gmra.mxu2 %v4580_v12  ;;  %2010 = vmatmul.bf16.gmra.mxu0 %v4581_v37  ;;  %v1707_v12 = vadd.f32 %v3928_v41, %v4248_v25 }
 0x237   : > { %1921 = vmatmul.bf16.gmra.mxu3 %v4582_v21 }
 0x238   : > { %4579 = vst [vmem:[#allocation29_spill] sm:$0xff] %v4250_v55  ;;  %v4585_v55 = vld [vmem:[#allocation41_spill] sm:$0xff] }
 0x239   : > { %2099 = vmatmul.bf16.gmra.mxu1 %v4584_v13  ;;  %v1793_v24 = vpop.f32.mrf.mxu2  ;;  %v2140_v11 = vmax.f32 %v4585_v55, 0.0 }
 0x23a   : > { %v1794_v17 = vadd.f32 %v1793_v24, %v1705_v26  ;;  %v1882_v7 = vpop.f32.mrf.mxu3 }
 0x23b   : > { %v1973_v54 = vpop.f32.mrf.mxu0 }
 0x23c   : > { %v1883_v31 = vadd.f32 %v1882_v7, %v1794_v17  ;;  %v4586_v7 = vld [vmem:[#allocation3_spill] sm:$0xff] }
 0x23e   : > { %v2062_v53 = vpop.f32.mrf.mxu1  ;;  %v1972_v60 = vadd.f32 %v1971_v15, %v1883_v31 }
 0x240   : > { %v2061_v37 = vadd.f32 %v2060_v2, %v1972_v60  ;;  %v1710_v2 = vadd.f32 %v3947_v3, %v4248_v25  ;;  %v4587_v60 = vld [vmem:[#allocation42_spill] sm:$0xff] }
 0x241   : > { %v1795_v21 = vpop.f32.mrf.mxu2 }
 0x242   : > { %v2141_v5 = vmax.f32 %v2061_v37, 0.0  ;;  %v1796_v13 = vadd.f32 %v1795_v21, %v1707_v12  ;;  %v1884_v4 = vpop.f32.mrf.mxu3 }
 0x243   : > { %v1976_v17 = vpop.f32.mrf.mxu0 }
 0x244   : > { %v2204_v26 = vpack.c.bf16 %v2141_v5, %v2140_v11  ;;  %v1885_v15 = vadd.f32 %v1884_v4, %v1796_v13  ;;  %v2142_v5 = vmax.f32 %v4587_v60, 0.0 }
 0x246   : > { %v2065_v24 = vpop.f32.mrf.mxu1  ;;  %2236 = vst [vmem:[%s4266_s13] sm:$0xff] %v2204_v26  ;;  %v1974_v41 = vadd.f32 %v1973_v54, %v1885_v15  ;;  %1837 = vmatmul.bf16.gmra.mxu2 %v4586_v7  ;;  %2015 = vmatmul.bf16.gmra.mxu0 %v3945_v38  ;;  %v4588_v26 = vld [vmem:[#allocation43_spill] sm:$0xff] }
 0x247   : > { %1926 = vmatmul.bf16.gmra.mxu3 %v3941_v63  ;;  %v1712_v63 = vadd.f32 %v3958_v51, %v4248_v25  ;;  %v4592_v51 = vld [vmem:[#allocation47_spill] sm:$0xff] }
 0x248   : > { %v2063_v55 = vadd.f32 %v2062_v53, %v1974_v41 }
 0x249   : > { %2104 = vmatmul.bf16.gmra.mxu1 %v3943_v35  ;;  %v1798_v31 = vpop.f32.mrf.mxu2  ;;  %v2144_v35 = vmax.f32 %v4588_v26, 0.0 }
 0x24a   : > { %v2143_v4 = vmax.f32 %v2063_v55, 0.0  ;;  %v1799_v12 = vadd.f32 %v1798_v31, %v1710_v2  ;;  %v1887_v37 = vpop.f32.mrf.mxu3 }
 0x24b   : > { %v1978_v54 = vpop.f32.mrf.mxu0 }
 0x24c   : > { %v2205_v21 = vpack.c.bf16 %v2143_v4, %v2142_v5  ;;  %v1888_v11 = vadd.f32 %v1887_v37, %v1799_v12  ;;  %v4589_v4 = vld [vmem:[#allocation4_spill] sm:$0xff] }
 0x24d   : > { %v4591_v12 = vld [vmem:[#allocation44_spill] sm:$0xff] }
 0x24e   : > { %v2067_v13 = vpop.f32.mrf.mxu1  ;;  %2237 = vst [vmem:[%s4266_s13 + $0x8] sm:$0xff] %v2205_v21  ;;  %v1977_v38 = vadd.f32 %v1976_v17, %v1888_v11  ;;  %v4590_v17 = vld [vmem:[#allocation46_spill] sm:$0xff]  ;;  %v4593_v21 = vld [vmem:[#allocation45_spill] sm:$0xff] }
 0x250   : > { %v2066_v3 = vadd.f32 %v2065_v24, %v1977_v38  ;;  %v1715_v24 = vadd.f32 %v4592_v51, %v4248_v25  ;;  %v4594_v38 = vld [vmem:[#allocation48_spill] sm:$0xff] }
 0x251   : > { %v1800_v53 = vpop.f32.mrf.mxu2 }
 0x252   : > { %v2145_v15 = vmax.f32 %v2066_v3, 0.0  ;;  %v1801_v41 = vadd.f32 %v1800_v53, %v1712_v63  ;;  %v1889_v7 = vpop.f32.mrf.mxu3  ;;  %v2146_v63 = vmax.f32 %v4594_v38, 0.0 }
 0x253   : > { %v1981_v55 = vpop.f32.mrf.mxu0 }
 0x254   : > { %v2206_v2 = vpack.c.bf16 %v2145_v15, %v2144_v35  ;;  %v1890_v31 = vadd.f32 %v1889_v7, %v1801_v41 }
 0x256   : > { %v2070_v60 = vpop.f32.mrf.mxu1  ;;  %2238 = vst [vmem:[%s4266_s13 + $0x10] sm:$0xff] %v2206_v2  ;;  %v1979_v5 = vadd.f32 %v1978_v54, %v1890_v31  ;;  %1842 = vmatmul.bf16.gmra.mxu2 %v4589_v4  ;;  %2020 = vmatmul.bf16.gmra.mxu0 %v4590_v17  ;;  %v1717_v2 = vadd.f32 %v3988_v19, %v4248_v25 }
 0x257   : > { %1931 = vmatmul.bf16.gmra.mxu3 %v4591_v12  ;;  %v1720_v19 = vadd.f32 %v4007_v0, %v4248_v25 }
 0x258   : > { %v2068_v37 = vadd.f32 %v2067_v13, %v1979_v5  ;;  %v4595_v5 = vld [vmem:[#allocation49_spill] sm:$0xff] }
 0x259   : > { %2109 = vmatmul.bf16.gmra.mxu1 %v4593_v21  ;;  %v1803_v11 = vpop.f32.mrf.mxu2  ;;  %v2148_v4 = vmax.f32 %v4595_v5, 0.0 }
 0x25a   : > { %v2147_v3 = vmax.f32 %v2068_v37, 0.0  ;;  %v1804_v53 = vadd.f32 %v1803_v11, %v1715_v24  ;;  %v1892_v26 = vpop.f32.mrf.mxu3 }
 0x25b   : > { %v1983_v54 = vpop.f32.mrf.mxu0 }
 0x25c   : > { %v2207_v35 = vpack.c.bf16 %v2147_v3, %v2146_v63  ;;  %v1893_v15 = vadd.f32 %v1892_v26, %v1804_v53  ;;  %v4596_v63 = vld [vmem:[#allocation5_spill] sm:$0xff]  ;;  %v4597_v3 = vld [vmem:[#allocation50_spill] sm:$0xff] }
 0x25d   : > { %v2150_v53 = vmax.f32 %v4597_v3, 0.0 }
 0x25e   : > { %v2072_v41 = vpop.f32.mrf.mxu1  ;;  %2239 = vst [vmem:[%s4266_s13 + $0x18] sm:$0xff] %v2207_v35  ;;  %v1982_v7 = vadd.f32 %v1981_v55, %v1893_v15 }
 0x260   : > { %v2071_v31 = vadd.f32 %v2070_v60, %v1982_v7 }
 0x261   : > { %v1805_v13 = vpop.f32.mrf.mxu2 }
 0x262   : > { %v2149_v17 = vmax.f32 %v2071_v31, 0.0  ;;  %v1806_v12 = vadd.f32 %v1805_v13, %v1717_v2  ;;  %v1894_v51 = vpop.f32.mrf.mxu3  ;;  %v4598_v13 = vld [vmem:[#allocation51_spill] sm:$0xff] }
 0x263   : > { %v1986_v37 = vpop.f32.mrf.mxu0 }
 0x264   : > { %v2208_v24 = vpack.c.bf16 %v2149_v17, %v2148_v4  ;;  %v1895_v21 = vadd.f32 %v1894_v51, %v1806_v12 }
 0x266   : > { %v2075_v11 = vpop.f32.mrf.mxu1  ;;  %2240 = vst [vmem:[%s4266_s13 + $0x20] sm:$0xff] %v2208_v24  ;;  %v1984_v38 = vadd.f32 %v1983_v54, %v1895_v21  ;;  %1847 = vmatmul.bf16.gmra.mxu2 %v4596_v63  ;;  %2025 = vmatmul.bf16.gmra.mxu0 %v4005_v32  ;;  %v4599_v63 = vld [vmem:[#allocation6_spill] sm:$0xff] }
 0x267   : > { %1936 = vmatmul.bf16.gmra.mxu3 %v4001_v27  ;;  %v1722_v27 = vadd.f32 %v4018_v44, %v4248_v25  ;;  %v4602_v44 = vld [vmem:[#allocation55_spill] sm:$0xff] }
 0x268   : > { %v2073_v55 = vadd.f32 %v2072_v41, %v1984_v38 }
 0x269   : > { %2114 = vmatmul.bf16.gmra.mxu1 %v4003_v40  ;;  %v1808_v60 = vpop.f32.mrf.mxu2  ;;  %v2152_v40 = vmax.f32 %v4598_v13, 0.0 }
 0x26a   : > { %v2151_v26 = vmax.f32 %v2073_v55, 0.0  ;;  %v1809_v35 = vadd.f32 %v1808_v60, %v1720_v19  ;;  %v1897_v15 = vpop.f32.mrf.mxu3  ;;  %v4601_v19 = vld [vmem:[#allocation52_spill] sm:$0xff]  ;;  %v4603_v60 = vld [vmem:[#allocation53_spill] sm:$0xff] }
 0x26b   : > { %v1988_v54 = vpop.f32.mrf.mxu0 }
 0x26c   : > { %v2209_v7 = vpack.c.bf16 %v2151_v26, %v2150_v53  ;;  %v1898_v2 = vadd.f32 %v1897_v15, %v1809_v35  ;;  %v4604_v53 = vld [vmem:[#allocation56_spill] sm:$0xff] }
 0x26d   : > { %v2154_v26 = vmax.f32 %v4604_v53, 0.0 }
 0x26e   : > { %v2077_v31 = vpop.f32.mrf.mxu1  ;;  %2241 = vst [vmem:[%s4266_s13 + $0x28] sm:$0xff] %v2209_v7  ;;  %v1987_v32 = vadd.f32 %v1986_v37, %v1898_v2  ;;  %v4600_v37 = vld [vmem:[#allocation54_spill] sm:$0xff] }
 0x270   : > { %v2076_v0 = vadd.f32 %v2075_v11, %v1987_v32  ;;  %v1725_v11 = vadd.f32 %v4602_v44, %v4248_v25  ;;  %v4606_v44 = vld [vmem:[#allocation8_spill] sm:$0xff] }
 0x271   : > { %v1810_v41 = vpop.f32.mrf.mxu2 }
 0x272   : > { %v2153_v5 = vmax.f32 %v2076_v0, 0.0  ;;  %v1811_v4 = vadd.f32 %v1810_v41, %v1722_v27  ;;  %v1899_v17 = vpop.f32.mrf.mxu3  ;;  %v1727_v41 = vadd.f32 %v4048_v62, %v4248_v25  ;;  %v1730_v62 = vadd.f32 %v4067_v56, %v4248_v25 }
 0x273   : > { %v1991_v12 = vpop.f32.mrf.mxu0 }
 0x274   : > { %v2210_v51 = vpack.c.bf16 %v2153_v5, %v2152_v40  ;;  %v1900_v24 = vadd.f32 %v1899_v17, %v1811_v4  ;;  %v4605_v40 = vld [vmem:[#allocation57_spill] sm:$0xff] }
 0x275   : > { %v2156_v5 = vmax.f32 %v4605_v40, 0.0 }
 0x276   : > { %v2080_v21 = vpop.f32.mrf.mxu1  ;;  %2242 = vst [vmem:[%s4266_s13 + $0x30] sm:$0xff] %v2210_v51  ;;  %v1989_v38 = vadd.f32 %v1988_v54, %v1900_v24  ;;  %1852 = vmatmul.bf16.gmra.mxu2 %v4599_v63  ;;  %2030 = vmatmul.bf16.gmra.mxu0 %v4600_v37 }
 0x277   : > { %1941 = vmatmul.bf16.gmra.mxu3 %v4601_v19 }
 0x278   : > { %v2078_v55 = vadd.f32 %v2077_v31, %v1989_v38 }
 0x279   : > { %2119 = vmatmul.bf16.gmra.mxu1 %v4603_v60  ;;  %v1813_v3 = vpop.f32.mrf.mxu2 }
 0x27a   : > { %v2155_v35 = vmax.f32 %v2078_v55, 0.0  ;;  %v1814_v15 = vadd.f32 %v1813_v3, %v1725_v11  ;;  %v1902_v7 = vpop.f32.mrf.mxu3  ;;  %v4608_v55 = vld [vmem:[#allocation59_spill] sm:$0xff] }
 0x27b   : > { %v1993_v54 = vpop.f32.mrf.mxu0  ;;  %v2158_v60 = vmax.f32 %v4608_v55, 0.0 }
 0x27c   : > { %v2211_v2 = vpack.c.bf16 %v2155_v35, %v2154_v26  ;;  %v1903_v32 = vadd.f32 %v1902_v7, %v1814_v15 }
 0x27e   : > { %v2082_v27 = vpop.f32.mrf.mxu1  ;;  %2243 = vst [vmem:[%s4266_s13 + $0x38] sm:$0xff] %v2211_v2  ;;  %v1992_v0 = vadd.f32 %v1991_v12, %v1903_v32  ;;  %v2160_v32 = vmax.f32 %v4080_v59, 0.0 }
 0x280   : > { %v2081_v13 = vadd.f32 %v2080_v21, %v1992_v0  ;;  %v4607_v21 = vld [vmem:[#allocation58_spill] sm:$0xff] }
 0x281   : > { %v1815_v31 = vpop.f32.mrf.mxu2 }
 0x282   : > { %v2157_v4 = vmax.f32 %v2081_v13, 0.0  ;;  %v1816_v17 = vadd.f32 %v1815_v31, %v1727_v41  ;;  %v1904_v51 = vpop.f32.mrf.mxu3 }
 0x283   : > { %v1996_v24 = vpop.f32.mrf.mxu0 }
 0x284   : > { %v2212_v38 = vpack.c.bf16 %v2157_v4, %v2156_v5  ;;  %v1905_v63 = vadd.f32 %v1904_v51, %v1816_v17  ;;  %v4609_v17 = vld [vmem:[#allocation10_spill] sm:$0xff] }
 0x286   : > { %v2085_v37 = vpop.f32.mrf.mxu1  ;;  %2244 = vst [vmem:[%s4266_s13 + $0x40] sm:$0xff] %v2212_v38  ;;  %v1994_v19 = vadd.f32 %v1993_v54, %v1905_v63  ;;  %1857 = vmatmul.bf16.gmra.mxu2 %v4606_v44  ;;  %2035 = vmatmul.bf16.gmra.mxu0 %v4065_v42  ;;  %v4612_v63 = vld [vmem:[#allocation62_spill] sm:$0xff] }
 0x287   : > { %1946 = vmatmul.bf16.gmra.mxu3 %v4061_v46  ;;  %v1732_v46 = vadd.f32 %v4078_v47, %v4248_v25  ;;  %v4610_v47 = vld [vmem:[#allocation61_spill] sm:$0xff] }
 0x288   : > { %v2083_v12 = vadd.f32 %v2082_v27, %v1994_v19  ;;  %v1735_v51 = vadd.f32 %v4610_v47, %v4248_v25 }
 0x289   : > { %2124 = vmatmul.bf16.gmra.mxu1 %v4607_v21  ;;  %v1818_v11 = vpop.f32.mrf.mxu2 }
 0x28a   : > { %v2159_v3 = vmax.f32 %v2083_v12, 0.0  ;;  %v1819_v53 = vadd.f32 %v1818_v11, %v1730_v62  ;;  %v1907_v26 = vpop.f32.mrf.mxu3 }
 0x28b   : > { %v1998_v35 = vpop.f32.mrf.mxu0 }
 0x28c   : > { %v2213_v15 = vpack.c.bf16 %v2159_v3, %v2158_v60  ;;  %v1908_v7 = vadd.f32 %v1907_v26, %v1819_v53  ;;  %v2164_v53 = vmax.f32 %v4106_v23, 0.0 }
 0x28e   : > { %v2087_v54 = vpop.f32.mrf.mxu1  ;;  %2245 = vst [vmem:[%s4266_s13 + $0x48] sm:$0xff] %v2213_v15  ;;  %v1997_v42 = vadd.f32 %v1996_v24, %v1908_v7  ;;  %v4611_v24 = vld [vmem:[#allocation60_spill] sm:$0xff] }
 0x290   : > { %v2086_v56 = vadd.f32 %v2085_v37, %v1997_v42  ;;  %v2162_v37 = vmax.f32 %v4612_v63, 0.0 }
 0x291   : > { %v1820_v2 = vpop.f32.mrf.mxu2 }
 0x292   : > { %v2161_v27 = vmax.f32 %v2086_v56, 0.0  ;;  %v1821_v0 = vadd.f32 %v1820_v2, %v1732_v46  ;;  %v1909_v41 = vpop.f32.mrf.mxu3  ;;  %v4613_v2 = vld [vmem:[#allocation12_spill] sm:$0xff] }
 0x293   : > { %v2001_v13 = vpop.f32.mrf.mxu0 }
 0x294   : > { %v2214_v31 = vpack.c.bf16 %v2161_v27, %v2160_v32  ;;  %v1910_v40 = vadd.f32 %v1909_v41, %v1821_v0  ;;  %v4614_v32 = vld [vmem:[#allocation63_spill] sm:$0xff]  ;;  %v4615_v0 = vld [vmem:[#allocation64_spill] sm:$0xff] }
 0x295   : > { %v2166_v41 = vmax.f32 %v4615_v0, 0.0 }
 0x296   : > { %v2090_v5 = vpop.f32.mrf.mxu1  ;;  %2246 = vst [vmem:[%s4266_s13 + $0x50] sm:$0xff] %v2214_v31  ;;  %v1999_v4 = vadd.f32 %v1998_v35, %v1910_v40  ;;  %1862 = vmatmul.bf16.gmra.mxu2 %v4609_v17  ;;  %2040 = vmatmul.bf16.gmra.mxu0 %v4093_v49 }
 0x297   : > { %1951 = vmatmul.bf16.gmra.mxu3 %v4089_v8  ;;  %v1737_v8 = vadd.f32 %v4104_v22, %v4248_v25  ;;  %v1740_v22 = vadd.f32 %v4121_v34, %v4248_v25 }
 0x298   : > { %v2088_v59 = vadd.f32 %v2087_v54, %v1999_v4 }
 0x299   : > { %2129 = vmatmul.bf16.gmra.mxu1 %v4611_v24  ;;  %v1823_v38 = vpop.f32.mrf.mxu2 }
 0x29a   : > { %v2163_v19 = vmax.f32 %v2088_v59, 0.0  ;;  %v1824_v44 = vadd.f32 %v1823_v38, %v1735_v51  ;;  %v1912_v62 = vpop.f32.mrf.mxu3  ;;  %v2168_v59 = vmax.f32 %v4132_v30, 0.0 }
 0x29b   : > { %v2003_v12 = vpop.f32.mrf.mxu0 }
 0x29c   : > { %v2215_v21 = vpack.c.bf16 %v2163_v19, %v2162_v37  ;;  %v1913_v11 = vadd.f32 %v1912_v62, %v1824_v44 }
 0x29e   : > { %v2092_v55 = vpop.f32.mrf.mxu1  ;;  %2247 = vst [vmem:[%s4266_s13 + $0x58] sm:$0xff] %v2215_v21  ;;  %v2002_v49 = vadd.f32 %v2001_v13, %v1913_v11  ;;  %v1745_v21 = vadd.f32 %v4135_v36, %v4248_v25  ;;  %v2172_v36 = vmax.f32 %v4146_v9, 0.0 }
 0x2a0   : > { %v2091_v60 = vadd.f32 %v2090_v5, %v2002_v49 }
 0x2a1   : > { %v1825_v3 = vpop.f32.mrf.mxu2 }
 0x2a2   : > { %v2165_v26 = vmax.f32 %v2091_v60, 0.0  ;;  %v1826_v35 = vadd.f32 %v1825_v3, %v1737_v8  ;;  %v1914_v15 = vpop.f32.mrf.mxu3 }
 0x2a3   : > { %v2006_v7 = vpop.f32.mrf.mxu0 }
 0x2a4   : > { %v2216_v54 = vpack.c.bf16 %v2165_v26, %v2164_v53  ;;  %v1915_v42 = vadd.f32 %v1914_v15, %v1826_v35  ;;  %v1747_v15 = vadd.f32 %v4144_v57, %v4248_v25  ;;  %v2174_v57 = vmax.f32 %v4151_v52, 0.0 }
 0x2a6   : > { %v2095_v46 = vpop.f32.mrf.mxu1  ;;  %2248 = vst [vmem:[%s4266_s13 + $0x60] sm:$0xff] %v2216_v54  ;;  %v2004_v56 = vadd.f32 %v2003_v12, %v1915_v42  ;;  %1867 = vmatmul.bf16.gmra.mxu2 %v4613_v2  ;;  %2045 = vmatmul.bf16.gmra.mxu0 %v4119_v48 }
 0x2a7   : > { %1956 = vmatmul.bf16.gmra.mxu3 %v4115_v61  ;;  %v1742_v61 = vadd.f32 %v4130_v58, %v4248_v25  ;;  %v2170_v58 = vmax.f32 %v4137_v29, 0.0 }
 0x2a8   : > { %v2093_v23 = vadd.f32 %v2092_v55, %v2004_v56 }
 0x2a9   : > { %2134 = vmatmul.bf16.gmra.mxu1 %v4614_v32  ;;  %v1828_v27 = vpop.f32.mrf.mxu2 }
 0x2aa   : > { %v2167_v13 = vmax.f32 %v2093_v23, 0.0  ;;  %v1829_v31 = vadd.f32 %v1828_v27, %v1740_v22  ;;  %v1917_v40 = vpop.f32.mrf.mxu3  ;;  %v1750_v27 = vadd.f32 %v4149_v45, %v4248_v25  ;;  %v2176_v45 = vmax.f32 %v4160_v33, 0.0 }
 0x2ab   : > { %v2008_v5 = vpop.f32.mrf.mxu0 }
 0x2ac   : > { %v2217_v4 = vpack.c.bf16 %v2167_v13, %v2166_v41  ;;  %v1918_v17 = vadd.f32 %v1917_v40, %v1829_v31 }
 0x2ae   : > { %v2097_v47 = vpop.f32.mrf.mxu1  ;;  %2249 = vst [vmem:[%s4266_s13 + $0x68] sm:$0xff] %v2217_v4  ;;  %v2007_v48 = vadd.f32 %v2006_v7, %v1918_v17 }
 0x2b0   : > { %v2096_v34 = vadd.f32 %v2095_v46, %v2007_v48  ;;  %v1752_v48 = vadd.f32 %v4158_v28, %v4248_v25  ;;  %v2178_v28 = vmax.f32 %v4165_v6, 0.0 }
 0x2b1   : > { %v1830_v51 = vpop.f32.mrf.mxu2 }
 0x2b2   : > { %v2169_v24 = vmax.f32 %v2096_v34, 0.0  ;;  %v1831_v38 = vadd.f32 %v1830_v51, %v1742_v61  ;;  %v1919_v63 = vpop.f32.mrf.mxu3 }
 0x2b3   : > { %v2011_v37 = vpop.f32.mrf.mxu0 }
 0x2b4   : > { %v2218_v19 = vpack.c.bf16 %v2169_v24, %v2168_v59  ;;  %v1920_v44 = vadd.f32 %v1919_v63, %v1831_v38 }
 0x2b6   : > { %v2100_v62 = vpop.f32.mrf.mxu1  ;;  %2250 = vst [vmem:[%s4266_s13 + $0x70] sm:$0xff] %v2218_v19  ;;  %v2009_v12 = vadd.f32 %v2008_v5, %v1920_v44  ;;  %v1755_v44 = vadd.f32 %v4163_v1, %v4248_v25  ;;  %v2180_v1 = vmax.f32 %v4174_v16, 0.0 }
 0x2b8   : > { %v2098_v11 = vadd.f32 %v2097_v47, %v2009_v12 }
 0x2b9   : > { %v1833_v55 = vpop.f32.mrf.mxu2 }
 0x2ba   : > { %v2171_v49 = vmax.f32 %v2098_v11, 0.0  ;;  %v1834_v8 = vadd.f32 %v1833_v55, %v1745_v21  ;;  %v1922_v30 = vpop.f32.mrf.mxu3 }
 0x2bb   : > { %v2013_v60 = vpop.f32.mrf.mxu0 }
 0x2bc   : > { %v2219_v3 = vpack.c.bf16 %v2171_v49, %v2170_v58  ;;  %v1923_v53 = vadd.f32 %v1922_v30, %v1834_v8 }
 0x2be   : > { %v2102_v26 = vpop.f32.mrf.mxu1  ;;  %2251 = vst [vmem:[%s4266_s13 + $0x78] sm:$0xff] %v2219_v3  ;;  %v2012_v35 = vadd.f32 %v2011_v37, %v1923_v53 }
 0x2c0   : > { %v2101_v7 = vadd.f32 %v2100_v62, %v2012_v35 }
 0x2c1   : > { %v1835_v54 = vpop.f32.mrf.mxu2 }
 0x2c2   : > { %v2173_v42 = vmax.f32 %v2101_v7, 0.0  ;;  %v1836_v46 = vadd.f32 %v1835_v54, %v1747_v15  ;;  %v1924_v29 = vpop.f32.mrf.mxu3 }
 0x2c3   : > { %v2016_v56 = vpop.f32.mrf.mxu0 }
 0x2c4   : > { %v2220_v2 = vpack.c.bf16 %v2173_v42, %v2172_v36  ;;  %v1925_v22 = vadd.f32 %v1924_v29, %v1836_v46  ;;  %v1760_v46 = vadd.f32 %v4177_v20, %v4248_v25  ;;  %v2184_v20 = vmax.f32 %v4188_v39, 0.0 }
 0x2c6   : > { %v2105_v23 = vpop.f32.mrf.mxu1  ;;  %2252 = vst [vmem:[%s4266_s13 + $0x80] sm:$0xff] %v2220_v2  ;;  %v2014_v32 = vadd.f32 %v2013_v60, %v1925_v22  ;;  %v1757_v60 = vadd.f32 %v4172_v10, %v4248_v25  ;;  %v2182_v10 = vmax.f32 %v4179_v14, 0.0 }
 0x2c8   : > { %v2103_v0 = vadd.f32 %v2102_v26, %v2014_v32 }
 0x2c9   : > { %v1838_v41 = vpop.f32.mrf.mxu2 }
 0x2ca   : > { %v2175_v13 = vmax.f32 %v2103_v0, 0.0  ;;  %v1839_v31 = vadd.f32 %v1838_v41, %v1750_v27  ;;  %v1927_v9 = vpop.f32.mrf.mxu3 }
 0x2cb   : > { %v2018_v40 = vpop.f32.mrf.mxu0 }
 0x2cc   : > { %v2221_v5 = vpack.c.bf16 %v2175_v13, %v2174_v57  ;;  %v1928_v4 = vadd.f32 %v1927_v9, %v1839_v31  ;;  %v1762_v57 = vadd.f32 %v4186_v43, %v4248_v25  ;;  %v2186_v43 = vmax.f32 %v4193_v50, 0.0 }
 0x2ce   : > { %v2107_v17 = vpop.f32.mrf.mxu1  ;;  %2253 = vst [vmem:[%s4266_s13 + $0x88] sm:$0xff] %v2221_v5  ;;  %v2017_v47 = vadd.f32 %v2016_v56, %v1928_v4 }
 0x2d0   : > { %v2106_v61 = vadd.f32 %v2105_v23, %v2017_v47 }
 0x2d1   : > { %v1840_v34 = vpop.f32.mrf.mxu2 }
 0x2d2   : > { %v2177_v51 = vmax.f32 %v2106_v61, 0.0  ;;  %v1841_v59 = vadd.f32 %v1840_v34, %v1752_v48  ;;  %v1929_v52 = vpop.f32.mrf.mxu3  ;;  %v1765_v61 = vadd.f32 %v4191_v18, %v4248_v25  ;;  %v4617_v18 = vld [vmem:[#allocation15_spill] sm:$0xff] }
 0x2d3   : > { %v2021_v24 = vpop.f32.mrf.mxu0 }
 0x2d4   : > { %v2222_v38 = vpack.c.bf16 %v2177_v51, %v2176_v45  ;;  %v1930_v63 = vadd.f32 %v1929_v52, %v1841_v59 }
 0x2d6   : > { %v2110_v37 = vpop.f32.mrf.mxu1  ;;  %2254 = vst [vmem:[%s4266_s13 + $0x90] sm:$0xff] %v2222_v38  ;;  %v2019_v19 = vadd.f32 %v2018_v40, %v1930_v63 }
 0x2d8   : > { %v2108_v62 = vadd.f32 %v2107_v17, %v2019_v19  ;;  %v4616_v19 = vld [vmem:[#allocation14_spill] sm:$0xff] }
 0x2d9   : > { %v1843_v12 = vpop.f32.mrf.mxu2 }
 0x2da   : > { %v2179_v21 = vmax.f32 %v2108_v62, 0.0  ;;  %v1844_v11 = vadd.f32 %v1843_v12, %v1755_v44  ;;  %v1932_v33 = vpop.f32.mrf.mxu3  ;;  %v1767_v44 = vadd.f32 %v4616_v19, %v4248_v25 }
 0x2db   : > { %v2023_v55 = vpop.f32.mrf.mxu0 }
 0x2dc   : > { %v2223_v58 = vpack.c.bf16 %v2179_v21, %v2178_v28  ;;  %v1933_v49 = vadd.f32 %v1932_v33, %v1844_v11  ;;  %v2188_v28 = vmax.f32 %v4617_v18, 0.0 }
 0x2de   : > { %v2112_v8 = vpop.f32.mrf.mxu1  ;;  %2255 = vst [vmem:[%s4266_s13 + $0x98] sm:$0xff] %v2223_v58  ;;  %v2022_v30 = vadd.f32 %v2021_v24, %v1933_v49 }
 0x2e0   : > { %v2111_v3 = vadd.f32 %v2110_v37, %v2022_v30  ;;  %v4618_v30 = vld [vmem:[#allocation19_spill] sm:$0xff] }
 0x2e1   : > { %v1845_v53 = vpop.f32.mrf.mxu2 }
 0x2e2   : > { %v2181_v26 = vmax.f32 %v2111_v3, 0.0  ;;  %v1846_v35 = vadd.f32 %v1845_v53, %v1757_v60  ;;  %v1934_v6 = vpop.f32.mrf.mxu3  ;;  %v1770_v60 = vadd.f32 %v4618_v30, %v4248_v25 }
 0x2e3   : > { %v2026_v15 = vpop.f32.mrf.mxu0 }
 0x2e4   : > { %v2224_v7 = vpack.c.bf16 %v2181_v26, %v2180_v1  ;;  %v1935_v54 = vadd.f32 %v1934_v6, %v1846_v35  ;;  %v4619_v1 = vld [vmem:[#allocation7_spill] sm:$0xff] }
 0x2e5   : > { %v2190_v26 = vmax.f32 %v4619_v1, 0.0 }
 0x2e6   : > { %v2115_v36 = vpop.f32.mrf.mxu1  ;;  %2256 = vst [vmem:[%s4266_s13 + $0xa0] sm:$0xff] %v2224_v7  ;;  %v2024_v42 = vadd.f32 %v2023_v55, %v1935_v54 }
 0x2e8   : > { %v2113_v29 = vadd.f32 %v2112_v8, %v2024_v42 }
 0x2e9   : > { %v1848_v56 = vpop.f32.mrf.mxu2 }
 0x2ea   : > { %v2183_v2 = vmax.f32 %v2113_v29, 0.0  ;;  %v1849_v22 = vadd.f32 %v1848_v56, %v1760_v46  ;;  %v1937_v16 = vpop.f32.mrf.mxu3  ;;  %v4620_v29 = vld [vmem:[#allocation18_spill] sm:$0xff] }
 0x2eb   : > { %v2028_v23 = vpop.f32.mrf.mxu0  ;;  %v1772_v56 = vadd.f32 %v4620_v29, %v4248_v25 }
 0x2ec   : > { %v2225_v32 = vpack.c.bf16 %v2183_v2, %v2182_v10  ;;  %v1938_v27 = vadd.f32 %v1937_v16, %v1849_v22  ;;  %v4621_v22 = vld [vmem:[#allocation16_spill] sm:$0xff] }
 0x2ed   : > { %v2192_v16 = vmax.f32 %v4621_v22, 0.0 }
 0x2ee   : > { %v2117_v0 = vpop.f32.mrf.mxu1  ;;  %2257 = vst [vmem:[%s4266_s13 + $0xa8] sm:$0xff] %v2225_v32  ;;  %v2027_v41 = vadd.f32 %v2026_v15, %v1938_v27 }
 0x2f0   : > { %v2116_v13 = vadd.f32 %v2115_v36, %v2027_v41 }
 0x2f1   : > { %v1850_v31 = vpop.f32.mrf.mxu2 }
 0x2f2   : > { %v2185_v9 = vmax.f32 %v2116_v13, 0.0  ;;  %v1851_v40 = vadd.f32 %v1850_v31, %v1762_v57  ;;  %v1939_v14 = vpop.f32.mrf.mxu3  ;;  %v4622_v31 = vld [vmem:[#allocation17_spill] sm:$0xff] }
 0x2f3   : > { %v2031_v5 = vpop.f32.mrf.mxu0 }
 0x2f4   : > { %v2226_v4 = vpack.c.bf16 %v2185_v9, %v2184_v20  ;;  %v1940_v17 = vadd.f32 %v1939_v14, %v1851_v40  ;;  %v1775_v20 = vadd.f32 %v4622_v31, %v4248_v25 }
 0x2f6   : > { %v2120_v47 = vpop.f32.mrf.mxu1  ;;  %2258 = vst [vmem:[%s4266_s13 + $0xb0] sm:$0xff] %v2226_v4  ;;  %v2029_v48 = vadd.f32 %v2028_v23, %v1940_v17 }
 0x2f8   : > { %v2118_v34 = vadd.f32 %v2117_v0, %v2029_v48 }
 0x2f9   : > { %v1853_v45 = vpop.f32.mrf.mxu2 }
 0x2fa   : > { %v2187_v51 = vmax.f32 %v2118_v34, 0.0  ;;  %v1854_v59 = vadd.f32 %v1853_v45, %v1765_v61  ;;  %v1942_v39 = vpop.f32.mrf.mxu3 }
 0x2fb   : > { %v2033_v52 = vpop.f32.mrf.mxu0 }
 0x2fc   : > { %v2227_v24 = vpack.c.bf16 %v2187_v51, %v2186_v43  ;;  %v1943_v38 = vadd.f32 %v1942_v39, %v1854_v59  ;;  %v4624_v43 = vld [vmem:[#allocation24_spill] sm:$0xff] }
 0x2fd   : > { %v1777_v51 = vadd.f32 %v4624_v43, %v4248_v25 }
 0x2fe   : > { %v2122_v63 = vpop.f32.mrf.mxu1  ;;  %2259 = vst [vmem:[%s4266_s13 + $0xb8] sm:$0xff] %v2227_v24  ;;  %v2032_v37 = vadd.f32 %v2031_v5, %v1943_v38  ;;  %v4623_v5 = vld [vmem:[#allocation20_spill] sm:$0xff]  ;;  %v4625_v24 = vld [vmem:[#allocation9_spill] sm:$0xff] }
 0x2ff   : > { %v2194_v4 = vmax.f32 %v4623_v5, 0.0  ;;  %v2196_v38 = vmax.f32 %v4625_v24, 0.0 }
 0x300   : > { %v2121_v62 = vadd.f32 %v2120_v47, %v2032_v37 }
 0x301   : > { %v1855_v12 = vpop.f32.mrf.mxu2 }
 0x302   : > { %v2189_v21 = vmax.f32 %v2121_v62, 0.0  ;;  %v1856_v11 = vadd.f32 %v1855_v12, %v1767_v44  ;;  %v1944_v50 = vpop.f32.mrf.mxu3 }
 0x303   : > { %v2036_v33 = vpop.f32.mrf.mxu0 }
 0x304   : > { %v2228_v55 = vpack.c.bf16 %v2189_v21, %v2188_v28  ;;  %v1945_v58 = vadd.f32 %v1944_v50, %v1856_v11  ;;  %v4626_v28 = vld [vmem:[#allocation23_spill] sm:$0xff] }
 0x305   : > { %v1780_v21 = vadd.f32 %v4626_v28, %v4248_v25 }
 0x306   : > { %v2125_v49 = vpop.f32.mrf.mxu1  ;;  %2260 = vst [vmem:[%s4266_s13 + $0xc0] sm:$0xff] %v2228_v55  ;;  %v2034_v8 = vadd.f32 %v2033_v52, %v1945_v58 }
 0x308   : > { %v2123_v3 = vadd.f32 %v2122_v63, %v2034_v8 }
 0x309   : > { %v1858_v53 = vpop.f32.mrf.mxu2 }
 0x30a   : > { %v2191_v35 = vmax.f32 %v2123_v3, 0.0  ;;  %v1859_v6 = vadd.f32 %v1858_v53, %v1770_v60  ;;  %v1947_v15 = vpop.f32.mrf.mxu3 }
 0x30b   : > { %v2038_v36 = vpop.f32.mrf.mxu0 }
 0x30c   : > { %v2229_v7 = vpack.c.bf16 %v2191_v35, %v2190_v26  ;;  %v1948_v54 = vadd.f32 %v1947_v15, %v1859_v6  ;;  %v4628_v26 = vld [vmem:[#allocation22_spill] sm:$0xff] }
 0x30d   : > { %v1782_v35 = vadd.f32 %v4628_v26, %v4248_v25 }
 0x30e   : > { %2261 = vst [vmem:[%s4266_s13 + $0xc8] sm:$0xff] %v2229_v7  ;;  %v2037_v42 = vadd.f32 %v2036_v33, %v1948_v54  ;;  %v2127_v46 = vpop.f32.mrf.mxu1  ;;  %v4627_v33 = vld [vmem:[#allocation21_spill] sm:$0xff] }
 0x30f   : > { %v2198_v55 = vmax.f32 %v4627_v33, 0.0  ;;  %v4629_v7 = vld [vmem:[#allocation25_spill] sm:$0xff] }
 0x310   : > { %v2126_v10 = vadd.f32 %v2125_v49, %v2037_v42  ;;  %v2200_v54 = vmax.f32 %v4629_v7, 0.0 }
 0x311   : > { %v1860_v2 = vpop.f32.mrf.mxu2 }
 0x312   : > { %v2193_v23 = vmax.f32 %v2126_v10, 0.0  ;;  %v1861_v32 = vadd.f32 %v1860_v2, %v1772_v56  ;;  %v1949_v27 = vpop.f32.mrf.mxu3 }
 0x313   : > { %v2041_v13 = vpop.f32.mrf.mxu0 }
 0x314   : > { %v2230_v0 = vpack.c.bf16 %v2193_v23, %v2192_v16  ;;  %v1950_v41 = vadd.f32 %v1949_v27, %v1861_v32  ;;  %v4630_v23 = vld [vmem:[#allocation29_spill] sm:$0xff] }
 0x315   : > { %v2202_v32 = vmax.f32 %v4630_v23, 0.0 }
 0x316   : > { %2262 = vst [vmem:[%s4266_s13 + $0xd0] sm:$0xff] %v2230_v0  ;;  %v2039_v57 = vadd.f32 %v2038_v36, %v1950_v41  ;;  %v2130_v40 = vpop.f32.mrf.mxu1 }
 0x318   : > { %v2128_v9 = vadd.f32 %v2127_v46, %v2039_v57 }
 0x319   : > { %v1863_v14 = vpop.f32.mrf.mxu2 }
 0x31a   : > { %v2195_v17 = vmax.f32 %v2128_v9, 0.0  ;;  %v1864_v47 = vadd.f32 %v1863_v14, %v1775_v20  ;;  %v1952_v48 = vpop.f32.mrf.mxu3 }
 0x31b   : > { %v2043_v39 = vpop.f32.mrf.mxu0 }
 0x31c   : > { %v2231_v61 = vpack.c.bf16 %v2195_v17, %v2194_v4  ;;  %v1953_v34 = vadd.f32 %v1952_v48, %v1864_v47 }
 0x31e   : > { %2263 = vst [vmem:[%s4266_s13 + $0xd8] sm:$0xff] %v2231_v61  ;;  %v2042_v45 = vadd.f32 %v2041_v13, %v1953_v34  ;;  %v2132_v44 = vpop.f32.mrf.mxu1 }
 0x320   : > { %v2131_v59 = vadd.f32 %v2130_v40, %v2042_v45 }
 0x321   : > { %v1865_v52 = vpop.f32.mrf.mxu2 }
 0x322   : > { %v2197_v63 = vmax.f32 %v2131_v59, 0.0  ;;  %v1866_v37 = vadd.f32 %v1865_v52, %v1777_v51  ;;  %v1954_v19 = vpop.f32.mrf.mxu3 }
 0x323   : > { %v2046_v30 = vpop.f32.mrf.mxu0 }
 0x324   : > { %v2232_v62 = vpack.c.bf16 %v2197_v63, %v2196_v38  ;;  %v1955_v12 = vadd.f32 %v1954_v19, %v1866_v37 }
 0x326   : > { %2264 = vst [vmem:[%s4266_s13 + $0xe0] sm:$0xff] %v2232_v62  ;;  %v2044_v18 = vadd.f32 %v2043_v39, %v1955_v12  ;;  %v2135_v53 = vpop.f32.mrf.mxu1 }
 0x328   : > { %v2133_v11 = vadd.f32 %v2132_v44, %v2044_v18 }
 0x329   : > { %v1868_v50 = vpop.f32.mrf.mxu2 }
 0x32a   : > { %v2199_v58 = vmax.f32 %v2133_v11, 0.0  ;;  %v1869_v49 = vadd.f32 %v1868_v50, %v1780_v21  ;;  %v1957_v8 = vpop.f32.mrf.mxu3 }
 0x32b   : > { %v2048_v10 = vpop.f32.mrf.mxu0 }
 0x32c   : > { %v2233_v60 = vpack.c.bf16 %v2199_v58, %v2198_v55  ;;  %v1958_v3 = vadd.f32 %v1957_v8, %v1869_v49 }
 0x32e   : > { %2265 = vst [vmem:[%s4266_s13 + $0xe8] sm:$0xff] %v2233_v60  ;;  %v2047_v1 = vadd.f32 %v2046_v30, %v1958_v3  ;;  %v2137_v22 = vpop.f32.mrf.mxu1 }
 0x330   : > { %v2136_v6 = vadd.f32 %v2135_v53, %v2047_v1 }
 0x331   : > { %v1870_v15 = vpop.f32.mrf.mxu2 }
 0x332   : > { %v2201_v36 = vmax.f32 %v2136_v6, 0.0  ;;  %v1871_v42 = vadd.f32 %v1870_v15, %v1782_v35  ;;  %v1959_v46 = vpop.f32.mrf.mxu3 }
 0x334   : > { %v2234_v29 = vpack.c.bf16 %v2201_v36, %v2200_v54  ;;  %v1960_v56 = vadd.f32 %v1959_v46, %v1871_v42 }
 0x336   : > { %2266 = vst [vmem:[%s4266_s13 + $0xf0] sm:$0xff] %v2234_v29  ;;  %v2049_v2 = vadd.f32 %v2048_v10, %v1960_v56 }
 0x338   : > { %v2138_v16 = vadd.f32 %v2137_v22, %v2049_v2 }
 0x33a   : > { %v2203_v27 = vmax.f32 %v2138_v16, 0.0 }
 0x33c   : > { %v2235_v0 = vpack.c.bf16 %v2203_v27, %v2202_v32 }
 0x33e   : > { %2267 = vst [vmem:[%s4266_s13 + $0xf8] sm:$0xff] %v2235_v0 }
 0x33f PF: > { %s13_s16 = sadd.s32 1, %s3304_s16   ;;  %s4631_s12 = smov %s3296_s14 }
 0x340   : > { %p10_p7 = scmp.ge.s32.totalorder %s13_s16, 8   ;;  %s4632_s13 = smov %s3300_s15 }
 0x341   : > { %s4633_s14 = smov %s4636_s17  ;;  %s4634_s15 = smov %s4640_s18 }
 0x342   :  { %12 = sbr.rel (!%p10_p7) target bundleno = 3 (0x3), region = 68 }

// kernel: _resblk_forward.6
= control target key start
LH: loop header
LB: loop body
LE: loop exit
PB: predicated region body
PF: predicated region fallthrough
CT: control target
= control target key end

     0   :  { %s1167_s12 = smov 0   ;;  %s1169_s13 = smov 0   ;;  %s1426_s0 = inlined_call_operand.vmem [shape: bf16[1,512,128], index: 0, kind: input, shape index: {}]   ;;  %s1427_s1 = inlined_call_operand.vmem [shape: bf16[1,128,256], index: 1, kind: input, shape index: {}]   ;;  %s1428_s2 = inlined_call_operand.vmem [shape: f32[1,1,256], index: 2, kind: input, shape index: {}]   ;;  %s1429_s3 = inlined_call_operand.vmem [shape: bf16[1,512,256], index: 3, kind: output, shape index: {}]  }
   0x1   :  { %s1171_s14 = smov 0  }
   0x2 LB: > { %s22_s15 = sadd.s32 1, %s1141_s13  ;;  %p914_p0 = scmp.ge.s32.totalorder %s1145_s14, 1  ;;  %s1145_s14 = sphi %s1171_s14, %s13_s14   ;;  %s1141_s13 = sphi %s1169_s13, %s1431_s13   ;;  %s1137_s12 = sphi %s1167_s12, %s1430_s12  }
   0x3   : > { %p23_p1 = scmp.ge.s32.totalorder %s22_s15, 2  ;;  %p177_p2 = scmp.lt.s32.totalorder %s1145_s14, 3 }
   0x5   : > { %s1433_s15 = smov (%p23_p1, %s22_s15), 0  ;;  %p178_p3 = pnand %p914_p0, %p177_p2 }
   0x6   : > { %s915_s6 = sshll.u32 (!%p178_p3), %s1137_s12, 5 }
   0x7   : > { %181 = sbr.rel (%p178_p3) target bundleno = 306 (0x132), region = 32  ;;  %p222_p4 = scmp.lt.s32.totalorder (!%p178_p3), %s915_s6, 63 }
   0xc   : > { %v1042_v0 = vld [vmem:[%s1427_s1 + $0x70] sm:$0xf]  ;;  %v1082_v1 = vld [vmem:[%s1427_s1 + $0x74] sm:$0xf0]  ;;  %v1081_v2 = vld [vmem:[%s1427_s1 + $0x74] sm:$0xf] }
   0xd   : > { %v1043_v3 = vor.u32 %v1082_v1, %v1042_v0  ;;  %v1044_v4 = vld [vmem:[%s1427_s1 + $0x78] sm:$0xf0]  ;;  %v1034_v5 = vld [vmem:[%s1427_s1 + $0x60] sm:$0xf]  ;;  %v1080_v6 = vld [vmem:[%s1427_s1 + $0x64] sm:$0xf0] }
   0xe   : > { %v1047_v7 = vor.u32 %v1081_v2, %v1044_v4  ;;  %v1079_v8 = vld [vmem:[%s1427_s1 + $0x64] sm:$0xf]  ;;  %v1036_v9 = vld [vmem:[%s1427_s1 + $0x68] sm:$0xf0]  ;;  %v1035_v10 = vor.u32 %v1080_v6, %v1034_v5  ;;  %v1026_v12 = vld [vmem:[%s1427_s1 + $0x50] sm:$0xf] }
   0xf   : > { %479 = vmatpush.bf16.msra.mxu0 %v1043_v3  ;;  %1083 = vmatpush.bf16.msra.mxu2 %v1043_v3  ;;  %v1039_v11 = vor.u32 %v1079_v8, %v1036_v9  ;;  %v1078_v13 = vld [vmem:[%s1427_s1 + $0x54] sm:$0xf0]  ;;  %v1077_v14 = vld [vmem:[%s1427_s1 + $0x54] sm:$0xf]  ;;  %v1028_v15 = vld [vmem:[%s1427_s1 + $0x58] sm:$0xf0] }
  0x10   : > { %568 = vmatpush.bf16.msra.mxu1 %v1047_v7  ;;  %1091 = vmatpush.bf16.msra.mxu3 %v1047_v7  ;;  %v1027_v16 = vor.u32 %v1078_v13, %v1026_v12  ;;  %v1031_v17 = vor.u32 %v1077_v14, %v1028_v15  ;;  %v1018_v18 = vld [vmem:[%s1427_s1 + $0x40] sm:$0xf]  ;;  %v1076_v19 = vld [vmem:[%s1427_s1 + $0x44] sm:$0xf0]  ;;  %v1075_v20 = vld [vmem:[%s1427_s1 + $0x44] sm:$0xf] }
  0x11   : > { %v1020_v21 = vld [vmem:[%s1427_s1 + $0x48] sm:$0xf0]  ;;  %v1019_v22 = vor.u32 %v1076_v19, %v1018_v18  ;;  %v1010_v24 = vld [vmem:[%s1427_s1 + $0x30] sm:$0xf]  ;;  %v1074_v25 = vld [vmem:[%s1427_s1 + $0x34] sm:$0xf0] }
  0x12   : > { %v1023_v23 = vor.u32 %v1075_v20, %v1020_v21  ;;  %v1073_v26 = vld [vmem:[%s1427_s1 + $0x34] sm:$0xf]  ;;  %v1012_v27 = vld [vmem:[%s1427_s1 + $0x38] sm:$0xf0]  ;;  %v1011_v28 = vor.u32 %v1074_v25, %v1010_v24  ;;  %v1002_v30 = vld [vmem:[%s1427_s1 + $0x20] sm:$0xf] }
  0x13   : > { %480 = vmatpush.bf16.msra.mxu0 %v1035_v10  ;;  %1084 = vmatpush.bf16.msra.mxu2 %v1035_v10  ;;  %v1015_v29 = vor.u32 %v1073_v26, %v1012_v27  ;;  %v1072_v31 = vld [vmem:[%s1427_s1 + $0x24] sm:$0xf0]  ;;  %v1071_v32 = vld [vmem:[%s1427_s1 + $0x24] sm:$0xf]  ;;  %v1004_v33 = vld [vmem:[%s1427_s1 + $0x28] sm:$0xf0] }
  0x14   : > { %569 = vmatpush.bf16.msra.mxu1 %v1039_v11  ;;  %1092 = vmatpush.bf16.msra.mxu3 %v1039_v11  ;;  %v1003_v34 = vor.u32 %v1072_v31, %v1002_v30  ;;  %v1007_v35 = vor.u32 %v1071_v32, %v1004_v33  ;;  %v994_v36 = vld [vmem:[%s1427_s1 + $0x10] sm:$0xf]  ;;  %v1070_v37 = vld [vmem:[%s1427_s1 + $0x14] sm:$0xf0]  ;;  %s1435_s6 = smov (!%p222_p4, %s915_s6), 63 }
  0x15   : > { %v1069_v38 = vld [vmem:[%s1427_s1 + $0x14] sm:$0xf]  ;;  %v996_v39 = vld [vmem:[%s1427_s1 + $0x18] sm:$0xf0]  ;;  %v995_v40 = vor.u32 %v1070_v37, %v994_v36  ;;  %v986_v42 = vld [vmem:[%s1427_s1] sm:$0xf] }
  0x16   : > { %v999_v41 = vor.u32 %v1069_v38, %v996_v39  ;;  %v1068_v43 = vld [vmem:[%s1427_s1 + $0x4] sm:$0xf0]  ;;  %s916_s30 = sshll.u32 %s1435_s6, 2  ;;  %v1067_v44 = vld [vmem:[%s1427_s1 + $0x4] sm:$0xf]  ;;  %s1050_s17 = sshll.u32 %s1435_s6, 3 }
  0x17   : > { %481 = vmatpush.bf16.msra.mxu0 %v1027_v16  ;;  %1085 = vmatpush.bf16.msra.mxu2 %v1027_v16  ;;  %v988_v45 = vld [vmem:[%s1427_s1 + $0x8] sm:$0xf0]  ;;  %v987_v46 = vor.u32 %v1068_v43, %v986_v42  ;;  %s1290_s11 = scalar_lea.vmem %s1426_s0, %s916_s30  ;;  %v297_v0 = vld [vmem:[%s1428_s2] sm:$0x3]  ;;  %s1321_s20 = scalar_lea.vmem %s1429_s3, %s1050_s17 }
  0x18   : > { %570 = vmatpush.bf16.msra.mxu1 %v1031_v17  ;;  %1093 = vmatpush.bf16.msra.mxu3 %v1031_v17  ;;  %v991_v47 = vor.u32 %v1067_v44, %v988_v45  ;;  %v1051_v48 = vld [vmem:[%s1290_s11] sm:$0xff]  ;;  %v1052_v50 = vld [vmem:[%s1290_s11 + $0x8] sm:$0xff]  ;;  %v1053_v52 = vld [vmem:[%s1290_s11 + $0x10] sm:$0xff]  ;;  %v1311_v1 = vperm.slane %v297_v0, 0  ;;  %v1313_v2 = vperm.slane %v297_v0, 1 }
  0x19   : > { %v1059_v49 = vld [vmem:[%s1290_s11 + $0x40] sm:$0xff]  ;;  %v1060_v51 = vld [vmem:[%s1290_s11 + $0x48] sm:$0xff]  ;;  %v1061_v53 = vld [vmem:[%s1290_s11 + $0x50] sm:$0xff] }
  0x1a   : > { %v1054_v54 = vld [vmem:[%s1290_s11 + $0x18] sm:$0xff]  ;;  %v1055_v56 = vld [vmem:[%s1290_s11 + $0x20] sm:$0xff]  ;;  %v1056_v58 = vld [vmem:[%s1290_s11 + $0x28] sm:$0xff] }
  0x1b   : > { %482 = vmatpush.bf16.msra.mxu0 %v1019_v22  ;;  %1086 = vmatpush.bf16.msra.mxu2 %v1019_v22  ;;  %v1062_v55 = vld [vmem:[%s1290_s11 + $0x58] sm:$0xff]  ;;  %v1063_v57 = vld [vmem:[%s1290_s11 + $0x60] sm:$0xff]  ;;  %v1064_v59 = vld [vmem:[%s1290_s11 + $0x68] sm:$0xff] }
  0x1c   : > { %571 = vmatpush.bf16.msra.mxu1 %v1023_v23  ;;  %1094 = vmatpush.bf16.msra.mxu3 %v1023_v23  ;;  %v1057_v60 = vld [vmem:[%s1290_s11 + $0x30] sm:$0xff]  ;;  %v1058_v62 = vld [vmem:[%s1290_s11 + $0x38] sm:$0xff] }
  0x1d   : > { %v1065_v61 = vld [vmem:[%s1290_s11 + $0x70] sm:$0xff]  ;;  %v1066_v63 = vld [vmem:[%s1290_s11 + $0x78] sm:$0xff] }
  0x1f   : > { %483 = vmatpush.bf16.msra.mxu0 %v1011_v28  ;;  %1087 = vmatpush.bf16.msra.mxu2 %v1011_v28 }
  0x20   : > { %572 = vmatpush.bf16.msra.mxu1 %v1015_v29  ;;  %1095 = vmatpush.bf16.msra.mxu3 %v1015_v29 }
  0x23   : > { %484 = vmatpush.bf16.msra.mxu0 %v1003_v34  ;;  %1088 = vmatpush.bf16.msra.mxu2 %v1003_v34 }
  0x24   : > { %573 = vmatpush.bf16.msra.mxu1 %v1007_v35  ;;  %1096 = vmatpush.bf16.msra.mxu3 %v1007_v35 }
  0x27   : > { %485 = vmatpush.bf16.msra.mxu0 %v995_v40  ;;  %1089 = vmatpush.bf16.msra.mxu2 %v995_v40 }
  0x28   : > { %574 = vmatpush.bf16.msra.mxu1 %v999_v41  ;;  %1097 = vmatpush.bf16.msra.mxu3 %v999_v41 }
  0x2b   : > { %486 = vmatpush.bf16.msra.mxu0 %v987_v46  ;;  %1090 = vmatpush.bf16.msra.mxu2 %v987_v46 }
  0x2c   : > { %575 = vmatpush.bf16.msra.mxu1 %v991_v47  ;;  %1098 = vmatpush.bf16.msra.mxu3 %v991_v47 }
  0x2e   : > { %487 = vmatmul.bf16.vlgmr.msra.gmra.mxu0 %v1051_v48  ;;  %527 = vmatmul.bf16.vlgmr.msra.gmra.mxu2 %v1059_v49 }
  0x2f   : > { %576 = vmatmul.bf16.vlgmr.msra.gmra.mxu1 %v1051_v48  ;;  %616 = vmatmul.bf16.vlgmr.msra.gmra.mxu3 %v1059_v49 }
  0x3e   : > { %492 = vmatmul.bf16.gmra.mxu0 %v1052_v50  ;;  %532 = vmatmul.bf16.gmra.mxu2 %v1060_v51 }
  0x3f   : > { %581 = vmatmul.bf16.gmra.mxu1 %v1052_v50  ;;  %621 = vmatmul.bf16.gmra.mxu3 %v1060_v51 }
  0x4e   : > { %497 = vmatmul.bf16.gmra.mxu0 %v1053_v52  ;;  %537 = vmatmul.bf16.gmra.mxu2 %v1061_v53 }
  0x4f   : > { %586 = vmatmul.bf16.gmra.mxu1 %v1053_v52  ;;  %626 = vmatmul.bf16.gmra.mxu3 %v1061_v53 }
  0x5e   : > { %502 = vmatmul.bf16.gmra.mxu0 %v1054_v54  ;;  %542 = vmatmul.bf16.gmra.mxu2 %v1062_v55 }
  0x5f   : > { %591 = vmatmul.bf16.gmra.mxu1 %v1054_v54  ;;  %631 = vmatmul.bf16.gmra.mxu3 %v1062_v55 }
  0x6e   : > { %507 = vmatmul.bf16.gmra.mxu0 %v1055_v56  ;;  %547 = vmatmul.bf16.gmra.mxu2 %v1063_v57 }
  0x6f   : > { %596 = vmatmul.bf16.gmra.mxu1 %v1055_v56  ;;  %636 = vmatmul.bf16.gmra.mxu3 %v1063_v57 }
  0x7e   : > { %512 = vmatmul.bf16.gmra.mxu0 %v1056_v58  ;;  %552 = vmatmul.bf16.gmra.mxu2 %v1064_v59 }
  0x7f   : > { %601 = vmatmul.bf16.gmra.mxu1 %v1056_v58  ;;  %641 = vmatmul.bf16.gmra.mxu3 %v1064_v59 }
  0x8e   : > { %517 = vmatmul.bf16.gmra.mxu0 %v1057_v60  ;;  %557 = vmatmul.bf16.gmra.mxu2 %v1065_v61 }
  0x8f   : > { %606 = vmatmul.bf16.gmra.mxu1 %v1057_v60  ;;  %646 = vmatmul.bf16.gmra.mxu3 %v1065_v61 }
  0x9e   : > { %522 = vmatmul.bf16.gmra.mxu0 %v1058_v62  ;;  %562 = vmatmul.bf16.gmra.mxu2 %v1066_v63 }
  0x9f   : > { %611 = vmatmul.bf16.gmra.mxu1 %v1058_v62  ;;  %651 = vmatmul.bf16.gmra.mxu3 %v1066_v63 }
  0xab   : > { %v488_v3 = vpop.f32.mrf.mxu0 }
  0xac   : > { %v489_v4 = vadd.f32 %v488_v3, %v1311_v1  ;;  %v577_v5 = vpop.f32.mrf.mxu1 }
  0xad   : > { %v578_v6 = vadd.f32 %v577_v5, %v1313_v2 }
  0xae   : > { %v657_v7 = vmax.f32 %v489_v4, 0.0 }
  0xaf   : > { %v658_v8 = vmax.f32 %v578_v6, 0.0 }
  0xb1   : > { %v721_v9 = vpack.c.bf16 %v658_v8, %v657_v7  ;;  %v528_v10 = vpop.f32.mrf.mxu2 }
  0xb2   : > { %v529_v11 = vadd.f32 %v528_v10, %v1311_v1  ;;  %v617_v12 = vpop.f32.mrf.mxu3 }
  0xb3   : > { %753 = vst [vmem:[%s1321_s20] sm:$0xff] %v721_v9  ;;  %v618_v13 = vadd.f32 %v617_v12, %v1313_v2  ;;  %v490_v14 = vpop.f32.mrf.mxu0 }
  0xb4   : > { %v689_v15 = vmax.f32 %v529_v11, 0.0  ;;  %v491_v16 = vadd.f32 %v490_v14, %v1311_v1  ;;  %v579_v17 = vpop.f32.mrf.mxu1 }
  0xb5   : > { %v690_v18 = vmax.f32 %v618_v13, 0.0  ;;  %v580_v19 = vadd.f32 %v579_v17, %v1313_v2 }
  0xb6   : > { %v659_v20 = vmax.f32 %v491_v16, 0.0 }
  0xb7   : > { %v737_v21 = vpack.c.bf16 %v690_v18, %v689_v15  ;;  %v660_v22 = vmax.f32 %v580_v19, 0.0 }
  0xb9   : > { %769 = vst [vmem:[%s1321_s20 + $0x80] sm:$0xff] %v737_v21  ;;  %v722_v23 = vpack.c.bf16 %v660_v22, %v659_v20  ;;  %v530_v24 = vpop.f32.mrf.mxu2 }
  0xba   : > { %v531_v25 = vadd.f32 %v530_v24, %v1311_v1  ;;  %v619_v26 = vpop.f32.mrf.mxu3 }
  0xbb   : > { %754 = vst [vmem:[%s1321_s20 + $0x8] sm:$0xff] %v722_v23  ;;  %v620_v27 = vadd.f32 %v619_v26, %v1313_v2  ;;  %v493_v28 = vpop.f32.mrf.mxu0 }
  0xbc   : > { %v691_v29 = vmax.f32 %v531_v25, 0.0  ;;  %v494_v30 = vadd.f32 %v493_v28, %v1311_v1  ;;  %v582_v31 = vpop.f32.mrf.mxu1 }
  0xbd   : > { %v692_v32 = vmax.f32 %v620_v27, 0.0  ;;  %v583_v33 = vadd.f32 %v582_v31, %v1313_v2 }
  0xbe   : > { %v661_v34 = vmax.f32 %v494_v30, 0.0 }
  0xbf   : > { %v738_v35 = vpack.c.bf16 %v692_v32, %v691_v29  ;;  %v662_v36 = vmax.f32 %v583_v33, 0.0 }
  0xc1   : > { %770 = vst [vmem:[%s1321_s20 + $0x88] sm:$0xff] %v738_v35  ;;  %v723_v37 = vpack.c.bf16 %v662_v36, %v661_v34  ;;  %v533_v38 = vpop.f32.mrf.mxu2 }
  0xc2   : > { %v534_v39 = vadd.f32 %v533_v38, %v1311_v1  ;;  %v622_v40 = vpop.f32.mrf.mxu3 }
  0xc3   : > { %755 = vst [vmem:[%s1321_s20 + $0x10] sm:$0xff] %v723_v37  ;;  %v623_v41 = vadd.f32 %v622_v40, %v1313_v2  ;;  %v495_v42 = vpop.f32.mrf.mxu0 }
  0xc4   : > { %v693_v43 = vmax.f32 %v534_v39, 0.0  ;;  %v496_v44 = vadd.f32 %v495_v42, %v1311_v1  ;;  %v584_v45 = vpop.f32.mrf.mxu1 }
  0xc5   : > { %v694_v46 = vmax.f32 %v623_v41, 0.0  ;;  %v585_v47 = vadd.f32 %v584_v45, %v1313_v2 }
  0xc6   : > { %v663_v48 = vmax.f32 %v496_v44, 0.0 }
  0xc7   : > { %v739_v49 = vpack.c.bf16 %v694_v46, %v693_v43  ;;  %v664_v50 = vmax.f32 %v585_v47, 0.0 }
  0xc9   : > { %771 = vst [vmem:[%s1321_s20 + $0x90] sm:$0xff] %v739_v49  ;;  %v724_v51 = vpack.c.bf16 %v664_v50, %v663_v48  ;;  %v535_v52 = vpop.f32.mrf.mxu2 }
  0xca   : > { %v536_v53 = vadd.f32 %v535_v52, %v1311_v1  ;;  %v624_v54 = vpop.f32.mrf.mxu3 }
  0xcb   : > { %756 = vst [vmem:[%s1321_s20 + $0x18] sm:$0xff] %v724_v51  ;;  %v625_v55 = vadd.f32 %v624_v54, %v1313_v2  ;;  %v498_v56 = vpop.f32.mrf.mxu0 }
  0xcc   : > { %v695_v57 = vmax.f32 %v536_v53, 0.0  ;;  %v499_v58 = vadd.f32 %v498_v56, %v1311_v1  ;;  %v587_v59 = vpop.f32.mrf.mxu1 }
  0xcd   : > { %v696_v60 = vmax.f32 %v625_v55, 0.0  ;;  %v588_v61 = vadd.f32 %v587_v59, %v1313_v2 }
  0xce   : > { %v665_v62 = vmax.f32 %v499_v58, 0.0 }
  0xcf   : > { %v740_v63 = vpack.c.bf16 %v696_v60, %v695_v57  ;;  %v666_v0 = vmax.f32 %v588_v61, 0.0 }
  0xd1   : > { %772 = vst [vmem:[%s1321_s20 + $0x98] sm:$0xff] %v740_v63  ;;  %v725_v3 = vpack.c.bf16 %v666_v0, %v665_v62  ;;  %v538_v4 = vpop.f32.mrf.mxu2 }
  0xd2   : > { %v539_v5 = vadd.f32 %v538_v4, %v1311_v1  ;;  %v627_v6 = vpop.f32.mrf.mxu3 }
  0xd3   : > { %757 = vst [vmem:[%s1321_s20 + $0x20] sm:$0xff] %v725_v3  ;;  %v628_v7 = vadd.f32 %v627_v6, %v1313_v2  ;;  %v500_v8 = vpop.f32.mrf.mxu0 }
  0xd4   : > { %v697_v9 = vmax.f32 %v539_v5, 0.0  ;;  %v501_v10 = vadd.f32 %v500_v8, %v1311_v1  ;;  %v589_v11 = vpop.f32.mrf.mxu1 }
  0xd5   : > { %v698_v12 = vmax.f32 %v628_v7, 0.0  ;;  %v590_v13 = vadd.f32 %v589_v11, %v1313_v2 }
  0xd6   : > { %v667_v14 = vmax.f32 %v501_v10, 0.0 }
  0xd7   : > { %v741_v15 = vpack.c.bf16 %v698_v12, %v697_v9  ;;  %v668_v16 = vmax.f32 %v590_v13, 0.0 }
  0xd9   : > { %773 = vst [vmem:[%s1321_s20 + $0xa0] sm:$0xff] %v741_v15  ;;  %v726_v17 = vpack.c.bf16 %v668_v16, %v667_v14  ;;  %v540_v18 = vpop.f32.mrf.mxu2 }
  0xda   : > { %v541_v19 = vadd.f32 %v540_v18, %v1311_v1  ;;  %v629_v20 = vpop.f32.mrf.mxu3 }
  0xdb   : > { %758 = vst [vmem:[%s1321_s20 + $0x28] sm:$0xff] %v726_v17  ;;  %v630_v21 = vadd.f32 %v629_v20, %v1313_v2  ;;  %v503_v22 = vpop.f32.mrf.mxu0 }
  0xdc   : > { %v699_v23 = vmax.f32 %v541_v19, 0.0  ;;  %v504_v24 = vadd.f32 %v503_v22, %v1311_v1  ;;  %v592_v25 = vpop.f32.mrf.mxu1 }
  0xdd   : > { %v700_v26 = vmax.f32 %v630_v21, 0.0  ;;  %v593_v27 = vadd.f32 %v592_v25, %v1313_v2 }
  0xde   : > { %v669_v28 = vmax.f32 %v504_v24, 0.0 }
  0xdf   : > { %v742_v29 = vpack.c.bf16 %v700_v26, %v699_v23  ;;  %v670_v30 = vmax.f32 %v593_v27, 0.0 }
  0xe1   : > { %774 = vst [vmem:[%s1321_s20 + $0xa8] sm:$0xff] %v742_v29  ;;  %v727_v31 = vpack.c.bf16 %v670_v30, %v669_v28  ;;  %v543_v32 = vpop.f32.mrf.mxu2 }
  0xe2   : > { %v544_v33 = vadd.f32 %v543_v32, %v1311_v1  ;;  %v632_v34 = vpop.f32.mrf.mxu3 }
  0xe3   : > { %759 = vst [vmem:[%s1321_s20 + $0x30] sm:$0xff] %v727_v31  ;;  %v633_v35 = vadd.f32 %v632_v34, %v1313_v2  ;;  %v505_v36 = vpop.f32.mrf.mxu0 }
  0xe4   : > { %v701_v37 = vmax.f32 %v544_v33, 0.0  ;;  %v506_v38 = vadd.f32 %v505_v36, %v1311_v1  ;;  %v594_v39 = vpop.f32.mrf.mxu1 }
  0xe5   : > { %v702_v40 = vmax.f32 %v633_v35, 0.0  ;;  %v595_v41 = vadd.f32 %v594_v39, %v1313_v2 }
  0xe6   : > { %v671_v42 = vmax.f32 %v506_v38, 0.0 }
  0xe7   : > { %v743_v43 = vpack.c.bf16 %v702_v40, %v701_v37  ;;  %v672_v44 = vmax.f32 %v595_v41, 0.0 }
  0xe9   : > { %775 = vst [vmem:[%s1321_s20 + $0xb0] sm:$0xff] %v743_v43  ;;  %v728_v45 = vpack.c.bf16 %v672_v44, %v671_v42  ;;  %v545_v46 = vpop.f32.mrf.mxu2 }
  0xea   : > { %v546_v47 = vadd.f32 %v545_v46, %v1311_v1  ;;  %v634_v48 = vpop.f32.mrf.mxu3 }
  0xeb   : > { %760 = vst [vmem:[%s1321_s20 + $0x38] sm:$0xff] %v728_v45  ;;  %v635_v49 = vadd.f32 %v634_v48, %v1313_v2  ;;  %v508_v50 = vpop.f32.mrf.mxu0 }
  0xec   : > { %v703_v51 = vmax.f32 %v546_v47, 0.0  ;;  %v509_v52 = vadd.f32 %v508_v50, %v1311_v1  ;;  %v597_v53 = vpop.f32.mrf.mxu1 }
  0xed   : > { %v704_v54 = vmax.f32 %v635_v49, 0.0  ;;  %v598_v55 = vadd.f32 %v597_v53, %v1313_v2 }
  0xee   : > { %v673_v56 = vmax.f32 %v509_v52, 0.0 }
  0xef   : > { %v744_v57 = vpack.c.bf16 %v704_v54, %v703_v51  ;;  %v674_v58 = vmax.f32 %v598_v55, 0.0 }
  0xf1   : > { %776 = vst [vmem:[%s1321_s20 + $0xb8] sm:$0xff] %v744_v57  ;;  %v729_v59 = vpack.c.bf16 %v674_v58, %v673_v56  ;;  %v548_v60 = vpop.f32.mrf.mxu2 }
  0xf2   : > { %v549_v61 = vadd.f32 %v548_v60, %v1311_v1  ;;  %v637_v62 = vpop.f32.mrf.mxu3 }
  0xf3   : > { %761 = vst [vmem:[%s1321_s20 + $0x40] sm:$0xff] %v729_v59  ;;  %v638_v63 = vadd.f32 %v637_v62, %v1313_v2  ;;  %v510_v0 = vpop.f32.mrf.mxu0 }
  0xf4   : > { %v705_v3 = vmax.f32 %v549_v61, 0.0  ;;  %v511_v4 = vadd.f32 %v510_v0, %v1311_v1  ;;  %v599_v5 = vpop.f32.mrf.mxu1 }
  0xf5   : > { %v706_v6 = vmax.f32 %v638_v63, 0.0  ;;  %v600_v7 = vadd.f32 %v599_v5, %v1313_v2 }
  0xf6   : > { %v675_v8 = vmax.f32 %v511_v4, 0.0 }
  0xf7   : > { %v745_v9 = vpack.c.bf16 %v706_v6, %v705_v3  ;;  %v676_v10 = vmax.f32 %v600_v7, 0.0 }
  0xf9   : > { %777 = vst [vmem:[%s1321_s20 + $0xc0] sm:$0xff] %v745_v9  ;;  %v730_v11 = vpack.c.bf16 %v676_v10, %v675_v8  ;;  %v550_v12 = vpop.f32.mrf.mxu2 }
  0xfa   : > { %v551_v13 = vadd.f32 %v550_v12, %v1311_v1  ;;  %v639_v14 = vpop.f32.mrf.mxu3 }
  0xfb   : > { %762 = vst [vmem:[%s1321_s20 + $0x48] sm:$0xff] %v730_v11  ;;  %v640_v15 = vadd.f32 %v639_v14, %v1313_v2  ;;  %v513_v16 = vpop.f32.mrf.mxu0 }
  0xfc   : > { %v707_v17 = vmax.f32 %v551_v13, 0.0  ;;  %v514_v18 = vadd.f32 %v513_v16, %v1311_v1  ;;  %v602_v19 = vpop.f32.mrf.mxu1 }
  0xfd   : > { %v708_v20 = vmax.f32 %v640_v15, 0.0  ;;  %v603_v21 = vadd.f32 %v602_v19, %v1313_v2 }
  0xfe   : > { %v677_v22 = vmax.f32 %v514_v18, 0.0 }
  0xff   : > { %v746_v23 = vpack.c.bf16 %v708_v20, %v707_v17  ;;  %v678_v24 = vmax.f32 %v603_v21, 0.0 }
 0x101   : > { %778 = vst [vmem:[%s1321_s20 + $0xc8] sm:$0xff] %v746_v23  ;;  %v731_v25 = vpack.c.bf16 %v678_v24, %v677_v22  ;;  %v553_v26 = vpop.f32.mrf.mxu2 }
 0x102   : > { %v554_v27 = vadd.f32 %v553_v26, %v1311_v1  ;;  %v642_v28 = vpop.f32.mrf.mxu3 }
 0x103   : > { %763 = vst [vmem:[%s1321_s20 + $0x50] sm:$0xff] %v731_v25  ;;  %v643_v29 = vadd.f32 %v642_v28, %v1313_v2  ;;  %v515_v30 = vpop.f32.mrf.mxu0 }
 0x104   : > { %v709_v31 = vmax.f32 %v554_v27, 0.0  ;;  %v516_v32 = vadd.f32 %v515_v30, %v1311_v1  ;;  %v604_v33 = vpop.f32.mrf.mxu1 }
 0x105   : > { %v710_v34 = vmax.f32 %v643_v29, 0.0  ;;  %v605_v35 = vadd.f32 %v604_v33, %v1313_v2 }
 0x106   : > { %v679_v36 = vmax.f32 %v516_v32, 0.0 }
 0x107   : > { %v747_v37 = vpack.c.bf16 %v710_v34, %v709_v31  ;;  %v680_v38 = vmax.f32 %v605_v35, 0.0 }
 0x109   : > { %779 = vst [vmem:[%s1321_s20 + $0xd0] sm:$0xff] %v747_v37  ;;  %v732_v39 = vpack.c.bf16 %v680_v38, %v679_v36  ;;  %v555_v40 = vpop.f32.mrf.mxu2 }
 0x10a   : > { %v556_v41 = vadd.f32 %v555_v40, %v1311_v1  ;;  %v644_v42 = vpop.f32.mrf.mxu3 }
 0x10b   : > { %764 = vst [vmem:[%s1321_s20 + $0x58] sm:$0xff] %v732_v39  ;;  %v645_v43 = vadd.f32 %v644_v42, %v1313_v2  ;;  %v518_v44 = vpop.f32.mrf.mxu0 }
 0x10c   : > { %v711_v45 = vmax.f32 %v556_v41, 0.0  ;;  %v519_v46 = vadd.f32 %v518_v44, %v1311_v1  ;;  %v607_v47 = vpop.f32.mrf.mxu1 }
 0x10d   : > { %v712_v48 = vmax.f32 %v645_v43, 0.0  ;;  %v608_v49 = vadd.f32 %v607_v47, %v1313_v2 }
 0x10e   : > { %v681_v50 = vmax.f32 %v519_v46, 0.0 }
 0x10f   : > { %v748_v51 = vpack.c.bf16 %v712_v48, %v711_v45  ;;  %v682_v52 = vmax.f32 %v608_v49, 0.0 }
 0x111   : > { %780 = vst [vmem:[%s1321_s20 + $0xd8] sm:$0xff] %v748_v51  ;;  %v733_v53 = vpack.c.bf16 %v682_v52, %v681_v50  ;;  %v558_v54 = vpop.f32.mrf.mxu2 }
 0x112   : > { %v559_v55 = vadd.f32 %v558_v54, %v1311_v1  ;;  %v647_v56 = vpop.f32.mrf.mxu3 }
 0x113   : > { %765 = vst [vmem:[%s1321_s20 + $0x60] sm:$0xff] %v733_v53  ;;  %v648_v57 = vadd.f32 %v647_v56, %v1313_v2  ;;  %v520_v58 = vpop.f32.mrf.mxu0 }
 0x114   : > { %v713_v59 = vmax.f32 %v559_v55, 0.0  ;;  %v521_v60 = vadd.f32 %v520_v58, %v1311_v1  ;;  %v609_v61 = vpop.f32.mrf.mxu1 }
 0x115   : > { %v714_v62 = vmax.f32 %v648_v57, 0.0  ;;  %v610_v63 = vadd.f32 %v609_v61, %v1313_v2 }
 0x116   : > { %v683_v0 = vmax.f32 %v521_v60, 0.0 }
 0x117   : > { %v749_v3 = vpack.c.bf16 %v714_v62, %v713_v59  ;;  %v684_v4 = vmax.f32 %v610_v63, 0.0 }
 0x119   : > { %781 = vst [vmem:[%s1321_s20 + $0xe0] sm:$0xff] %v749_v3  ;;  %v734_v5 = vpack.c.bf16 %v684_v4, %v683_v0  ;;  %v560_v6 = vpop.f32.mrf.mxu2 }
 0x11a   : > { %v561_v7 = vadd.f32 %v560_v6, %v1311_v1  ;;  %v649_v8 = vpop.f32.mrf.mxu3 }
 0x11b   : > { %766 = vst [vmem:[%s1321_s20 + $0x68] sm:$0xff] %v734_v5  ;;  %v650_v9 = vadd.f32 %v649_v8, %v1313_v2  ;;  %v523_v10 = vpop.f32.mrf.mxu0 }
 0x11c   : > { %v715_v11 = vmax.f32 %v561_v7, 0.0  ;;  %v524_v12 = vadd.f32 %v523_v10, %v1311_v1  ;;  %v612_v13 = vpop.f32.mrf.mxu1 }
 0x11d   : > { %v716_v14 = vmax.f32 %v650_v9, 0.0  ;;  %v613_v15 = vadd.f32 %v612_v13, %v1313_v2 }
 0x11e   : > { %v685_v16 = vmax.f32 %v524_v12, 0.0 }
 0x11f   : > { %v750_v17 = vpack.c.bf16 %v716_v14, %v715_v11  ;;  %v686_v18 = vmax.f32 %v613_v15, 0.0 }
 0x121   : > { %782 = vst [vmem:[%s1321_s20 + $0xe8] sm:$0xff] %v750_v17  ;;  %v735_v19 = vpack.c.bf16 %v686_v18, %v685_v16  ;;  %v563_v20 = vpop.f32.mrf.mxu2 }
 0x122   : > { %v564_v21 = vadd.f32 %v563_v20, %v1311_v1  ;;  %v652_v22 = vpop.f32.mrf.mxu3 }
 0x123   : > { %767 = vst [vmem:[%s1321_s20 + $0x70] sm:$0xff] %v735_v19  ;;  %v653_v23 = vadd.f32 %v652_v22, %v1313_v2  ;;  %v525_v24 = vpop.f32.mrf.mxu0 }
 0x124   : > { %v717_v25 = vmax.f32 %v564_v21, 0.0  ;;  %v526_v26 = vadd.f32 %v525_v24, %v1311_v1  ;;  %v614_v27 = vpop.f32.mrf.mxu1 }
 0x125   : > { %v718_v28 = vmax.f32 %v653_v23, 0.0  ;;  %v615_v29 = vadd.f32 %v614_v27, %v1313_v2 }
 0x126   : > { %v687_v30 = vmax.f32 %v526_v26, 0.0 }
 0x127   : > { %v751_v31 = vpack.c.bf16 %v718_v28, %v717_v25  ;;  %v688_v32 = vmax.f32 %v615_v29, 0.0 }
 0x129   : > { %783 = vst [vmem:[%s1321_s20 + $0xf0] sm:$0xff] %v751_v31  ;;  %v736_v33 = vpack.c.bf16 %v688_v32, %v687_v30  ;;  %v565_v34 = vpop.f32.mrf.mxu2 }
 0x12a   : > { %v566_v35 = vadd.f32 %v565_v34, %v1311_v1  ;;  %v654_v36 = vpop.f32.mrf.mxu3 }
 0x12b   : > { %768 = vst [vmem:[%s1321_s20 + $0x78] sm:$0xff] %v736_v33  ;;  %v655_v37 = vadd.f32 %v654_v36, %v1313_v2 }
 0x12c   : > { %v719_v38 = vmax.f32 %v566_v35, 0.0 }
 0x12d   : > { %v720_v39 = vmax.f32 %v655_v37, 0.0 }
 0x12f   : > { %v752_v40 = vpack.c.bf16 %v720_v39, %v719_v38 }
 0x131   : > { %784 = vst [vmem:[%s1321_s20 + $0xf8] sm:$0xff] %v752_v40 }
 0x132 PF: > { %s13_s14 = sadd.s32 1, %s1145_s14   ;;  %s1430_s12 = smov %s1141_s13 }
 0x133   : > { %p10_p5 = scmp.ge.s32.totalorder %s13_s14, 4   ;;  %s1431_s13 = smov %s1433_s15 }
 0x135   :  { %12 = sbr.rel (!%p10_p5) target bundleno = 2 (0x2), region = 68 }

// kernel: _resblk_forward.8
= control target key start
LH: loop header
LB: loop body
LE: loop exit
PB: predicated region body
PF: predicated region fallthrough
CT: control target
= control target key end

     0   :  { %s4351_s18 = smov 0   ;;  %s4353_s19 = smov 0   ;;  %s5252_s0 = inlined_call_operand.vmem [shape: bf16[512,256], index: 0, kind: input, shape index: {}]   ;;  %s5253_s1 = inlined_call_operand.vmem [shape: bf16[3,512,256], index: 1, kind: input, shape index: {}]   ;;  %s5254_s2 = inlined_call_operand.vmem [shape: bf16[4,256,128], index: 2, kind: input, shape index: {}]   ;;  %s5255_s3 = inlined_call_operand.vmem [shape: f32[1,128], index: 3, kind: input, shape index: {}]   ;;  %s5256_s4 = inlined_call_operand.vmem [shape: f32[512,128], index: 4, kind: input, shape index: {}]   ;;  %s5257_s5 = inlined_call_operand.vmem [shape: bf16[512,128], index: 5, kind: output, shape index: {}]  }
   0x1   :  { %s4355_s20 = smov 0  }
   0x2 LB: > { %s3034_s21 = sadd.s32 4294967295, %s4319_s20   ;;  %s4368_s22 = sadd.s32 1, %s4319_s20   ;;  %s4319_s20 = sphi %s4355_s20, %s5260_s20   ;;  %s4315_s19 = sphi %s4353_s19, %s5259_s19   ;;  %s4311_s18 = sphi %s4351_s18, %s5258_s18  }
   0x3   : > { %s45_s23 = ssub.s32 %s4319_s20, %s4368_s22  ;;  %s48_s24 = sadd.s32 1, %s4315_s19 }
   0x4   : > { %p46_p0 = scmp.eq.s32.totalorder %s45_s23, 0  ;;  %p55_p1 = scmp.ne.s32.totalorder %s4315_s19, %s4311_s18 }
   0x5   : > { %p56_p2 = scmp.eq.s32.totalorder %s4319_s20, 0  ;;  %p3037_p4 = scmp.ge.s32.totalorder %s4319_s20, 2 }
   0x6   : > { %s4377_s25 = scalar_select %p46_p0, %s4315_s19, %s48_s24  }
   0x7   : > { %p57_p3 = por %p56_p2, %p55_p1  ;;  %181 = sbr.rel (%p3037_p4) target bundleno = 112 (0x70), region = 24 }
   0xc   : > { %194 = sbr.rel (!%p57_p3) target bundleno = 112 (0x70), region = 32  ;;  %s196_s26 = sand.u32 (%p57_p3), 1, %s4315_s19  }
   0xd   : > { %s3980_s27 = sshll.u32 (%p57_p3), %s4319_s20, 8  ;;  %s4269_s28 = smul.u32 (%p57_p3), 768, %s196_s26 }
   0xe   : > { %s4385_s6 = scalar_lea.vmem (%p57_p3), %s5253_s1, %s3980_s27 }
   0xf   : > { %v421_v0 = vld [vmem:[%s4385_s6] sm:$0xff] (%p57_p3)  ;;  %v423_v1 = vld [vmem:[%s4385_s6 + $0x8] sm:$0xff] (%p57_p3)  ;;  %v425_v2 = vld [vmem:[%s4385_s6 + $0x10] sm:$0xff] (%p57_p3)  ;;  %s4390_s7 = scalar_lea.vmem (%p57_p3), [#allocation2], %s4269_s28 }
  0x10   : > { %422 = vst [vmem:[%s4390_s7] sm:$0xff] (%p57_p3), %v421_v0  ;;  %v427_v3 = vld [vmem:[%s4385_s6 + $0x18] sm:$0xff] (%p57_p3)  ;;  %v429_v4 = vld [vmem:[%s4385_s6 + $0x20] sm:$0xff] (%p57_p3)  ;;  %v431_v5 = vld [vmem:[%s4385_s6 + $0x28] sm:$0xff] (%p57_p3) }
  0x11   : > { %424 = vst [vmem:[%s4390_s7 + $0x8] sm:$0xff] %v423_v1  ;;  %v433_v6 = vld [vmem:[%s4385_s6 + $0x30] sm:$0xff]  ;;  %v435_v7 = vld [vmem:[%s4385_s6 + $0x38] sm:$0xff]  ;;  %v437_v8 = vld [vmem:[%s4385_s6 + $0x40] sm:$0xff] }
  0x12   : > { %426 = vst [vmem:[%s4390_s7 + $0x10] sm:$0xff] %v425_v2  ;;  %v439_v9 = vld [vmem:[%s4385_s6 + $0x48] sm:$0xff]  ;;  %v441_v10 = vld [vmem:[%s4385_s6 + $0x50] sm:$0xff]  ;;  %v443_v11 = vld [vmem:[%s4385_s6 + $0x58] sm:$0xff] }
  0x13   : > { %428 = vst [vmem:[%s4390_s7 + $0x18] sm:$0xff] %v427_v3  ;;  %v445_v12 = vld [vmem:[%s4385_s6 + $0x60] sm:$0xff]  ;;  %v447_v13 = vld [vmem:[%s4385_s6 + $0x68] sm:$0xff]  ;;  %v449_v14 = vld [vmem:[%s4385_s6 + $0x70] sm:$0xff] }
  0x14   : > { %430 = vst [vmem:[%s4390_s7 + $0x20] sm:$0xff] %v429_v4  ;;  %v451_v15 = vld [vmem:[%s4385_s6 + $0x78] sm:$0xff]  ;;  %v453_v16 = vld [vmem:[%s4385_s6 + $0x80] sm:$0xff]  ;;  %v455_v17 = vld [vmem:[%s4385_s6 + $0x88] sm:$0xff] }
  0x15   : > { %432 = vst [vmem:[%s4390_s7 + $0x28] sm:$0xff] %v431_v5  ;;  %v457_v18 = vld [vmem:[%s4385_s6 + $0x90] sm:$0xff]  ;;  %v459_v19 = vld [vmem:[%s4385_s6 + $0x98] sm:$0xff]  ;;  %v461_v20 = vld [vmem:[%s4385_s6 + $0xa0] sm:$0xff] }
  0x16   : > { %434 = vst [vmem:[%s4390_s7 + $0x30] sm:$0xff] %v433_v6  ;;  %v463_v21 = vld [vmem:[%s4385_s6 + $0xa8] sm:$0xff]  ;;  %v465_v22 = vld [vmem:[%s4385_s6 + $0xb0] sm:$0xff]  ;;  %v467_v23 = vld [vmem:[%s4385_s6 + $0xb8] sm:$0xff] }
  0x17   : > { %436 = vst [vmem:[%s4390_s7 + $0x38] sm:$0xff] %v435_v7  ;;  %v469_v24 = vld [vmem:[%s4385_s6 + $0xc0] sm:$0xff]  ;;  %v471_v25 = vld [vmem:[%s4385_s6 + $0xc8] sm:$0xff]  ;;  %v473_v26 = vld [vmem:[%s4385_s6 + $0xd0] sm:$0xff] }
  0x18   : > { %438 = vst [vmem:[%s4390_s7 + $0x40] sm:$0xff] %v437_v8  ;;  %v475_v27 = vld [vmem:[%s4385_s6 + $0xd8] sm:$0xff]  ;;  %v477_v28 = vld [vmem:[%s4385_s6 + $0xe0] sm:$0xff]  ;;  %v479_v29 = vld [vmem:[%s4385_s6 + $0xe8] sm:$0xff] }
  0x19   : > { %440 = vst [vmem:[%s4390_s7 + $0x48] sm:$0xff] %v439_v9  ;;  %v481_v30 = vld [vmem:[%s4385_s6 + $0xf0] sm:$0xff]  ;;  %v483_v31 = vld [vmem:[%s4385_s6 + $0xf8] sm:$0xff]  ;;  %v485_v32 = vld [vmem:[%s4385_s6 + $0x200] sm:$0xff] }
  0x1a   : > { %442 = vst [vmem:[%s4390_s7 + $0x50] sm:$0xff] %v441_v10  ;;  %v487_v33 = vld [vmem:[%s4385_s6 + $0x208] sm:$0xff]  ;;  %v489_v34 = vld [vmem:[%s4385_s6 + $0x210] sm:$0xff]  ;;  %v491_v35 = vld [vmem:[%s4385_s6 + $0x218] sm:$0xff] }
  0x1b   : > { %444 = vst [vmem:[%s4390_s7 + $0x58] sm:$0xff] %v443_v11  ;;  %v493_v36 = vld [vmem:[%s4385_s6 + $0x220] sm:$0xff]  ;;  %v495_v37 = vld [vmem:[%s4385_s6 + $0x228] sm:$0xff]  ;;  %v497_v38 = vld [vmem:[%s4385_s6 + $0x230] sm:$0xff] }
  0x1c   : > { %446 = vst [vmem:[%s4390_s7 + $0x60] sm:$0xff] %v445_v12  ;;  %v499_v39 = vld [vmem:[%s4385_s6 + $0x238] sm:$0xff]  ;;  %v501_v40 = vld [vmem:[%s4385_s6 + $0x240] sm:$0xff]  ;;  %v503_v41 = vld [vmem:[%s4385_s6 + $0x248] sm:$0xff] }
  0x1d   : > { %448 = vst [vmem:[%s4390_s7 + $0x68] sm:$0xff] %v447_v13  ;;  %v505_v42 = vld [vmem:[%s4385_s6 + $0x250] sm:$0xff]  ;;  %v507_v43 = vld [vmem:[%s4385_s6 + $0x258] sm:$0xff]  ;;  %v509_v44 = vld [vmem:[%s4385_s6 + $0x260] sm:$0xff] }
  0x1e   : > { %450 = vst [vmem:[%s4390_s7 + $0x70] sm:$0xff] %v449_v14  ;;  %v511_v45 = vld [vmem:[%s4385_s6 + $0x268] sm:$0xff]  ;;  %v513_v46 = vld [vmem:[%s4385_s6 + $0x270] sm:$0xff]  ;;  %v515_v47 = vld [vmem:[%s4385_s6 + $0x278] sm:$0xff] }
  0x1f   : > { %452 = vst [vmem:[%s4390_s7 + $0x78] sm:$0xff] %v451_v15  ;;  %v517_v48 = vld [vmem:[%s4385_s6 + $0x280] sm:$0xff]  ;;  %v519_v49 = vld [vmem:[%s4385_s6 + $0x288] sm:$0xff]  ;;  %v521_v50 = vld [vmem:[%s4385_s6 + $0x290] sm:$0xff] }
  0x20   : > { %454 = vst [vmem:[%s4390_s7 + $0x80] sm:$0xff] %v453_v16  ;;  %v523_v51 = vld [vmem:[%s4385_s6 + $0x298] sm:$0xff]  ;;  %v525_v52 = vld [vmem:[%s4385_s6 + $0x2a0] sm:$0xff]  ;;  %v527_v53 = vld [vmem:[%s4385_s6 + $0x2a8] sm:$0xff] }
  0x21   : > { %456 = vst [vmem:[%s4390_s7 + $0x88] sm:$0xff] %v455_v17  ;;  %v529_v54 = vld [vmem:[%s4385_s6 + $0x2b0] sm:$0xff]  ;;  %v531_v55 = vld [vmem:[%s4385_s6 + $0x2b8] sm:$0xff]  ;;  %v533_v56 = vld [vmem:[%s4385_s6 + $0x2c0] sm:$0xff] }
  0x22   : > { %458 = vst [vmem:[%s4390_s7 + $0x90] sm:$0xff] %v457_v18  ;;  %v535_v57 = vld [vmem:[%s4385_s6 + $0x2c8] sm:$0xff]  ;;  %v537_v58 = vld [vmem:[%s4385_s6 + $0x2d0] sm:$0xff]  ;;  %v539_v59 = vld [vmem:[%s4385_s6 + $0x2d8] sm:$0xff] }
  0x23   : > { %460 = vst [vmem:[%s4390_s7 + $0x98] sm:$0xff] %v459_v19  ;;  %v541_v60 = vld [vmem:[%s4385_s6 + $0x2e0] sm:$0xff]  ;;  %v543_v61 = vld [vmem:[%s4385_s6 + $0x2e8] sm:$0xff]  ;;  %v545_v62 = vld [vmem:[%s4385_s6 + $0x2f0] sm:$0xff] }
  0x24   : > { %462 = vst [vmem:[%s4390_s7 + $0xa0] sm:$0xff] %v461_v20  ;;  %v547_v63 = vld [vmem:[%s4385_s6 + $0x2f8] sm:$0xff]  ;;  %v549_v0 = vld [vmem:[%s4385_s6 + $0x400] sm:$0xff]  ;;  %v551_v1 = vld [vmem:[%s4385_s6 + $0x408] sm:$0xff] }
  0x25   : > { %464 = vst [vmem:[%s4390_s7 + $0xa8] sm:$0xff] %v463_v21  ;;  %v553_v2 = vld [vmem:[%s4385_s6 + $0x410] sm:$0xff]  ;;  %v555_v3 = vld [vmem:[%s4385_s6 + $0x418] sm:$0xff]  ;;  %v557_v4 = vld [vmem:[%s4385_s6 + $0x420] sm:$0xff] }
  0x26   : > { %466 = vst [vmem:[%s4390_s7 + $0xb0] sm:$0xff] %v465_v22  ;;  %v559_v5 = vld [vmem:[%s4385_s6 + $0x428] sm:$0xff]  ;;  %v561_v6 = vld [vmem:[%s4385_s6 + $0x430] sm:$0xff]  ;;  %v563_v7 = vld [vmem:[%s4385_s6 + $0x438] sm:$0xff] }
  0x27   : > { %468 = vst [vmem:[%s4390_s7 + $0xb8] sm:$0xff] %v467_v23  ;;  %v565_v8 = vld [vmem:[%s4385_s6 + $0x440] sm:$0xff]  ;;  %v567_v9 = vld [vmem:[%s4385_s6 + $0x448] sm:$0xff]  ;;  %v569_v10 = vld [vmem:[%s4385_s6 + $0x450] sm:$0xff] }
  0x28   : > { %470 = vst [vmem:[%s4390_s7 + $0xc0] sm:$0xff] %v469_v24  ;;  %v571_v11 = vld [vmem:[%s4385_s6 + $0x458] sm:$0xff]  ;;  %v573_v12 = vld [vmem:[%s4385_s6 + $0x460] sm:$0xff]  ;;  %v575_v13 = vld [vmem:[%s4385_s6 + $0x468] sm:$0xff] }
  0x29   : > { %472 = vst [vmem:[%s4390_s7 + $0xc8] sm:$0xff] %v471_v25  ;;  %v577_v14 = vld [vmem:[%s4385_s6 + $0x470] sm:$0xff]  ;;  %v579_v15 = vld [vmem:[%s4385_s6 + $0x478] sm:$0xff]  ;;  %v581_v16 = vld [vmem:[%s4385_s6 + $0x480] sm:$0xff] }
  0x2a   : > { %474 = vst [vmem:[%s4390_s7 + $0xd0] sm:$0xff] %v473_v26  ;;  %v583_v17 = vld [vmem:[%s4385_s6 + $0x488] sm:$0xff]  ;;  %v585_v18 = vld [vmem:[%s4385_s6 + $0x490] sm:$0xff]  ;;  %v587_v19 = vld [vmem:[%s4385_s6 + $0x498] sm:$0xff] }
  0x2b   : > { %476 = vst [vmem:[%s4390_s7 + $0xd8] sm:$0xff] %v475_v27  ;;  %v589_v20 = vld [vmem:[%s4385_s6 + $0x4a0] sm:$0xff]  ;;  %v591_v21 = vld [vmem:[%s4385_s6 + $0x4a8] sm:$0xff]  ;;  %v593_v22 = vld [vmem:[%s4385_s6 + $0x4b0] sm:$0xff] }
  0x2c   : > { %478 = vst [vmem:[%s4390_s7 + $0xe0] sm:$0xff] %v477_v28  ;;  %v595_v23 = vld [vmem:[%s4385_s6 + $0x4b8] sm:$0xff]  ;;  %v597_v24 = vld [vmem:[%s4385_s6 + $0x4c0] sm:$0xff]  ;;  %v599_v25 = vld [vmem:[%s4385_s6 + $0x4c8] sm:$0xff] }
  0x2d   : > { %480 = vst [vmem:[%s4390_s7 + $0xe8] sm:$0xff] %v479_v29  ;;  %v601_v26 = vld [vmem:[%s4385_s6 + $0x4d0] sm:$0xff]  ;;  %v603_v27 = vld [vmem:[%s4385_s6 + $0x4d8] sm:$0xff]  ;;  %v605_v28 = vld [vmem:[%s4385_s6 + $0x4e0] sm:$0xff] }
  0x2e   : > { %482 = vst [vmem:[%s4390_s7 + $0xf0] sm:$0xff] %v481_v30  ;;  %v607_v29 = vld [vmem:[%s4385_s6 + $0x4e8] sm:$0xff]  ;;  %v609_v30 = vld [vmem:[%s4385_s6 + $0x4f0] sm:$0xff] }
  0x2f   : > { %484 = vst [vmem:[%s4390_s7 + $0xf8] sm:$0xff] %v483_v31  ;;  %v611_v31 = vld [vmem:[%s4385_s6 + $0x4f8] sm:$0xff] }
  0x30   : > { %486 = vst [vmem:[%s4390_s7 + $0x100] sm:$0xff] %v485_v32 }
  0x31   : > { %488 = vst [vmem:[%s4390_s7 + $0x108] sm:$0xff] %v487_v33 }
  0x32   : > { %490 = vst [vmem:[%s4390_s7 + $0x110] sm:$0xff] %v489_v34 }
  0x33   : > { %492 = vst [vmem:[%s4390_s7 + $0x118] sm:$0xff] %v491_v35 }
  0x34   : > { %494 = vst [vmem:[%s4390_s7 + $0x120] sm:$0xff] %v493_v36 }
  0x35   : > { %496 = vst [vmem:[%s4390_s7 + $0x128] sm:$0xff] %v495_v37 }
  0x36   : > { %498 = vst [vmem:[%s4390_s7 + $0x130] sm:$0xff] %v497_v38 }
  0x37   : > { %500 = vst [vmem:[%s4390_s7 + $0x138] sm:$0xff] %v499_v39 }
  0x38   : > { %502 = vst [vmem:[%s4390_s7 + $0x140] sm:$0xff] %v501_v40 }
  0x39   : > { %504 = vst [vmem:[%s4390_s7 + $0x148] sm:$0xff] %v503_v41 }
  0x3a   : > { %506 = vst [vmem:[%s4390_s7 + $0x150] sm:$0xff] %v505_v42 }
  0x3b   : > { %508 = vst [vmem:[%s4390_s7 + $0x158] sm:$0xff] %v507_v43 }
  0x3c   : > { %510 = vst [vmem:[%s4390_s7 + $0x160] sm:$0xff] %v509_v44 }
  0x3d   : > { %512 = vst [vmem:[%s4390_s7 + $0x168] sm:$0xff] %v511_v45 }
  0x3e   : > { %514 = vst [vmem:[%s4390_s7 + $0x170] sm:$0xff] %v513_v46 }
  0x3f   : > { %516 = vst [vmem:[%s4390_s7 + $0x178] sm:$0xff] %v515_v47 }
  0x40   : > { %518 = vst [vmem:[%s4390_s7 + $0x180] sm:$0xff] %v517_v48 }
  0x41   : > { %520 = vst [vmem:[%s4390_s7 + $0x188] sm:$0xff] %v519_v49 }
  0x42   : > { %522 = vst [vmem:[%s4390_s7 + $0x190] sm:$0xff] %v521_v50 }
  0x43   : > { %524 = vst [vmem:[%s4390_s7 + $0x198] sm:$0xff] %v523_v51 }
  0x44   : > { %526 = vst [vmem:[%s4390_s7 + $0x1a0] sm:$0xff] %v525_v52 }
  0x45   : > { %528 = vst [vmem:[%s4390_s7 + $0x1a8] sm:$0xff] %v527_v53 }
  0x46   : > { %530 = vst [vmem:[%s4390_s7 + $0x1b0] sm:$0xff] %v529_v54 }
  0x47   : > { %532 = vst [vmem:[%s4390_s7 + $0x1b8] sm:$0xff] %v531_v55 }
  0x48   : > { %534 = vst [vmem:[%s4390_s7 + $0x1c0] sm:$0xff] %v533_v56 }
  0x49   : > { %536 = vst [vmem:[%s4390_s7 + $0x1c8] sm:$0xff] %v535_v57 }
  0x4a   : > { %538 = vst [vmem:[%s4390_s7 + $0x1d0] sm:$0xff] %v537_v58 }
  0x4b   : > { %540 = vst [vmem:[%s4390_s7 + $0x1d8] sm:$0xff] %v539_v59 }
  0x4c   : > { %542 = vst [vmem:[%s4390_s7 + $0x1e0] sm:$0xff] %v541_v60 }
  0x4d   : > { %544 = vst [vmem:[%s4390_s7 + $0x1e8] sm:$0xff] %v543_v61 }
  0x4e   : > { %546 = vst [vmem:[%s4390_s7 + $0x1f0] sm:$0xff] %v545_v62 }
  0x4f   : > { %548 = vst [vmem:[%s4390_s7 + $0x1f8] sm:$0xff] %v547_v63 }
  0x50   : > { %550 = vst [vmem:[%s4390_s7 + $0x200] sm:$0xff] %v549_v0 }
  0x51   : > { %552 = vst [vmem:[%s4390_s7 + $0x208] sm:$0xff] %v551_v1 }
  0x52   : > { %554 = vst [vmem:[%s4390_s7 + $0x210] sm:$0xff] %v553_v2 }
  0x53   : > { %556 = vst [vmem:[%s4390_s7 + $0x218] sm:$0xff] %v555_v3 }
  0x54   : > { %558 = vst [vmem:[%s4390_s7 + $0x220] sm:$0xff] %v557_v4 }
  0x55   : > { %560 = vst [vmem:[%s4390_s7 + $0x228] sm:$0xff] %v559_v5 }
  0x56   : > { %562 = vst [vmem:[%s4390_s7 + $0x230] sm:$0xff] %v561_v6 }
  0x57   : > { %564 = vst [vmem:[%s4390_s7 + $0x238] sm:$0xff] %v563_v7 }
  0x58   : > { %566 = vst [vmem:[%s4390_s7 + $0x240] sm:$0xff] %v565_v8 }
  0x59   : > { %568 = vst [vmem:[%s4390_s7 + $0x248] sm:$0xff] %v567_v9 }
  0x5a   : > { %570 = vst [vmem:[%s4390_s7 + $0x250] sm:$0xff] %v569_v10 }
  0x5b   : > { %572 = vst [vmem:[%s4390_s7 + $0x258] sm:$0xff] %v571_v11 }
  0x5c   : > { %574 = vst [vmem:[%s4390_s7 + $0x260] sm:$0xff] %v573_v12 }
  0x5d   : > { %576 = vst [vmem:[%s4390_s7 + $0x268] sm:$0xff] %v575_v13 }
  0x5e   : > { %578 = vst [vmem:[%s4390_s7 + $0x270] sm:$0xff] %v577_v14 }
  0x5f   : > { %580 = vst [vmem:[%s4390_s7 + $0x278] sm:$0xff] %v579_v15 }
  0x60   : > { %582 = vst [vmem:[%s4390_s7 + $0x280] sm:$0xff] %v581_v16 }
  0x61   : > { %584 = vst [vmem:[%s4390_s7 + $0x288] sm:$0xff] %v583_v17 }
  0x62   : > { %586 = vst [vmem:[%s4390_s7 + $0x290] sm:$0xff] %v585_v18 }
  0x63   : > { %588 = vst [vmem:[%s4390_s7 + $0x298] sm:$0xff] %v587_v19 }
  0x64   : > { %590 = vst [vmem:[%s4390_s7 + $0x2a0] sm:$0xff] %v589_v20 }
  0x65   : > { %592 = vst [vmem:[%s4390_s7 + $0x2a8] sm:$0xff] %v591_v21 }
  0x66   : > { %594 = vst [vmem:[%s4390_s7 + $0x2b0] sm:$0xff] %v593_v22 }
  0x67   : > { %596 = vst [vmem:[%s4390_s7 + $0x2b8] sm:$0xff] %v595_v23 }
  0x68   : > { %598 = vst [vmem:[%s4390_s7 + $0x2c0] sm:$0xff] %v597_v24 }
  0x69   : > { %600 = vst [vmem:[%s4390_s7 + $0x2c8] sm:$0xff] %v599_v25 }
  0x6a   : > { %602 = vst [vmem:[%s4390_s7 + $0x2d0] sm:$0xff] %v601_v26 }
  0x6b   : > { %604 = vst [vmem:[%s4390_s7 + $0x2d8] sm:$0xff] %v603_v27 }
  0x6c   : > { %606 = vst [vmem:[%s4390_s7 + $0x2e0] sm:$0xff] %v605_v28 }
  0x6d   : > { %608 = vst [vmem:[%s4390_s7 + $0x2e8] sm:$0xff] %v607_v29 }
  0x6e   : > { %610 = vst [vmem:[%s4390_s7 + $0x2f0] sm:$0xff] %v609_v30 }
  0x6f   : > { %612 = vst [vmem:[%s4390_s7 + $0x2f8] sm:$0xff] %v611_v31 }
  0x70 PF: > { %p3041_p5 = scmp.ge.s32.totalorder %s4319_s20, 1  ;;  %p626_p6 = scmp.lt.s32.totalorder %s4319_s20, 3 }
  0x72   : > { %p627_p7 = pnand %p3041_p5, %p626_p6 }
  0x73   : > { %s3042_s13 = sshll.u32 (!%p627_p7), %s3034_s21, 5  ;;  %s633_s9 = sand.u32 (!%p627_p7), 1, %s4311_s18  }
  0x74   : > { %630 = sbr.rel (%p627_p7) target bundleno = 805 (0x325), region = 74  ;;  %p672_p8 = scmp.lt.s32.totalorder (!%p627_p7), %s3042_s13, 63 }
  0x75   : > { %s4270_s15 = smul.u32 (!%p627_p7), 768, %s633_s9 }
  0x77   : > { %s4692_s26 = scalar_lea.vmem (!%p627_p7), [#allocation2], %s4270_s15 }
  0x79   : > { %v4069_v32 = vld [vmem:[%s5254_s2 + $0xb8] sm:$0xff]  ;;  %v4068_v36 = vld [vmem:[%s5254_s2 + $0xb0] sm:$0xff]  ;;  %v4067_v40 = vld [vmem:[%s5254_s2 + $0xa8] sm:$0xff]  ;;  %s5262_s13 = smov (!%p672_p8, %s3042_s13), 63 }
  0x7a   : > { %v4077_v33 = vld [vmem:[%s5254_s2 + $0xf8] sm:$0xff]  ;;  %1076 = vmatpush.bf16.msra.mxu0 %v4069_v32  ;;  %v4076_v37 = vld [vmem:[%s5254_s2 + $0xf0] sm:$0xff]  ;;  %v4075_v41 = vld [vmem:[%s5254_s2 + $0xe8] sm:$0xff]  ;;  %s3981_s24 = sshll.u32 %s5262_s13, 3 }
  0x7b   : > { %v4021_v34 = vld [vmem:[%s5254_s2 + $0x38] sm:$0xff]  ;;  %1165 = vmatpush.bf16.msra.mxu1 %v4077_v33  ;;  %v4020_v38 = vld [vmem:[%s5254_s2 + $0x30] sm:$0xff]  ;;  %v4019_v42 = vld [vmem:[%s5254_s2 + $0x28] sm:$0xff]  ;;  %s4678_s9 = scalar_lea.vmem %s5252_s0, %s3981_s24  ;;  %s5073_s14 = scalar_lea.vmem %s5256_s4, %s3981_s24 }
  0x7c   : > { %v4029_v35 = vld [vmem:[%s5254_s2 + $0x78] sm:$0xff]  ;;  %1510 = vmatpush.bf16.msra.mxu2 %v4021_v34  ;;  %v4028_v39 = vld [vmem:[%s5254_s2 + $0x70] sm:$0xff]  ;;  %v4027_v43 = vld [vmem:[%s5254_s2 + $0x68] sm:$0xff]  ;;  %s3048_s24 = sshll.u32 %s5262_s13, 2 }
  0x7d   : > { %1599 = vmatpush.bf16.msra.mxu3 %v4029_v35  ;;  %v4066_v44 = vld [vmem:[%s5254_s2 + $0xa0] sm:$0xff]  ;;  %v4065_v48 = vld [vmem:[%s5254_s2 + $0x98] sm:$0xff]  ;;  %v4064_v52 = vld [vmem:[%s5254_s2 + $0x90] sm:$0xff]  ;;  %s5084_s18 = scalar_lea.vmem %s5257_s5, %s3048_s24 }
  0x7e   : > { %1077 = vmatpush.bf16.msra.mxu0 %v4068_v36  ;;  %v4074_v45 = vld [vmem:[%s5254_s2 + $0xe0] sm:$0xff]  ;;  %v4073_v49 = vld [vmem:[%s5254_s2 + $0xd8] sm:$0xff]  ;;  %v4072_v53 = vld [vmem:[%s5254_s2 + $0xd0] sm:$0xff] }
  0x7f   : > { %1166 = vmatpush.bf16.msra.mxu1 %v4076_v37  ;;  %v4018_v46 = vld [vmem:[%s5254_s2 + $0x20] sm:$0xff]  ;;  %v4017_v50 = vld [vmem:[%s5254_s2 + $0x18] sm:$0xff]  ;;  %v4016_v54 = vld [vmem:[%s5254_s2 + $0x10] sm:$0xff] }
  0x80   : > { %1511 = vmatpush.bf16.msra.mxu2 %v4020_v38  ;;  %v4026_v47 = vld [vmem:[%s5254_s2 + $0x60] sm:$0xff]  ;;  %v4025_v51 = vld [vmem:[%s5254_s2 + $0x58] sm:$0xff]  ;;  %v4024_v55 = vld [vmem:[%s5254_s2 + $0x50] sm:$0xff] }
  0x81   : > { %1600 = vmatpush.bf16.msra.mxu3 %v4028_v39  ;;  %v4063_v56 = vld [vmem:[%s5254_s2 + $0x88] sm:$0xff]  ;;  %v4062_v60 = vld [vmem:[%s5254_s2 + $0x80] sm:$0xff]  ;;  %v4165_v8 = vld [vmem:[%s5254_s2 + $0x1b8] sm:$0xff] }
  0x82   : > { %1078 = vmatpush.bf16.msra.mxu0 %v4067_v40  ;;  %v4071_v57 = vld [vmem:[%s5254_s2 + $0xc8] sm:$0xff]  ;;  %v4070_v61 = vld [vmem:[%s5254_s2 + $0xc0] sm:$0xff]  ;;  %v4173_v9 = vld [vmem:[%s5254_s2 + $0x1f8] sm:$0xff] }
  0x83   : > { %1167 = vmatpush.bf16.msra.mxu1 %v4075_v41  ;;  %v4015_v58 = vld [vmem:[%s5254_s2 + $0x8] sm:$0xff]  ;;  %v4014_v62 = vld [vmem:[%s5254_s2] sm:$0xff]  ;;  %v4117_v14 = vld [vmem:[%s5254_s2 + $0x138] sm:$0xff] }
  0x84   : > { %1512 = vmatpush.bf16.msra.mxu2 %v4019_v42  ;;  %v4023_v59 = vld [vmem:[%s5254_s2 + $0x48] sm:$0xff]  ;;  %v4022_v63 = vld [vmem:[%s5254_s2 + $0x40] sm:$0xff]  ;;  %v4125_v15 = vld [vmem:[%s5254_s2 + $0x178] sm:$0xff] }
  0x85   : > { %1601 = vmatpush.bf16.msra.mxu3 %v4027_v43  ;;  %v3083_v0 = vld [vmem:[%s4692_s26] sm:$0xf]  ;;  %v4031_v1 = vld [vmem:[%s4692_s26 + $0x4] sm:$0xf0]  ;;  %v4030_v2 = vld [vmem:[%s4692_s26 + $0x4] sm:$0xf] }
  0x86   : > { %1079 = vmatpush.bf16.msra.mxu0 %v4066_v44  ;;  %v3085_v3 = vld [vmem:[%s4692_s26 + $0x8] sm:$0xf0]  ;;  %v3275_v4 = vld [vmem:[%s4678_s9] sm:$0xf]  ;;  %v3983_v5 = vld [vmem:[%s4678_s9 + $0x4] sm:$0xf0]  ;;  %v3084_v10 = vor.u32 %v4031_v1, %v3083_v0 }
  0x87   : > { %1168 = vmatpush.bf16.msra.mxu1 %v4074_v45  ;;  %v3982_v6 = vld [vmem:[%s4678_s9 + $0x4] sm:$0xf]  ;;  %v3277_v7 = vld [vmem:[%s4678_s9 + $0x8] sm:$0xf0]  ;;  %v3088_v11 = vor.u32 %v4030_v2, %v3085_v3  ;;  %v3276_v12 = vor.u32 %v3983_v5, %v3275_v4  ;;  %v4164_v16 = vld [vmem:[%s5254_s2 + $0x1b0] sm:$0xff] }
  0x88   : > { %1513 = vmatpush.bf16.msra.mxu2 %v4018_v46  ;;  %v3280_v13 = vor.u32 %v3982_v6, %v3277_v7  ;;  %v4172_v17 = vld [vmem:[%s5254_s2 + $0x1f0] sm:$0xff]  ;;  %v4033_v21 = vld [vmem:[%s4692_s26 + $0x14] sm:$0xf0]  ;;  %v3093_v23 = vld [vmem:[%s4692_s26 + $0x18] sm:$0xf0] }
  0x89   : > { %1602 = vmatpush.bf16.msra.mxu3 %v4026_v47  ;;  %v4116_v18 = vld [vmem:[%s5254_s2 + $0x130] sm:$0xff]  ;;  %v3985_v25 = vld [vmem:[%s4678_s9 + $0x14] sm:$0xf0]  ;;  %v3285_v27 = vld [vmem:[%s4678_s9 + $0x18] sm:$0xf0] }
  0x8a   : > { %1080 = vmatpush.bf16.msra.mxu0 %v4065_v48  ;;  %v4124_v19 = vld [vmem:[%s5254_s2 + $0x170] sm:$0xff]  ;;  %v3099_v32 = vld [vmem:[%s4692_s26 + $0x20] sm:$0xf]  ;;  %v4035_v33 = vld [vmem:[%s4692_s26 + $0x24] sm:$0xf0] }
  0x8b   : > { %1169 = vmatpush.bf16.msra.mxu1 %v4073_v49  ;;  %v3091_v20 = vld [vmem:[%s4692_s26 + $0x10] sm:$0xf]  ;;  %v4032_v22 = vld [vmem:[%s4692_s26 + $0x14] sm:$0xf]  ;;  %v4034_v34 = vld [vmem:[%s4692_s26 + $0x24] sm:$0xf]  ;;  %v3100_v40 = vor.u32 %v4035_v33, %v3099_v32 }
  0x8c   : > { %1514 = vmatpush.bf16.msra.mxu2 %v4017_v50  ;;  %v3283_v24 = vld [vmem:[%s4678_s9 + $0x10] sm:$0xf]  ;;  %v3984_v26 = vld [vmem:[%s4678_s9 + $0x14] sm:$0xf]  ;;  %v3092_v28 = vor.u32 %v4033_v21, %v3091_v20  ;;  %v3096_v29 = vor.u32 %v4032_v22, %v3093_v23  ;;  %v3101_v35 = vld [vmem:[%s4692_s26 + $0x28] sm:$0xf0] }
  0x8d   : > { %1603 = vmatpush.bf16.msra.mxu3 %v4025_v51  ;;  %v3284_v30 = vor.u32 %v3985_v25, %v3283_v24  ;;  %v3288_v31 = vor.u32 %v3984_v26, %v3285_v27  ;;  %v3291_v36 = vld [vmem:[%s4678_s9 + $0x20] sm:$0xf]  ;;  %v3987_v37 = vld [vmem:[%s4678_s9 + $0x24] sm:$0xf0]  ;;  %v3986_v38 = vld [vmem:[%s4678_s9 + $0x24] sm:$0xf]  ;;  %v3104_v41 = vor.u32 %v4034_v34, %v3101_v35 }
  0x8e   : > { %1081 = vmatpush.bf16.msra.mxu0 %v4064_v52  ;;  %v3293_v39 = vld [vmem:[%s4678_s9 + $0x28] sm:$0xf0]  ;;  %v3292_v42 = vor.u32 %v3987_v37, %v3291_v36  ;;  %v3107_v48 = vld [vmem:[%s4692_s26 + $0x30] sm:$0xf]  ;;  %v4037_v49 = vld [vmem:[%s4692_s26 + $0x34] sm:$0xf0] }
  0x8f   : > { %1170 = vmatpush.bf16.msra.mxu1 %v4072_v53  ;;  %v3296_v43 = vor.u32 %v3986_v38, %v3293_v39  ;;  %v4163_v44 = vld [vmem:[%s5254_s2 + $0x1a8] sm:$0xff]  ;;  %v4036_v50 = vld [vmem:[%s4692_s26 + $0x34] sm:$0xf]  ;;  %v3109_v51 = vld [vmem:[%s4692_s26 + $0x38] sm:$0xf0] }
  0x90   : > { %1515 = vmatpush.bf16.msra.mxu2 %v4016_v54  ;;  %v4171_v45 = vld [vmem:[%s5254_s2 + $0x1e8] sm:$0xff]  ;;  %v3299_v52 = vld [vmem:[%s4678_s9 + $0x30] sm:$0xf]  ;;  %v3989_v53 = vld [vmem:[%s4678_s9 + $0x34] sm:$0xf0] }
  0x91   : > { %1604 = vmatpush.bf16.msra.mxu3 %v4024_v55  ;;  %v4115_v46 = vld [vmem:[%s5254_s2 + $0x128] sm:$0xff]  ;;  %v3988_v54 = vld [vmem:[%s4678_s9 + $0x34] sm:$0xf]  ;;  %v3301_v55 = vld [vmem:[%s4678_s9 + $0x38] sm:$0xf0] }
  0x92   : > { %1082 = vmatpush.bf16.msra.mxu0 %v4063_v56  ;;  %v4123_v47 = vld [vmem:[%s5254_s2 + $0x168] sm:$0xff]  ;;  %v3108_v56 = vor.u32 %v4037_v49, %v3107_v48  ;;  %v3307_v0 = vld [vmem:[%s4678_s9 + $0x40] sm:$0xf]  ;;  %v3990_v2 = vld [vmem:[%s4678_s9 + $0x44] sm:$0xf] }
  0x93   : > { %1171 = vmatpush.bf16.msra.mxu1 %v4071_v57  ;;  %v3112_v57 = vor.u32 %v4036_v50, %v3109_v51  ;;  %v3991_v1 = vld [vmem:[%s4678_s9 + $0x44] sm:$0xf0]  ;;  %v3309_v3 = vld [vmem:[%s4678_s9 + $0x48] sm:$0xf0]  ;;  %v3131_v24 = vld [vmem:[%s4692_s26 + $0x60] sm:$0xf] }
  0x94   : > { %1516 = vmatpush.bf16.msra.mxu2 %v4015_v58  ;;  %v3300_v58 = vor.u32 %v3989_v53, %v3299_v52  ;;  %v3308_v6 = vor.u32 %v3991_v1, %v3307_v0  ;;  %v3312_v7 = vor.u32 %v3990_v2, %v3309_v3  ;;  %v4043_v25 = vld [vmem:[%s4692_s26 + $0x64] sm:$0xf0]  ;;  %v4042_v26 = vld [vmem:[%s4692_s26 + $0x64] sm:$0xf]  ;;  %v3133_v27 = vld [vmem:[%s4692_s26 + $0x68] sm:$0xf0] }
  0x95   : > { %1605 = vmatpush.bf16.msra.mxu3 %v4023_v59  ;;  %v3304_v59 = vor.u32 %v3988_v54, %v3301_v55  ;;  %v3132_v32 = vor.u32 %v4043_v25, %v3131_v24  ;;  %v3136_v33 = vor.u32 %v4042_v26, %v3133_v27  ;;  %v4161_v36 = vld [vmem:[%s5254_s2 + $0x198] sm:$0xff]  ;;  %v3147_v52 = vld [vmem:[%s4692_s26 + $0x80] sm:$0xf]  ;;  %v4047_v53 = vld [vmem:[%s4692_s26 + $0x84] sm:$0xf0] }
  0x96   : > { %1083 = vmatpush.bf16.msra.mxu0 %v4062_v60  ;;  %v3115_v60 = vld [vmem:[%s4692_s26 + $0x40] sm:$0xf]  ;;  %v4169_v37 = vld [vmem:[%s5254_s2 + $0x1d8] sm:$0xff]  ;;  %v4046_v54 = vld [vmem:[%s4692_s26 + $0x84] sm:$0xf] }
  0x97   : > { %1172 = vmatpush.bf16.msra.mxu1 %v4070_v61  ;;  %v4039_v61 = vld [vmem:[%s4692_s26 + $0x44] sm:$0xf0]  ;;  %v4113_v38 = vld [vmem:[%s5254_s2 + $0x118] sm:$0xff]  ;;  %v3149_v55 = vld [vmem:[%s4692_s26 + $0x88] sm:$0xf0] }
  0x98   : > { %1517 = vmatpush.bf16.msra.mxu2 %v4014_v62  ;;  %v4038_v62 = vld [vmem:[%s4692_s26 + $0x44] sm:$0xf]  ;;  %v3116_v4 = vor.u32 %v4039_v61, %v3115_v60  ;;  %v4121_v39 = vld [vmem:[%s5254_s2 + $0x158] sm:$0xff]  ;;  %v3148_v60 = vor.u32 %v4047_v53, %v3147_v52  ;;  %v3152_v61 = vor.u32 %v4046_v54, %v3149_v55  ;;  %v4160_v3 = vld [vmem:[%s5254_s2 + $0x190] sm:$0xff] }
  0x99   : > { %1606 = vmatpush.bf16.msra.mxu3 %v4022_v63  ;;  %1084 = vmatmul.bf16.vlgmr.msra.gmra.mxu0 %v3084_v10  ;;  %v3117_v63 = vld [vmem:[%s4692_s26 + $0x48] sm:$0xf0]  ;;  %v4114_v10 = vld [vmem:[%s5254_s2 + $0x120] sm:$0xff] }
  0x9a   : > { %1173 = vmatmul.bf16.vlgmr.msra.gmra.mxu1 %v3088_v11  ;;  %2010 = vmatpush.bf16.msrb.mxu0 %v4117_v14  ;;  %v3120_v5 = vor.u32 %v4038_v62, %v3117_v63  ;;  %v4122_v11 = vld [vmem:[%s5254_s2 + $0x160] sm:$0xff]  ;;  %v4040_v14 = vld [vmem:[%s4692_s26 + $0x54] sm:$0xf] }
  0x9b   : > { %1518 = vmatmul.bf16.vlgmr.msra.gmra.mxu2 %v3276_v12  ;;  %2099 = vmatpush.bf16.msrb.mxu1 %v4125_v15  ;;  %v3123_v12 = vld [vmem:[%s4692_s26 + $0x50] sm:$0xf]  ;;  %v3125_v15 = vld [vmem:[%s4692_s26 + $0x58] sm:$0xf0] }
  0x9c   : > { %2542 = vmatpush.bf16.msrb.mxu2 %v4165_v8  ;;  %1607 = vmatmul.bf16.vlgmr.msra.gmra.mxu3 %v3280_v13  ;;  %v4162_v8 = vld [vmem:[%s5254_s2 + $0x1a0] sm:$0xff]  ;;  %v4041_v13 = vld [vmem:[%s4692_s26 + $0x54] sm:$0xf0]  ;;  %v3128_v21 = vor.u32 %v4040_v14, %v3125_v15  ;;  %v3155_v14 = vld [vmem:[%s4692_s26 + $0x90] sm:$0xf] }
  0x9d   : > { %2631 = vmatpush.bf16.msrb.mxu3 %v4173_v9  ;;  %v4170_v9 = vld [vmem:[%s5254_s2 + $0x1e0] sm:$0xff]  ;;  %v3124_v20 = vor.u32 %v4041_v13, %v3123_v12  ;;  %v4112_v12 = vld [vmem:[%s5254_s2 + $0x110] sm:$0xff]  ;;  %v4049_v15 = vld [vmem:[%s4692_s26 + $0x94] sm:$0xf0] }
  0x9e   : > { %2011 = vmatpush.bf16.msrb.mxu0 %v4116_v18  ;;  %v3992_v18 = vld [vmem:[%s4678_s9 + $0x54] sm:$0xf]  ;;  %v3156_v24 = vor.u32 %v4049_v15, %v3155_v14  ;;  %v3365_v14 = vld [vmem:[%s4678_s9 + $0xb8] sm:$0xf0] }
  0x9f   : > { %2100 = vmatpush.bf16.msrb.mxu1 %v4124_v19  ;;  %v3317_v19 = vld [vmem:[%s4678_s9 + $0x58] sm:$0xf0]  ;;  %v4120_v13 = vld [vmem:[%s5254_s2 + $0x150] sm:$0xff] }
  0xa0   : > { %2543 = vmatpush.bf16.msrb.mxu2 %v4164_v16  ;;  %v3315_v16 = vld [vmem:[%s4678_s9 + $0x50] sm:$0xf]  ;;  %v3320_v23 = vor.u32 %v3992_v18, %v3317_v19  ;;  %v4001_v19 = vld [vmem:[%s4678_s9 + $0x94] sm:$0xf0] }
  0xa1   : > { %2632 = vmatpush.bf16.msrb.mxu3 %v4172_v17  ;;  %v3993_v17 = vld [vmem:[%s4678_s9 + $0x54] sm:$0xf0]  ;;  %v3347_v18 = vld [vmem:[%s4678_s9 + $0x90] sm:$0xf] }
  0xa2   : > { %2012 = vmatpush.bf16.msrb.mxu0 %v4115_v46  ;;  %v3316_v22 = vor.u32 %v3993_v17, %v3315_v16  ;;  %v3996_v46 = vld [vmem:[%s4678_s9 + $0x74] sm:$0xf]  ;;  %v3157_v17 = vld [vmem:[%s4692_s26 + $0x98] sm:$0xf0] }
  0xa3   : > { %2101 = vmatpush.bf16.msrb.mxu1 %v4123_v47  ;;  %v3333_v47 = vld [vmem:[%s4678_s9 + $0x78] sm:$0xf0]  ;;  %v4048_v16 = vld [vmem:[%s4692_s26 + $0x94] sm:$0xf] }
  0xa4   : > { %2544 = vmatpush.bf16.msrb.mxu2 %v4163_v44  ;;  %v3331_v44 = vld [vmem:[%s4678_s9 + $0x70] sm:$0xf]  ;;  %v3336_v51 = vor.u32 %v3996_v46, %v3333_v47  ;;  %v3160_v25 = vor.u32 %v4048_v16, %v3157_v17  ;;  %v4002_v46 = vld [vmem:[%s4678_s9 + $0xa4] sm:$0xf]  ;;  %v3357_v47 = vld [vmem:[%s4678_s9 + $0xa8] sm:$0xf0] }
  0xa5   : > { %2633 = vmatpush.bf16.msrb.mxu3 %v4171_v45  ;;  %v3997_v45 = vld [vmem:[%s4678_s9 + $0x74] sm:$0xf0] }
  0xa6   : > { %2013 = vmatpush.bf16.msrb.mxu0 %v4114_v10  ;;  %v3332_v50 = vor.u32 %v3997_v45, %v3331_v44  ;;  %v3355_v44 = vld [vmem:[%s4678_s9 + $0xa0] sm:$0xf]  ;;  %v4003_v45 = vld [vmem:[%s4678_s9 + $0xa4] sm:$0xf0] }
  0xa7   : > { %2102 = vmatpush.bf16.msrb.mxu1 %v4122_v11  ;;  %v3356_v55 = vor.u32 %v4003_v45, %v3355_v44 }
  0xa8   : > { %2545 = vmatpush.bf16.msrb.mxu2 %v4162_v8 }
  0xa9   : > { %1089 = vmatmul.bf16.gmra.mxu0 %v3092_v28  ;;  %2634 = vmatpush.bf16.msrb.mxu3 %v4170_v9  ;;  %v3323_v28 = vld [vmem:[%s4678_s9 + $0x60] sm:$0xf] }
  0xaa   : > { %1178 = vmatmul.bf16.gmra.mxu1 %v3096_v29  ;;  %v3995_v29 = vld [vmem:[%s4678_s9 + $0x64] sm:$0xf0]  ;;  %2014 = vmatpush.bf16.msrb.mxu0 %v4113_v38 }
  0xab   : > { %1523 = vmatmul.bf16.gmra.mxu2 %v3284_v30  ;;  %v3994_v30 = vld [vmem:[%s4678_s9 + $0x64] sm:$0xf]  ;;  %v3324_v34 = vor.u32 %v3995_v29, %v3323_v28  ;;  %2103 = vmatpush.bf16.msrb.mxu1 %v4121_v39  ;;  %v3348_v29 = vor.u32 %v4001_v19, %v3347_v18 }
  0xac   : > { %1612 = vmatmul.bf16.gmra.mxu3 %v3288_v31  ;;  %v3325_v31 = vld [vmem:[%s4678_s9 + $0x68] sm:$0xf0]  ;;  %2546 = vmatpush.bf16.msrb.mxu2 %v4161_v36 }
  0xad   : > { %v3328_v35 = vor.u32 %v3994_v30, %v3325_v31  ;;  %2635 = vmatpush.bf16.msrb.mxu3 %v4169_v37 }
  0xae   : > { %2015 = vmatpush.bf16.msrb.mxu0 %v4112_v12  ;;  %v4005_v12 = vld [vmem:[%s4678_s9 + $0xb4] sm:$0xf0] }
  0xaf   : > { %2104 = vmatpush.bf16.msrb.mxu1 %v4120_v13  ;;  %v4004_v13 = vld [vmem:[%s4678_s9 + $0xb4] sm:$0xf] }
  0xb0   : > { %2547 = vmatpush.bf16.msrb.mxu2 %v4160_v3 }
  0xb9   : > { %1094 = vmatmul.bf16.gmra.mxu0 %v3100_v40  ;;  %v3139_v40 = vld [vmem:[%s4692_s26 + $0x70] sm:$0xf] }
  0xba   : > { %1183 = vmatmul.bf16.gmra.mxu1 %v3104_v41  ;;  %v4045_v41 = vld [vmem:[%s4692_s26 + $0x74] sm:$0xf0] }
  0xbb   : > { %1528 = vmatmul.bf16.gmra.mxu2 %v3292_v42  ;;  %v4044_v42 = vld [vmem:[%s4692_s26 + $0x74] sm:$0xf]  ;;  %v3140_v48 = vor.u32 %v4045_v41, %v3139_v40  ;;  %v3163_v40 = vld [vmem:[%s4692_s26 + $0xa0] sm:$0xf]  ;;  %v4051_v41 = vld [vmem:[%s4692_s26 + $0xa4] sm:$0xf0] }
  0xbc   : > { %1617 = vmatmul.bf16.gmra.mxu3 %v3296_v43  ;;  %v3141_v43 = vld [vmem:[%s4692_s26 + $0x78] sm:$0xf0] }
  0xbd   : > { %v3144_v49 = vor.u32 %v4044_v42, %v3141_v43  ;;  %v4050_v42 = vld [vmem:[%s4692_s26 + $0xa4] sm:$0xf]  ;;  %v3165_v43 = vld [vmem:[%s4692_s26 + $0xa8] sm:$0xf0] }
  0xc9   : > { %1099 = vmatmul.bf16.gmra.mxu0 %v3108_v56  ;;  %v3339_v56 = vld [vmem:[%s4678_s9 + $0x80] sm:$0xf] }
  0xca   : > { %1188 = vmatmul.bf16.gmra.mxu1 %v3112_v57  ;;  %v3999_v57 = vld [vmem:[%s4678_s9 + $0x84] sm:$0xf0] }
  0xcb   : > { %1533 = vmatmul.bf16.gmra.mxu2 %v3300_v58  ;;  %v3998_v58 = vld [vmem:[%s4678_s9 + $0x84] sm:$0xf]  ;;  %v3340_v0 = vor.u32 %v3999_v57, %v3339_v56  ;;  %v3360_v56 = vor.u32 %v4002_v46, %v3357_v47 }
  0xcc   : > { %1622 = vmatmul.bf16.gmra.mxu3 %v3304_v59  ;;  %v3341_v59 = vld [vmem:[%s4678_s9 + $0x88] sm:$0xf0] }
  0xcd   : > { %v3344_v1 = vor.u32 %v3998_v58, %v3341_v59  ;;  %v4159_v59 = vld [vmem:[%s5254_s2 + $0x188] sm:$0xff] }
  0xce   : > { %2548 = vmatpush.bf16.msrb.mxu2 %v4159_v59 }
  0xd9   : > { %1104 = vmatmul.bf16.gmra.mxu0 %v3116_v4  ;;  %v4168_v4 = vld [vmem:[%s5254_s2 + $0x1d0] sm:$0xff] }
  0xda   : > { %1193 = vmatmul.bf16.gmra.mxu1 %v3120_v5  ;;  %2636 = vmatpush.bf16.msrb.mxu3 %v4168_v4  ;;  %v4111_v4 = vld [vmem:[%s5254_s2 + $0x108] sm:$0xff] }
  0xdb   : > { %1538 = vmatmul.bf16.gmra.mxu2 %v3308_v6  ;;  %2016 = vmatpush.bf16.msrb.mxu0 %v4111_v4  ;;  %v4057_v4 = vld [vmem:[%s4692_s26 + $0xd4] sm:$0xf0] }
  0xdc   : > { %1627 = vmatmul.bf16.gmra.mxu3 %v3312_v7 }
  0xe9   : > { %1109 = vmatmul.bf16.gmra.mxu0 %v3124_v20  ;;  %v4000_v20 = vld [vmem:[%s4678_s9 + $0x94] sm:$0xf] }
  0xea   : > { %1198 = vmatmul.bf16.gmra.mxu1 %v3128_v21  ;;  %v3349_v21 = vld [vmem:[%s4678_s9 + $0x98] sm:$0xf0] }
  0xeb   : > { %1543 = vmatmul.bf16.gmra.mxu2 %v3316_v22  ;;  %v3352_v30 = vor.u32 %v4000_v20, %v3349_v21 }
  0xec   : > { %1632 = vmatmul.bf16.gmra.mxu3 %v3320_v23 }
  0xf9   : > { %1114 = vmatmul.bf16.gmra.mxu0 %v3132_v32 }
  0xfa   : > { %1203 = vmatmul.bf16.gmra.mxu1 %v3136_v33 }
  0xfb   : > { %1548 = vmatmul.bf16.gmra.mxu2 %v3324_v34 }
  0xfc   : > { %1637 = vmatmul.bf16.gmra.mxu3 %v3328_v35 }
 0x109   : > { %1119 = vmatmul.bf16.gmra.mxu0 %v3140_v48 }
 0x10a   : > { %1208 = vmatmul.bf16.gmra.mxu1 %v3144_v49 }
 0x10b   : > { %1553 = vmatmul.bf16.gmra.mxu2 %v3332_v50  ;;  %v3164_v50 = vor.u32 %v4051_v41, %v3163_v40  ;;  %v4007_v40 = vld [vmem:[%s4678_s9 + $0xc4] sm:$0xf0]  ;;  %v4006_v41 = vld [vmem:[%s4678_s9 + $0xc4] sm:$0xf] }
 0x10c   : > { %1642 = vmatmul.bf16.gmra.mxu3 %v3336_v51  ;;  %v3168_v51 = vor.u32 %v4050_v42, %v3165_v43  ;;  %v3373_v42 = vld [vmem:[%s4678_s9 + $0xc8] sm:$0xf0] }
 0x116   : > { %v1085_v62 = vpop.f32.mrf.mxu0 }
 0x117   : > { %v1174_v63 = vpop.f32.mrf.mxu1 }
 0x118   : > { %v1175_v2 = vadd.f32 %v1174_v63, %v1085_v62 }
 0x119   : > { %1124 = vmatmul.bf16.gmra.mxu0 %v3148_v60  ;;  %v4167_v60 = vld [vmem:[%s5254_s2 + $0x1c8] sm:$0xff] }
 0x11a   : > { %1213 = vmatmul.bf16.gmra.mxu1 %v3152_v61  ;;  %2637 = vmatpush.bf16.msrb.mxu3 %v4167_v60 }
 0x11b   : > { %1558 = vmatmul.bf16.gmra.mxu2 %v3340_v0 }
 0x11c   : > { %1647 = vmatmul.bf16.gmra.mxu3 %v3344_v1 }
 0x11e   : > { %v1519_v5 = vpop.f32.mrf.mxu2  ;;  %v1087_v8 = vpop.f32.mrf.mxu0 }
 0x11f   : > { %v1608_v6 = vpop.f32.mrf.mxu3  ;;  %v1520_v7 = vadd.f32 %v1519_v5, %v1175_v2  ;;  %v1176_v9 = vpop.f32.mrf.mxu1  ;;  %v4119_v5 = vld [vmem:[%s5254_s2 + $0x148] sm:$0xff] }
 0x120   : > { %v1177_v10 = vadd.f32 %v1176_v9, %v1087_v8  ;;  %v4052_v8 = vld [vmem:[%s4692_s26 + $0xb4] sm:$0xf]  ;;  %v3173_v9 = vld [vmem:[%s4692_s26 + $0xb8] sm:$0xf0]  ;;  %2105 = vmatpush.bf16.msrb.mxu1 %v4119_v5 }
 0x121   : > { %v4832_v11 = vadd.f32 %v1608_v6, %v1520_v7  ;;  %v3171_v6 = vld [vmem:[%s4692_s26 + $0xb0] sm:$0xf]  ;;  %v4053_v7 = vld [vmem:[%s4692_s26 + $0xb4] sm:$0xf0]  ;;  %v3176_v18 = vor.u32 %v4052_v8, %v3173_v9  ;;  %v4056_v5 = vld [vmem:[%s4692_s26 + $0xd4] sm:$0xf] }
 0x122   : > { %v3172_v17 = vor.u32 %v4053_v7, %v3171_v6  ;;  %v3189_v6 = vld [vmem:[%s4692_s26 + $0xd8] sm:$0xf0]  ;;  %v3379_v7 = vld [vmem:[%s4678_s9 + $0xd0] sm:$0xf]  ;;  %v4009_v8 = vld [vmem:[%s4678_s9 + $0xd4] sm:$0xf0] }
 0x123   : > { %v4008_v9 = vld [vmem:[%s4678_s9 + $0xd4] sm:$0xf] }
 0x126   : > { %v1521_v22 = vpop.f32.mrf.mxu2  ;;  %v1090_v27 = vpop.f32.mrf.mxu0 }
 0x127   : > { %v1610_v23 = vpop.f32.mrf.mxu3  ;;  %v1522_v26 = vadd.f32 %v1521_v22, %v1177_v10  ;;  %v1179_v28 = vpop.f32.mrf.mxu1  ;;  %v3363_v10 = vld [vmem:[%s4678_s9 + $0xb0] sm:$0xf] }
 0x128   : > { %v1180_v31 = vadd.f32 %v1179_v28, %v1090_v27  ;;  %v3364_v22 = vor.u32 %v4005_v12, %v3363_v10  ;;  %v3381_v10 = vld [vmem:[%s4678_s9 + $0xd8] sm:$0xf0] }
 0x129   : > { %v4848_v32 = vadd.f32 %v1610_v23, %v1522_v26  ;;  %1129 = vmatmul.bf16.gmra.mxu0 %v3156_v24  ;;  %v3368_v23 = vor.u32 %v4004_v13, %v3365_v14 }
 0x12a   : > { %1218 = vmatmul.bf16.gmra.mxu1 %v3160_v25 }
 0x12b   : > { %1563 = vmatmul.bf16.gmra.mxu2 %v3348_v29 }
 0x12c   : > { %1652 = vmatmul.bf16.gmra.mxu3 %v3352_v30 }
 0x12e   : > { %v1524_v33 = vpop.f32.mrf.mxu2  ;;  %v1092_v36 = vpop.f32.mrf.mxu0 }
 0x12f   : > { %v1613_v34 = vpop.f32.mrf.mxu3  ;;  %v1525_v35 = vadd.f32 %v1524_v33, %v1180_v31  ;;  %v1181_v37 = vpop.f32.mrf.mxu1 }
 0x130   : > { %v1182_v38 = vadd.f32 %v1181_v37, %v1092_v36  ;;  %v4054_v36 = vld [vmem:[%s4692_s26 + $0xc4] sm:$0xf]  ;;  %v3181_v37 = vld [vmem:[%s4692_s26 + $0xc8] sm:$0xf0] }
 0x131   : > { %v4850_v39 = vadd.f32 %v1613_v34, %v1525_v35  ;;  %v3179_v34 = vld [vmem:[%s4692_s26 + $0xc0] sm:$0xf]  ;;  %v4055_v35 = vld [vmem:[%s4692_s26 + $0xc4] sm:$0xf0]  ;;  %v3184_v46 = vor.u32 %v4054_v36, %v3181_v37  ;;  %v3197_v36 = vld [vmem:[%s4692_s26 + $0xe8] sm:$0xf0] }
 0x132   : > { %v3180_v45 = vor.u32 %v4055_v35, %v3179_v34  ;;  %v4059_v34 = vld [vmem:[%s4692_s26 + $0xe4] sm:$0xf0]  ;;  %v4058_v35 = vld [vmem:[%s4692_s26 + $0xe4] sm:$0xf]  ;;  %v3387_v37 = vld [vmem:[%s4678_s9 + $0xe0] sm:$0xf] }
 0x136   : > { %v1526_v48 = vpop.f32.mrf.mxu2  ;;  %v1095_v53 = vpop.f32.mrf.mxu0 }
 0x137   : > { %v1615_v49 = vpop.f32.mrf.mxu3  ;;  %v1527_v52 = vadd.f32 %v1526_v48, %v1182_v38  ;;  %v1184_v54 = vpop.f32.mrf.mxu1  ;;  %v3371_v38 = vld [vmem:[%s4678_s9 + $0xc0] sm:$0xf] }
 0x138   : > { %v1185_v57 = vadd.f32 %v1184_v54, %v1095_v53  ;;  %v4158_v54 = vld [vmem:[%s5254_s2 + $0x180] sm:$0xff] }
 0x139   : > { %v4860_v58 = vadd.f32 %v1615_v49, %v1527_v52  ;;  %1134 = vmatmul.bf16.gmra.mxu0 %v3164_v50  ;;  %v3372_v50 = vor.u32 %v4007_v40, %v3371_v38  ;;  %2549 = vmatpush.bf16.msrb.mxu2 %v4158_v54  ;;  %v4011_v38 = vld [vmem:[%s4678_s9 + $0xe4] sm:$0xf0]  ;;  %v4010_v40 = vld [vmem:[%s4678_s9 + $0xe4] sm:$0xf] }
 0x13a   : > { %1223 = vmatmul.bf16.gmra.mxu1 %v3168_v51  ;;  %v3376_v51 = vor.u32 %v4006_v41, %v3373_v42  ;;  %v3389_v41 = vld [vmem:[%s4678_s9 + $0xe8] sm:$0xf0] }
 0x13b   : > { %1568 = vmatmul.bf16.gmra.mxu2 %v3356_v55  ;;  %v4166_v55 = vld [vmem:[%s5254_s2 + $0x1c0] sm:$0xff] }
 0x13c   : > { %1657 = vmatmul.bf16.gmra.mxu3 %v3360_v56 }
 0x13d   : > { %2638 = vmatpush.bf16.msrb.mxu3 %v4166_v55 }
 0x13e   : > { %v1529_v61 = vpop.f32.mrf.mxu2  ;;  %v1097_v0 = vpop.f32.mrf.mxu0 }
 0x13f   : > { %v1618_v62 = vpop.f32.mrf.mxu3  ;;  %v1530_v63 = vadd.f32 %v1529_v61, %v1185_v57  ;;  %v1186_v1 = vpop.f32.mrf.mxu1 }
 0x140   : > { %v1187_v2 = vadd.f32 %v1186_v1, %v1097_v0  ;;  %v4110_v0 = vld [vmem:[%s5254_s2 + $0x100] sm:$0xff] }
 0x141   : > { %v4868_v3 = vadd.f32 %v1618_v62, %v1530_v63  ;;  %v4118_v1 = vld [vmem:[%s5254_s2 + $0x140] sm:$0xff]  ;;  %2017 = vmatpush.bf16.msrb.mxu0 %v4110_v0  ;;  %v4061_v0 = vld [vmem:[%s4692_s26 + $0xf4] sm:$0xf0] }
 0x142   : > { %2106 = vmatpush.bf16.msrb.mxu1 %v4118_v1  ;;  %v4060_v1 = vld [vmem:[%s4692_s26 + $0xf4] sm:$0xf] }
 0x146   : > { %v1531_v15 = vpop.f32.mrf.mxu2  ;;  %v1100_v20 = vpop.f32.mrf.mxu0 }
 0x147   : > { %v1620_v16 = vpop.f32.mrf.mxu3  ;;  %v1532_v19 = vadd.f32 %v1531_v15, %v1187_v2  ;;  %v1189_v21 = vpop.f32.mrf.mxu1  ;;  %v3187_v2 = vld [vmem:[%s4692_s26 + $0xd0] sm:$0xf]  ;;  %v3192_v15 = vor.u32 %v4056_v5, %v3189_v6  ;;  %v4013_v5 = vld [vmem:[%s4678_s9 + $0xf4] sm:$0xf0]  ;;  %v4012_v6 = vld [vmem:[%s4678_s9 + $0xf4] sm:$0xf] }
 0x148   : > { %v1190_v24 = vadd.f32 %v1189_v21, %v1100_v20  ;;  %v3188_v14 = vor.u32 %v4057_v4, %v3187_v2  ;;  %v3384_v20 = vor.u32 %v4008_v9, %v3381_v10  ;;  %v3205_v2 = vld [vmem:[%s4692_s26 + $0xf8] sm:$0xf0]  ;;  %v3395_v4 = vld [vmem:[%s4678_s9 + $0xf0] sm:$0xf] }
 0x149   : > { %v4884_v25 = vadd.f32 %v1620_v16, %v1532_v19  ;;  %1139 = vmatmul.bf16.gmra.mxu0 %v3172_v17  ;;  %v3380_v19 = vor.u32 %v4009_v8, %v3379_v7  ;;  %v3397_v7 = vld [vmem:[%s4678_s9 + $0xf8] sm:$0xf0] }
 0x14a   : > { %1228 = vmatmul.bf16.gmra.mxu1 %v3176_v18 }
 0x14b   : > { %1573 = vmatmul.bf16.gmra.mxu2 %v3364_v22 }
 0x14c   : > { %1662 = vmatmul.bf16.gmra.mxu3 %v3368_v23 }
 0x14e   : > { %v1534_v26 = vpop.f32.mrf.mxu2  ;;  %v1102_v29 = vpop.f32.mrf.mxu0 }
 0x14f   : > { %v1623_v27 = vpop.f32.mrf.mxu3  ;;  %v1535_v28 = vadd.f32 %v1534_v26, %v1190_v24  ;;  %v1191_v30 = vpop.f32.mrf.mxu1 }
 0x150   : > { %v1192_v31 = vadd.f32 %v1191_v30, %v1102_v29 }
 0x151   : > { %v4886_v33 = vadd.f32 %v1623_v27, %v1535_v28 }
 0x156   : > { %v1536_v43 = vpop.f32.mrf.mxu2  ;;  %v1105_v48 = vpop.f32.mrf.mxu0 }
 0x157   : > { %v1625_v44 = vpop.f32.mrf.mxu3  ;;  %v1537_v47 = vadd.f32 %v1536_v43, %v1192_v31  ;;  %v1194_v49 = vpop.f32.mrf.mxu1  ;;  %v3195_v31 = vld [vmem:[%s4692_s26 + $0xe0] sm:$0xf] }
 0x158   : > { %v1195_v52 = vadd.f32 %v1194_v49, %v1105_v48  ;;  %v3388_v49 = vor.u32 %v4011_v38, %v3387_v37  ;;  %v4127_v37 = vld [vmem:[%s4692_s26 + $0x204] sm:$0xf0]  ;;  %v4126_v38 = vld [vmem:[%s4692_s26 + $0x204] sm:$0xf] }
 0x159   : > { %v4896_v53 = vadd.f32 %v1625_v44, %v1537_v47  ;;  %1144 = vmatmul.bf16.gmra.mxu0 %v3180_v45  ;;  %v3196_v44 = vor.u32 %v4059_v34, %v3195_v31  ;;  %v3200_v45 = vor.u32 %v4058_v35, %v3197_v36  ;;  %v4079_v31 = vld [vmem:[%s4692_s26 + $0x104] sm:$0xf0]  ;;  %v4078_v34 = vld [vmem:[%s4692_s26 + $0x104] sm:$0xf]  ;;  %v3533_v35 = vld [vmem:[%s4692_s26 + $0x108] sm:$0xf0] }
 0x15a   : > { %1233 = vmatmul.bf16.gmra.mxu1 %v3184_v46  ;;  %v3787_v36 = vld [vmem:[%s4692_s26 + $0x200] sm:$0xf] }
 0x15b   : > { %1578 = vmatmul.bf16.gmra.mxu2 %v3372_v50  ;;  %v3392_v50 = vor.u32 %v4010_v40, %v3389_v41  ;;  %v3789_v40 = vld [vmem:[%s4692_s26 + $0x208] sm:$0xf0] }
 0x15c   : > { %1667 = vmatmul.bf16.gmra.mxu3 %v3376_v51 }
 0x15e   : > { %v1539_v56 = vpop.f32.mrf.mxu2  ;;  %v1107_v60 = vpop.f32.mrf.mxu0 }
 0x15f   : > { %v1628_v57 = vpop.f32.mrf.mxu3  ;;  %v1540_v59 = vadd.f32 %v1539_v56, %v1195_v52  ;;  %v1196_v61 = vpop.f32.mrf.mxu1 }
 0x160   : > { %v1197_v62 = vadd.f32 %v1196_v61, %v1107_v60 }
 0x161   : > { %v4904_v63 = vadd.f32 %v1628_v57, %v1540_v59 }
 0x166   : > { %v1541_v12 = vpop.f32.mrf.mxu2  ;;  %v1110_v17 = vpop.f32.mrf.mxu0 }
 0x167   : > { %v1630_v13 = vpop.f32.mrf.mxu3  ;;  %v1542_v16 = vadd.f32 %v1541_v12, %v1197_v62  ;;  %v1199_v18 = vpop.f32.mrf.mxu1  ;;  %v3203_v62 = vld [vmem:[%s4692_s26 + $0xf0] sm:$0xf]  ;;  %v3208_v12 = vor.u32 %v4060_v1, %v3205_v2  ;;  %v4081_v1 = vld [vmem:[%s4692_s26 + $0x114] sm:$0xf0]  ;;  %v4080_v2 = vld [vmem:[%s4692_s26 + $0x114] sm:$0xf] }
 0x168   : > { %v1200_v21 = vadd.f32 %v1199_v18, %v1110_v17  ;;  %v3204_v10 = vor.u32 %v4061_v0, %v3203_v62  ;;  %v3400_v17 = vor.u32 %v4012_v6, %v3397_v7  ;;  %v3539_v0 = vld [vmem:[%s4692_s26 + $0x110] sm:$0xf]  ;;  %v4129_v6 = vld [vmem:[%s4692_s26 + $0x214] sm:$0xf0]  ;;  %v4128_v7 = vld [vmem:[%s4692_s26 + $0x214] sm:$0xf] }
 0x169   : > { %v4920_v22 = vadd.f32 %v1630_v13, %v1542_v16  ;;  %1149 = vmatmul.bf16.gmra.mxu0 %v3188_v14  ;;  %v3396_v16 = vor.u32 %v4013_v5, %v3395_v4  ;;  %v3541_v4 = vld [vmem:[%s4692_s26 + $0x118] sm:$0xf0]  ;;  %v3795_v5 = vld [vmem:[%s4692_s26 + $0x210] sm:$0xf] }
 0x16a   : > { %1238 = vmatmul.bf16.gmra.mxu1 %v3192_v15 }
 0x16b   : > { %1583 = vmatmul.bf16.gmra.mxu2 %v3380_v19 }
 0x16c   : > { %1672 = vmatmul.bf16.gmra.mxu3 %v3384_v20 }
 0x16e   : > { %v1544_v23 = vpop.f32.mrf.mxu2  ;;  %v1112_v27 = vpop.f32.mrf.mxu0 }
 0x16f   : > { %v1633_v24 = vpop.f32.mrf.mxu3  ;;  %v1545_v26 = vadd.f32 %v1544_v23, %v1200_v21  ;;  %v1201_v28 = vpop.f32.mrf.mxu1 }
 0x170   : > { %v1202_v29 = vadd.f32 %v1201_v28, %v1112_v27 }
 0x171   : > { %v4922_v30 = vadd.f32 %v1633_v24, %v1545_v26 }
 0x176   : > { %v1546_v42 = vpop.f32.mrf.mxu2  ;;  %v1115_v47 = vpop.f32.mrf.mxu0 }
 0x177   : > { %v1635_v43 = vpop.f32.mrf.mxu3  ;;  %v1547_v46 = vadd.f32 %v1546_v42, %v1202_v29  ;;  %v1204_v48 = vpop.f32.mrf.mxu1  ;;  %v3531_v29 = vld [vmem:[%s4692_s26 + $0x100] sm:$0xf] }
 0x178   : > { %v1205_v51 = vadd.f32 %v1204_v48, %v1115_v47  ;;  %v3788_v48 = vor.u32 %v4127_v37, %v3787_v36  ;;  %v4083_v36 = vld [vmem:[%s4692_s26 + $0x124] sm:$0xf0]  ;;  %v4082_v37 = vld [vmem:[%s4692_s26 + $0x124] sm:$0xf] }
 0x179   : > { %v4932_v52 = vadd.f32 %v1635_v43, %v1547_v46  ;;  %1154 = vmatmul.bf16.gmra.mxu0 %v3196_v44  ;;  %v3532_v43 = vor.u32 %v4079_v31, %v3531_v29  ;;  %v3536_v44 = vor.u32 %v4078_v34, %v3533_v35  ;;  %v3547_v35 = vld [vmem:[%s4692_s26 + $0x120] sm:$0xf] }
 0x17a   : > { %1243 = vmatmul.bf16.gmra.mxu1 %v3200_v45 }
 0x17b   : > { %1588 = vmatmul.bf16.gmra.mxu2 %v3388_v49  ;;  %v3792_v49 = vor.u32 %v4126_v38, %v3789_v40  ;;  %v3549_v38 = vld [vmem:[%s4692_s26 + $0x128] sm:$0xf0]  ;;  %v3803_v40 = vld [vmem:[%s4692_s26 + $0x220] sm:$0xf] }
 0x17c   : > { %1677 = vmatmul.bf16.gmra.mxu3 %v3392_v50 }
 0x17e   : > { %v1549_v54 = vpop.f32.mrf.mxu2  ;;  %v1117_v57 = vpop.f32.mrf.mxu0 }
 0x17f   : > { %v1638_v55 = vpop.f32.mrf.mxu3  ;;  %v1550_v56 = vadd.f32 %v1549_v54, %v1205_v51  ;;  %v1206_v59 = vpop.f32.mrf.mxu1 }
 0x180   : > { %v1207_v60 = vadd.f32 %v1206_v59, %v1117_v57 }
 0x181   : > { %v4934_v61 = vadd.f32 %v1638_v55, %v1550_v56 }
 0x186   : > { %v1551_v8 = vpop.f32.mrf.mxu2  ;;  %v1120_v14 = vpop.f32.mrf.mxu0 }
 0x187   : > { %v1640_v9 = vpop.f32.mrf.mxu3  ;;  %v1552_v13 = vadd.f32 %v1551_v8, %v1207_v60  ;;  %v1209_v15 = vpop.f32.mrf.mxu1  ;;  %v3797_v8 = vld [vmem:[%s4692_s26 + $0x218] sm:$0xf0] }
 0x188   : > { %v1210_v18 = vadd.f32 %v1209_v15, %v1120_v14 }
 0x189   : > { %v4944_v19 = vadd.f32 %v1640_v9, %v1552_v13  ;;  %1159 = vmatmul.bf16.gmra.mxu0 %v3204_v10  ;;  %v3544_v13 = vor.u32 %v4080_v2, %v3541_v4 }
 0x18a   : > { %1248 = vmatmul.bf16.gmra.mxu1 %v3208_v12  ;;  %v3540_v12 = vor.u32 %v4081_v1, %v3539_v0 }
 0x18b   : > { %1593 = vmatmul.bf16.gmra.mxu2 %v3396_v16 }
 0x18c   : > { %1682 = vmatmul.bf16.gmra.mxu3 %v3400_v17  ;;  %v3796_v17 = vor.u32 %v4129_v6, %v3795_v5  ;;  %v3555_v6 = vld [vmem:[%s4692_s26 + $0x130] sm:$0xf] }
 0x18e   : > { %v1554_v20 = vpop.f32.mrf.mxu2  ;;  %v1122_v24 = vpop.f32.mrf.mxu0 }
 0x18f   : > { %v1643_v21 = vpop.f32.mrf.mxu3  ;;  %v1555_v23 = vadd.f32 %v1554_v20, %v1210_v18  ;;  %v1211_v26 = vpop.f32.mrf.mxu1  ;;  %v3800_v18 = vor.u32 %v4128_v7, %v3797_v8  ;;  %v4085_v7 = vld [vmem:[%s4692_s26 + $0x134] sm:$0xf0]  ;;  %v4084_v8 = vld [vmem:[%s4692_s26 + $0x134] sm:$0xf] }
 0x190   : > { %v1212_v27 = vadd.f32 %v1211_v26, %v1122_v24 }
 0x191   : > { %v4946_v28 = vadd.f32 %v1643_v21, %v1555_v23 }
 0x196   : > { %v1556_v41 = vpop.f32.mrf.mxu2  ;;  %v1125_v46 = vpop.f32.mrf.mxu0 }
 0x197   : > { %v1645_v42 = vpop.f32.mrf.mxu3  ;;  %v1557_v45 = vadd.f32 %v1556_v41, %v1212_v27  ;;  %v1214_v47 = vpop.f32.mrf.mxu1  ;;  %v4131_v41 = vld [vmem:[%s4692_s26 + $0x224] sm:$0xf0] }
 0x198   : > { %v1215_v50 = vadd.f32 %v1214_v47, %v1125_v46  ;;  %v3548_v46 = vor.u32 %v4083_v36, %v3547_v35  ;;  %v3552_v47 = vor.u32 %v4082_v37, %v3549_v38 }
 0x199   : > { %v4956_v51 = vadd.f32 %v1645_v42, %v1557_v45  ;;  %2018 = vmatmul.bf16.vlgmr.msrb.gmra.mxu0 %v3532_v43  ;;  %v4130_v42 = vld [vmem:[%s4692_s26 + $0x224] sm:$0xf]  ;;  %v3805_v43 = vld [vmem:[%s4692_s26 + $0x228] sm:$0xf0] }
 0x19a   : > { %2107 = vmatmul.bf16.vlgmr.msrb.gmra.mxu1 %v3536_v44 }
 0x19b   : > { %2550 = vmatmul.bf16.vlgmr.msrb.gmra.mxu2 %v3788_v48 }
 0x19c   : > { %2639 = vmatmul.bf16.vlgmr.msrb.gmra.mxu3 %v3792_v49 }
 0x19e   : > { %v1559_v54 = vpop.f32.mrf.mxu2  ;;  %v1127_v57 = vpop.f32.mrf.mxu0 }
 0x19f   : > { %v1648_v55 = vpop.f32.mrf.mxu3  ;;  %v1560_v56 = vadd.f32 %v1559_v54, %v1215_v50  ;;  %v1216_v59 = vpop.f32.mrf.mxu1  ;;  %v3804_v54 = vor.u32 %v4131_v41, %v3803_v40 }
 0x1a0   : > { %v1217_v60 = vadd.f32 %v1216_v59, %v1127_v57 }
 0x1a1   : > { %v4958_v62 = vadd.f32 %v1648_v55, %v1560_v56  ;;  %v3808_v55 = vor.u32 %v4130_v42, %v3805_v43  ;;  %v3563_v43 = vld [vmem:[%s4692_s26 + $0x140] sm:$0xf] }
 0x1a6   : > { %v1561_v9 = vpop.f32.mrf.mxu2  ;;  %v1130_v15 = vpop.f32.mrf.mxu0 }
 0x1a7   : > { %v1650_v10 = vpop.f32.mrf.mxu3  ;;  %v1562_v14 = vadd.f32 %v1561_v9, %v1217_v60  ;;  %v1219_v16 = vpop.f32.mrf.mxu1  ;;  %v3557_v9 = vld [vmem:[%s4692_s26 + $0x138] sm:$0xf0] }
 0x1a8   : > { %v1220_v20 = vadd.f32 %v1219_v16, %v1130_v15 }
 0x1a9   : > { %v4968_v21 = vadd.f32 %v1650_v10, %v1562_v14  ;;  %2023 = vmatmul.bf16.gmra.mxu0 %v3540_v12  ;;  %v3811_v10 = vld [vmem:[%s4692_s26 + $0x230] sm:$0xf]  ;;  %v4133_v12 = vld [vmem:[%s4692_s26 + $0x234] sm:$0xf0]  ;;  %v3813_v14 = vld [vmem:[%s4692_s26 + $0x238] sm:$0xf0] }
 0x1aa   : > { %2112 = vmatmul.bf16.gmra.mxu1 %v3544_v13  ;;  %v4132_v13 = vld [vmem:[%s4692_s26 + $0x234] sm:$0xf] }
 0x1ab   : > { %2555 = vmatmul.bf16.gmra.mxu2 %v3796_v17  ;;  %v3556_v17 = vor.u32 %v4085_v7, %v3555_v6 }
 0x1ac   : > { %2644 = vmatmul.bf16.gmra.mxu3 %v3800_v18  ;;  %v3560_v18 = vor.u32 %v4084_v8, %v3557_v9 }
 0x1ae   : > { %v1564_v23 = vpop.f32.mrf.mxu2  ;;  %v1132_v27 = vpop.f32.mrf.mxu0 }
 0x1af   : > { %v1653_v24 = vpop.f32.mrf.mxu3  ;;  %v1565_v26 = vadd.f32 %v1564_v23, %v1220_v20  ;;  %v1221_v29 = vpop.f32.mrf.mxu1 }
 0x1b0   : > { %v1222_v31 = vadd.f32 %v1221_v29, %v1132_v27  ;;  %v3816_v27 = vor.u32 %v4132_v13, %v3813_v14 }
 0x1b1   : > { %v4970_v34 = vadd.f32 %v1653_v24, %v1565_v26  ;;  %v3812_v26 = vor.u32 %v4133_v12, %v3811_v10 }
 0x1b6   : > { %v1566_v44 = vpop.f32.mrf.mxu2  ;;  %v1135_v49 = vpop.f32.mrf.mxu0 }
 0x1b7   : > { %v1655_v45 = vpop.f32.mrf.mxu3  ;;  %v1567_v48 = vadd.f32 %v1566_v44, %v1222_v31  ;;  %v1224_v50 = vpop.f32.mrf.mxu1  ;;  %v4087_v44 = vld [vmem:[%s4692_s26 + $0x144] sm:$0xf0] }
 0x1b8   : > { %v1225_v56 = vadd.f32 %v1224_v50, %v1135_v49  ;;  %v4134_v49 = vld [vmem:[%s4692_s26 + $0x244] sm:$0xf]  ;;  %v3821_v50 = vld [vmem:[%s4692_s26 + $0x248] sm:$0xf0] }
 0x1b9   : > { %v4980_v57 = vadd.f32 %v1655_v45, %v1567_v48  ;;  %2028 = vmatmul.bf16.gmra.mxu0 %v3548_v46  ;;  %v4086_v45 = vld [vmem:[%s4692_s26 + $0x144] sm:$0xf]  ;;  %v3565_v46 = vld [vmem:[%s4692_s26 + $0x148] sm:$0xf0]  ;;  %v4135_v48 = vld [vmem:[%s4692_s26 + $0x244] sm:$0xf0] }
 0x1ba   : > { %2117 = vmatmul.bf16.gmra.mxu1 %v3552_v47  ;;  %v3819_v47 = vld [vmem:[%s4692_s26 + $0x240] sm:$0xf] }
 0x1bb   : > { %2560 = vmatmul.bf16.gmra.mxu2 %v3804_v54 }
 0x1bc   : > { %2649 = vmatmul.bf16.gmra.mxu3 %v3808_v55 }
 0x1be   : > { %v1569_v59 = vpop.f32.mrf.mxu2  ;;  %v1137_v1 = vpop.f32.mrf.mxu0 }
 0x1bf   : > { %v1658_v60 = vpop.f32.mrf.mxu3  ;;  %v1570_v0 = vadd.f32 %v1569_v59, %v1225_v56  ;;  %v1226_v2 = vpop.f32.mrf.mxu1  ;;  %v3564_v56 = vor.u32 %v4087_v44, %v3563_v43  ;;  %v3568_v59 = vor.u32 %v4086_v45, %v3565_v46 }
 0x1c0   : > { %v1227_v4 = vadd.f32 %v1226_v2, %v1137_v1  ;;  %v3820_v2 = vor.u32 %v4135_v48, %v3819_v47 }
 0x1c1   : > { %v4982_v5 = vadd.f32 %v1658_v60, %v1570_v0 }
 0x1c6   : > { %v1571_v15 = vpop.f32.mrf.mxu2  ;;  %v1140_v23 = vpop.f32.mrf.mxu0 }
 0x1c7   : > { %v1660_v16 = vpop.f32.mrf.mxu3  ;;  %v1572_v20 = vadd.f32 %v1571_v15, %v1227_v4  ;;  %v1229_v24 = vpop.f32.mrf.mxu1  ;;  %v3824_v4 = vor.u32 %v4134_v49, %v3821_v50 }
 0x1c8   : > { %v1230_v29 = vadd.f32 %v1229_v24, %v1140_v23  ;;  %v3827_v23 = vld [vmem:[%s4692_s26 + $0x250] sm:$0xf]  ;;  %v4137_v24 = vld [vmem:[%s4692_s26 + $0x254] sm:$0xf0] }
 0x1c9   : > { %v4992_v31 = vadd.f32 %v1660_v16, %v1572_v20  ;;  %2033 = vmatmul.bf16.gmra.mxu0 %v3556_v17  ;;  %v3571_v16 = vld [vmem:[%s4692_s26 + $0x150] sm:$0xf]  ;;  %v4089_v17 = vld [vmem:[%s4692_s26 + $0x154] sm:$0xf0]  ;;  %v3573_v20 = vld [vmem:[%s4692_s26 + $0x158] sm:$0xf0]  ;;  %v3828_v43 = vor.u32 %v4137_v24, %v3827_v23 }
 0x1ca   : > { %2122 = vmatmul.bf16.gmra.mxu1 %v3560_v18  ;;  %v4088_v18 = vld [vmem:[%s4692_s26 + $0x154] sm:$0xf] }
 0x1cb   : > { %2565 = vmatmul.bf16.gmra.mxu2 %v3812_v26  ;;  %v4136_v26 = vld [vmem:[%s4692_s26 + $0x254] sm:$0xf] }
 0x1cc   : > { %2654 = vmatmul.bf16.gmra.mxu3 %v3816_v27  ;;  %v3829_v27 = vld [vmem:[%s4692_s26 + $0x258] sm:$0xf0] }
 0x1cd   : > { %v3832_v44 = vor.u32 %v4136_v26, %v3829_v27 }
 0x1ce   : > { %v1574_v35 = vpop.f32.mrf.mxu2  ;;  %v1142_v38 = vpop.f32.mrf.mxu0 }
 0x1cf   : > { %v1663_v36 = vpop.f32.mrf.mxu3  ;;  %v1575_v37 = vadd.f32 %v1574_v35, %v1230_v29  ;;  %v1231_v40 = vpop.f32.mrf.mxu1 }
 0x1d0   : > { %v1232_v41 = vadd.f32 %v1231_v40, %v1142_v38 }
 0x1d1   : > { %v4994_v42 = vadd.f32 %v1663_v36, %v1575_v37  ;;  %v3572_v36 = vor.u32 %v4089_v17, %v3571_v16  ;;  %v3576_v37 = vor.u32 %v4088_v18, %v3573_v20 }
 0x1d6   : > { %v1576_v54 = vpop.f32.mrf.mxu2  ;;  %v1145_v0 = vpop.f32.mrf.mxu0 }
 0x1d7   : > { %v1665_v55 = vpop.f32.mrf.mxu3  ;;  %v1577_v60 = vadd.f32 %v1576_v54, %v1232_v41  ;;  %v1234_v1 = vpop.f32.mrf.mxu1 }
 0x1d8   : > { %v1235_v6 = vadd.f32 %v1234_v1, %v1145_v0  ;;  %v4090_v0 = vld [vmem:[%s4692_s26 + $0x164] sm:$0xf]  ;;  %v3581_v1 = vld [vmem:[%s4692_s26 + $0x168] sm:$0xf0] }
 0x1d9   : > { %v5004_v7 = vadd.f32 %v1665_v55, %v1577_v60  ;;  %2038 = vmatmul.bf16.gmra.mxu0 %v3564_v56  ;;  %v4091_v60 = vld [vmem:[%s4692_s26 + $0x164] sm:$0xf0] }
 0x1da   : > { %2127 = vmatmul.bf16.gmra.mxu1 %v3568_v59  ;;  %v3579_v59 = vld [vmem:[%s4692_s26 + $0x160] sm:$0xf] }
 0x1db   : > { %2570 = vmatmul.bf16.gmra.mxu2 %v3820_v2  ;;  %v3835_v2 = vld [vmem:[%s4692_s26 + $0x260] sm:$0xf] }
 0x1dc   : > { %2659 = vmatmul.bf16.gmra.mxu3 %v3824_v4  ;;  %v4139_v4 = vld [vmem:[%s4692_s26 + $0x264] sm:$0xf0] }
 0x1dd   : > { %v3836_v18 = vor.u32 %v4139_v4, %v3835_v2 }
 0x1de   : > { %v1579_v8 = vpop.f32.mrf.mxu2  ;;  %v1147_v12 = vpop.f32.mrf.mxu0 }
 0x1df   : > { %v1668_v9 = vpop.f32.mrf.mxu3  ;;  %v1580_v10 = vadd.f32 %v1579_v8, %v1235_v6  ;;  %v1236_v13 = vpop.f32.mrf.mxu1  ;;  %v4138_v6 = vld [vmem:[%s4692_s26 + $0x264] sm:$0xf]  ;;  %v3837_v8 = vld [vmem:[%s4692_s26 + $0x268] sm:$0xf0] }
 0x1e0   : > { %v1237_v14 = vadd.f32 %v1236_v13, %v1147_v12  ;;  %v3580_v12 = vor.u32 %v4091_v60, %v3579_v59  ;;  %v3584_v13 = vor.u32 %v4090_v0, %v3581_v1  ;;  %v3840_v20 = vor.u32 %v4138_v6, %v3837_v8 }
 0x1e1   : > { %v5006_v15 = vadd.f32 %v1668_v9, %v1580_v10 }
 0x1e6   : > { %v1581_v29 = vpop.f32.mrf.mxu2  ;;  %v1150_v40 = vpop.f32.mrf.mxu0 }
 0x1e7   : > { %v1670_v35 = vpop.f32.mrf.mxu3  ;;  %v1582_v38 = vadd.f32 %v1581_v29, %v1237_v14  ;;  %v1239_v41 = vpop.f32.mrf.mxu1 }
 0x1e8   : > { %v1240_v45 = vadd.f32 %v1239_v41, %v1150_v40  ;;  %v3587_v40 = vld [vmem:[%s4692_s26 + $0x170] sm:$0xf]  ;;  %v4093_v41 = vld [vmem:[%s4692_s26 + $0x174] sm:$0xf0] }
 0x1e9   : > { %v5016_v46 = vadd.f32 %v1670_v35, %v1582_v38  ;;  %2043 = vmatmul.bf16.gmra.mxu0 %v3572_v36 }
 0x1ea   : > { %2132 = vmatmul.bf16.gmra.mxu1 %v3576_v37 }
 0x1eb   : > { %2575 = vmatmul.bf16.gmra.mxu2 %v3828_v43  ;;  %v4092_v43 = vld [vmem:[%s4692_s26 + $0x174] sm:$0xf] }
 0x1ec   : > { %2664 = vmatmul.bf16.gmra.mxu3 %v3832_v44  ;;  %v3589_v44 = vld [vmem:[%s4692_s26 + $0x178] sm:$0xf0] }
 0x1ed   : > { %v3592_v59 = vor.u32 %v4092_v43, %v3589_v44 }
 0x1ee   : > { %v1584_v47 = vpop.f32.mrf.mxu2  ;;  %v1152_v50 = vpop.f32.mrf.mxu0 }
 0x1ef   : > { %v1673_v48 = vpop.f32.mrf.mxu3  ;;  %v1585_v49 = vadd.f32 %v1584_v47, %v1240_v45  ;;  %v1241_v54 = vpop.f32.mrf.mxu1  ;;  %v3843_v45 = vld [vmem:[%s4692_s26 + $0x270] sm:$0xf]  ;;  %v4141_v47 = vld [vmem:[%s4692_s26 + $0x274] sm:$0xf0] }
 0x1f0   : > { %v1242_v55 = vadd.f32 %v1241_v54, %v1152_v50  ;;  %v3844_v2 = vor.u32 %v4141_v47, %v3843_v45 }
 0x1f1   : > { %v5018_v56 = vadd.f32 %v1673_v48, %v1585_v49  ;;  %v4140_v48 = vld [vmem:[%s4692_s26 + $0x274] sm:$0xf]  ;;  %v3845_v49 = vld [vmem:[%s4692_s26 + $0x278] sm:$0xf0] }
 0x1f2   : > { %v3848_v4 = vor.u32 %v4140_v48, %v3845_v49 }
 0x1f6   : > { %v1586_v9 = vpop.f32.mrf.mxu2  ;;  %v1155_v16 = vpop.f32.mrf.mxu0 }
 0x1f7   : > { %v1675_v10 = vpop.f32.mrf.mxu3  ;;  %v1587_v14 = vadd.f32 %v1586_v9, %v1242_v55  ;;  %v1244_v17 = vpop.f32.mrf.mxu1  ;;  %v3588_v55 = vor.u32 %v4093_v41, %v3587_v40 }
 0x1f8   : > { %v1245_v23 = vadd.f32 %v1244_v17, %v1155_v16 }
 0x1f9   : > { %v5028_v24 = vadd.f32 %v1675_v10, %v1587_v14  ;;  %2048 = vmatmul.bf16.gmra.mxu0 %v3580_v12 }
 0x1fa   : > { %2137 = vmatmul.bf16.gmra.mxu1 %v3584_v13 }
 0x1fb   : > { %2580 = vmatmul.bf16.gmra.mxu2 %v3836_v18  ;;  %v3595_v18 = vld [vmem:[%s4692_s26 + $0x180] sm:$0xf] }
 0x1fc   : > { %2669 = vmatmul.bf16.gmra.mxu3 %v3840_v20  ;;  %v4095_v20 = vld [vmem:[%s4692_s26 + $0x184] sm:$0xf0] }
 0x1fd   : > { %v3596_v41 = vor.u32 %v4095_v20, %v3595_v18  ;;  %v4145_v18 = vld [vmem:[%s4692_s26 + $0x294] sm:$0xf0]  ;;  %v4144_v20 = vld [vmem:[%s4692_s26 + $0x294] sm:$0xf] }
 0x1fe   : > { %v1589_v26 = vpop.f32.mrf.mxu2  ;;  %v1157_v35 = vpop.f32.mrf.mxu0 }
 0x1ff   : > { %v1678_v27 = vpop.f32.mrf.mxu3  ;;  %v1590_v29 = vadd.f32 %v1589_v26, %v1245_v23  ;;  %v1246_v36 = vpop.f32.mrf.mxu1  ;;  %v4094_v23 = vld [vmem:[%s4692_s26 + $0x184] sm:$0xf]  ;;  %v3597_v26 = vld [vmem:[%s4692_s26 + $0x188] sm:$0xf0] }
 0x200   : > { %v1247_v37 = vadd.f32 %v1246_v36, %v1157_v35  ;;  %v4142_v35 = vld [vmem:[%s4692_s26 + $0x284] sm:$0xf]  ;;  %v3853_v36 = vld [vmem:[%s4692_s26 + $0x288] sm:$0xf0]  ;;  %v3600_v43 = vor.u32 %v4094_v23, %v3597_v26  ;;  %v3861_v23 = vld [vmem:[%s4692_s26 + $0x298] sm:$0xf0] }
 0x201   : > { %v5030_v38 = vadd.f32 %v1678_v27, %v1590_v29  ;;  %v3851_v27 = vld [vmem:[%s4692_s26 + $0x280] sm:$0xf]  ;;  %v4143_v29 = vld [vmem:[%s4692_s26 + $0x284] sm:$0xf0]  ;;  %v3856_v49 = vor.u32 %v4142_v35, %v3853_v36 }
 0x202   : > { %v3852_v48 = vor.u32 %v4143_v29, %v3851_v27 }
 0x206   : > { %v1591_v50 = vpop.f32.mrf.mxu2  ;;  %v1160_v0 = vpop.f32.mrf.mxu0 }
 0x207   : > { %v1680_v54 = vpop.f32.mrf.mxu3  ;;  %v1592_v60 = vadd.f32 %v1591_v50, %v1247_v37  ;;  %v1249_v1 = vpop.f32.mrf.mxu1 }
 0x208   : > { %v1250_v6 = vadd.f32 %v1249_v1, %v1160_v0 }
 0x209   : > { %v5040_v8 = vadd.f32 %v1680_v54, %v1592_v60  ;;  %2053 = vmatmul.bf16.gmra.mxu0 %v3588_v55 }
 0x20a   : > { %2142 = vmatmul.bf16.gmra.mxu1 %v3592_v59 }
 0x20b   : > { %2585 = vmatmul.bf16.gmra.mxu2 %v3844_v2 }
 0x20c   : > { %2674 = vmatmul.bf16.gmra.mxu3 %v3848_v4  ;;  %v5058_v4 = vld [vmem:[%s5255_s3] ss:$0 sm:$0xff] }
 0x20e   : > { %v1594_v9 = vpop.f32.mrf.mxu2  ;;  %v1162_v13 = vpop.f32.mrf.mxu0 }
 0x20f   : > { %v1683_v10 = vpop.f32.mrf.mxu3  ;;  %v1595_v12 = vadd.f32 %v1594_v9, %v1250_v6  ;;  %v1251_v14 = vpop.f32.mrf.mxu1  ;;  %v3603_v6 = vld [vmem:[%s4692_s26 + $0x190] sm:$0xf]  ;;  %v4097_v9 = vld [vmem:[%s4692_s26 + $0x194] sm:$0xf0] }
 0x210   : > { %v1252_v16 = vadd.f32 %v1251_v14, %v1162_v13  ;;  %v3605_v14 = vld [vmem:[%s4692_s26 + $0x198] sm:$0xf0]  ;;  %v3604_v27 = vor.u32 %v4097_v9, %v3603_v6 }
 0x211   : > { %v5042_v17 = vadd.f32 %v1683_v10, %v1595_v12  ;;  %v4096_v10 = vld [vmem:[%s4692_s26 + $0x194] sm:$0xf] }
 0x212   : > { %v3608_v29 = vor.u32 %v4096_v10, %v3605_v14  ;;  %v4099_v14 = vld [vmem:[%s4692_s26 + $0x1a4] sm:$0xf0] }
 0x216   : > { %v1596_v37 = vpop.f32.mrf.mxu2  ;;  %v2019_v45 = vpop.f32.mrf.mxu0 }
 0x217   : > { %v1685_v40 = vpop.f32.mrf.mxu3  ;;  %v1597_v44 = vadd.f32 %v1596_v37, %v1252_v16  ;;  %v2108_v47 = vpop.f32.mrf.mxu1  ;;  %v3859_v16 = vld [vmem:[%s4692_s26 + $0x290] sm:$0xf] }
 0x218   : > { %v2109_v54 = vadd.f32 %v2108_v47, %v2019_v45  ;;  %v3860_v35 = vor.u32 %v4145_v18, %v3859_v16  ;;  %v2788_v45 = vld [vmem:[%s5073_s14] sm:$0xff] }
 0x219   : > { %v5052_v50 = vadd.f32 %v1685_v40, %v1597_v44  ;;  %2058 = vmatmul.bf16.gmra.mxu0 %v3596_v41  ;;  %v3864_v44 = vor.u32 %v4144_v20, %v3861_v23  ;;  %v4098_v16 = vld [vmem:[%s4692_s26 + $0x1a4] sm:$0xf]  ;;  %v3613_v23 = vld [vmem:[%s4692_s26 + $0x1a8] sm:$0xf0] }
 0x21a   : > { %2147 = vmatmul.bf16.gmra.mxu1 %v3600_v43  ;;  %v2188_v2 = vadd.f32 %v2109_v54, %v4832_v11 }
 0x21b   : > { %2590 = vmatmul.bf16.gmra.mxu2 %v3852_v48  ;;  %v2789_v48 = vld [vmem:[%s5073_s14 + $0x8] sm:$0xff] }
 0x21c   : > { %2679 = vmatmul.bf16.gmra.mxu3 %v3856_v49 }
 0x21e   : > { %v2551_v55 = vpop.f32.mrf.mxu2  ;;  %v2021_v0 = vpop.f32.mrf.mxu0 }
 0x21f   : > { %v2640_v59 = vpop.f32.mrf.mxu3  ;;  %v2110_v1 = vpop.f32.mrf.mxu1 }
 0x220   : > { %v2641_v60 = vadd.f32 %v2640_v59, %v2551_v55  ;;  %v2111_v13 = vadd.f32 %v2110_v1, %v2021_v0 }
 0x222   : > { %v2720_v12 = vadd.f32 %v2641_v60, %v2188_v2  ;;  %v2189_v37 = vadd.f32 %v2111_v13, %v4848_v32  ;;  %v3611_v13 = vld [vmem:[%s4692_s26 + $0x1a0] sm:$0xf] }
 0x224   : > { %v2756_v36 = vadd.f32 %v5058_v4, %v2720_v12 }
 0x226   : > { %v2553_v11 = vpop.f32.mrf.mxu2  ;;  %v2024_v41 = vpop.f32.mrf.mxu0  ;;  %v2820_v49 = vadd.f32 %v2788_v45, %v2756_v36 }
 0x227   : > { %v2642_v26 = vpop.f32.mrf.mxu3  ;;  %v2113_v43 = vpop.f32.mrf.mxu1 }
 0x228   : > { %v2643_v40 = vadd.f32 %v2642_v26, %v2553_v11  ;;  %v2114_v32 = vadd.f32 %v2113_v43, %v2024_v41  ;;  %v2852_v0 = vmax.f32 %v2820_v49, 0.0  ;;  %v3867_v11 = vld [vmem:[%s4692_s26 + $0x2a0] sm:$0xf]  ;;  %v4147_v26 = vld [vmem:[%s4692_s26 + $0x2a4] sm:$0xf0]  ;;  %v2790_v49 = vld [vmem:[%s5073_s14 + $0x10] sm:$0xff] }
 0x229   : > { %2063 = vmatmul.bf16.gmra.mxu0 %v3604_v27  ;;  %v4146_v27 = vld [vmem:[%s4692_s26 + $0x2a4] sm:$0xf]  ;;  %v3868_v41 = vor.u32 %v4147_v26, %v3867_v11 }
 0x22a   : > { %v2721_v47 = vadd.f32 %v2643_v40, %v2189_v37  ;;  %2152 = vmatmul.bf16.gmra.mxu1 %v3608_v29  ;;  %v2190_v12 = vadd.f32 %v2114_v32, %v4850_v39  ;;  %v3869_v29 = vld [vmem:[%s4692_s26 + $0x2a8] sm:$0xf0]  ;;  %v3612_v37 = vor.u32 %v4099_v14, %v3611_v13  ;;  %v3616_v40 = vor.u32 %v4098_v16, %v3613_v23  ;;  %v3619_v16 = vld [vmem:[%s4692_s26 + $0x1b0] sm:$0xf]  ;;  %v3621_v23 = vld [vmem:[%s4692_s26 + $0x1b8] sm:$0xf0] }
 0x22b   : > { %2595 = vmatmul.bf16.gmra.mxu2 %v3860_v35 }
 0x22c   : > { %v2757_v54 = vadd.f32 %v5058_v4, %v2721_v47  ;;  %2684 = vmatmul.bf16.gmra.mxu3 %v3864_v44 }
 0x22e   : > { %v2821_v55 = vadd.f32 %v2789_v48, %v2757_v54  ;;  %v2556_v59 = vpop.f32.mrf.mxu2  ;;  %v2026_v6 = vpop.f32.mrf.mxu0  ;;  %v3872_v48 = vor.u32 %v4146_v27, %v3869_v29  ;;  %v3875_v27 = vld [vmem:[%s4692_s26 + $0x2b0] sm:$0xf]  ;;  %v4149_v29 = vld [vmem:[%s4692_s26 + $0x2b4] sm:$0xf0] }
 0x22f   : > { %v2645_v60 = vpop.f32.mrf.mxu3  ;;  %v2115_v9 = vpop.f32.mrf.mxu1 }
 0x230   : > { %v2853_v1 = vmax.f32 %v2821_v55, 0.0  ;;  %v2646_v2 = vadd.f32 %v2645_v60, %v2556_v59  ;;  %v2116_v20 = vadd.f32 %v2115_v9, %v2026_v6  ;;  %v2791_v55 = vld [vmem:[%s5073_s14 + $0x18] sm:$0xff] }
 0x232   : > { %v4177_v10 = vpack.c.bf16 %v2853_v1, %v2852_v0  ;;  %v2722_v18 = vadd.f32 %v2646_v2, %v2190_v12  ;;  %v2191_v43 = vadd.f32 %v2116_v20, %v4860_v58  ;;  %v4100_v20 = vld [vmem:[%s4692_s26 + $0x1b4] sm:$0xf] }
 0x234   : > { %4178 = vst [vmem:[%s5084_s18] sm:$0xff] %v4177_v10   ;;  %v2758_v39 = vadd.f32 %v5058_v4, %v2722_v18  ;;  %v4101_v18 = vld [vmem:[%s4692_s26 + $0x1b4] sm:$0xf0] }
 0x236   : > { %v2558_v35 = vpop.f32.mrf.mxu2  ;;  %v2029_v45 = vpop.f32.mrf.mxu0  ;;  %v2822_v32 = vadd.f32 %v2790_v49, %v2758_v39  ;;  %v3624_v39 = vor.u32 %v4100_v20, %v3621_v23  ;;  %v4102_v20 = vld [vmem:[%s4692_s26 + $0x1c4] sm:$0xf]  ;;  %v3629_v23 = vld [vmem:[%s4692_s26 + $0x1c8] sm:$0xf0] }
 0x237   : > { %v2647_v36 = vpop.f32.mrf.mxu3  ;;  %v2118_v47 = vpop.f32.mrf.mxu1 }
 0x238   : > { %v2648_v44 = vadd.f32 %v2647_v36, %v2558_v35  ;;  %v2119_v60 = vadd.f32 %v2118_v47, %v2029_v45  ;;  %v2854_v2 = vmax.f32 %v2822_v32, 0.0  ;;  %v4148_v35 = vld [vmem:[%s4692_s26 + $0x2b4] sm:$0xf]  ;;  %v3877_v36 = vld [vmem:[%s4692_s26 + $0x2b8] sm:$0xf0]  ;;  %v2793_v32 = vld [vmem:[%s5073_s14 + $0x28] sm:$0xff] }
 0x239   : > { %2068 = vmatmul.bf16.gmra.mxu0 %v3612_v37  ;;  %v3880_v49 = vor.u32 %v4148_v35, %v3877_v36  ;;  %v4150_v35 = vld [vmem:[%s4692_s26 + $0x2c4] sm:$0xf]  ;;  %v3885_v36 = vld [vmem:[%s4692_s26 + $0x2c8] sm:$0xf0] }
 0x23a   : > { %v2723_v54 = vadd.f32 %v2648_v44, %v2191_v43  ;;  %2157 = vmatmul.bf16.gmra.mxu1 %v3616_v40  ;;  %v2192_v14 = vadd.f32 %v2119_v60, %v4868_v3  ;;  %v3876_v43 = vor.u32 %v4149_v29, %v3875_v27  ;;  %v3883_v27 = vld [vmem:[%s4692_s26 + $0x2c0] sm:$0xf]  ;;  %v4151_v29 = vld [vmem:[%s4692_s26 + $0x2c4] sm:$0xf0] }
 0x23b   : > { %2600 = vmatmul.bf16.gmra.mxu2 %v3868_v41  ;;  %v3620_v41 = vor.u32 %v4101_v18, %v3619_v16  ;;  %v3627_v16 = vld [vmem:[%s4692_s26 + $0x1c0] sm:$0xf]  ;;  %v4103_v18 = vld [vmem:[%s4692_s26 + $0x1c4] sm:$0xf0] }
 0x23c   : > { %v2759_v59 = vadd.f32 %v5058_v4, %v2723_v54  ;;  %2689 = vmatmul.bf16.gmra.mxu3 %v3872_v48  ;;  %v2792_v54 = vld [vmem:[%s5073_s14 + $0x20] sm:$0xff] }
 0x23e   : > { %v2823_v58 = vadd.f32 %v2791_v55, %v2759_v59  ;;  %v2561_v0 = vpop.f32.mrf.mxu2  ;;  %v2031_v10 = vpop.f32.mrf.mxu0 }
 0x23f   : > { %v2650_v1 = vpop.f32.mrf.mxu3  ;;  %v2120_v12 = vpop.f32.mrf.mxu1 }
 0x240   : > { %v2855_v6 = vmax.f32 %v2823_v58, 0.0  ;;  %v2651_v9 = vadd.f32 %v2650_v1, %v2561_v0  ;;  %v2121_v26 = vadd.f32 %v2120_v12, %v2031_v10 }
 0x242   : > { %v4182_v13 = vpack.c.bf16 %v2855_v6, %v2854_v2  ;;  %v2724_v11 = vadd.f32 %v2651_v9, %v2192_v14  ;;  %v2193_v44 = vadd.f32 %v2121_v26, %v4884_v25 }
 0x244   : > { %4254 = vst [vmem:[%s5084_s18 + $0x8] sm:$0xff] %v4182_v13   ;;  %v2760_v3 = vadd.f32 %v5058_v4, %v2724_v11 }
 0x246   : > { %v2563_v37 = vpop.f32.mrf.mxu2  ;;  %v2034_v47 = vpop.f32.mrf.mxu0  ;;  %v2824_v59 = vadd.f32 %v2792_v54, %v2760_v3 }
 0x247   : > { %v2652_v40 = vpop.f32.mrf.mxu3  ;;  %v2123_v48 = vpop.f32.mrf.mxu1 }
 0x248   : > { %v2653_v45 = vadd.f32 %v2652_v40, %v2563_v37  ;;  %v2124_v60 = vadd.f32 %v2123_v48, %v2034_v47  ;;  %v2856_v2 = vmax.f32 %v2824_v59, 0.0  ;;  %v3888_v48 = vor.u32 %v4150_v35, %v3885_v36 }
 0x249   : > { %2073 = vmatmul.bf16.gmra.mxu0 %v3620_v41  ;;  %v3628_v41 = vor.u32 %v4103_v18, %v3627_v16  ;;  %v4104_v16 = vld [vmem:[%s4692_s26 + $0x1d4] sm:$0xf]  ;;  %v3637_v18 = vld [vmem:[%s4692_s26 + $0x1d8] sm:$0xf0] }
 0x24a   : > { %v2725_v55 = vadd.f32 %v2653_v45, %v2193_v44  ;;  %2162 = vmatmul.bf16.gmra.mxu1 %v3624_v39  ;;  %v2194_v14 = vadd.f32 %v2124_v60, %v4886_v33  ;;  %v3632_v39 = vor.u32 %v4102_v20, %v3629_v23 }
 0x24b   : > { %2605 = vmatmul.bf16.gmra.mxu2 %v3876_v43  ;;  %v3884_v43 = vor.u32 %v4151_v29, %v3883_v27  ;;  %v4152_v27 = vld [vmem:[%s4692_s26 + $0x2d4] sm:$0xf]  ;;  %v3893_v29 = vld [vmem:[%s4692_s26 + $0x2d8] sm:$0xf0] }
 0x24c   : > { %v2761_v58 = vadd.f32 %v5058_v4, %v2725_v55  ;;  %2694 = vmatmul.bf16.gmra.mxu3 %v3880_v49  ;;  %v2794_v49 = vld [vmem:[%s5073_s14 + $0x30] sm:$0xff]  ;;  %v2795_v55 = vld [vmem:[%s5073_s14 + $0x38] sm:$0xff] }
 0x24e   : > { %v2825_v25 = vadd.f32 %v2793_v32, %v2761_v58  ;;  %v2566_v0 = vpop.f32.mrf.mxu2  ;;  %v2036_v10 = vpop.f32.mrf.mxu0 }
 0x24f   : > { %v2655_v1 = vpop.f32.mrf.mxu3  ;;  %v2125_v12 = vpop.f32.mrf.mxu1 }
 0x250   : > { %v2857_v6 = vmax.f32 %v2825_v25, 0.0  ;;  %v2656_v9 = vadd.f32 %v2655_v1, %v2566_v0  ;;  %v2126_v26 = vadd.f32 %v2125_v12, %v2036_v10 }
 0x252   : > { %v4187_v13 = vpack.c.bf16 %v2857_v6, %v2856_v2  ;;  %v2726_v11 = vadd.f32 %v2656_v9, %v2194_v14  ;;  %v2195_v3 = vadd.f32 %v2126_v26, %v4896_v53  ;;  %v4105_v14 = vld [vmem:[%s4692_s26 + $0x1d4] sm:$0xf0] }
 0x253   : > { %v4153_v26 = vld [vmem:[%s4692_s26 + $0x2d4] sm:$0xf0] }
 0x254   : > { %4255 = vst [vmem:[%s5084_s18 + $0x10] sm:$0xff] %v4187_v13   ;;  %v2762_v33 = vadd.f32 %v5058_v4, %v2726_v11  ;;  %v3635_v13 = vld [vmem:[%s4692_s26 + $0x1d0] sm:$0xf] }
 0x255   : > { %v3891_v11 = vld [vmem:[%s4692_s26 + $0x2d0] sm:$0xf] }
 0x256   : > { %v2568_v37 = vpop.f32.mrf.mxu2  ;;  %v2039_v45 = vpop.f32.mrf.mxu0  ;;  %v2826_v32 = vadd.f32 %v2794_v49, %v2762_v33 }
 0x257   : > { %v2657_v40 = vpop.f32.mrf.mxu3  ;;  %v2128_v47 = vpop.f32.mrf.mxu1 }
 0x258   : > { %v2658_v44 = vadd.f32 %v2657_v40, %v2568_v37  ;;  %v2129_v58 = vadd.f32 %v2128_v47, %v2039_v45  ;;  %v2858_v0 = vmax.f32 %v2826_v32, 0.0  ;;  %v3636_v37 = vor.u32 %v4105_v14, %v3635_v13  ;;  %v2796_v45 = vld [vmem:[%s5073_s14 + $0x40] sm:$0xff] }
 0x259   : > { %2078 = vmatmul.bf16.gmra.mxu0 %v3628_v41  ;;  %v3640_v40 = vor.u32 %v4104_v16, %v3637_v18  ;;  %v3892_v41 = vor.u32 %v4153_v26, %v3891_v11  ;;  %v3899_v16 = vld [vmem:[%s4692_s26 + $0x2e0] sm:$0xf]  ;;  %v4155_v18 = vld [vmem:[%s4692_s26 + $0x2e4] sm:$0xf0] }
 0x25a   : > { %v2727_v54 = vadd.f32 %v2658_v44, %v2195_v3  ;;  %2167 = vmatmul.bf16.gmra.mxu1 %v3632_v39  ;;  %v2196_v12 = vadd.f32 %v2129_v58, %v4904_v63  ;;  %v3896_v44 = vor.u32 %v4152_v27, %v3893_v29 }
 0x25b   : > { %2610 = vmatmul.bf16.gmra.mxu2 %v3884_v43 }
 0x25c   : > { %v2763_v59 = vadd.f32 %v5058_v4, %v2727_v54  ;;  %2699 = vmatmul.bf16.gmra.mxu3 %v3888_v48  ;;  %v2797_v48 = vld [vmem:[%s5073_s14 + $0x48] sm:$0xff] }
 0x25e   : > { %v2827_v53 = vadd.f32 %v2795_v55, %v2763_v59  ;;  %v2571_v25 = vpop.f32.mrf.mxu2  ;;  %v2041_v6 = vpop.f32.mrf.mxu0 }
 0x25f   : > { %v2660_v60 = vpop.f32.mrf.mxu3  ;;  %v2130_v9 = vpop.f32.mrf.mxu1 }
 0x260   : > { %v2859_v1 = vmax.f32 %v2827_v53, 0.0  ;;  %v2661_v2 = vadd.f32 %v2660_v60, %v2571_v25  ;;  %v2131_v23 = vadd.f32 %v2130_v9, %v2041_v6  ;;  %v3643_v6 = vld [vmem:[%s4692_s26 + $0x1e0] sm:$0xf]  ;;  %v4107_v9 = vld [vmem:[%s4692_s26 + $0x1e4] sm:$0xf0] }
 0x261   : > { %v3644_v27 = vor.u32 %v4107_v9, %v3643_v6  ;;  %v3907_v6 = vld [vmem:[%s4692_s26 + $0x2f0] sm:$0xf]  ;;  %v4157_v9 = vld [vmem:[%s4692_s26 + $0x2f4] sm:$0xf0] }
 0x262   : > { %v4192_v10 = vpack.c.bf16 %v2859_v1, %v2858_v0  ;;  %v2728_v20 = vadd.f32 %v2661_v2, %v2196_v12  ;;  %v2197_v39 = vadd.f32 %v2131_v23, %v4920_v22  ;;  %v3645_v12 = vld [vmem:[%s4692_s26 + $0x1e8] sm:$0xf0] }
 0x263   : > { %v3901_v23 = vld [vmem:[%s4692_s26 + $0x2e8] sm:$0xf0] }
 0x264   : > { %4256 = vst [vmem:[%s5084_s18 + $0x18] sm:$0xff] %v4192_v10   ;;  %v2764_v63 = vadd.f32 %v5058_v4, %v2728_v20  ;;  %v4106_v10 = vld [vmem:[%s4692_s26 + $0x1e4] sm:$0xf] }
 0x265   : > { %v4154_v20 = vld [vmem:[%s4692_s26 + $0x2e4] sm:$0xf]  ;;  %v3648_v29 = vor.u32 %v4106_v10, %v3645_v12  ;;  %v4156_v10 = vld [vmem:[%s4692_s26 + $0x2f4] sm:$0xf]  ;;  %v3909_v12 = vld [vmem:[%s4692_s26 + $0x2f8] sm:$0xf0] }
 0x266   : > { %v2573_v35 = vpop.f32.mrf.mxu2  ;;  %v2044_v33 = vpop.f32.mrf.mxu0  ;;  %v2828_v49 = vadd.f32 %v2796_v45, %v2764_v63  ;;  %v3904_v63 = vor.u32 %v4154_v20, %v3901_v23  ;;  %v3908_v20 = vor.u32 %v4157_v9, %v3907_v6 }
 0x267   : > { %v2662_v36 = vpop.f32.mrf.mxu3  ;;  %v2133_v3 = vpop.f32.mrf.mxu1 }
 0x268   : > { %v2663_v43 = vadd.f32 %v2662_v36, %v2573_v35  ;;  %v2134_v55 = vadd.f32 %v2133_v3, %v2044_v33  ;;  %v2860_v53 = vmax.f32 %v2828_v49, 0.0  ;;  %v3900_v35 = vor.u32 %v4155_v18, %v3899_v16  ;;  %v2799_v33 = vld [vmem:[%s5073_s14 + $0x58] sm:$0xff] }
 0x269   : > { %2083 = vmatmul.bf16.gmra.mxu0 %v3636_v37 }
 0x26a   : > { %v2729_v47 = vadd.f32 %v2663_v43, %v2197_v39  ;;  %2172 = vmatmul.bf16.gmra.mxu1 %v3640_v40  ;;  %v2198_v2 = vadd.f32 %v2134_v55, %v4922_v30  ;;  %v2798_v39 = vld [vmem:[%s5073_s14 + $0x50] sm:$0xff] }
 0x26b   : > { %2615 = vmatmul.bf16.gmra.mxu2 %v3892_v41 }
 0x26c   : > { %v2765_v54 = vadd.f32 %v5058_v4, %v2729_v47  ;;  %2704 = vmatmul.bf16.gmra.mxu3 %v3896_v44 }
 0x26e   : > { %v2829_v22 = vadd.f32 %v2797_v48, %v2765_v54  ;;  %v2576_v32 = vpop.f32.mrf.mxu2  ;;  %v2046_v60 = vpop.f32.mrf.mxu0 }
 0x26f   : > { %v2665_v59 = vpop.f32.mrf.mxu3  ;;  %v2135_v0 = vpop.f32.mrf.mxu1 }
 0x270   : > { %v2861_v58 = vmax.f32 %v2829_v22, 0.0  ;;  %v2666_v25 = vadd.f32 %v2665_v59, %v2576_v32  ;;  %v2136_v14 = vadd.f32 %v2135_v0, %v2046_v60  ;;  %v4108_v60 = vld [vmem:[%s4692_s26 + $0x1f4] sm:$0xf]  ;;  %v3653_v0 = vld [vmem:[%s4692_s26 + $0x1f8] sm:$0xf0] }
 0x271   : > { %v3656_v18 = vor.u32 %v4108_v60, %v3653_v0  ;;  %v2803_v0 = vld [vmem:[%s5073_s14 + $0x78] sm:$0xff] }
 0x272   : > { %v4197_v1 = vpack.c.bf16 %v2861_v58, %v2860_v53  ;;  %v2730_v13 = vadd.f32 %v2666_v25, %v2198_v2  ;;  %v2199_v36 = vadd.f32 %v2136_v14, %v4932_v52  ;;  %v3651_v58 = vld [vmem:[%s4692_s26 + $0x1f0] sm:$0xf]  ;;  %v4109_v25 = vld [vmem:[%s4692_s26 + $0x1f4] sm:$0xf0] }
 0x273   : > { %v3652_v16 = vor.u32 %v4109_v25, %v3651_v58  ;;  %v2802_v25 = vld [vmem:[%s5073_s14 + $0x70] sm:$0xff] }
 0x274   : > { %4257 = vst [vmem:[%s5084_s18 + $0x20] sm:$0xff] %v4197_v1   ;;  %v2766_v30 = vadd.f32 %v5058_v4, %v2730_v13 }
 0x276   : > { %v2578_v11 = vpop.f32.mrf.mxu2  ;;  %v2049_v40 = vpop.f32.mrf.mxu0  ;;  %v2830_v3 = vadd.f32 %v2798_v39, %v2766_v30 }
 0x277   : > { %v2667_v26 = vpop.f32.mrf.mxu3  ;;  %v2138_v41 = vpop.f32.mrf.mxu1 }
 0x278   : > { %v2668_v37 = vadd.f32 %v2667_v26, %v2578_v11  ;;  %v2139_v45 = vadd.f32 %v2138_v41, %v2049_v40  ;;  %v2862_v49 = vmax.f32 %v2830_v3, 0.0 }
 0x279   : > { %2088 = vmatmul.bf16.gmra.mxu0 %v3644_v27 }
 0x27a   : > { %v2731_v43 = vadd.f32 %v2668_v37, %v2199_v36  ;;  %2177 = vmatmul.bf16.gmra.mxu1 %v3648_v29  ;;  %v2200_v53 = vadd.f32 %v2139_v45, %v4934_v61  ;;  %v3912_v29 = vor.u32 %v4156_v10, %v3909_v12  ;;  %v2801_v36 = vld [vmem:[%s5073_s14 + $0x68] sm:$0xff] }
 0x27b   : > { %2620 = vmatmul.bf16.gmra.mxu2 %v3900_v35  ;;  %v2800_v35 = vld [vmem:[%s5073_s14 + $0x60] sm:$0xff] }
 0x27c   : > { %v2767_v44 = vadd.f32 %v5058_v4, %v2731_v43  ;;  %2709 = vmatmul.bf16.gmra.mxu3 %v3904_v63 }
 0x27e   : > { %v2831_v52 = vadd.f32 %v2799_v33, %v2767_v44  ;;  %v2581_v47 = vpop.f32.mrf.mxu2  ;;  %v2051_v55 = vpop.f32.mrf.mxu0 }
 0x27f   : > { %v2670_v48 = vpop.f32.mrf.mxu3  ;;  %v2140_v32 = vpop.f32.mrf.mxu1 }
 0x280   : > { %v2863_v54 = vmax.f32 %v2831_v52, 0.0  ;;  %v2671_v22 = vadd.f32 %v2670_v48, %v2581_v47  ;;  %v2141_v2 = vadd.f32 %v2140_v32, %v2051_v55 }
 0x282   : > { %v4202_v59 = vpack.c.bf16 %v2863_v54, %v2862_v49  ;;  %v2732_v1 = vadd.f32 %v2671_v22, %v2200_v53  ;;  %v2201_v23 = vadd.f32 %v2141_v2, %v4944_v19 }
 0x284   : > { %4258 = vst [vmem:[%s5084_s18 + $0x28] sm:$0xff] %v4202_v59   ;;  %v2768_v61 = vadd.f32 %v5058_v4, %v2732_v1 }
 0x286   : > { %v2583_v13 = vpop.f32.mrf.mxu2  ;;  %v2054_v26 = vpop.f32.mrf.mxu0  ;;  %v2832_v37 = vadd.f32 %v2800_v35, %v2768_v61 }
 0x287   : > { %v2672_v14 = vpop.f32.mrf.mxu3  ;;  %v2143_v27 = vpop.f32.mrf.mxu1 }
 0x288   : > { %v2673_v11 = vadd.f32 %v2672_v14, %v2583_v13  ;;  %v2144_v63 = vadd.f32 %v2143_v27, %v2054_v26  ;;  %v2864_v19 = vmax.f32 %v2832_v37, 0.0  ;;  %v2804_v37 = vld [vmem:[%s5073_s14 + $0x80] sm:$0xff] }
 0x289   : > { %2093 = vmatmul.bf16.gmra.mxu0 %v3652_v16 }
 0x28a   : > { %v2733_v30 = vadd.f32 %v2673_v11, %v2201_v23  ;;  %2182 = vmatmul.bf16.gmra.mxu1 %v3656_v18  ;;  %v2202_v47 = vadd.f32 %v2144_v63, %v4946_v28 }
 0x28b   : > { %2625 = vmatmul.bf16.gmra.mxu2 %v3908_v20 }
 0x28c   : > { %v2769_v40 = vadd.f32 %v5058_v4, %v2733_v30  ;;  %2714 = vmatmul.bf16.gmra.mxu3 %v3912_v29 }
 0x28e   : > { %v2833_v41 = vadd.f32 %v2801_v36, %v2769_v40  ;;  %v2586_v39 = vpop.f32.mrf.mxu2  ;;  %v2056_v44 = vpop.f32.mrf.mxu0 }
 0x28f   : > { %v2675_v43 = vpop.f32.mrf.mxu3  ;;  %v2145_v52 = vpop.f32.mrf.mxu1 }
 0x290   : > { %v2865_v33 = vmax.f32 %v2833_v41, 0.0  ;;  %v2676_v3 = vadd.f32 %v2675_v43, %v2586_v39  ;;  %v2146_v49 = vadd.f32 %v2145_v52, %v2056_v44  ;;  %v2805_v41 = vld [vmem:[%s5073_s14 + $0x88] sm:$0xff] }
 0x292   : > { %v4207_v45 = vpack.c.bf16 %v2865_v33, %v2864_v19  ;;  %v2734_v48 = vadd.f32 %v2676_v3, %v2202_v47  ;;  %v2203_v32 = vadd.f32 %v2146_v49, %v4956_v51 }
 0x294   : > { %4259 = vst [vmem:[%s5084_s18 + $0x30] sm:$0xff] %v4207_v45   ;;  %v2770_v55 = vadd.f32 %v5058_v4, %v2734_v48 }
 0x296   : > { %v2588_v54 = vpop.f32.mrf.mxu2  ;;  %v2059_v53 = vpop.f32.mrf.mxu0  ;;  %v2834_v1 = vadd.f32 %v2802_v25, %v2770_v55 }
 0x297   : > { %v2677_v22 = vpop.f32.mrf.mxu3  ;;  %v2148_v58 = vpop.f32.mrf.mxu1 }
 0x298   : > { %v2678_v59 = vadd.f32 %v2677_v22, %v2588_v54  ;;  %v2149_v6 = vadd.f32 %v2148_v58, %v2059_v53  ;;  %v2866_v12 = vmax.f32 %v2834_v1, 0.0  ;;  %v2807_v1 = vld [vmem:[%s5073_s14 + $0x98] sm:$0xff] }
 0x29a   : > { %v2735_v60 = vadd.f32 %v2678_v59, %v2203_v32  ;;  %v2204_v20 = vadd.f32 %v2149_v6, %v4958_v62 }
 0x29c   : > { %v2771_v2 = vadd.f32 %v5058_v4, %v2735_v60  ;;  %v2806_v60 = vld [vmem:[%s5073_s14 + $0x90] sm:$0xff] }
 0x29e   : > { %v2835_v28 = vadd.f32 %v2803_v0, %v2771_v2  ;;  %v2591_v9 = vpop.f32.mrf.mxu2  ;;  %v2061_v16 = vpop.f32.mrf.mxu0 }
 0x29f   : > { %v2680_v10 = vpop.f32.mrf.mxu3  ;;  %v2150_v51 = vpop.f32.mrf.mxu1 }
 0x2a0   : > { %v2867_v13 = vmax.f32 %v2835_v28, 0.0  ;;  %v2681_v14 = vadd.f32 %v2680_v10, %v2591_v9  ;;  %v2151_v23 = vadd.f32 %v2150_v51, %v2061_v16 }
 0x2a2   : > { %v4212_v18 = vpack.c.bf16 %v2867_v13, %v2866_v12  ;;  %v2736_v61 = vadd.f32 %v2681_v14, %v2204_v20  ;;  %v2205_v29 = vadd.f32 %v2151_v23, %v4968_v21 }
 0x2a4   : > { %4260 = vst [vmem:[%s5084_s18 + $0x38] sm:$0xff] %v4212_v18   ;;  %v2772_v27 = vadd.f32 %v5058_v4, %v2736_v61 }
 0x2a6   : > { %v2593_v11 = vpop.f32.mrf.mxu2  ;;  %v2064_v30 = vpop.f32.mrf.mxu0  ;;  %v2836_v63 = vadd.f32 %v2804_v37, %v2772_v27 }
 0x2a7   : > { %v2682_v26 = vpop.f32.mrf.mxu3  ;;  %v2153_v36 = vpop.f32.mrf.mxu1 }
 0x2a8   : > { %v2683_v35 = vadd.f32 %v2682_v26, %v2593_v11  ;;  %v2154_v43 = vadd.f32 %v2153_v36, %v2064_v30  ;;  %v2868_v3 = vmax.f32 %v2836_v63, 0.0  ;;  %v2808_v36 = vld [vmem:[%s5073_s14 + $0xa0] sm:$0xff] }
 0x2aa   : > { %v2737_v40 = vadd.f32 %v2683_v35, %v2205_v29  ;;  %v2206_v48 = vadd.f32 %v2154_v43, %v4970_v34 }
 0x2ac   : > { %v2773_v39 = vadd.f32 %v5058_v4, %v2737_v40  ;;  %v2809_v40 = vld [vmem:[%s5073_s14 + $0xa8] sm:$0xff] }
 0x2ae   : > { %v2837_v62 = vadd.f32 %v2805_v41, %v2773_v39  ;;  %v2596_v19 = vpop.f32.mrf.mxu2  ;;  %v2066_v45 = vpop.f32.mrf.mxu0 }
 0x2af   : > { %v2685_v33 = vpop.f32.mrf.mxu3  ;;  %v2155_v21 = vpop.f32.mrf.mxu1 }
 0x2b0   : > { %v2869_v44 = vmax.f32 %v2837_v62, 0.0  ;;  %v2686_v52 = vadd.f32 %v2685_v33, %v2596_v19  ;;  %v2156_v54 = vadd.f32 %v2155_v21, %v2066_v45 }
 0x2b2   : > { %v4217_v47 = vpack.c.bf16 %v2869_v44, %v2868_v3  ;;  %v2738_v49 = vadd.f32 %v2686_v52, %v2206_v48  ;;  %v2207_v59 = vadd.f32 %v2156_v54, %v4980_v57 }
 0x2b4   : > { %4261 = vst [vmem:[%s5084_s18 + $0x40] sm:$0xff] %v4217_v47   ;;  %v2774_v32 = vadd.f32 %v5058_v4, %v2738_v49 }
 0x2b6   : > { %v2598_v22 = vpop.f32.mrf.mxu2  ;;  %v2069_v58 = vpop.f32.mrf.mxu0  ;;  %v2838_v2 = vadd.f32 %v2806_v60, %v2774_v32 }
 0x2b7   : > { %v2687_v55 = vpop.f32.mrf.mxu3  ;;  %v2158_v25 = vpop.f32.mrf.mxu1 }
 0x2b8   : > { %v2688_v53 = vadd.f32 %v2687_v55, %v2598_v22  ;;  %v2159_v6 = vadd.f32 %v2158_v25, %v2069_v58  ;;  %v2870_v12 = vmax.f32 %v2838_v2, 0.0  ;;  %v2811_v25 = vld [vmem:[%s5073_s14 + $0xb8] sm:$0xff] }
 0x2ba   : > { %v2739_v0 = vadd.f32 %v2688_v53, %v2207_v59  ;;  %v2208_v18 = vadd.f32 %v2159_v6, %v4982_v5  ;;  %v2810_v53 = vld [vmem:[%s5073_s14 + $0xb0] sm:$0xff] }
 0x2bc   : > { %v2775_v28 = vadd.f32 %v5058_v4, %v2739_v0 }
 0x2be   : > { %v2839_v34 = vadd.f32 %v2807_v1, %v2775_v28  ;;  %v2601_v9 = vpop.f32.mrf.mxu2  ;;  %v2071_v16 = vpop.f32.mrf.mxu0 }
 0x2bf   : > { %v2690_v10 = vpop.f32.mrf.mxu3  ;;  %v2160_v57 = vpop.f32.mrf.mxu1 }
 0x2c0   : > { %v2871_v13 = vmax.f32 %v2839_v34, 0.0  ;;  %v2691_v14 = vadd.f32 %v2690_v10, %v2601_v9  ;;  %v2161_v61 = vadd.f32 %v2160_v57, %v2071_v16 }
 0x2c2   : > { %v4222_v51 = vpack.c.bf16 %v2871_v13, %v2870_v12  ;;  %v2740_v20 = vadd.f32 %v2691_v14, %v2208_v18  ;;  %v2209_v27 = vadd.f32 %v2161_v61, %v4992_v31 }
 0x2c4   : > { %4262 = vst [vmem:[%s5084_s18 + $0x48] sm:$0xff] %v4222_v51   ;;  %v2776_v26 = vadd.f32 %v5058_v4, %v2740_v20 }
 0x2c6   : > { %v2603_v23 = vpop.f32.mrf.mxu2  ;;  %v2074_v35 = vpop.f32.mrf.mxu0  ;;  %v2840_v41 = vadd.f32 %v2808_v36, %v2776_v26  ;;  %v2812_v26 = vld [vmem:[%s5073_s14 + $0xc0] sm:$0xff] }
 0x2c7   : > { %v2692_v11 = vpop.f32.mrf.mxu3  ;;  %v2163_v30 = vpop.f32.mrf.mxu1 }
 0x2c8   : > { %v2693_v29 = vadd.f32 %v2692_v11, %v2603_v23  ;;  %v2164_v39 = vadd.f32 %v2163_v30, %v2074_v35  ;;  %v2872_v19 = vmax.f32 %v2840_v41, 0.0 }
 0x2ca   : > { %v2741_v37 = vadd.f32 %v2693_v29, %v2209_v27  ;;  %v2210_v45 = vadd.f32 %v2164_v39, %v4994_v42  ;;  %v2813_v29 = vld [vmem:[%s5073_s14 + $0xc8] sm:$0xff] }
 0x2cc   : > { %v2777_v63 = vadd.f32 %v5058_v4, %v2741_v37 }
 0x2ce   : > { %v2841_v5 = vadd.f32 %v2809_v40, %v2777_v63  ;;  %v2606_v62 = vpop.f32.mrf.mxu2  ;;  %v2076_v44 = vpop.f32.mrf.mxu0 }
 0x2cf   : > { %v2695_v43 = vpop.f32.mrf.mxu3  ;;  %v2165_v31 = vpop.f32.mrf.mxu1 }
 0x2d0   : > { %v2873_v33 = vmax.f32 %v2841_v5, 0.0  ;;  %v2696_v3 = vadd.f32 %v2695_v43, %v2606_v62  ;;  %v2166_v47 = vadd.f32 %v2165_v31, %v2076_v44 }
 0x2d2   : > { %v4227_v52 = vpack.c.bf16 %v2873_v33, %v2872_v19  ;;  %v2742_v21 = vadd.f32 %v2696_v3, %v2210_v45  ;;  %v2211_v22 = vadd.f32 %v2166_v47, %v5004_v7 }
 0x2d4   : > { %4263 = vst [vmem:[%s5084_s18 + $0x50] sm:$0xff] %v4227_v52   ;;  %v2778_v54 = vadd.f32 %v5058_v4, %v2742_v21 }
 0x2d6   : > { %v2608_v48 = vpop.f32.mrf.mxu2  ;;  %v2079_v32 = vpop.f32.mrf.mxu0  ;;  %v2842_v60 = vadd.f32 %v2810_v53, %v2778_v54  ;;  %v2815_v54 = vld [vmem:[%s5073_s14 + $0xd8] sm:$0xff] }
 0x2d7   : > { %v2697_v49 = vpop.f32.mrf.mxu3  ;;  %v2168_v59 = vpop.f32.mrf.mxu1 }
 0x2d8   : > { %v2698_v55 = vadd.f32 %v2697_v49, %v2608_v48  ;;  %v2169_v1 = vadd.f32 %v2168_v59, %v2079_v32  ;;  %v2874_v34 = vmax.f32 %v2842_v60, 0.0  ;;  %v2814_v48 = vld [vmem:[%s5073_s14 + $0xd0] sm:$0xff] }
 0x2da   : > { %v2743_v58 = vadd.f32 %v2698_v55, %v2211_v22  ;;  %v2212_v13 = vadd.f32 %v2169_v1, %v5006_v15 }
 0x2dc   : > { %v2779_v0 = vadd.f32 %v5058_v4, %v2743_v58 }
 0x2de   : > { %v2843_v42 = vadd.f32 %v2811_v25, %v2779_v0  ;;  %v2611_v2 = vpop.f32.mrf.mxu2  ;;  %v2081_v10 = vpop.f32.mrf.mxu0 }
 0x2df   : > { %v2700_v28 = vpop.f32.mrf.mxu3  ;;  %v2170_v7 = vpop.f32.mrf.mxu1 }
 0x2e0   : > { %v2875_v6 = vmax.f32 %v2843_v42, 0.0  ;;  %v2701_v9 = vadd.f32 %v2700_v28, %v2611_v2  ;;  %v2171_v16 = vadd.f32 %v2170_v7, %v2081_v10 }
 0x2e2   : > { %v4232_v12 = vpack.c.bf16 %v2875_v6, %v2874_v34  ;;  %v2744_v14 = vadd.f32 %v2701_v9, %v2212_v13  ;;  %v2213_v20 = vadd.f32 %v2171_v16, %v5016_v46 }
 0x2e4   : > { %4264 = vst [vmem:[%s5084_s18 + $0x58] sm:$0xff] %v4232_v12   ;;  %v2780_v18 = vadd.f32 %v5058_v4, %v2744_v14  ;;  %v2816_v14 = vld [vmem:[%s5073_s14 + $0xe0] sm:$0xff] }
 0x2e6   : > { %v2613_v57 = vpop.f32.mrf.mxu2  ;;  %v2084_v23 = vpop.f32.mrf.mxu0  ;;  %v2844_v35 = vadd.f32 %v2812_v26, %v2780_v18 }
 0x2e7   : > { %v2702_v51 = vpop.f32.mrf.mxu3  ;;  %v2173_v11 = vpop.f32.mrf.mxu1 }
 0x2e8   : > { %v2703_v61 = vadd.f32 %v2702_v51, %v2613_v57  ;;  %v2174_v36 = vadd.f32 %v2173_v11, %v2084_v23  ;;  %v2876_v41 = vmax.f32 %v2844_v35, 0.0  ;;  %v2817_v57 = vld [vmem:[%s5073_s14 + $0xe8] sm:$0xff] }
 0x2ea   : > { %v2745_v27 = vadd.f32 %v2703_v61, %v2213_v20  ;;  %v2214_v43 = vadd.f32 %v2174_v36, %v5018_v56 }
 0x2ec   : > { %v2781_v30 = vadd.f32 %v5058_v4, %v2745_v27 }
 0x2ee   : > { %v2845_v15 = vadd.f32 %v2813_v29, %v2781_v30  ;;  %v2616_v37 = vpop.f32.mrf.mxu2  ;;  %v2086_v39 = vpop.f32.mrf.mxu0 }
 0x2ef   : > { %v2705_v40 = vpop.f32.mrf.mxu3  ;;  %v2175_v46 = vpop.f32.mrf.mxu1 }
 0x2f0   : > { %v2877_v63 = vmax.f32 %v2845_v15, 0.0  ;;  %v2706_v5 = vadd.f32 %v2705_v40, %v2616_v37  ;;  %v2176_v33 = vadd.f32 %v2175_v46, %v2086_v39  ;;  %v2818_v39 = vld [vmem:[%s5073_s14 + $0xf0] sm:$0xff] }
 0x2f2   : > { %v4237_v62 = vpack.c.bf16 %v2877_v63, %v2876_v41  ;;  %v2746_v19 = vadd.f32 %v2706_v5, %v2214_v43  ;;  %v2215_v52 = vadd.f32 %v2176_v33, %v5028_v24 }
 0x2f4   : > { %4265 = vst [vmem:[%s5084_s18 + $0x60] sm:$0xff] %v4237_v62   ;;  %v2782_v31 = vadd.f32 %v5058_v4, %v2746_v19  ;;  %v2819_v62 = vld [vmem:[%s5073_s14 + $0xf8] sm:$0xff]  ;;  %v4296_v19 = vld [vmem:[%s5255_s3] ss:$0 sm:$0xff] }
 0x2f6   : > { %v2618_v3 = vpop.f32.mrf.mxu2  ;;  %v2089_v21 = vpop.f32.mrf.mxu0  ;;  %v2846_v22 = vadd.f32 %v2814_v48, %v2782_v31 }
 0x2f7   : > { %v2707_v44 = vpop.f32.mrf.mxu3  ;;  %v2178_v47 = vpop.f32.mrf.mxu1 }
 0x2f8   : > { %v2708_v45 = vadd.f32 %v2707_v44, %v2618_v3  ;;  %v2179_v32 = vadd.f32 %v2178_v47, %v2089_v21  ;;  %v2878_v58 = vmax.f32 %v2846_v22, 0.0 }
 0x2fa   : > { %v2747_v49 = vadd.f32 %v2708_v45, %v2215_v52  ;;  %v2216_v1 = vadd.f32 %v2179_v32, %v5030_v38 }
 0x2fc   : > { %v2783_v55 = vadd.f32 %v5058_v4, %v2747_v49 }
 0x2fe   : > { %v2847_v56 = vadd.f32 %v2815_v54, %v2783_v55  ;;  %v2621_v59 = vpop.f32.mrf.mxu2  ;;  %v2091_v0 = vpop.f32.mrf.mxu0 }
 0x2ff   : > { %v2710_v53 = vpop.f32.mrf.mxu3  ;;  %v2180_v24 = vpop.f32.mrf.mxu1 }
 0x300   : > { %v2879_v25 = vmax.f32 %v2847_v56, 0.0  ;;  %v2711_v60 = vadd.f32 %v2710_v53, %v2621_v59  ;;  %v2181_v28 = vadd.f32 %v2180_v24, %v2091_v0 }
 0x302   : > { %v4242_v42 = vpack.c.bf16 %v2879_v25, %v2878_v58  ;;  %v2748_v2 = vadd.f32 %v2711_v60, %v2216_v1  ;;  %v2217_v10 = vadd.f32 %v2181_v28, %v5040_v8 }
 0x304   : > { %4266 = vst [vmem:[%s5084_s18 + $0x68] sm:$0xff] %v4242_v42   ;;  %v2784_v9 = vadd.f32 %v5058_v4, %v2748_v2 }
 0x306   : > { %v2623_v34 = vpop.f32.mrf.mxu2  ;;  %v2094_v12 = vpop.f32.mrf.mxu0  ;;  %v2848_v51 = vadd.f32 %v2816_v14, %v2784_v9 }
 0x307   : > { %v2712_v6 = vpop.f32.mrf.mxu3  ;;  %v2183_v13 = vpop.f32.mrf.mxu1 }
 0x308   : > { %v2713_v7 = vadd.f32 %v2712_v6, %v2623_v34  ;;  %v2184_v20 = vadd.f32 %v2183_v13, %v2094_v12  ;;  %v2880_v11 = vmax.f32 %v2848_v51, 0.0 }
 0x30a   : > { %v2749_v16 = vadd.f32 %v2713_v7, %v2217_v10  ;;  %v2218_v30 = vadd.f32 %v2184_v20, %v5042_v17 }
 0x30c   : > { %v2785_v18 = vadd.f32 %v5058_v4, %v2749_v16 }
 0x30e   : > { %v2849_v38 = vadd.f32 %v2817_v57, %v2785_v18  ;;  %v2626_v61 = vpop.f32.mrf.mxu2  ;;  %v2096_v8 = vpop.f32.mrf.mxu0 }
 0x30f   : > { %v2715_v23 = vpop.f32.mrf.mxu3  ;;  %v2185_v29 = vpop.f32.mrf.mxu1 }
 0x310   : > { %v2881_v26 = vmax.f32 %v2849_v38, 0.0  ;;  %v2716_v27 = vadd.f32 %v2715_v23, %v2626_v61  ;;  %v2186_v36 = vadd.f32 %v2185_v29, %v2096_v8 }
 0x312   : > { %v4247_v35 = vpack.c.bf16 %v2881_v26, %v2880_v11  ;;  %v2750_v15 = vadd.f32 %v2716_v27, %v2218_v30  ;;  %v2219_v63 = vadd.f32 %v2186_v36, %v5052_v50 }
 0x314   : > { %4267 = vst [vmem:[%s5084_s18 + $0x70] sm:$0xff] %v4247_v35   ;;  %v2786_v41 = vadd.f32 %v5058_v4, %v2750_v15 }
 0x316   : > { %v2628_v37 = vpop.f32.mrf.mxu2  ;;  %v2850_v43 = vadd.f32 %v2818_v39, %v2786_v41 }
 0x317   : > { %v2717_v40 = vpop.f32.mrf.mxu3 }
 0x318   : > { %v2718_v5 = vadd.f32 %v2717_v40, %v2628_v37  ;;  %v2882_v3 = vmax.f32 %v2850_v43, 0.0 }
 0x31a   : > { %v2751_v46 = vadd.f32 %v2718_v5, %v2219_v63 }
 0x31c   : > { %v2787_v17 = vadd.f32 %v4296_v19, %v2751_v46 }
 0x31e   : > { %v2851_v33 = vadd.f32 %v2819_v62, %v2787_v17 }
 0x320   : > { %v2883_v44 = vmax.f32 %v2851_v33, 0.0 }
 0x322   : > { %v4252_v31 = vpack.c.bf16 %v2883_v44, %v2882_v3 }
 0x324   : > { %4268 = vst [vmem:[%s5084_s18 + $0x78] sm:$0xff] %v4252_v31  }
 0x325 PF: > { %p12_p9 = scmp.ge.s32.totalorder %s4368_s22, 4   ;;  %s5258_s18 = smov %s4315_s19 }
 0x326   : > { %s5259_s19 = smov %s4377_s25  ;;  %s5260_s20 = smov %s4368_s22 }
 0x327   :  { %14 = sbr.rel (!%p12_p9) target bundleno = 2 (0x2), region = 124 }

// kernel: _resblk_forward.9
= control target key start
LH: loop header
LB: loop body
LE: loop exit
PB: predicated region body
PF: predicated region fallthrough
CT: control target
= control target key end

     0   :  { %s2384_s12 = smov 0   ;;  %s2386_s13 = smov 0   ;;  %s2873_s0 = inlined_call_operand.vmem [shape: bf16[1,512,640], index: 0, kind: input, shape index: {}]   ;;  %s2874_s1 = inlined_call_operand.vmem [shape: bf16[1,640,128], index: 1, kind: input, shape index: {}]   ;;  %s2875_s2 = inlined_call_operand.vmem [shape: f32[1,1,128], index: 2, kind: input, shape index: {}]   ;;  %s2876_s3 = inlined_call_operand.vmem [shape: f32[1,512,128], index: 3, kind: output, shape index: {}]  }
   0x1   :  { %s2388_s14 = smov 0  }
   0x2 LB: > { %s22_s15 = sadd.s32 1, %s2358_s13  ;;  %p1683_p0 = scmp.ge.s32.totalorder %s2362_s14, 1  ;;  %s2362_s14 = sphi %s2388_s14, %s13_s14   ;;  %s2358_s13 = sphi %s2386_s13, %s2878_s13   ;;  %s2354_s12 = sphi %s2384_s12, %s2877_s12  }
   0x3   : > { %p23_p1 = scmp.ge.s32.totalorder %s22_s15, 2  ;;  %p177_p2 = scmp.lt.s32.totalorder %s2362_s14, 3 }
   0x5   : > { %s2880_s15 = smov (%p23_p1, %s22_s15), 0  ;;  %p178_p3 = pnand %p1683_p0, %p177_p2 }
   0x6   : > { %s1684_s22 = sshll.u32 (!%p178_p3), %s2354_s12, 5 }
   0x7   : > { %181 = sbr.rel (%p178_p3) target bundleno = 495 (0x1ef), region = 32  ;;  %p221_p4 = scmp.lt.s32.totalorder (!%p178_p3), %s1684_s22, 63 }
   0xc   : > { %v2257_v0 = vld [vmem:[%s2874_s1 + $0x38] sm:$0xff]  ;;  %v2256_v1 = vld [vmem:[%s2874_s1 + $0x30] sm:$0xff]  ;;  %v2255_v2 = vld [vmem:[%s2874_s1 + $0x28] sm:$0xff]  ;;  %s2882_s22 = smov (!%p221_p4, %s1684_s22), 63 }
   0xd   : > { %2290 = vmatpush.bf16.msra.mxu1 %v2257_v0  ;;  %2291 = vmatpush.bf16.msra.mxu2 %v2257_v0  ;;  %v2254_v3 = vld [vmem:[%s2874_s1 + $0x20] sm:$0xff]  ;;  %v2253_v4 = vld [vmem:[%s2874_s1 + $0x18] sm:$0xff]  ;;  %v2252_v5 = vld [vmem:[%s2874_s1 + $0x10] sm:$0xff]  ;;  %s2314_s29 = smul.u32 20, %s2882_s22  ;;  %s1687_s10 = sshll.u32 %s2882_s22, 3 }
   0xe   : > { %2292 = vmatpush.bf16.msra.mxu3 %v2257_v0  ;;  %1083 = vmatpush.bf16.msra.mxu0 %v2257_v0  ;;  %v2251_v6 = vld [vmem:[%s2874_s1 + $0x8] sm:$0xff]  ;;  %v2250_v7 = vld [vmem:[%s2874_s1] sm:$0xff]  ;;  %v2273_v16 = vld [vmem:[%s2874_s1 + $0xb8] sm:$0xff]  ;;  %s2736_s16 = scalar_lea.vmem %s2876_s3, %s1687_s10 }
   0xf   : > { %s2432_s7 = scalar_lea.vmem %s2873_s0, %s2314_s29  ;;  %v2281_v17 = vld [vmem:[%s2874_s1 + $0xf8] sm:$0xff]  ;;  %v2272_v24 = vld [vmem:[%s2874_s1 + $0xb0] sm:$0xff]  ;;  %v2271_v28 = vld [vmem:[%s2874_s1 + $0xa8] sm:$0xff] }
  0x10   : > { %v1770_v8 = vld [vmem:[%s2432_s7 + $0xa0] sm:$0xf]  ;;  %v2192_v9 = vld [vmem:[%s2432_s7 + $0xb0] sm:$0xf0]  ;;  %v2265_v22 = vld [vmem:[%s2874_s1 + $0x78] sm:$0xff] }
  0x11   : > { %2293 = vmatpush.bf16.msra.mxu1 %v2256_v1  ;;  %2294 = vmatpush.bf16.msra.mxu2 %v2256_v1  ;;  %v1850_v10 = vld [vmem:[%s2432_s7 + $0x140] sm:$0xf]  ;;  %v2212_v11 = vld [vmem:[%s2432_s7 + $0x150] sm:$0xf0]  ;;  %v1771_v18 = vor.u32 %v2192_v9, %v1770_v8  ;;  %v2289_v23 = vld [vmem:[%s2874_s1 + $0x138] sm:$0xff] }
  0x12   : > { %2295 = vmatpush.bf16.msra.mxu3 %v2256_v1  ;;  %1084 = vmatpush.bf16.msra.mxu0 %v2256_v1  ;;  %v1930_v12 = vld [vmem:[%s2432_s7 + $0x1e0] sm:$0xf]  ;;  %v2232_v13 = vld [vmem:[%s2432_s7 + $0x1f0] sm:$0xf0]  ;;  %v1851_v19 = vor.u32 %v2212_v11, %v1850_v10  ;;  %v2279_v29 = vld [vmem:[%s2874_s1 + $0xe8] sm:$0xff] }
  0x13   : > { %v1690_v14 = vld [vmem:[%s2432_s7] sm:$0xf]  ;;  %v2172_v15 = vld [vmem:[%s2432_s7 + $0x10] sm:$0xf0]  ;;  %v1931_v20 = vor.u32 %v2232_v13, %v1930_v12  ;;  %v2263_v30 = vld [vmem:[%s2874_s1 + $0x68] sm:$0xff] }
  0x14   : > { %v1691_v21 = vor.u32 %v2172_v15, %v1690_v14  ;;  %v2280_v25 = vld [vmem:[%s2874_s1 + $0xf0] sm:$0xff]  ;;  %v2287_v31 = vld [vmem:[%s2874_s1 + $0x128] sm:$0xff]  ;;  %v2270_v33 = vld [vmem:[%s2874_s1 + $0xa0] sm:$0xff] }
  0x15   : > { %2296 = vmatpush.bf16.msra.mxu1 %v2255_v2  ;;  %2297 = vmatpush.bf16.msra.mxu2 %v2255_v2  ;;  %v2264_v26 = vld [vmem:[%s2874_s1 + $0x70] sm:$0xff]  ;;  %v1790_v32 = vld [vmem:[%s2432_s7 + $0xc8] sm:$0xf]  ;;  %v2278_v34 = vld [vmem:[%s2874_s1 + $0xe0] sm:$0xff] }
  0x16   : > { %2298 = vmatpush.bf16.msra.mxu3 %v2255_v2  ;;  %1085 = vmatpush.bf16.msra.mxu0 %v2255_v2  ;;  %v2288_v27 = vld [vmem:[%s2874_s1 + $0x130] sm:$0xff]  ;;  %v2197_v35 = vld [vmem:[%s2432_s7 + $0xd8] sm:$0xf0]  ;;  %v1870_v36 = vld [vmem:[%s2432_s7 + $0x168] sm:$0xf] }
  0x17   : > { %v2217_v37 = vld [vmem:[%s2432_s7 + $0x178] sm:$0xf0]  ;;  %v1950_v38 = vld [vmem:[%s2432_s7 + $0x208] sm:$0xf]  ;;  %v2262_v42 = vld [vmem:[%s2874_s1 + $0x60] sm:$0xff]  ;;  %v1791_v46 = vor.u32 %v2197_v35, %v1790_v32 }
  0x18   : > { %v2237_v39 = vld [vmem:[%s2432_s7 + $0x218] sm:$0xf0]  ;;  %v1710_v40 = vld [vmem:[%s2432_s7 + $0x28] sm:$0xf]  ;;  %v2286_v43 = vld [vmem:[%s2874_s1 + $0x120] sm:$0xff]  ;;  %v1871_v47 = vor.u32 %v2217_v37, %v1870_v36 }
  0x19   : > { %2299 = vmatpush.bf16.msra.mxu1 %v2254_v3  ;;  %2300 = vmatpush.bf16.msra.mxu2 %v2254_v3  ;;  %v2177_v41 = vld [vmem:[%s2432_s7 + $0x38] sm:$0xf0]  ;;  %v1951_v48 = vor.u32 %v2237_v39, %v1950_v38  ;;  %v2268_v52 = vld [vmem:[%s2874_s1 + $0x90] sm:$0xff]  ;;  %v2267_v56 = vld [vmem:[%s2874_s1 + $0x88] sm:$0xff] }
  0x1a   : > { %2301 = vmatpush.bf16.msra.mxu3 %v2254_v3  ;;  %1086 = vmatpush.bf16.msra.mxu0 %v2254_v3  ;;  %v2269_v44 = vld [vmem:[%s2874_s1 + $0x98] sm:$0xff]  ;;  %v1711_v49 = vor.u32 %v2177_v41, %v1710_v40  ;;  %v2276_v53 = vld [vmem:[%s2874_s1 + $0xd0] sm:$0xff]  ;;  %v2275_v57 = vld [vmem:[%s2874_s1 + $0xc8] sm:$0xff] }
  0x1b   : > { %v2277_v45 = vld [vmem:[%s2874_s1 + $0xd8] sm:$0xff]  ;;  %v2260_v54 = vld [vmem:[%s2874_s1 + $0x50] sm:$0xff]  ;;  %v2259_v58 = vld [vmem:[%s2874_s1 + $0x48] sm:$0xff] }
  0x1c   : > { %v2261_v50 = vld [vmem:[%s2874_s1 + $0x58] sm:$0xff]  ;;  %v2284_v55 = vld [vmem:[%s2874_s1 + $0x110] sm:$0xff]  ;;  %v2283_v59 = vld [vmem:[%s2874_s1 + $0x108] sm:$0xff] }
  0x1d   : > { %2302 = vmatpush.bf16.msra.mxu1 %v2253_v4  ;;  %2303 = vmatpush.bf16.msra.mxu2 %v2253_v4  ;;  %v2285_v51 = vld [vmem:[%s2874_s1 + $0x118] sm:$0xff]  ;;  %v1810_v60 = vld [vmem:[%s2432_s7 + $0xf0] sm:$0xf]  ;;  %v2266_v61 = vld [vmem:[%s2874_s1 + $0x80] sm:$0xff] }
  0x1e   : > { %2304 = vmatpush.bf16.msra.mxu3 %v2253_v4  ;;  %1087 = vmatpush.bf16.msra.mxu0 %v2253_v4  ;;  %v2274_v62 = vld [vmem:[%s2874_s1 + $0xc0] sm:$0xff]  ;;  %v1890_v0 = vld [vmem:[%s2432_s7 + $0x190] sm:$0xf]  ;;  %v1830_v12 = vld [vmem:[%s2432_s7 + $0x118] sm:$0xf] }
  0x1f   : > { %v2202_v63 = vld [vmem:[%s2432_s7 + $0x100] sm:$0xf0]  ;;  %v1970_v2 = vld [vmem:[%s2432_s7 + $0x230] sm:$0xf]  ;;  %v2207_v13 = vld [vmem:[%s2432_s7 + $0x128] sm:$0xf0] }
  0x20   : > { %v2222_v1 = vld [vmem:[%s2432_s7 + $0x1a0] sm:$0xf0]  ;;  %v1730_v4 = vld [vmem:[%s2432_s7 + $0x50] sm:$0xf]  ;;  %v1811_v8 = vor.u32 %v2202_v63, %v1810_v60  ;;  %v1910_v14 = vld [vmem:[%s2432_s7 + $0x1b8] sm:$0xf] }
  0x21   : > { %2305 = vmatpush.bf16.msra.mxu1 %v2252_v5  ;;  %2306 = vmatpush.bf16.msra.mxu2 %v2252_v5  ;;  %v2242_v3 = vld [vmem:[%s2432_s7 + $0x240] sm:$0xf0]  ;;  %v1891_v9 = vor.u32 %v2222_v1, %v1890_v0  ;;  %v2227_v15 = vld [vmem:[%s2432_s7 + $0x1c8] sm:$0xf0]  ;;  %v1712_v37 = vld [vmem:[%s2432_s7 + $0x3c] sm:$0xf0] }
  0x22   : > { %2307 = vmatpush.bf16.msra.mxu3 %v2252_v5  ;;  %1088 = vmatpush.bf16.msra.mxu0 %v2252_v5  ;;  %v2182_v5 = vld [vmem:[%s2432_s7 + $0x60] sm:$0xf0]  ;;  %v1971_v10 = vor.u32 %v2242_v3, %v1970_v2  ;;  %v2175_v36 = vld [vmem:[%s2432_s7 + $0x2c] sm:$0xf]  ;;  %v1718_v38 = vld [vmem:[%s2432_s7 + $0x30] sm:$0xf] }
  0x23   : > { %v1731_v11 = vor.u32 %v2182_v5, %v1730_v4  ;;  %v2178_v39 = vld [vmem:[%s2432_s7 + $0x40] sm:$0xf0]  ;;  %v2176_v40 = vld [vmem:[%s2432_s7 + $0x34] sm:$0xf]  ;;  %v1720_v41 = vld [vmem:[%s2432_s7 + $0x44] sm:$0xf0] }
  0x24   : > { %v2185_v60 = vld [vmem:[%s2432_s7 + $0x7c] sm:$0xf]  ;;  %v2188_v63 = vld [vmem:[%s2432_s7 + $0x90] sm:$0xf0]  ;;  %v2186_v0 = vld [vmem:[%s2432_s7 + $0x84] sm:$0xf] }
  0x25   : > { %2308 = vmatpush.bf16.msra.mxu1 %v2251_v6  ;;  %2309 = vmatpush.bf16.msra.mxu2 %v2251_v6  ;;  %v1760_v1 = vld [vmem:[%s2432_s7 + $0x94] sm:$0xf0]  ;;  %v1766_v2 = vld [vmem:[%s2432_s7 + $0x88] sm:$0xf]  ;;  %v2189_v3 = vld [vmem:[%s2432_s7 + $0x98] sm:$0xf0] }
  0x26   : > { %2310 = vmatpush.bf16.msra.mxu3 %v2251_v6  ;;  %1089 = vmatpush.bf16.msra.mxu0 %v2251_v6  ;;  %v2258_v6 = vld [vmem:[%s2874_s1 + $0x40] sm:$0xff] }
  0x29   : > { %2311 = vmatpush.bf16.msra.mxu1 %v2250_v7  ;;  %2312 = vmatpush.bf16.msra.mxu2 %v2250_v7 }
  0x2a   : > { %2313 = vmatpush.bf16.msra.mxu3 %v2250_v7  ;;  %1090 = vmatpush.bf16.msra.mxu0 %v2250_v7  ;;  %v2282_v7 = vld [vmem:[%s2874_s1 + $0x100] sm:$0xff] }
  0x2c   : > { %1111 = vmatmul.bf16.vlgmr.msra.gmra.mxu1 %v1771_v18  ;;  %1131 = vmatmul.bf16.vlgmr.msra.gmra.mxu2 %v1851_v19  ;;  %v1750_v18 = vld [vmem:[%s2432_s7 + $0x78] sm:$0xf]  ;;  %v2187_v19 = vld [vmem:[%s2432_s7 + $0x88] sm:$0xf0] }
  0x2d   : > { %1261 = vmatpush.bf16.msrb.mxu2 %v2273_v16  ;;  %1151 = vmatmul.bf16.vlgmr.msra.gmra.mxu3 %v1931_v20  ;;  %v1990_v16 = vld [vmem:[%s2432_s7 + $0x258] sm:$0xf]  ;;  %v1831_v20 = vor.u32 %v2207_v13, %v1830_v12  ;;  %v2193_v12 = vld [vmem:[%s2432_s7 + $0xb8] sm:$0xf0]  ;;  %v2191_v13 = vld [vmem:[%s2432_s7 + $0xac] sm:$0xf] }
  0x2e   : > { %1350 = vmatpush.bf16.msrb.mxu3 %v2281_v17  ;;  %1091 = vmatmul.bf16.vlgmr.msra.gmra.mxu0 %v1691_v21  ;;  %v2247_v17 = vld [vmem:[%s2432_s7 + $0x268] sm:$0xf0]  ;;  %v1911_v21 = vor.u32 %v2227_v15, %v1910_v14  ;;  %v1780_v14 = vld [vmem:[%s2432_s7 + $0xbc] sm:$0xf0]  ;;  %v1786_v15 = vld [vmem:[%s2432_s7 + $0xb0] sm:$0xf] }
  0x2f   : > { %1172 = vmatpush.bf16.msrb.mxu1 %v2265_v22  ;;  %1439 = vmatpush.bf16.msrb.mxu0 %v2289_v23  ;;  %v1991_v22 = vor.u32 %v2247_v17, %v1990_v16  ;;  %v1751_v23 = vor.u32 %v2187_v19, %v1750_v18  ;;  %v2194_v16 = vld [vmem:[%s2432_s7 + $0xc0] sm:$0xf0] }
  0x31   : > { %1262 = vmatpush.bf16.msrb.mxu2 %v2272_v24  ;;  %v2170_v24 = vld [vmem:[%s2432_s7 + $0x4] sm:$0xf] }
  0x32   : > { %1351 = vmatpush.bf16.msrb.mxu3 %v2280_v25  ;;  %v1692_v25 = vld [vmem:[%s2432_s7 + $0x14] sm:$0xf0] }
  0x33   : > { %1173 = vmatpush.bf16.msrb.mxu1 %v2264_v26  ;;  %1440 = vmatpush.bf16.msrb.mxu0 %v2288_v27  ;;  %v1698_v26 = vld [vmem:[%s2432_s7 + $0x8] sm:$0xf]  ;;  %v2173_v27 = vld [vmem:[%s2432_s7 + $0x18] sm:$0xf0]  ;;  %v1695_v32 = vor.u32 %v2170_v24, %v1692_v25 }
  0x35   : > { %1263 = vmatpush.bf16.msrb.mxu2 %v2271_v28  ;;  %v2171_v28 = vld [vmem:[%s2432_s7 + $0xc] sm:$0xf] }
  0x36   : > { %1352 = vmatpush.bf16.msrb.mxu3 %v2279_v29  ;;  %v1700_v29 = vld [vmem:[%s2432_s7 + $0x1c] sm:$0xf0] }
  0x37   : > { %1174 = vmatpush.bf16.msrb.mxu1 %v2263_v30  ;;  %1441 = vmatpush.bf16.msrb.mxu0 %v2287_v31  ;;  %v1706_v30 = vld [vmem:[%s2432_s7 + $0x10] sm:$0xf]  ;;  %v2174_v31 = vld [vmem:[%s2432_s7 + $0x20] sm:$0xf0] }
  0x38   : > { %v1707_v35 = vor.u32 %v2174_v31, %v1706_v30  ;;  %v2195_v31 = vld [vmem:[%s2432_s7 + $0xcc] sm:$0xf] }
  0x39   : > { %1264 = vmatpush.bf16.msrb.mxu2 %v2270_v33  ;;  %v1699_v33 = vor.u32 %v2173_v27, %v1698_v26 }
  0x3a   : > { %1353 = vmatpush.bf16.msrb.mxu3 %v2278_v34  ;;  %v1703_v34 = vor.u32 %v2171_v28, %v1700_v29 }
  0x3b   : > { %1175 = vmatpush.bf16.msrb.mxu1 %v2262_v42  ;;  %1442 = vmatpush.bf16.msrb.mxu0 %v2286_v43  ;;  %v1726_v42 = vld [vmem:[%s2432_s7 + $0x38] sm:$0xf]  ;;  %v2179_v43 = vld [vmem:[%s2432_s7 + $0x48] sm:$0xf0] }
  0x3c   : > { %1116 = vmatmul.bf16.gmra.mxu1 %v1791_v46  ;;  %1136 = vmatmul.bf16.gmra.mxu2 %v1871_v47  ;;  %v1723_v46 = vor.u32 %v2176_v40, %v1720_v41  ;;  %v1727_v47 = vor.u32 %v2179_v43, %v1726_v42 }
  0x3d   : > { %1265 = vmatpush.bf16.msrb.mxu2 %v2269_v44  ;;  %1156 = vmatmul.bf16.gmra.mxu3 %v1951_v48  ;;  %v1715_v44 = vor.u32 %v2175_v36, %v1712_v37  ;;  %v2180_v48 = vld [vmem:[%s2432_s7 + $0x54] sm:$0xf]  ;;  %v1800_v36 = vld [vmem:[%s2432_s7 + $0xe4] sm:$0xf0]  ;;  %v1806_v37 = vld [vmem:[%s2432_s7 + $0xd8] sm:$0xf] }
  0x3e   : > { %1354 = vmatpush.bf16.msrb.mxu3 %v2277_v45  ;;  %1096 = vmatmul.bf16.gmra.mxu0 %v1711_v49  ;;  %v1719_v45 = vor.u32 %v2178_v39, %v1718_v38  ;;  %v1732_v49 = vld [vmem:[%s2432_s7 + $0x64] sm:$0xf0]  ;;  %v2199_v38 = vld [vmem:[%s2432_s7 + $0xe8] sm:$0xf0] }
  0x3f   : > { %1176 = vmatpush.bf16.msrb.mxu1 %v2261_v50  ;;  %1443 = vmatpush.bf16.msrb.mxu0 %v2285_v51  ;;  %v1738_v50 = vld [vmem:[%s2432_s7 + $0x58] sm:$0xf]  ;;  %v2183_v51 = vld [vmem:[%s2432_s7 + $0x68] sm:$0xf0] }
  0x41   : > { %1266 = vmatpush.bf16.msrb.mxu2 %v2268_v52  ;;  %v2181_v52 = vld [vmem:[%s2432_s7 + $0x5c] sm:$0xf] }
  0x42   : > { %1355 = vmatpush.bf16.msrb.mxu3 %v2276_v53  ;;  %v1740_v53 = vld [vmem:[%s2432_s7 + $0x6c] sm:$0xf0] }
  0x43   : > { %1177 = vmatpush.bf16.msrb.mxu1 %v2260_v54  ;;  %1444 = vmatpush.bf16.msrb.mxu0 %v2284_v55  ;;  %v1746_v54 = vld [vmem:[%s2432_s7 + $0x60] sm:$0xf]  ;;  %v2184_v55 = vld [vmem:[%s2432_s7 + $0x70] sm:$0xf0] }
  0x45   : > { %1267 = vmatpush.bf16.msrb.mxu2 %v2267_v56  ;;  %v1735_v56 = vor.u32 %v2180_v48, %v1732_v49 }
  0x46   : > { %1356 = vmatpush.bf16.msrb.mxu3 %v2275_v57  ;;  %v1739_v57 = vor.u32 %v2183_v51, %v1738_v50 }
  0x47   : > { %1178 = vmatpush.bf16.msrb.mxu1 %v2259_v58  ;;  %1445 = vmatpush.bf16.msrb.mxu0 %v2283_v59  ;;  %v1743_v58 = vor.u32 %v2181_v52, %v1740_v53  ;;  %v1747_v59 = vor.u32 %v2184_v55, %v1746_v54 }
  0x49   : > { %1268 = vmatpush.bf16.msrb.mxu2 %v2266_v61  ;;  %v1752_v61 = vld [vmem:[%s2432_s7 + $0x8c] sm:$0xf0] }
  0x4a   : > { %1357 = vmatpush.bf16.msrb.mxu3 %v2274_v62  ;;  %v1758_v62 = vld [vmem:[%s2432_s7 + $0x80] sm:$0xf]  ;;  %v1755_v4 = vor.u32 %v2185_v60, %v1752_v61  ;;  %v2203_v60 = vld [vmem:[%s2432_s7 + $0x108] sm:$0xf0]  ;;  %v2201_v61 = vld [vmem:[%s2432_s7 + $0xfc] sm:$0xf] }
  0x4b   : > { %1179 = vmatpush.bf16.msrb.mxu1 %v2258_v6  ;;  %1446 = vmatpush.bf16.msrb.mxu0 %v2282_v7  ;;  %v1759_v5 = vor.u32 %v2188_v63, %v1758_v62  ;;  %v1763_v6 = vor.u32 %v2186_v0, %v1760_v1  ;;  %v1767_v7 = vor.u32 %v2189_v3, %v1766_v2  ;;  %v1820_v62 = vld [vmem:[%s2432_s7 + $0x10c] sm:$0xf0]  ;;  %v1826_v63 = vld [vmem:[%s2432_s7 + $0x100] sm:$0xf]  ;;  %v2204_v0 = vld [vmem:[%s2432_s7 + $0x110] sm:$0xf0] }
  0x4c   : > { %1121 = vmatmul.bf16.gmra.mxu1 %v1811_v8  ;;  %1141 = vmatmul.bf16.gmra.mxu2 %v1891_v9  ;;  %v2600_v8 = vld [vmem:[%s2875_s2] ss:$0 sm:$0xff]  ;;  %v2190_v9 = vld [vmem:[%s2432_s7 + $0xa4] sm:$0xf] }
  0x4d   : > { %1161 = vmatmul.bf16.gmra.mxu3 %v1971_v10  ;;  %v1772_v10 = vld [vmem:[%s2432_s7 + $0xb4] sm:$0xf0] }
  0x4e   : > { %1101 = vmatmul.bf16.gmra.mxu0 %v1731_v11  ;;  %v1778_v11 = vld [vmem:[%s2432_s7 + $0xa8] sm:$0xf]  ;;  %v1775_v17 = vor.u32 %v2190_v9, %v1772_v10  ;;  %v1823_v9 = vor.u32 %v2201_v61, %v1820_v62  ;;  %v1827_v10 = vor.u32 %v2204_v0, %v1826_v63  ;;  %v1852_v61 = vld [vmem:[%s2432_s7 + $0x154] sm:$0xf0]  ;;  %v2213_v63 = vld [vmem:[%s2432_s7 + $0x158] sm:$0xf0] }
  0x4f   : > { %v1779_v18 = vor.u32 %v2193_v12, %v1778_v11  ;;  %v1858_v62 = vld [vmem:[%s2432_s7 + $0x148] sm:$0xf]  ;;  %v2211_v0 = vld [vmem:[%s2432_s7 + $0x14c] sm:$0xf] }
  0x5c   : > { %1126 = vmatmul.bf16.gmra.mxu1 %v1831_v20  ;;  %1146 = vmatmul.bf16.gmra.mxu2 %v1911_v21  ;;  %v1783_v20 = vor.u32 %v2191_v13, %v1780_v14  ;;  %v1787_v21 = vor.u32 %v2194_v16, %v1786_v15 }
  0x5d   : > { %1166 = vmatmul.bf16.gmra.mxu3 %v1991_v22 }
  0x5e   : > { %1106 = vmatmul.bf16.gmra.mxu0 %v1751_v23 }
  0x6c   : > { %1180 = vmatmul.bf16.vlgmr.msrb.gmra.mxu1 %v1695_v32  ;;  %1269 = vmatmul.bf16.vlgmr.msrb.gmra.mxu2 %v1699_v33  ;;  %v1792_v32 = vld [vmem:[%s2432_s7 + $0xdc] sm:$0xf0]  ;;  %v1798_v33 = vld [vmem:[%s2432_s7 + $0xd0] sm:$0xf] }
  0x6d   : > { %1358 = vmatmul.bf16.vlgmr.msrb.gmra.mxu3 %v1703_v34  ;;  %v2198_v34 = vld [vmem:[%s2432_s7 + $0xe0] sm:$0xf0]  ;;  %v1795_v42 = vor.u32 %v2195_v31, %v1792_v32  ;;  %v1840_v31 = vld [vmem:[%s2432_s7 + $0x134] sm:$0xf0]  ;;  %v1846_v32 = vld [vmem:[%s2432_s7 + $0x128] sm:$0xf] }
  0x6e   : > { %1447 = vmatmul.bf16.vlgmr.msrb.gmra.mxu0 %v1707_v35  ;;  %v2196_v35 = vld [vmem:[%s2432_s7 + $0xd4] sm:$0xf]  ;;  %v1799_v43 = vor.u32 %v2198_v34, %v1798_v33  ;;  %v2209_v33 = vld [vmem:[%s2432_s7 + $0x138] sm:$0xf0] }
  0x7c   : > { %1185 = vmatmul.bf16.gmra.mxu1 %v1715_v44  ;;  %1274 = vmatmul.bf16.gmra.mxu2 %v1719_v45 }
  0x7d   : > { %1363 = vmatmul.bf16.gmra.mxu3 %v1723_v46  ;;  %v1803_v46 = vor.u32 %v2196_v35, %v1800_v36 }
  0x7e   : > { %1452 = vmatmul.bf16.gmra.mxu0 %v1727_v47  ;;  %v1807_v47 = vor.u32 %v2199_v38, %v1806_v37 }
  0x8c   : > { %1190 = vmatmul.bf16.gmra.mxu1 %v1735_v56  ;;  %1279 = vmatmul.bf16.gmra.mxu2 %v1739_v57  ;;  %v2200_v57 = vld [vmem:[%s2432_s7 + $0xf4] sm:$0xf] }
  0x8d   : > { %1368 = vmatmul.bf16.gmra.mxu3 %v1743_v58  ;;  %v1812_v58 = vld [vmem:[%s2432_s7 + $0x104] sm:$0xf0] }
  0x8e   : > { %1457 = vmatmul.bf16.gmra.mxu0 %v1747_v59  ;;  %v1818_v59 = vld [vmem:[%s2432_s7 + $0xf8] sm:$0xf] }
  0x9c   : > { %1195 = vmatmul.bf16.gmra.mxu1 %v1755_v4  ;;  %1284 = vmatmul.bf16.gmra.mxu2 %v1759_v5  ;;  %v1815_v4 = vor.u32 %v2200_v57, %v1812_v58  ;;  %v1819_v5 = vor.u32 %v2203_v60, %v1818_v59  ;;  %v2210_v60 = vld [vmem:[%s2432_s7 + $0x144] sm:$0xf] }
  0x9d   : > { %1373 = vmatmul.bf16.gmra.mxu3 %v1763_v6 }
  0x9e   : > { %1462 = vmatmul.bf16.gmra.mxu0 %v1767_v7 }
  0xa9   : > { %v1112_v19 = vpop.f32.mrf.mxu1 }
  0xaa   : > { %v2611_v22 = vadd.f32 %v2600_v8, %v1112_v19 }
  0xab   : > { %v2613_v23 = vpop.f32.mrf.mxu0 }
  0xac   : > { %1200 = vmatmul.bf16.gmra.mxu1 %v1775_v17  ;;  %1289 = vmatmul.bf16.gmra.mxu2 %v1779_v18 }
  0xad   : > { %1378 = vmatmul.bf16.gmra.mxu3 %v1783_v20  ;;  %v2205_v20 = vld [vmem:[%s2432_s7 + $0x11c] sm:$0xf] }
  0xae   : > { %1467 = vmatmul.bf16.gmra.mxu0 %v1787_v21  ;;  %v1832_v21 = vld [vmem:[%s2432_s7 + $0x12c] sm:$0xf0] }
  0xaf   : > { %v1132_v24 = vpop.f32.mrf.mxu2  ;;  %v1835_v37 = vor.u32 %v2205_v20, %v1832_v21 }
  0xb0   : > { %v2616_v25 = vadd.f32 %v2600_v8, %v1132_v24  ;;  %v1152_v26 = vpop.f32.mrf.mxu3  ;;  %v1838_v24 = vld [vmem:[%s2432_s7 + $0x120] sm:$0xf] }
  0xb1   : > { %v2619_v27 = vadd.f32 %v2600_v8, %v1152_v26  ;;  %v1114_v28 = vpop.f32.mrf.mxu1  ;;  %v2208_v26 = vld [vmem:[%s2432_s7 + $0x130] sm:$0xf0] }
  0xb2   : > { %v2622_v29 = vadd.f32 %v2600_v8, %v1114_v28  ;;  %v2206_v28 = vld [vmem:[%s2432_s7 + $0x124] sm:$0xf]  ;;  %v1839_v38 = vor.u32 %v2208_v26, %v1838_v24  ;;  %v1093_v26 = vadd.f32 %v2600_v8, %v2613_v23 }
  0xb3   : > { %v2624_v30 = vpop.f32.mrf.mxu0 }
  0xb7   : > { %v1134_v39 = vpop.f32.mrf.mxu2 }
  0xb8   : > { %v2635_v40 = vadd.f32 %v2600_v8, %v1134_v39  ;;  %v1154_v41 = vpop.f32.mrf.mxu3 }
  0xb9   : > { %v2638_v44 = vadd.f32 %v2600_v8, %v1154_v41  ;;  %v1117_v45 = vpop.f32.mrf.mxu1 }
  0xba   : > { %v2641_v48 = vadd.f32 %v2600_v8, %v1117_v45 }
  0xbb   : > { %v2643_v49 = vpop.f32.mrf.mxu0 }
  0xbc   : > { %1205 = vmatmul.bf16.gmra.mxu1 %v1795_v42  ;;  %1294 = vmatmul.bf16.gmra.mxu2 %v1799_v43  ;;  %v1843_v42 = vor.u32 %v2206_v28, %v1840_v31  ;;  %v1847_v43 = vor.u32 %v2209_v33, %v1846_v32 }
  0xbd   : > { %1383 = vmatmul.bf16.gmra.mxu3 %v1803_v46 }
  0xbe   : > { %1472 = vmatmul.bf16.gmra.mxu0 %v1807_v47 }
  0xbf   : > { %v1137_v50 = vpop.f32.mrf.mxu2 }
  0xc0   : > { %v2646_v51 = vadd.f32 %v2600_v8, %v1137_v50  ;;  %v1157_v52 = vpop.f32.mrf.mxu3 }
  0xc1   : > { %v2649_v53 = vadd.f32 %v2600_v8, %v1157_v52  ;;  %v1119_v54 = vpop.f32.mrf.mxu1 }
  0xc2   : > { %v2652_v55 = vadd.f32 %v2600_v8, %v1119_v54 }
  0xc3   : > { %v2654_v56 = vpop.f32.mrf.mxu0 }
  0xc7   : > { %v1139_v1 = vpop.f32.mrf.mxu2 }
  0xc8   : > { %v2665_v2 = vadd.f32 %v2600_v8, %v1139_v1  ;;  %v1159_v3 = vpop.f32.mrf.mxu3  ;;  %v1860_v1 = vld [vmem:[%s2432_s7 + $0x15c] sm:$0xf0] }
  0xc9   : > { %v2668_v6 = vadd.f32 %v2600_v8, %v1159_v3  ;;  %v1122_v7 = vpop.f32.mrf.mxu1  ;;  %v1866_v3 = vld [vmem:[%s2432_s7 + $0x150] sm:$0xf]  ;;  %v1863_v20 = vor.u32 %v2211_v0, %v1860_v1 }
  0xca   : > { %v2671_v11 = vadd.f32 %v2600_v8, %v1122_v7 }
  0xcb   : > { %v2673_v12 = vpop.f32.mrf.mxu0 }
  0xcc   : > { %1210 = vmatmul.bf16.gmra.mxu1 %v1815_v4  ;;  %1299 = vmatmul.bf16.gmra.mxu2 %v1819_v5  ;;  %v2214_v4 = vld [vmem:[%s2432_s7 + $0x160] sm:$0xf0] }
  0xcd   : > { %1388 = vmatmul.bf16.gmra.mxu3 %v1823_v9  ;;  %v1867_v21 = vor.u32 %v2214_v4, %v1866_v3 }
  0xce   : > { %1477 = vmatmul.bf16.gmra.mxu0 %v1827_v10  ;;  %v1855_v10 = vor.u32 %v2210_v60, %v1852_v61  ;;  %v1880_v60 = vld [vmem:[%s2432_s7 + $0x184] sm:$0xf0]  ;;  %v1886_v61 = vld [vmem:[%s2432_s7 + $0x178] sm:$0xf] }
  0xcf   : > { %v1142_v13 = vpop.f32.mrf.mxu2 }
  0xd0   : > { %v2676_v14 = vadd.f32 %v2600_v8, %v1142_v13  ;;  %v1162_v15 = vpop.f32.mrf.mxu3  ;;  %v1859_v13 = vor.u32 %v2213_v63, %v1858_v62  ;;  %v2219_v62 = vld [vmem:[%s2432_s7 + $0x188] sm:$0xf0] }
  0xd1   : > { %v2679_v16 = vadd.f32 %v2600_v8, %v1162_v15  ;;  %v1124_v17 = vpop.f32.mrf.mxu1 }
  0xd2   : > { %v2682_v18 = vadd.f32 %v2600_v8, %v1124_v17 }
  0xd3   : > { %v2684_v19 = vpop.f32.mrf.mxu0 }
  0xd7   : > { %v1144_v34 = vpop.f32.mrf.mxu2 }
  0xd8   : > { %v2695_v35 = vadd.f32 %v2600_v8, %v1144_v34  ;;  %v1164_v36 = vpop.f32.mrf.mxu3 }
  0xd9   : > { %v2698_v39 = vadd.f32 %v2600_v8, %v1164_v36  ;;  %v1127_v41 = vpop.f32.mrf.mxu1 }
  0xda   : > { %v2701_v45 = vadd.f32 %v2600_v8, %v1127_v41  ;;  %v2215_v41 = vld [vmem:[%s2432_s7 + $0x16c] sm:$0xf] }
  0xdb   : > { %v2703_v46 = vpop.f32.mrf.mxu0 }
  0xdc   : > { %1215 = vmatmul.bf16.gmra.mxu1 %v1835_v37  ;;  %1304 = vmatmul.bf16.gmra.mxu2 %v1839_v38  ;;  %v1095_v37 = vadd.f32 %v2600_v8, %v2624_v30  ;;  %v1887_v30 = vor.u32 %v2219_v62, %v1886_v61 }
  0xdd   : > { %1393 = vmatmul.bf16.gmra.mxu3 %v1843_v42  ;;  %v1872_v42 = vld [vmem:[%s2432_s7 + $0x17c] sm:$0xf0] }
  0xde   : > { %1482 = vmatmul.bf16.gmra.mxu0 %v1847_v43  ;;  %v1878_v43 = vld [vmem:[%s2432_s7 + $0x170] sm:$0xf]  ;;  %v1875_v3 = vor.u32 %v2215_v41, %v1872_v42  ;;  %v2221_v41 = vld [vmem:[%s2432_s7 + $0x19c] sm:$0xf] }
  0xdf   : > { %v1147_v47 = vpop.f32.mrf.mxu2  ;;  %v1900_v42 = vld [vmem:[%s2432_s7 + $0x1ac] sm:$0xf0] }
  0xe0   : > { %v2706_v50 = vadd.f32 %v2600_v8, %v1147_v47  ;;  %v1167_v52 = vpop.f32.mrf.mxu3  ;;  %v2218_v47 = vld [vmem:[%s2432_s7 + $0x180] sm:$0xf0] }
  0xe1   : > { %v2709_v54 = vadd.f32 %v2600_v8, %v1167_v52  ;;  %v1129_v57 = vpop.f32.mrf.mxu1  ;;  %v2216_v52 = vld [vmem:[%s2432_s7 + $0x174] sm:$0xf]  ;;  %v1879_v4 = vor.u32 %v2218_v47, %v1878_v43  ;;  %v1906_v47 = vld [vmem:[%s2432_s7 + $0x1a0] sm:$0xf] }
  0xe2   : > { %v2712_v58 = vadd.f32 %v2600_v8, %v1129_v57 }
  0xe3   : > { %v2714_v59 = vpop.f32.mrf.mxu0 }
  0xe7   : > { %v1149_v5 = vpop.f32.mrf.mxu2 }
  0xe8   : > { %v2725_v7 = vadd.f32 %v2600_v8, %v1149_v5  ;;  %v1169_v9 = vpop.f32.mrf.mxu3 }
  0xe9   : > { %v2728_v15 = vadd.f32 %v2600_v8, %v1169_v9  ;;  %v1181_v17 = vpop.f32.mrf.mxu1  ;;  %v1883_v9 = vor.u32 %v2216_v52, %v1880_v60  ;;  %v2224_v52 = vld [vmem:[%s2432_s7 + $0x1b0] sm:$0xf0] }
  0xea   : > { %v1182_v28 = vadd.f32 %v1181_v17, %v1093_v26  ;;  %v1098_v17 = vadd.f32 %v2600_v8, %v2643_v49 }
  0xeb   : > { %v1448_v24 = vpop.f32.mrf.mxu0 }
  0xec   : > { %1220 = vmatmul.bf16.gmra.mxu1 %v1855_v10  ;;  %1309 = vmatmul.bf16.gmra.mxu2 %v1859_v13 }
  0xed   : > { %1398 = vmatmul.bf16.gmra.mxu3 %v1863_v20 }
  0xee   : > { %1487 = vmatmul.bf16.gmra.mxu0 %v1867_v21 }
  0xef   : > { %v1270_v31 = vpop.f32.mrf.mxu2 }
  0xf0   : > { %v1271_v32 = vadd.f32 %v1270_v31, %v1182_v28  ;;  %v1359_v33 = vpop.f32.mrf.mxu3 }
  0xf1   : > { %v1183_v34 = vpop.f32.mrf.mxu1 }
  0xf2   : > { %v1360_v36 = vadd.f32 %v1359_v33, %v1271_v32  ;;  %v1184_v57 = vadd.f32 %v1183_v34, %v1095_v37  ;;  %v1100_v33 = vadd.f32 %v2600_v8, %v2654_v56  ;;  %v1898_v37 = vld [vmem:[%s2432_s7 + $0x198] sm:$0xf]  ;;  %v1907_v56 = vor.u32 %v2224_v52, %v1906_v47 }
  0xf3   : > { %v1450_v23 = vpop.f32.mrf.mxu0 }
  0xf4   : > { %v1449_v38 = vadd.f32 %v1448_v24, %v1360_v36  ;;  %v2220_v36 = vld [vmem:[%s2432_s7 + $0x194] sm:$0xf] }
  0xf6   : > { %1528 = vst [vmem:[%s2736_s16] sm:$0xff] %v1449_v38  ;;  %v2223_v38 = vld [vmem:[%s2432_s7 + $0x1a8] sm:$0xf0] }
  0xf7   : > { %v1272_v63 = vpop.f32.mrf.mxu2 }
  0xf8   : > { %v1273_v0 = vadd.f32 %v1272_v63, %v1184_v57  ;;  %v1361_v1 = vpop.f32.mrf.mxu3  ;;  %v1899_v63 = vor.u32 %v2223_v38, %v1898_v37  ;;  %v2229_v37 = vld [vmem:[%s2432_s7 + $0x1d8] sm:$0xf0] }
  0xf9   : > { %v1186_v5 = vpop.f32.mrf.mxu1 }
  0xfa   : > { %v1362_v10 = vadd.f32 %v1361_v1, %v1273_v0  ;;  %v1187_v21 = vadd.f32 %v1186_v5, %v1098_v17  ;;  %v1903_v1 = vor.u32 %v2221_v41, %v1900_v42  ;;  %v1103_v5 = vadd.f32 %v2600_v8, %v2673_v12 }
  0xfb   : > { %v1453_v13 = vpop.f32.mrf.mxu0 }
  0xfc   : > { %v1451_v20 = vadd.f32 %v1450_v23, %v1362_v10  ;;  %1225 = vmatmul.bf16.gmra.mxu1 %v1875_v3  ;;  %1314 = vmatmul.bf16.gmra.mxu2 %v1879_v4  ;;  %v1892_v23 = vld [vmem:[%s2432_s7 + $0x1a4] sm:$0xf0] }
  0xfd   : > { %1403 = vmatmul.bf16.gmra.mxu3 %v1883_v9  ;;  %v1895_v62 = vor.u32 %v2220_v36, %v1892_v23  ;;  %v1926_v23 = vld [vmem:[%s2432_s7 + $0x1c8] sm:$0xf] }
  0xfe   : > { %1492 = vmatmul.bf16.gmra.mxu0 %v1887_v30  ;;  %1529 = vst [vmem:[%s2736_s16 + $0x8] sm:$0xff] %v1451_v20 }
  0xff   : > { %v1275_v24 = vpop.f32.mrf.mxu2 }
 0x100   : > { %v1276_v26 = vadd.f32 %v1275_v24, %v1187_v21  ;;  %v1364_v28 = vpop.f32.mrf.mxu3  ;;  %v1105_v24 = vadd.f32 %v2600_v8, %v2684_v19  ;;  %v1927_v19 = vor.u32 %v2229_v37, %v1926_v23 }
 0x101   : > { %v1188_v49 = vpop.f32.mrf.mxu1 }
 0x102   : > { %v1365_v31 = vadd.f32 %v1364_v28, %v1276_v26  ;;  %v1189_v43 = vadd.f32 %v1188_v49, %v1100_v33  ;;  %v2225_v28 = vld [vmem:[%s2432_s7 + $0x1bc] sm:$0xf]  ;;  %v1912_v49 = vld [vmem:[%s2432_s7 + $0x1cc] sm:$0xf0]  ;;  %v2226_v33 = vld [vmem:[%s2432_s7 + $0x1c4] sm:$0xf] }
 0x103   : > { %v1455_v32 = vpop.f32.mrf.mxu0 }
 0x104   : > { %v1454_v34 = vadd.f32 %v1453_v13, %v1365_v31  ;;  %v1918_v31 = vld [vmem:[%s2432_s7 + $0x1c0] sm:$0xf] }
 0x106   : > { %1530 = vst [vmem:[%s2736_s16 + $0x10] sm:$0xff] %v1454_v34  ;;  %v1920_v34 = vld [vmem:[%s2432_s7 + $0x1d4] sm:$0xf0] }
 0x107   : > { %v1277_v57 = vpop.f32.mrf.mxu2 }
 0x108   : > { %v1278_v60 = vadd.f32 %v1277_v57, %v1189_v43  ;;  %v1366_v61 = vpop.f32.mrf.mxu3  ;;  %v1915_v43 = vor.u32 %v2225_v28, %v1912_v49  ;;  %v1923_v57 = vor.u32 %v2226_v33, %v1920_v34  ;;  %v2234_v28 = vld [vmem:[%s2432_s7 + $0x200] sm:$0xf0] }
 0x109   : > { %v1191_v0 = vpop.f32.mrf.mxu1 }
 0x10a   : > { %v1367_v3 = vadd.f32 %v1366_v61, %v1278_v60  ;;  %v1192_v30 = vadd.f32 %v1191_v0, %v1103_v5 }
 0x10b   : > { %v1458_v4 = vpop.f32.mrf.mxu0 }
 0x10c   : > { %v1456_v9 = vadd.f32 %v1455_v32, %v1367_v3  ;;  %1230 = vmatmul.bf16.gmra.mxu1 %v1895_v62  ;;  %1319 = vmatmul.bf16.gmra.mxu2 %v1899_v63  ;;  %v2228_v32 = vld [vmem:[%s2432_s7 + $0x1d0] sm:$0xf0]  ;;  %v1108_v62 = vadd.f32 %v2600_v8, %v2703_v46 }
 0x10d   : > { %1408 = vmatmul.bf16.gmra.mxu3 %v1903_v1  ;;  %v1919_v47 = vor.u32 %v2228_v32, %v1918_v31 }
 0x10e   : > { %1497 = vmatmul.bf16.gmra.mxu0 %v1907_v56  ;;  %1531 = vst [vmem:[%s2736_s16 + $0x18] sm:$0xff] %v1456_v9  ;;  %v1110_v9 = vadd.f32 %v2600_v8, %v2714_v59 }
 0x10f   : > { %v1280_v10 = vpop.f32.mrf.mxu2 }
 0x110   : > { %v1281_v13 = vadd.f32 %v1280_v10, %v1192_v30  ;;  %v1369_v17 = vpop.f32.mrf.mxu3  ;;  %v2230_v10 = vld [vmem:[%s2432_s7 + $0x1e4] sm:$0xf] }
 0x111   : > { %v1193_v12 = vpop.f32.mrf.mxu1 }
 0x112   : > { %v1370_v20 = vadd.f32 %v1369_v17, %v1281_v13  ;;  %v1194_v36 = vadd.f32 %v1193_v12, %v1105_v24  ;;  %v1932_v13 = vld [vmem:[%s2432_s7 + $0x1f4] sm:$0xf0]  ;;  %v1938_v17 = vld [vmem:[%s2432_s7 + $0x1e8] sm:$0xf]  ;;  %v2233_v12 = vld [vmem:[%s2432_s7 + $0x1f8] sm:$0xf0] }
 0x113   : > { %v1460_v21 = vpop.f32.mrf.mxu0  ;;  %v1935_v33 = vor.u32 %v2230_v10, %v1932_v13  ;;  %v1939_v34 = vor.u32 %v2233_v12, %v1938_v17 }
 0x114   : > { %v1459_v26 = vadd.f32 %v1458_v4, %v1370_v20  ;;  %v2231_v20 = vld [vmem:[%s2432_s7 + $0x1ec] sm:$0xf] }
 0x116   : > { %1532 = vst [vmem:[%s2736_s16 + $0x20] sm:$0xff] %v1459_v26  ;;  %v1946_v26 = vld [vmem:[%s2432_s7 + $0x1f0] sm:$0xf] }
 0x117   : > { %v1282_v38 = vpop.f32.mrf.mxu2  ;;  %v1947_v8 = vor.u32 %v2234_v28, %v1946_v26 }
 0x118   : > { %v1283_v41 = vadd.f32 %v1282_v38, %v1194_v36  ;;  %v1371_v42 = vpop.f32.mrf.mxu3 }
 0x119   : > { %v1196_v52 = vpop.f32.mrf.mxu1 }
 0x11a   : > { %v1372_v60 = vadd.f32 %v1371_v42, %v1283_v41  ;;  %v1197_v0 = vadd.f32 %v1196_v52, %v1108_v62  ;;  %v1952_v62 = vld [vmem:[%s2432_s7 + $0x21c] sm:$0xf0] }
 0x11b   : > { %v1463_v61 = vpop.f32.mrf.mxu0 }
 0x11c   : > { %v1461_v63 = vadd.f32 %v1460_v21, %v1372_v60  ;;  %1235 = vmatmul.bf16.gmra.mxu1 %v1915_v43  ;;  %1324 = vmatmul.bf16.gmra.mxu2 %v1919_v47  ;;  %v1940_v21 = vld [vmem:[%s2432_s7 + $0x1fc] sm:$0xf0] }
 0x11d   : > { %1413 = vmatmul.bf16.gmra.mxu3 %v1923_v57  ;;  %v1943_v23 = vor.u32 %v2231_v20, %v1940_v21 }
 0x11e   : > { %1502 = vmatmul.bf16.gmra.mxu0 %v1927_v19  ;;  %1533 = vst [vmem:[%s2736_s16 + $0x28] sm:$0xff] %v1461_v63  ;;  %v1958_v63 = vld [vmem:[%s2432_s7 + $0x210] sm:$0xf] }
 0x11f   : > { %v1285_v1 = vpop.f32.mrf.mxu2 }
 0x120   : > { %v1286_v56 = vadd.f32 %v1285_v1, %v1197_v0  ;;  %v1374_v3 = vpop.f32.mrf.mxu3  ;;  %v2238_v0 = vld [vmem:[%s2432_s7 + $0x220] sm:$0xf0]  ;;  %v2236_v1 = vld [vmem:[%s2432_s7 + $0x214] sm:$0xf] }
 0x121   : > { %v1198_v46 = vpop.f32.mrf.mxu1  ;;  %v1959_v10 = vor.u32 %v2238_v0, %v1958_v63 }
 0x122   : > { %v1375_v4 = vadd.f32 %v1374_v3, %v1286_v56  ;;  %v1199_v24 = vadd.f32 %v1198_v46, %v1110_v9  ;;  %v1960_v56 = vld [vmem:[%s2432_s7 + $0x224] sm:$0xf0]  ;;  %v1966_v46 = vld [vmem:[%s2432_s7 + $0x218] sm:$0xf] }
 0x123   : > { %v1465_v5 = vpop.f32.mrf.mxu0  ;;  %v1963_v17 = vor.u32 %v2236_v1, %v1960_v56 }
 0x124   : > { %v1464_v30 = vadd.f32 %v1463_v61, %v1375_v4  ;;  %v2235_v61 = vld [vmem:[%s2432_s7 + $0x20c] sm:$0xf] }
 0x126   : > { %1534 = vst [vmem:[%s2736_s16 + $0x30] sm:$0xff] %v1464_v30  ;;  %v1955_v30 = vor.u32 %v2235_v61, %v1952_v62 }
 0x127   : > { %v1287_v49 = vpop.f32.mrf.mxu2 }
 0x128   : > { %v1288_v31 = vadd.f32 %v1287_v49, %v1199_v24  ;;  %v1376_v32 = vpop.f32.mrf.mxu3 }
 0x129   : > { %v1201_v36 = vpop.f32.mrf.mxu1 }
 0x12a   : > { %v1377_v59 = vadd.f32 %v1376_v32, %v1288_v31  ;;  %v1202_v41 = vadd.f32 %v1201_v36, %v2611_v22  ;;  %v2239_v22 = vld [vmem:[%s2432_s7 + $0x228] sm:$0xf0]  ;;  %v2240_v36 = vld [vmem:[%s2432_s7 + $0x234] sm:$0xf] }
 0x12b   : > { %v1468_v37 = vpop.f32.mrf.mxu0  ;;  %v1967_v12 = vor.u32 %v2239_v22, %v1966_v46 }
 0x12c   : > { %v1466_v38 = vadd.f32 %v1465_v5, %v1377_v59  ;;  %1240 = vmatmul.bf16.gmra.mxu1 %v1935_v33  ;;  %1329 = vmatmul.bf16.gmra.mxu2 %v1939_v34  ;;  %v2243_v59 = vld [vmem:[%s2432_s7 + $0x248] sm:$0xf0] }
 0x12d   : > { %1418 = vmatmul.bf16.gmra.mxu3 %v1943_v23  ;;  %v1972_v23 = vld [vmem:[%s2432_s7 + $0x244] sm:$0xf0] }
 0x12e   : > { %1507 = vmatmul.bf16.gmra.mxu0 %v1947_v8  ;;  %1535 = vst [vmem:[%s2736_s16 + $0x38] sm:$0xff] %v1466_v38  ;;  %v1978_v8 = vld [vmem:[%s2432_s7 + $0x238] sm:$0xf]  ;;  %v1980_v38 = vld [vmem:[%s2432_s7 + $0x24c] sm:$0xf0] }
 0x12f   : > { %v1290_v42 = vpop.f32.mrf.mxu2 }
 0x130   : > { %v1291_v43 = vadd.f32 %v1290_v42, %v1202_v41  ;;  %v1379_v47 = vpop.f32.mrf.mxu3  ;;  %v1986_v42 = vld [vmem:[%s2432_s7 + $0x240] sm:$0xf] }
 0x131   : > { %v1203_v52 = vpop.f32.mrf.mxu1 }
 0x132   : > { %v1380_v57 = vadd.f32 %v1379_v47, %v1291_v43  ;;  %v1204_v3 = vadd.f32 %v1203_v52, %v2622_v29 }
 0x133   : > { %v1470_v19 = vpop.f32.mrf.mxu0 }
 0x134   : > { %v1469_v60 = vadd.f32 %v1468_v37, %v1380_v57  ;;  %v2241_v37 = vld [vmem:[%s2432_s7 + $0x23c] sm:$0xf]  ;;  %v1975_v57 = vor.u32 %v2240_v36, %v1972_v23 }
 0x135   : > { %v1983_v61 = vor.u32 %v2241_v37, %v1980_v38 }
 0x136   : > { %1536 = vst [vmem:[%s2736_s16 + $0x40] sm:$0xff] %v1469_v60 }
 0x137   : > { %v1292_v4 = vpop.f32.mrf.mxu2 }
 0x138   : > { %v1293_v5 = vadd.f32 %v1292_v4, %v1204_v3  ;;  %v1381_v9 = vpop.f32.mrf.mxu3 }
 0x139   : > { %v1206_v13 = vpop.f32.mrf.mxu1 }
 0x13a   : > { %v1382_v20 = vadd.f32 %v1381_v9, %v1293_v5  ;;  %v1207_v29 = vadd.f32 %v1206_v13, %v2641_v48  ;;  %v2244_v48 = vld [vmem:[%s2432_s7 + $0x250] sm:$0xf0]  ;;  %v1998_v13 = vld [vmem:[%s2432_s7 + $0x260] sm:$0xf] }
 0x13b   : > { %v1473_v21 = vpop.f32.mrf.mxu0  ;;  %v1987_v62 = vor.u32 %v2244_v48, %v1986_v42 }
 0x13c   : > { %v1471_v24 = vadd.f32 %v1470_v19, %v1382_v20  ;;  %1245 = vmatmul.bf16.gmra.mxu1 %v1955_v30  ;;  %1334 = vmatmul.bf16.gmra.mxu2 %v1959_v10  ;;  %v1979_v19 = vor.u32 %v2243_v59, %v1978_v8  ;;  %v2245_v30 = vld [vmem:[%s2432_s7 + $0x25c] sm:$0xf]  ;;  %v1992_v10 = vld [vmem:[%s2432_s7 + $0x26c] sm:$0xf0]  ;;  %v2000_v20 = vld [vmem:[%s2432_s7 + $0x274] sm:$0xf0] }
 0x13d   : > { %1423 = vmatmul.bf16.gmra.mxu3 %v1963_v17  ;;  %v2248_v17 = vld [vmem:[%s2432_s7 + $0x270] sm:$0xf0] }
 0x13e   : > { %1512 = vmatmul.bf16.gmra.mxu0 %v1967_v12  ;;  %1537 = vst [vmem:[%s2736_s16 + $0x48] sm:$0xff] %v1471_v24  ;;  %v2246_v12 = vld [vmem:[%s2432_s7 + $0x264] sm:$0xf]  ;;  %v2006_v24 = vld [vmem:[%s2432_s7 + $0x268] sm:$0xf] }
 0x13f   : > { %v1295_v26 = vpop.f32.mrf.mxu2 }
 0x140   : > { %v1296_v28 = vadd.f32 %v1295_v26, %v1207_v29  ;;  %v1384_v49 = vpop.f32.mrf.mxu3 }
 0x141   : > { %v1208_v31 = vpop.f32.mrf.mxu1 }
 0x142   : > { %v1385_v32 = vadd.f32 %v1384_v49, %v1296_v28  ;;  %v1209_v41 = vadd.f32 %v1208_v31, %v2652_v55  ;;  %v1995_v49 = vor.u32 %v2245_v30, %v1992_v10  ;;  %v1999_v31 = vor.u32 %v2248_v17, %v1998_v13 }
 0x143   : > { %v1475_v33 = vpop.f32.mrf.mxu0 }
 0x144   : > { %v1474_v34 = vadd.f32 %v1473_v21, %v1385_v32 }
 0x146   : > { %1538 = vst [vmem:[%s2736_s16 + $0x50] sm:$0xff] %v1474_v34 }
 0x147   : > { %v1297_v43 = vpop.f32.mrf.mxu2 }
 0x148   : > { %v1298_v47 = vadd.f32 %v1297_v43, %v1209_v41  ;;  %v1386_v52 = vpop.f32.mrf.mxu3 }
 0x149   : > { %v1211_v60 = vpop.f32.mrf.mxu1 }
 0x14a   : > { %v1387_v63 = vadd.f32 %v1386_v52, %v1298_v47  ;;  %v1212_v55 = vadd.f32 %v1211_v60, %v2671_v11  ;;  %v2249_v11 = vld [vmem:[%s2432_s7 + $0x278] sm:$0xf0] }
 0x14b   : > { %v1478_v0 = vpop.f32.mrf.mxu0  ;;  %v2007_v34 = vor.u32 %v2249_v11, %v2006_v24 }
 0x14c   : > { %v1476_v1 = vadd.f32 %v1475_v33, %v1387_v63  ;;  %1250 = vmatmul.bf16.gmra.mxu1 %v1975_v57  ;;  %1339 = vmatmul.bf16.gmra.mxu2 %v1979_v19  ;;  %v2003_v33 = vor.u32 %v2246_v12, %v2000_v20 }
 0x14d   : > { %1428 = vmatmul.bf16.gmra.mxu3 %v1983_v61 }
 0x14e   : > { %1517 = vmatmul.bf16.gmra.mxu0 %v1987_v62  ;;  %1539 = vst [vmem:[%s2736_s16 + $0x58] sm:$0xff] %v1476_v1 }
 0x14f   : > { %v1300_v56 = vpop.f32.mrf.mxu2 }
 0x150   : > { %v1301_v3 = vadd.f32 %v1300_v56, %v1212_v55  ;;  %v1389_v46 = vpop.f32.mrf.mxu3 }
 0x151   : > { %v1213_v22 = vpop.f32.mrf.mxu1 }
 0x152   : > { %v1390_v4 = vadd.f32 %v1389_v46, %v1301_v3  ;;  %v1214_v21 = vadd.f32 %v1213_v22, %v2682_v18 }
 0x153   : > { %v1480_v5 = vpop.f32.mrf.mxu0 }
 0x154   : > { %v1479_v9 = vadd.f32 %v1478_v0, %v1390_v4 }
 0x156   : > { %1540 = vst [vmem:[%s2736_s16 + $0x60] sm:$0xff] %v1479_v9 }
 0x157   : > { %v1302_v29 = vpop.f32.mrf.mxu2 }
 0x158   : > { %v1303_v26 = vadd.f32 %v1302_v29, %v1214_v21  ;;  %v1391_v28 = vpop.f32.mrf.mxu3 }
 0x159   : > { %v1216_v32 = vpop.f32.mrf.mxu1 }
 0x15a   : > { %v1392_v36 = vadd.f32 %v1391_v28, %v1303_v26  ;;  %v1217_v18 = vadd.f32 %v1216_v32, %v2701_v45 }
 0x15b   : > { %v1483_v23 = vpop.f32.mrf.mxu0 }
 0x15c   : > { %v1481_v8 = vadd.f32 %v1480_v5, %v1392_v36  ;;  %1255 = vmatmul.bf16.gmra.mxu1 %v1995_v49  ;;  %1344 = vmatmul.bf16.gmra.mxu2 %v1999_v31 }
 0x15d   : > { %1433 = vmatmul.bf16.gmra.mxu3 %v2003_v33 }
 0x15e   : > { %1522 = vmatmul.bf16.gmra.mxu0 %v2007_v34  ;;  %1541 = vst [vmem:[%s2736_s16 + $0x68] sm:$0xff] %v1481_v8 }
 0x15f   : > { %v1305_v59 = vpop.f32.mrf.mxu2 }
 0x160   : > { %v1306_v37 = vadd.f32 %v1305_v59, %v1217_v18  ;;  %v1394_v38 = vpop.f32.mrf.mxu3 }
 0x161   : > { %v1218_v41 = vpop.f32.mrf.mxu1 }
 0x162   : > { %v1395_v42 = vadd.f32 %v1394_v38, %v1306_v37  ;;  %v1219_v47 = vadd.f32 %v1218_v41, %v2712_v58 }
 0x163   : > { %v1485_v48 = vpop.f32.mrf.mxu0 }
 0x164   : > { %v1484_v43 = vadd.f32 %v1483_v23, %v1395_v42 }
 0x166   : > { %1542 = vst [vmem:[%s2736_s16 + $0x70] sm:$0xff] %v1484_v43 }
 0x167   : > { %v1307_v52 = vpop.f32.mrf.mxu2 }
 0x168   : > { %v1308_v57 = vadd.f32 %v1307_v52, %v1219_v47  ;;  %v1396_v19 = vpop.f32.mrf.mxu3 }
 0x169   : > { %v1221_v60 = vpop.f32.mrf.mxu1 }
 0x16a   : > { %v1397_v61 = vadd.f32 %v1396_v19, %v1308_v57  ;;  %v1222_v45 = vadd.f32 %v1221_v60, %v2616_v25 }
 0x16b   : > { %v1488_v62 = vpop.f32.mrf.mxu0 }
 0x16c   : > { %v1486_v63 = vadd.f32 %v1485_v48, %v1397_v61 }
 0x16e   : > { %1543 = vst [vmem:[%s2736_s16 + $0x78] sm:$0xff] %v1486_v63 }
 0x16f   : > { %v1310_v0 = vpop.f32.mrf.mxu2 }
 0x170   : > { %v1311_v1 = vadd.f32 %v1310_v0, %v1222_v45  ;;  %v1399_v55 = vpop.f32.mrf.mxu3 }
 0x171   : > { %v1223_v56 = vpop.f32.mrf.mxu1 }
 0x172   : > { %v1400_v3 = vadd.f32 %v1399_v55, %v1311_v1  ;;  %v1224_v58 = vadd.f32 %v1223_v56, %v2635_v40 }
 0x173   : > { %v1490_v46 = vpop.f32.mrf.mxu0 }
 0x174   : > { %v1489_v22 = vadd.f32 %v1488_v62, %v1400_v3 }
 0x176   : > { %1544 = vst [vmem:[%s2736_s16 + $0x80] sm:$0xff] %v1489_v22 }
 0x177   : > { %v1312_v4 = vpop.f32.mrf.mxu2 }
 0x178   : > { %v1313_v5 = vadd.f32 %v1312_v4, %v1224_v58  ;;  %v1401_v9 = vpop.f32.mrf.mxu3 }
 0x179   : > { %v1226_v30 = vpop.f32.mrf.mxu1 }
 0x17a   : > { %v1402_v10 = vadd.f32 %v1401_v9, %v1313_v5  ;;  %v1227_v25 = vadd.f32 %v1226_v30, %v2646_v51 }
 0x17b   : > { %v1493_v13 = vpop.f32.mrf.mxu0 }
 0x17c   : > { %v1491_v17 = vadd.f32 %v1490_v46, %v1402_v10 }
 0x17e   : > { %1545 = vst [vmem:[%s2736_s16 + $0x88] sm:$0xff] %v1491_v17 }
 0x17f   : > { %v1315_v12 = vpop.f32.mrf.mxu2 }
 0x180   : > { %v1316_v20 = vadd.f32 %v1315_v12, %v1227_v25  ;;  %v1404_v21 = vpop.f32.mrf.mxu3 }
 0x181   : > { %v1228_v24 = vpop.f32.mrf.mxu1 }
 0x182   : > { %v1405_v11 = vadd.f32 %v1404_v21, %v1316_v20  ;;  %v1229_v40 = vadd.f32 %v1228_v24, %v2665_v2 }
 0x183   : > { %v1495_v29 = vpop.f32.mrf.mxu0 }
 0x184   : > { %v1494_v26 = vadd.f32 %v1493_v13, %v1405_v11 }
 0x186   : > { %1546 = vst [vmem:[%s2736_s16 + $0x90] sm:$0xff] %v1494_v26 }
 0x187   : > { %v1317_v28 = vpop.f32.mrf.mxu2 }
 0x188   : > { %v1318_v49 = vadd.f32 %v1317_v28, %v1229_v40  ;;  %v1406_v31 = vpop.f32.mrf.mxu3 }
 0x189   : > { %v1231_v32 = vpop.f32.mrf.mxu1 }
 0x18a   : > { %v1407_v33 = vadd.f32 %v1406_v31, %v1318_v49  ;;  %v1232_v51 = vadd.f32 %v1231_v32, %v2676_v14 }
 0x18b   : > { %v1498_v34 = vpop.f32.mrf.mxu0 }
 0x18c   : > { %v1496_v36 = vadd.f32 %v1495_v29, %v1407_v33 }
 0x18e   : > { %1547 = vst [vmem:[%s2736_s16 + $0x98] sm:$0xff] %v1496_v36 }
 0x18f   : > { %v1320_v23 = vpop.f32.mrf.mxu2 }
 0x190   : > { %v1321_v8 = vadd.f32 %v1320_v23, %v1232_v51  ;;  %v1409_v18 = vpop.f32.mrf.mxu3 }
 0x191   : > { %v1233_v59 = vpop.f32.mrf.mxu1 }
 0x192   : > { %v1410_v37 = vadd.f32 %v1409_v18, %v1321_v8  ;;  %v1234_v2 = vadd.f32 %v1233_v59, %v2695_v35 }
 0x193   : > { %v1500_v38 = vpop.f32.mrf.mxu0 }
 0x194   : > { %v1499_v41 = vadd.f32 %v1498_v34, %v1410_v37 }
 0x196   : > { %1548 = vst [vmem:[%s2736_s16 + $0xa0] sm:$0xff] %v1499_v41 }
 0x197   : > { %v1322_v42 = vpop.f32.mrf.mxu2 }
 0x198   : > { %v1323_v48 = vadd.f32 %v1322_v42, %v1234_v2  ;;  %v1411_v43 = vpop.f32.mrf.mxu3 }
 0x199   : > { %v1236_v47 = vpop.f32.mrf.mxu1 }
 0x19a   : > { %v1412_v52 = vadd.f32 %v1411_v43, %v1323_v48  ;;  %v1237_v14 = vadd.f32 %v1236_v47, %v2706_v50 }
 0x19b   : > { %v1503_v57 = vpop.f32.mrf.mxu0 }
 0x19c   : > { %v1501_v19 = vadd.f32 %v1500_v38, %v1412_v52 }
 0x19e   : > { %1549 = vst [vmem:[%s2736_s16 + $0xa8] sm:$0xff] %v1501_v19 }
 0x19f   : > { %v1325_v60 = vpop.f32.mrf.mxu2 }
 0x1a0   : > { %v1326_v61 = vadd.f32 %v1325_v60, %v1237_v14  ;;  %v1414_v62 = vpop.f32.mrf.mxu3 }
 0x1a1   : > { %v1238_v63 = vpop.f32.mrf.mxu1 }
 0x1a2   : > { %v1415_v45 = vadd.f32 %v1414_v62, %v1326_v61  ;;  %v1239_v35 = vadd.f32 %v1238_v63, %v2725_v7 }
 0x1a3   : > { %v1505_v0 = vpop.f32.mrf.mxu0 }
 0x1a4   : > { %v1504_v1 = vadd.f32 %v1503_v57, %v1415_v45 }
 0x1a6   : > { %1550 = vst [vmem:[%s2736_s16 + $0xb0] sm:$0xff] %v1504_v1 }
 0x1a7   : > { %v1327_v55 = vpop.f32.mrf.mxu2 }
 0x1a8   : > { %v1328_v56 = vadd.f32 %v1327_v55, %v1239_v35  ;;  %v1416_v3 = vpop.f32.mrf.mxu3 }
 0x1a9   : > { %v1241_v46 = vpop.f32.mrf.mxu1 }
 0x1aa   : > { %v1417_v22 = vadd.f32 %v1416_v3, %v1328_v56  ;;  %v1242_v50 = vadd.f32 %v1241_v46, %v2619_v27 }
 0x1ab   : > { %v1508_v58 = vpop.f32.mrf.mxu0 }
 0x1ac   : > { %v1506_v4 = vadd.f32 %v1505_v0, %v1417_v22 }
 0x1ae   : > { %1551 = vst [vmem:[%s2736_s16 + $0xb8] sm:$0xff] %v1506_v4 }
 0x1af   : > { %v1330_v5 = vpop.f32.mrf.mxu2 }
 0x1b0   : > { %v1331_v9 = vadd.f32 %v1330_v5, %v1242_v50  ;;  %v1419_v30 = vpop.f32.mrf.mxu3 }
 0x1b1   : > { %v1243_v10 = vpop.f32.mrf.mxu1 }
 0x1b2   : > { %v1420_v13 = vadd.f32 %v1419_v30, %v1331_v9  ;;  %v1244_v7 = vadd.f32 %v1243_v10, %v2638_v44 }
 0x1b3   : > { %v1510_v17 = vpop.f32.mrf.mxu0 }
 0x1b4   : > { %v1509_v25 = vadd.f32 %v1508_v58, %v1420_v13 }
 0x1b6   : > { %1552 = vst [vmem:[%s2736_s16 + $0xc0] sm:$0xff] %v1509_v25 }
 0x1b7   : > { %v1332_v12 = vpop.f32.mrf.mxu2 }
 0x1b8   : > { %v1333_v20 = vadd.f32 %v1332_v12, %v1244_v7  ;;  %v1421_v21 = vpop.f32.mrf.mxu3 }
 0x1b9   : > { %v1246_v24 = vpop.f32.mrf.mxu1 }
 0x1ba   : > { %v1422_v11 = vadd.f32 %v1421_v21, %v1333_v20  ;;  %v1247_v27 = vadd.f32 %v1246_v24, %v2649_v53 }
 0x1bb   : > { %v1513_v29 = vpop.f32.mrf.mxu0 }
 0x1bc   : > { %v1511_v26 = vadd.f32 %v1510_v17, %v1422_v11 }
 0x1be   : > { %1553 = vst [vmem:[%s2736_s16 + $0xc8] sm:$0xff] %v1511_v26 }
 0x1bf   : > { %v1335_v40 = vpop.f32.mrf.mxu2 }
 0x1c0   : > { %v1336_v28 = vadd.f32 %v1335_v40, %v1247_v27  ;;  %v1424_v49 = vpop.f32.mrf.mxu3 }
 0x1c1   : > { %v1248_v31 = vpop.f32.mrf.mxu1 }
 0x1c2   : > { %v1425_v32 = vadd.f32 %v1424_v49, %v1336_v28  ;;  %v1249_v44 = vadd.f32 %v1248_v31, %v2668_v6 }
 0x1c3   : > { %v1515_v33 = vpop.f32.mrf.mxu0 }
 0x1c4   : > { %v1514_v34 = vadd.f32 %v1513_v29, %v1425_v32 }
 0x1c6   : > { %1554 = vst [vmem:[%s2736_s16 + $0xd0] sm:$0xff] %v1514_v34 }
 0x1c7   : > { %v1337_v36 = vpop.f32.mrf.mxu2 }
 0x1c8   : > { %v1338_v51 = vadd.f32 %v1337_v36, %v1249_v44  ;;  %v1426_v23 = vpop.f32.mrf.mxu3 }
 0x1c9   : > { %v1251_v8 = vpop.f32.mrf.mxu1 }
 0x1ca   : > { %v1427_v18 = vadd.f32 %v1426_v23, %v1338_v51  ;;  %v1252_v53 = vadd.f32 %v1251_v8, %v2679_v16 }
 0x1cb   : > { %v1518_v37 = vpop.f32.mrf.mxu0 }
 0x1cc   : > { %v1516_v59 = vadd.f32 %v1515_v33, %v1427_v18 }
 0x1ce   : > { %1555 = vst [vmem:[%s2736_s16 + $0xd8] sm:$0xff] %v1516_v59 }
 0x1cf   : > { %v1340_v38 = vpop.f32.mrf.mxu2 }
 0x1d0   : > { %v1341_v41 = vadd.f32 %v1340_v38, %v1252_v53  ;;  %v1429_v2 = vpop.f32.mrf.mxu3 }
 0x1d1   : > { %v1253_v42 = vpop.f32.mrf.mxu1 }
 0x1d2   : > { %v1430_v48 = vadd.f32 %v1429_v2, %v1341_v41  ;;  %v1254_v6 = vadd.f32 %v1253_v42, %v2698_v39 }
 0x1d3   : > { %v1520_v47 = vpop.f32.mrf.mxu0 }
 0x1d4   : > { %v1519_v43 = vadd.f32 %v1518_v37, %v1430_v48 }
 0x1d6   : > { %1556 = vst [vmem:[%s2736_s16 + $0xe0] sm:$0xff] %v1519_v43 }
 0x1d7   : > { %v1342_v52 = vpop.f32.mrf.mxu2 }
 0x1d8   : > { %v1343_v57 = vadd.f32 %v1342_v52, %v1254_v6  ;;  %v1431_v19 = vpop.f32.mrf.mxu3 }
 0x1d9   : > { %v1256_v14 = vpop.f32.mrf.mxu1 }
 0x1da   : > { %v1432_v60 = vadd.f32 %v1431_v19, %v1343_v57  ;;  %v1257_v16 = vadd.f32 %v1256_v14, %v2709_v54 }
 0x1db   : > { %v1523_v0 = vpop.f32.mrf.mxu0 }
 0x1dc   : > { %v1521_v61 = vadd.f32 %v1520_v47, %v1432_v60 }
 0x1de   : > { %1557 = vst [vmem:[%s2736_s16 + $0xe8] sm:$0xff] %v1521_v61 }
 0x1df   : > { %v1345_v62 = vpop.f32.mrf.mxu2 }
 0x1e0   : > { %v1346_v63 = vadd.f32 %v1345_v62, %v1257_v16  ;;  %v1434_v45 = vpop.f32.mrf.mxu3 }
 0x1e1   : > { %v1258_v35 = vpop.f32.mrf.mxu1 }
 0x1e2   : > { %v1435_v1 = vadd.f32 %v1434_v45, %v1346_v63  ;;  %v1259_v39 = vadd.f32 %v1258_v35, %v2728_v15 }
 0x1e3   : > { %v1525_v58 = vpop.f32.mrf.mxu0 }
 0x1e4   : > { %v1524_v55 = vadd.f32 %v1523_v0, %v1435_v1 }
 0x1e6   : > { %1558 = vst [vmem:[%s2736_s16 + $0xf0] sm:$0xff] %v1524_v55 }
 0x1e7   : > { %v1347_v56 = vpop.f32.mrf.mxu2 }
 0x1e8   : > { %v1348_v3 = vadd.f32 %v1347_v56, %v1259_v39  ;;  %v1436_v46 = vpop.f32.mrf.mxu3 }
 0x1ea   : > { %v1437_v22 = vadd.f32 %v1436_v46, %v1348_v3 }
 0x1ec   : > { %v1526_v4 = vadd.f32 %v1525_v58, %v1437_v22 }
 0x1ee   : > { %1559 = vst [vmem:[%s2736_s16 + $0xf8] sm:$0xff] %v1526_v4 }
 0x1ef PF: > { %s13_s14 = sadd.s32 1, %s2362_s14   ;;  %s2877_s12 = smov %s2358_s13 }
 0x1f0   : > { %p10_p5 = scmp.ge.s32.totalorder %s13_s14, 4   ;;  %s2878_s13 = smov %s2880_s15 }
 0x1f2   :  { %12 = sbr.rel (!%p10_p5) target bundleno = 2 (0x2), region = 68 }

</bundles_post_ra>
